<compile_context>
chip_gen: v5e
topology: v5e:2x2
jax: 0.10.0
libtpu: 0.0.40
codegen_flags: <defaults>
</compile_context>

<pallas_src>
import functools

import numpy as np
import jax
import jax.numpy as jnp
from jax import lax
from jax.experimental import pallas as pl
from jax.experimental.pallas import tpu as pltpu

# ---- small-but-structurally-faithful hyper-parameters (real: D=768, H=12, 12 layers) ----
B = 2            # batch
T = 64           # time frames
F = 16           # mel bins
PT, PF = 4, 4    # patch size (time, freq)
L = (T // PT) * (F // PF)   # 64 tokens
D = 128          # embed dim (lane-dense: multiple of 128)
H = 4            # attention heads
DH = D // H      # head dim
FFN = 4 * D      # feed-forward hidden dim
LAYERS = 2       # encoder layers
POOL = 8         # AvgPool1d(8, 8) over the token axis (self.feat_mean)
LN_EPS = 1e-5
MXU_DTYPE = jnp.bfloat16   # MXU operand dtype (f32 accumulation everywhere)

# TODO(synk): at production dims (D=768, FFN=3072) tile the FFN weight K/N in the
# BlockSpecs and set pltpu.CompilerParams(vmem_limit_bytes=...) explicitly
# (v7x: 64 MiB physical VMEM; v5e: 16 MiB default scoped limit).


# ------------------------------ kernel helpers ------------------------------

def _ln(x, g, b):
    """LayerNorm over the last dim, f32 math (g, b are (1, D))."""
    mu = jnp.mean(x, axis=-1, keepdims=True)
    var = jnp.mean(jnp.square(x - mu), axis=-1, keepdims=True)
    return (x - mu) * lax.rsqrt(var + LN_EPS) * g + b


def _pool_matrix(n_out, n_in, pool):
    """(n_out, n_in) f32 averaging matrix built in-kernel from iotas."""
    row = lax.broadcasted_iota(jnp.int32, (n_out, n_in), 0)
    col = lax.broadcasted_iota(jnp.int32, (n_out, n_in), 1)
    sel = (col >= row * pool) & (col < row * pool + pool)
    return jnp.where(sel, jnp.float32(1.0 / pool), jnp.float32(0.0))


# ------------------------------ Pallas kernels ------------------------------

def _embed_kernel(p_ref, w_ref, b_ref, pos_ref, g_ref, beta_ref, feat_ref, x_ref):
    """patch-embed linear + pos-embed add + encoder LayerNorm, fused per batch."""
    patches = p_ref[...]                                     # (L, PT*PF) f32
    w = w_ref[...]                                           # (PT*PF, D) bf16
    feat = jnp.dot(patches.astype(w.dtype), w,
                   preferred_element_type=jnp.float32) + b_ref[...]
    feat_ref[...] = feat.astype(feat_ref.dtype)
    x = feat + pos_ref[...]
    x_ref[...] = _ln(x, g_ref[...], beta_ref[...]).astype(x_ref.dtype)


def _layer_kernel(x_ref, wqkv_ref, bqkv_ref, wo_ref, bo_ref,
                  ln1g_ref, ln1b_ref, w1_ref, b1_ref, w2_ref, b2_ref,
                  ln2g_ref, ln2b_ref, o_ref, *, pool):
    """One full post-LN transformer encoder layer per batch (optionally + AvgPool)."""
    x = x_ref[...]                                           # (L, D) f32
    wqkv = wqkv_ref[...]                                     # (D, 3D) bf16
    qkv = jnp.dot(x.astype(wqkv.dtype), wqkv,
                  preferred_element_type=jnp.float32) + bqkv_ref[...]   # (L, 3D) f32
    wo = wo_ref[...]                                         # (D, D) bf16
    scale = 1.0 / float(np.sqrt(DH))

    # per-head attention, heads statically unrolled; the concat over heads is
    # folded into the output projection: attn @ Wo == sum_h o_h @ Wo[h*DH:(h+1)*DH].
    attn_proj = jnp.zeros((L, D), jnp.float32)
    for h in range(H):
        # scale folded into q (L,DH) instead of scaling the (L,L) score tile.
        q = qkv[:, h * DH:(h + 1) * DH] * scale
        k = qkv[:, D + h * DH: D + (h + 1) * DH]
        v = qkv[:, 2 * D + h * DH: 2 * D + (h + 1) * DH]
        s = lax.dot_general(q.astype(MXU_DTYPE), k.astype(MXU_DTYPE),
                            (((1,), (1,)), ((), ())),
                            preferred_element_type=jnp.float32)          # (L, L)
        m = jnp.max(s, axis=-1, keepdims=True)
        p = jnp.exp(s - m)
        denom = jnp.sum(p, axis=-1, keepdims=True)
        p = p * pl.reciprocal(denom, approx=True)            # EUP, not VALU divide
        o_h = jnp.dot(p.astype(MXU_DTYPE), v.astype(MXU_DTYPE),
                      preferred_element_type=jnp.float32)    # (L, DH)
        attn_proj = attn_proj + jnp.dot(o_h.astype(MXU_DTYPE),
                                        wo[h * DH:(h + 1) * DH, :],
                                        preferred_element_type=jnp.float32)

    # residual + post-LN (self-attention block)
    y = _ln(x + attn_proj + bo_ref[...], ln1g_ref[...], ln1b_ref[...])

    # feed-forward block
    w1 = w1_ref[...]                                         # (D, FFN) bf16
    hidden = jnp.dot(y.astype(w1.dtype), w1,
                     preferred_element_type=jnp.float32) + b1_ref[...]
    # TODO(synk): PyTorch nn.GELU default is the exact erf form; tanh approximation used.
    hidden = jax.nn.gelu(hidden, approximate=True)
    w2 = w2_ref[...]                                         # (FFN, D) bf16
    z = jnp.dot(hidden.astype(w2.dtype), w2,
                preferred_element_type=jnp.float32) + b2_ref[...]
    z = _ln(y + z, ln2g_ref[...], ln2b_ref[...])             # residual + post-LN

    if pool:
        # AvgPool1d(pool, pool) over the token axis fused into the epilogue.
        pmat = _pool_matrix(L // pool, L, pool)
        o_ref[...] = jnp.dot(pmat, z,
                             preferred_element_type=jnp.float32).astype(o_ref.dtype)
    else:
        o_ref[...] = z.astype(o_ref.dtype)


def _pool_kernel(x_ref, o_ref, *, pool):
    """Standalone AvgPool1d(pool, pool) over tokens (only used for ret_conv=True)."""
    x = x_ref[...]
    pmat = _pool_matrix(x.shape[0] // pool, x.shape[0], pool)
    o_ref[...] = jnp.dot(pmat, x, preferred_element_type=jnp.float32).astype(o_ref.dtype)


# ------------------------------ pallas_call wrappers ------------------------------

def embed_tokens(patches, w, b, pos, g, beta):
    """(B, L, PT*PF) patches -> (features (B,L,D), x0 = LN(features + pos))."""
    Bn, Lx, PP = patches.shape
    return pl.pallas_call(
        _embed_kernel,
        out_shape=(jax.ShapeDtypeStruct((Bn, Lx, D), jnp.float32),
                   jax.ShapeDtypeStruct((Bn, Lx, D), jnp.float32)),
        grid=(Bn,),
        in_specs=[
            pl.BlockSpec((None, Lx, PP), lambda i: (i, 0, 0)),
            pl.BlockSpec((PP, D), lambda i: (0, 0)),
            pl.BlockSpec((1, D), lambda i: (0, 0)),
            pl.BlockSpec((Lx, D), lambda i: (0, 0)),
            pl.BlockSpec((1, D), lambda i: (0, 0)),
            pl.BlockSpec((1, D), lambda i: (0, 0)),
        ],
        out_specs=(pl.BlockSpec((None, Lx, D), lambda i: (i, 0, 0)),
                   pl.BlockSpec((None, Lx, D), lambda i: (i, 0, 0))),
        compiler_params=pltpu.CompilerParams(dimension_semantics=("parallel",)),
    )(patches, w, b.reshape(1, D), pos, g.reshape(1, D), beta.reshape(1, D))


def encoder_layer(x, lp, pool=0):
    """One fused transformer encoder layer; if pool>0, output is avg-pooled tokens."""
    Bn = x.shape[0]
    out_L = L // pool if pool else L
    D3 = 3 * D

    flops = Bn * (2 * L * D * D3 + 4 * L * L * D + 2 * L * D * D + 4 * L * D * FFN)
    transcendentals = Bn * (H * L * L + L * FFN)
    bytes_accessed = (Bn * (L * D + out_L * D) * 4
                      + 2 * (D * D3 + D * D + D * FFN + FFN * D)
                      + 4 * (D3 + 6 * D + FFN))

    vec = lambda n: pl.BlockSpec((1, n), lambda b: (0, 0))
    mat = lambda r, c: pl.BlockSpec((r, c), lambda b: (0, 0))

    return pl.pallas_call(
        functools.partial(_layer_kernel, pool=pool),
        out_shape=jax.ShapeDtypeStruct((Bn, out_L, D), jnp.float32),
        grid=(Bn,),
        in_specs=[
            pl.BlockSpec((None, L, D), lambda b: (b, 0, 0)),   # x
            mat(D, D3), vec(D3),                               # wqkv, bqkv
            mat(D, D), vec(D),                                 # wo, bo
            vec(D), vec(D),                                    # ln1 gamma, beta
            mat(D, FFN), vec(FFN),                             # w1, b1
            mat(FFN, D), vec(D),                               # w2, b2
            vec(D), vec(D),                                    # ln2 gamma, beta
        ],
        out_specs=pl.BlockSpec((None, out_L, D), lambda b: (b, 0, 0)),
        compiler_params=pltpu.CompilerParams(dimension_semantics=("parallel",)),
        cost_estimate=pl.CostEstimate(flops=flops, transcendentals=transcendentals,
                                      bytes_accessed=bytes_accessed),
    )(x,
      lp["wqkv"], lp["bqkv"].reshape(1, D3),
      lp["wo"], lp["bo"].reshape(1, D),
      lp["ln1_g"].reshape(1, D), lp["ln1_b"].reshape(1, D),
      lp["w1"], lp["b1"].reshape(1, FFN),
      lp["w2"], lp["b2"].reshape(1, D),
      lp["ln2_g"].reshape(1, D), lp["ln2_b"].reshape(1, D))


def avg_pool_tokens(x, pool):
    """AvgPool1d(pool, pool) over the token axis of x:(B, L, D) (ret_conv path only)."""
    Bn, Lx, Dm = x.shape
    Lp = Lx // pool
    return pl.pallas_call(
        functools.partial(_pool_kernel, pool=pool),
        out_shape=jax.ShapeDtypeStruct((Bn, Lp, Dm), jnp.float32),
        grid=(Bn,),
        in_specs=[pl.BlockSpec((None, Lx, Dm), lambda b: (b, 0, 0))],
        out_specs=pl.BlockSpec((None, Lp, Dm), lambda b: (b, 0, 0)),
        compiler_params=pltpu.CompilerParams(dimension_semantics=("parallel",)),
    )(x)


# ------------------------------ glue (plain JAX) ------------------------------

def patchify(source):
    """(B, T, F) -> (B, L, PT*PF): stride==kernel Conv2d patch-embed, as im2col."""
    Bn = source.shape[0]
    x = source.reshape(Bn, T // PT, PT, F // PF, PF)
    x = x.transpose(0, 1, 3, 2, 4)                       # (B, nT, nF, PT, PF)
    return x.reshape(Bn, L, PT * PF)


def sincos_pos_embed(n, dim):
    pos = np.arange(n, dtype=np.float32)[:, None]
    omega = np.arange(dim // 2, dtype=np.float32) / (dim / 2.0)
    omega = 1.0 / (10000.0 ** omega)
    ang = pos * omega[None, :]
    return jnp.asarray(np.concatenate([np.sin(ang), np.cos(ang)], axis=1),
                       jnp.float32)                      # (n, dim)


def init_params(key):
    # MXU weight matrices are stored in bf16 (a real f32 checkpoint would be cast
    # once at load time); biases and LayerNorm params stay f32.
    def dense(k, fan_in, fan_out):
        w = (jax.random.normal(k, (fan_in, fan_out), jnp.float32) * 0.02).astype(MXU_DTYPE)
        return w, jnp.zeros((fan_out,), jnp.float32)

    keys = jax.random.split(key, 1 + LAYERS)
    params = {}
    params["patch_w"], params["patch_b"] = dense(keys[0], PT * PF, D)
    params["enc_ln_g"] = jnp.ones((D,), jnp.float32)
    params["enc_ln_b"] = jnp.zeros((D,), jnp.float32)
    layers = []
    for l in range(LAYERS):
        lk = jax.random.split(keys[1 + l], 4)
        lp = {}
        lp["wqkv"], lp["bqkv"] = dense(lk[0], D, 3 * D)     # merged q/k/v projection
        lp["wo"], lp["bo"] = dense(lk[1], D, D)
        lp["ln1_g"] = jnp.ones((D,), jnp.float32)
        lp["ln1_b"] = jnp.zeros((D,), jnp.float32)
        lp["w1"], lp["b1"] = dense(lk[2], D, FFN)
        lp["w2"], lp["b2"] = dense(lk[3], FFN, D)
        lp["ln2_g"] = jnp.ones((D,), jnp.float32)
        lp["ln2_b"] = jnp.zeros((D,), jnp.float32)
        layers.append(lp)
    params["layers"] = layers
    return params


def mae_ast_encoder_forward(params, source, pool_last=0):
    """MAE_AST.forward(source, padding_mask=zeros.bool(), mask=False, features_only=True).

    If pool_last > 0, the trailing AvgPool1d is fused into the last layer's epilogue
    and res['x'] is the pooled (B, L//pool, D) feature.
    """
    Bn = source.shape[0]
    patches = patchify(source)                           # (B, L, PT*PF)
    # TODO(synk): wav2vec2-style grouped-conv positional embedding (pos_conv) of the
    # fairseq TransformerEncoder is omitted; fixed sinusoidal pos-embed is used, and
    # dropout is identity (eval mode).
    pos = sincos_pos_embed(L, D)
    features, x = embed_tokens(patches, params["patch_w"], params["patch_b"],
                               pos, params["enc_ln_g"], params["enc_ln_b"])

    n_layers = len(params["layers"])
    for li, lp in enumerate(params["layers"]):
        is_last = li == n_layers - 1
        x = encoder_layer(x, lp, pool=pool_last if is_last else 0)

    # pad_matrix is all zeros -> boolean padding mask is all False (no padding).
    padding_mask = jnp.zeros((Bn, L), dtype=jnp.bool_)
    return {"x": x, "features": features, "padding_mask": padding_mask}


def mae_ast_model_forward(params, source, ret_conv=False):
    """MAE_ASTModel.forward: encoder -> transpose -> AvgPool1d(8,8) -> transpose."""
    if ret_conv:
        res = mae_ast_encoder_forward(params, source, pool_last=0)
        feature = avg_pool_tokens(res["features"], POOL)
    else:
        res = mae_ast_encoder_forward(params, source, pool_last=POOL)
        feature = res["x"]           # pooling fused into the last encoder layer
    return feature, res["padding_mask"]


if __name__ == "__main__":
    key = jax.random.PRNGKey(0)
    pkey, xkey = jax.random.split(key)
    params = init_params(pkey)
    source = jax.random.normal(xkey, (B, T, F), jnp.float32)

    feature, padding_mask = jax.jit(mae_ast_model_forward)(params, source)
    jax.block_until_ready((feature, padding_mask))

    assert feature.shape == (B, L // POOL, D), feature.shape
    assert padding_mask.shape == (B, L), padding_mask.shape
    assert bool(jnp.all(jnp.isfinite(feature)))
    print("KERNEL_OK")
</pallas_src>

<mosaic_0001>
module attributes {stable_mosaic.version = 11 : i64} {
  func.func @_embed_kernel(%arg0: i32, %arg1: memref<1x64x16xf32, #tpu.memory_space<vmem>>, %arg2: memref<16x128xbf16, #tpu.memory_space<vmem>>, %arg3: memref<1x128xf32, #tpu.memory_space<vmem>>, %arg4: memref<64x128xf32, #tpu.memory_space<vmem>>, %arg5: memref<1x128xf32, #tpu.memory_space<vmem>>, %arg6: memref<1x128xf32, #tpu.memory_space<vmem>>, %arg7: memref<1x64x128xf32, #tpu.memory_space<vmem>>, %arg8: memref<1x64x128xf32, #tpu.memory_space<vmem>>) attributes {dimension_semantics = [#tpu.dimension_semantics<parallel>], iteration_bounds = array<i64: 2>, scalar_prefetch = 0 : i64, scratch_operands = 0 : i64, tpu.core_type = #tpu.core_type<tc>, window_params = [{transform_indices = @transform_0, window_bounds = array<i64: 1, 64, 16>}, {pipeline_mode = #tpu.pipeline_mode<synchronous>, transform_indices = @transform_1, window_bounds = array<i64: 16, 128>}, {pipeline_mode = #tpu.pipeline_mode<synchronous>, transform_indices = @transform_2, window_bounds = array<i64: 1, 128>}, {pipeline_mode = #tpu.pipeline_mode<synchronous>, transform_indices = @transform_3, window_bounds = array<i64: 64, 128>}, {pipeline_mode = #tpu.pipeline_mode<synchronous>, transform_indices = @transform_4, window_bounds = array<i64: 1, 128>}, {pipeline_mode = #tpu.pipeline_mode<synchronous>, transform_indices = @transform_5, window_bounds = array<i64: 1, 128>}, {transform_indices = @transform_6, window_bounds = array<i64: 1, 64, 128>}, {transform_indices = @transform_7, window_bounds = array<i64: 1, 64, 128>}]} {
    %c0 = arith.constant 0 : index
    %c0_0 = arith.constant 0 : index
    %c0_1 = arith.constant 0 : index
    %0 = vector.load %arg1[%c0, %c0_0, %c0_1] : memref<1x64x16xf32, #tpu.memory_space<vmem>>, vector<1x64x16xf32>
    %1 = vector.shape_cast %0 : vector<1x64x16xf32> to vector<64x16xf32>
    %c0_2 = arith.constant 0 : index
    %c0_3 = arith.constant 0 : index
    %2 = vector.load %arg2[%c0_2, %c0_3] : memref<16x128xbf16, #tpu.memory_space<vmem>>, vector<16x128xbf16>
    %3 = arith.truncf %1 : vector<64x16xf32> to vector<64x16xbf16>
    %cst = arith.constant dense<0.000000e+00> : vector<64x128xf32>
    %4 = tpu.matmul %3, %2, %cst {dimension_numbers = #tpu.dot_dimension_numbers<[1], [0], [0], [1], [0, 0, 1, 1], [], []>} : vector<64x16xbf16>, vector<16x128xbf16>, vector<64x128xf32> -> vector<64x128xf32>
    %c0_4 = arith.constant 0 : index
    %c0_5 = arith.constant 0 : index
    %5 = vector.load %arg3[%c0_4, %c0_5] : memref<1x128xf32, #tpu.memory_space<vmem>>, vector<1x128xf32>
    %6 = vector.broadcast %5 : vector<1x128xf32> to vector<64x128xf32>
    %7 = arith.addf %4, %6 : vector<64x128xf32>
    %c0_6 = arith.constant 0 : index
    %c0_7 = arith.constant 0 : index
    %c0_8 = arith.constant 0 : index
    %8 = vector.load %arg7[%c0_6, %c0_7, %c0_8] : memref<1x64x128xf32, #tpu.memory_space<vmem>>, vector<1x64x128xf32>
    %9 = vector.shape_cast %8 : vector<1x64x128xf32> to vector<64x128xf32>
    %10 = vector.shape_cast %7 : vector<64x128xf32> to vector<1x64x128xf32>
    tpu.vector_store %arg7[%c0_6, %c0_7, %c0_8], %10 {strides = array<i32>} : memref<1x64x128xf32, #tpu.memory_space<vmem>>, vector<1x64x128xf32>,
    %c0_9 = arith.constant 0 : index
    %c0_10 = arith.constant 0 : index
    %11 = vector.load %arg4[%c0_9, %c0_10] : memref<64x128xf32, #tpu.memory_space<vmem>>, vector<64x128xf32>
    %12 = arith.addf %7, %11 : vector<64x128xf32>
    %c0_11 = arith.constant 0 : index
    %c0_12 = arith.constant 0 : index
    %13 = vector.load %arg5[%c0_11, %c0_12] : memref<1x128xf32, #tpu.memory_space<vmem>>, vector<1x128xf32>
    %c0_13 = arith.constant 0 : index
    %c0_14 = arith.constant 0 : index
    %14 = vector.load %arg6[%c0_13, %c0_14] : memref<1x128xf32, #tpu.memory_space<vmem>>, vector<1x128xf32>
    %cst_15 = arith.constant dense<0.000000e+00> : vector<64xf32>
    %15 = vector.multi_reduction <add>, %12, %cst_15 [1] : vector<64x128xf32> to vector<64xf32>
    %16 = vector.shape_cast %15 : vector<64xf32> to vector<64x1xf32>
    %cst_16 = arith.constant 1.280000e+02 : f32
    %17 = vector.broadcast %cst_16 : f32 to vector<64x1xf32>
    %18 = arith.divf %16, %17 : vector<64x1xf32>
    %19 = vector.broadcast %18 : vector<64x1xf32> to vector<64x128xf32>
    %20 = arith.subf %12, %19 : vector<64x128xf32>
    %21 = arith.mulf %20, %20 : vector<64x128xf32>
    %cst_17 = arith.constant dense<0.000000e+00> : vector<64xf32>
    %22 = vector.multi_reduction <add>, %21, %cst_17 [1] : vector<64x128xf32> to vector<64xf32>
    %23 = vector.shape_cast %22 : vector<64xf32> to vector<64x1xf32>
    %cst_18 = arith.constant 1.280000e+02 : f32
    %24 = vector.broadcast %cst_18 : f32 to vector<64x1xf32>
    %25 = arith.divf %23, %24 : vector<64x1xf32>
    %26 = vector.broadcast %18 : vector<64x1xf32> to vector<64x128xf32>
    %27 = arith.subf %12, %26 : vector<64x128xf32>
    %cst_19 = arith.constant 9.99999974E-6 : f32
    %28 = vector.broadcast %cst_19 : f32 to vector<64x1xf32>
    %29 = arith.addf %25, %28 : vector<64x1xf32>
    %30 = math.rsqrt %29 : vector<64x1xf32>
    %31 = vector.broadcast %30 : vector<64x1xf32> to vector<64x128xf32>
    %32 = arith.mulf %27, %31 : vector<64x128xf32>
    %33 = vector.broadcast %13 : vector<1x128xf32> to vector<64x128xf32>
    %34 = arith.mulf %32, %33 : vector<64x128xf32>
    %35 = vector.broadcast %14 : vector<1x128xf32> to vector<64x128xf32>
    %36 = arith.addf %34, %35 : vector<64x128xf32>
    %c0_20 = arith.constant 0 : index
    %c0_21 = arith.constant 0 : index
    %c0_22 = arith.constant 0 : index
    %37 = vector.load %arg8[%c0_20, %c0_21, %c0_22] : memref<1x64x128xf32, #tpu.memory_space<vmem>>, vector<1x64x128xf32>
    %38 = vector.shape_cast %37 : vector<1x64x128xf32> to vector<64x128xf32>
    %39 = vector.shape_cast %36 : vector<64x128xf32> to vector<1x64x128xf32>
    tpu.vector_store %arg8[%c0_20, %c0_21, %c0_22], %39 {strides = array<i32>} : memref<1x64x128xf32, #tpu.memory_space<vmem>>, vector<1x64x128xf32>,
    return
  }
  func.func @transform_0(%arg0: i32) -> (i32, i32, i32) {
    %c0_i32 = arith.constant 0 : i32
    %c0_i32_0 = arith.constant 0 : i32
    %c0_i32_1 = arith.constant 0 : i32
    return %arg0, %c0_i32, %c0_i32_0 : i32, i32, i32
  }
  func.func @transform_1(%arg0: i32) -> (i32, i32) {
    %c0_i32 = arith.constant 0 : i32
    %c0_i32_0 = arith.constant 0 : i32
    %c0_i32_1 = arith.constant 0 : i32
    return %c0_i32, %c0_i32_0 : i32, i32
  }
  func.func @transform_2(%arg0: i32) -> (i32, i32) {
    %c0_i32 = arith.constant 0 : i32
    %c0_i32_0 = arith.constant 0 : i32
    %c0_i32_1 = arith.constant 0 : i32
    return %c0_i32, %c0_i32_0 : i32, i32
  }
  func.func @transform_3(%arg0: i32) -> (i32, i32) {
    %c0_i32 = arith.constant 0 : i32
    %c0_i32_0 = arith.constant 0 : i32
    %c0_i32_1 = arith.constant 0 : i32
    return %c0_i32, %c0_i32_0 : i32, i32
  }
  func.func @transform_4(%arg0: i32) -> (i32, i32) {
    %c0_i32 = arith.constant 0 : i32
    %c0_i32_0 = arith.constant 0 : i32
    %c0_i32_1 = arith.constant 0 : i32
    return %c0_i32, %c0_i32_0 : i32, i32
  }
  func.func @transform_5(%arg0: i32) -> (i32, i32) {
    %c0_i32 = arith.constant 0 : i32
    %c0_i32_0 = arith.constant 0 : i32
    %c0_i32_1 = arith.constant 0 : i32
    return %c0_i32, %c0_i32_0 : i32, i32
  }
  func.func @transform_6(%arg0: i32) -> (i32, i32, i32) {
    %c0_i32 = arith.constant 0 : i32
    %c0_i32_0 = arith.constant 0 : i32
    %c0_i32_1 = arith.constant 0 : i32
    return %arg0, %c0_i32, %c0_i32_0 : i32, i32, i32
  }
  func.func @transform_7(%arg0: i32) -> (i32, i32, i32) {
    %c0_i32 = arith.constant 0 : i32
    %c0_i32_0 = arith.constant 0 : i32
    %c0_i32_1 = arith.constant 0 : i32
    return %arg0, %c0_i32, %c0_i32_0 : i32, i32, i32
  }
}

module attributes {stable_mosaic.version = 11 : i64} {
  func.func @_layer_kernel(%arg0: i32, %arg1: memref<1x64x128xf32, #tpu.memory_space<vmem>>, %arg2: memref<128x384xbf16, #tpu.memory_space<vmem>>, %arg3: memref<1x384xf32, #tpu.memory_space<vmem>>, %arg4: memref<128x128xbf16, #tpu.memory_space<vmem>>, %arg5: memref<1x128xf32, #tpu.memory_space<vmem>>, %arg6: memref<1x128xf32, #tpu.memory_space<vmem>>, %arg7: memref<1x128xf32, #tpu.memory_space<vmem>>, %arg8: memref<128x512xbf16, #tpu.memory_space<vmem>>, %arg9: memref<1x512xf32, #tpu.memory_space<vmem>>, %arg10: memref<512x128xbf16, #tpu.memory_space<vmem>>, %arg11: memref<1x128xf32, #tpu.memory_space<vmem>>, %arg12: memref<1x128xf32, #tpu.memory_space<vmem>>, %arg13: memref<1x128xf32, #tpu.memory_space<vmem>>, %arg14: memref<1x8x128xf32, #tpu.memory_space<vmem>>) attributes {dimension_semantics = [#tpu.dimension_semantics<parallel>], iteration_bounds = array<i64: 2>, scalar_prefetch = 0 : i64, scratch_operands = 0 : i64, tpu.core_type = #tpu.core_type<tc>, window_params = [{transform_indices = @transform_0, window_bounds = array<i64: 1, 64, 128>}, {pipeline_mode = #tpu.pipeline_mode<synchronous>, transform_indices = @transform_1, window_bounds = array<i64: 128, 384>}, {pipeline_mode = #tpu.pipeline_mode<synchronous>, transform_indices = @transform_2, window_bounds = array<i64: 1, 384>}, {pipeline_mode = #tpu.pipeline_mode<synchronous>, transform_indices = @transform_3, window_bounds = array<i64: 128, 128>}, {pipeline_mode = #tpu.pipeline_mode<synchronous>, transform_indices = @transform_4, window_bounds = array<i64: 1, 128>}, {pipeline_mode = #tpu.pipeline_mode<synchronous>, transform_indices = @transform_5, window_bounds = array<i64: 1, 128>}, {pipeline_mode = #tpu.pipeline_mode<synchronous>, transform_indices = @transform_6, window_bounds = array<i64: 1, 128>}, {pipeline_mode = #tpu.pipeline_mode<synchronous>, transform_indices = @transform_7, window_bounds = array<i64: 128, 512>}, {pipeline_mode = #tpu.pipeline_mode<synchronous>, transform_indices = @transform_8, window_bounds = array<i64: 1, 512>}, {pipeline_mode = #tpu.pipeline_mode<synchronous>, transform_indices = @transform_9, window_bounds = array<i64: 512, 128>}, {pipeline_mode = #tpu.pipeline_mode<synchronous>, transform_indices = @transform_10, window_bounds = array<i64: 1, 128>}, {pipeline_mode = #tpu.pipeline_mode<synchronous>, transform_indices = @transform_11, window_bounds = array<i64: 1, 128>}, {pipeline_mode = #tpu.pipeline_mode<synchronous>, transform_indices = @transform_12, window_bounds = array<i64: 1, 128>}, {transform_indices = @transform_13, window_bounds = array<i64: 1, 8, 128>}]} {
    %c0 = arith.constant 0 : index
    %c0_0 = arith.constant 0 : index
    %c0_1 = arith.constant 0 : index
    %0 = vector.load %arg1[%c0, %c0_0, %c0_1] : memref<1x64x128xf32, #tpu.memory_space<vmem>>, vector<1x64x128xf32>
    %1 = vector.shape_cast %0 : vector<1x64x128xf32> to vector<64x128xf32>
    %c0_2 = arith.constant 0 : index
    %c0_3 = arith.constant 0 : index
    %2 = vector.load %arg2[%c0_2, %c0_3] : memref<128x384xbf16, #tpu.memory_space<vmem>>, vector<128x384xbf16>
    %3 = arith.truncf %1 : vector<64x128xf32> to vector<64x128xbf16>
    %cst = arith.constant dense<0.000000e+00> : vector<64x384xf32>
    %4 = tpu.matmul %3, %2, %cst {dimension_numbers = #tpu.dot_dimension_numbers<[1], [0], [0], [1], [0, 0, 1, 1], [], []>} : vector<64x128xbf16>, vector<128x384xbf16>, vector<64x384xf32> -> vector<64x384xf32>
    %c0_4 = arith.constant 0 : index
    %c0_5 = arith.constant 0 : index
    %5 = vector.load %arg3[%c0_4, %c0_5] : memref<1x384xf32, #tpu.memory_space<vmem>>, vector<1x384xf32>
    %6 = vector.broadcast %5 : vector<1x384xf32> to vector<64x384xf32>
    %7 = arith.addf %4, %6 : vector<64x384xf32>
    %c0_6 = arith.constant 0 : index
    %c0_7 = arith.constant 0 : index
    %8 = vector.load %arg4[%c0_6, %c0_7] : memref<128x128xbf16, #tpu.memory_space<vmem>>, vector<128x128xbf16>
    %cst_8 = arith.constant 0.000000e+00 : f32
    %9 = vector.broadcast %cst_8 : f32 to vector<64x128xf32>
    %10 = vector.extract_strided_slice %7 {offsets = [0, 0], sizes = [64, 32], strides = [1, 1]} : vector<64x384xf32> to vector<64x32xf32>
    %cst_9 = arith.constant 0.176776692 : f32
    %11 = vector.broadcast %cst_9 : f32 to vector<64x32xf32>
    %12 = arith.mulf %10, %11 : vector<64x32xf32>
    %13 = vector.extract_strided_slice %7 {offsets = [0, 128], sizes = [64, 32], strides = [1, 1]} : vector<64x384xf32> to vector<64x32xf32>
    %14 = vector.extract_strided_slice %7 {offsets = [0, 256], sizes = [64, 32], strides = [1, 1]} : vector<64x384xf32> to vector<64x32xf32>
    %15 = arith.truncf %12 : vector<64x32xf32> to vector<64x32xbf16>
    %16 = arith.truncf %13 : vector<64x32xf32> to vector<64x32xbf16>
    %cst_10 = arith.constant dense<0.000000e+00> : vector<64x64xf32>
    %17 = tpu.matmul %15, %16, %cst_10 {dimension_numbers = #tpu.dot_dimension_numbers<[1], [1], [0], [0], [0, 0, 1, 0], [], []>} : vector<64x32xbf16>, vector<64x32xbf16>, vector<64x64xf32> -> vector<64x64xf32>
    %cst_11 = arith.constant dense<0xFF800000> : vector<64xf32>
    %18 = vector.multi_reduction <maximumf>, %17, %cst_11 [1] : vector<64x64xf32> to vector<64xf32>
    %19 = vector.shape_cast %18 : vector<64xf32> to vector<64x1xf32>
    %20 = vector.broadcast %19 : vector<64x1xf32> to vector<64x64xf32>
    %21 = arith.subf %17, %20 : vector<64x64xf32>
    %22 = math.exp %21 : vector<64x64xf32>
    %cst_12 = arith.constant dense<0.000000e+00> : vector<64xf32>
    %23 = vector.multi_reduction <add>, %22, %cst_12 [1] : vector<64x64xf32> to vector<64xf32>
    %24 = vector.shape_cast %23 : vector<64xf32> to vector<64x1xf32>
    %25 = tpu.reciprocal %24 {approx = true} : vector<64x1xf32> -> vector<64x1xf32>
    %26 = vector.broadcast %25 : vector<64x1xf32> to vector<64x64xf32>
    %27 = arith.mulf %22, %26 : vector<64x64xf32>
    %28 = arith.truncf %27 : vector<64x64xf32> to vector<64x64xbf16>
    %29 = arith.truncf %14 : vector<64x32xf32> to vector<64x32xbf16>
    %cst_13 = arith.constant dense<0.000000e+00> : vector<64x32xf32>
    %30 = tpu.matmul %28, %29, %cst_13 {dimension_numbers = #tpu.dot_dimension_numbers<[1], [0], [0], [1], [0, 0, 1, 1], [], []>} : vector<64x64xbf16>, vector<64x32xbf16>, vector<64x32xf32> -> vector<64x32xf32>
    %31 = arith.truncf %30 : vector<64x32xf32> to vector<64x32xbf16>
    %32 = vector.extract_strided_slice %8 {offsets = [0, 0], sizes = [32, 128], strides = [1, 1]} : vector<128x128xbf16> to vector<32x128xbf16>
    %cst_14 = arith.constant dense<0.000000e+00> : vector<64x128xf32>
    %33 = tpu.matmul %31, %32, %cst_14 {dimension_numbers = #tpu.dot_dimension_numbers<[1], [0], [0], [1], [0, 0, 1, 1], [], []>} : vector<64x32xbf16>, vector<32x128xbf16>, vector<64x128xf32> -> vector<64x128xf32>
    %34 = arith.addf %9, %33 : vector<64x128xf32>
    %35 = vector.extract_strided_slice %7 {offsets = [0, 32], sizes = [64, 32], strides = [1, 1]} : vector<64x384xf32> to vector<64x32xf32>
    %cst_15 = arith.constant 0.176776692 : f32
    %36 = vector.broadcast %cst_15 : f32 to vector<64x32xf32>
    %37 = arith.mulf %35, %36 : vector<64x32xf32>
    %38 = vector.extract_strided_slice %7 {offsets = [0, 160], sizes = [64, 32], strides = [1, 1]} : vector<64x384xf32> to vector<64x32xf32>
    %39 = vector.extract_strided_slice %7 {offsets = [0, 288], sizes = [64, 32], strides = [1, 1]} : vector<64x384xf32> to vector<64x32xf32>
    %40 = arith.truncf %37 : vector<64x32xf32> to vector<64x32xbf16>
    %41 = arith.truncf %38 : vector<64x32xf32> to vector<64x32xbf16>
    %cst_16 = arith.constant dense<0.000000e+00> : vector<64x64xf32>
    %42 = tpu.matmul %40, %41, %cst_16 {dimension_numbers = #tpu.dot_dimension_numbers<[1], [1], [0], [0], [0, 0, 1, 0], [], []>} : vector<64x32xbf16>, vector<64x32xbf16>, vector<64x64xf32> -> vector<64x64xf32>
    %cst_17 = arith.constant dense<0xFF800000> : vector<64xf32>
    %43 = vector.multi_reduction <maximumf>, %42, %cst_17 [1] : vector<64x64xf32> to vector<64xf32>
    %44 = vector.shape_cast %43 : vector<64xf32> to vector<64x1xf32>
    %45 = vector.broadcast %44 : vector<64x1xf32> to vector<64x64xf32>
    %46 = arith.subf %42, %45 : vector<64x64xf32>
    %47 = math.exp %46 : vector<64x64xf32>
    %cst_18 = arith.constant dense<0.000000e+00> : vector<64xf32>
    %48 = vector.multi_reduction <add>, %47, %cst_18 [1] : vector<64x64xf32> to vector<64xf32>
    %49 = vector.shape_cast %48 : vector<64xf32> to vector<64x1xf32>
    %50 = tpu.reciprocal %49 {approx = true} : vector<64x1xf32> -> vector<64x1xf32>
    %51 = vector.broadcast %50 : vector<64x1xf32> to vector<64x64xf32>
    %52 = arith.mulf %47, %51 : vector<64x64xf32>
    %53 = arith.truncf %52 : vector<64x64xf32> to vector<64x64xbf16>
    %54 = arith.truncf %39 : vector<64x32xf32> to vector<64x32xbf16>
    %cst_19 = arith.constant dense<0.000000e+00> : vector<64x32xf32>
    %55 = tpu.matmul %53, %54, %cst_19 {dimension_numbers = #tpu.dot_dimension_numbers<[1], [0], [0], [1], [0, 0, 1, 1], [], []>} : vector<64x64xbf16>, vector<64x32xbf16>, vector<64x32xf32> -> vector<64x32xf32>
    %56 = arith.truncf %55 : vector<64x32xf32> to vector<64x32xbf16>
    %57 = vector.extract_strided_slice %8 {offsets = [32, 0], sizes = [32, 128], strides = [1, 1]} : vector<128x128xbf16> to vector<32x128xbf16>
    %cst_20 = arith.constant dense<0.000000e+00> : vector<64x128xf32>
    %58 = tpu.matmul %56, %57, %cst_20 {dimension_numbers = #tpu.dot_dimension_numbers<[1], [0], [0], [1], [0, 0, 1, 1], [], []>} : vector<64x32xbf16>, vector<32x128xbf16>, vector<64x128xf32> -> vector<64x128xf32>
    %59 = arith.addf %34, %58 : vector<64x128xf32>
    %60 = vector.extract_strided_slice %7 {offsets = [0, 64], sizes = [64, 32], strides = [1, 1]} : vector<64x384xf32> to vector<64x32xf32>
    %cst_21 = arith.constant 0.176776692 : f32
    %61 = vector.broadcast %cst_21 : f32 to vector<64x32xf32>
    %62 = arith.mulf %60, %61 : vector<64x32xf32>
    %63 = vector.extract_strided_slice %7 {offsets = [0, 192], sizes = [64, 32], strides = [1, 1]} : vector<64x384xf32> to vector<64x32xf32>
    %64 = vector.extract_strided_slice %7 {offsets = [0, 320], sizes = [64, 32], strides = [1, 1]} : vector<64x384xf32> to vector<64x32xf32>
    %65 = arith.truncf %62 : vector<64x32xf32> to vector<64x32xbf16>
    %66 = arith.truncf %63 : vector<64x32xf32> to vector<64x32xbf16>
    %cst_22 = arith.constant dense<0.000000e+00> : vector<64x64xf32>
    %67 = tpu.matmul %65, %66, %cst_22 {dimension_numbers = #tpu.dot_dimension_numbers<[1], [1], [0], [0], [0, 0, 1, 0], [], []>} : vector<64x32xbf16>, vector<64x32xbf16>, vector<64x64xf32> -> vector<64x64xf32>
    %cst_23 = arith.constant dense<0xFF800000> : vector<64xf32>
    %68 = vector.multi_reduction <maximumf>, %67, %cst_23 [1] : vector<64x64xf32> to vector<64xf32>
    %69 = vector.shape_cast %68 : vector<64xf32> to vector<64x1xf32>
    %70 = vector.broadcast %69 : vector<64x1xf32> to vector<64x64xf32>
    %71 = arith.subf %67, %70 : vector<64x64xf32>
    %72 = math.exp %71 : vector<64x64xf32>
    %cst_24 = arith.constant dense<0.000000e+00> : vector<64xf32>
    %73 = vector.multi_reduction <add>, %72, %cst_24 [1] : vector<64x64xf32> to vector<64xf32>
    %74 = vector.shape_cast %73 : vector<64xf32> to vector<64x1xf32>
    %75 = tpu.reciprocal %74 {approx = true} : vector<64x1xf32> -> vector<64x1xf32>
    %76 = vector.broadcast %75 : vector<64x1xf32> to vector<64x64xf32>
    %77 = arith.mulf %72, %76 : vector<64x64xf32>
    %78 = arith.truncf %77 : vector<64x64xf32> to vector<64x64xbf16>
    %79 = arith.truncf %64 : vector<64x32xf32> to vector<64x32xbf16>
    %cst_25 = arith.constant dense<0.000000e+00> : vector<64x32xf32>
    %80 = tpu.matmul %78, %79, %cst_25 {dimension_numbers = #tpu.dot_dimension_numbers<[1], [0], [0], [1], [0, 0, 1, 1], [], []>} : vector<64x64xbf16>, vector<64x32xbf16>, vector<64x32xf32> -> vector<64x32xf32>
    %81 = arith.truncf %80 : vector<64x32xf32> to vector<64x32xbf16>
    %82 = vector.extract_strided_slice %8 {offsets = [64, 0], sizes = [32, 128], strides = [1, 1]} : vector<128x128xbf16> to vector<32x128xbf16>
    %cst_26 = arith.constant dense<0.000000e+00> : vector<64x128xf32>
    %83 = tpu.matmul %81, %82, %cst_26 {dimension_numbers = #tpu.dot_dimension_numbers<[1], [0], [0], [1], [0, 0, 1, 1], [], []>} : vector<64x32xbf16>, vector<32x128xbf16>, vector<64x128xf32> -> vector<64x128xf32>
    %84 = arith.addf %59, %83 : vector<64x128xf32>
    %85 = vector.extract_strided_slice %7 {offsets = [0, 96], sizes = [64, 32], strides = [1, 1]} : vector<64x384xf32> to vector<64x32xf32>
    %cst_27 = arith.constant 0.176776692 : f32
    %86 = vector.broadcast %cst_27 : f32 to vector<64x32xf32>
    %87 = arith.mulf %85, %86 : vector<64x32xf32>
    %88 = vector.extract_strided_slice %7 {offsets = [0, 224], sizes = [64, 32], strides = [1, 1]} : vector<64x384xf32> to vector<64x32xf32>
    %89 = vector.extract_strided_slice %7 {offsets = [0, 352], sizes = [64, 32], strides = [1, 1]} : vector<64x384xf32> to vector<64x32xf32>
    %90 = arith.truncf %87 : vector<64x32xf32> to vector<64x32xbf16>
    %91 = arith.truncf %88 : vector<64x32xf32> to vector<64x32xbf16>
    %cst_28 = arith.constant dense<0.000000e+00> : vector<64x64xf32>
    %92 = tpu.matmul %90, %91, %cst_28 {dimension_numbers = #tpu.dot_dimension_numbers<[1], [1], [0], [0], [0, 0, 1, 0], [], []>} : vector<64x32xbf16>, vector<64x32xbf16>, vector<64x64xf32> -> vector<64x64xf32>
    %cst_29 = arith.constant dense<0xFF800000> : vector<64xf32>
    %93 = vector.multi_reduction <maximumf>, %92, %cst_29 [1] : vector<64x64xf32> to vector<64xf32>
    %94 = vector.shape_cast %93 : vector<64xf32> to vector<64x1xf32>
    %95 = vector.broadcast %94 : vector<64x1xf32> to vector<64x64xf32>
    %96 = arith.subf %92, %95 : vector<64x64xf32>
    %97 = math.exp %96 : vector<64x64xf32>
    %cst_30 = arith.constant dense<0.000000e+00> : vector<64xf32>
    %98 = vector.multi_reduction <add>, %97, %cst_30 [1] : vector<64x64xf32> to vector<64xf32>
    %99 = vector.shape_cast %98 : vector<64xf32> to vector<64x1xf32>
    %100 = tpu.reciprocal %99 {approx = true} : vector<64x1xf32> -> vector<64x1xf32>
    %101 = vector.broadcast %100 : vector<64x1xf32> to vector<64x64xf32>
    %102 = arith.mulf %97, %101 : vector<64x64xf32>
    %103 = arith.truncf %102 : vector<64x64xf32> to vector<64x64xbf16>
    %104 = arith.truncf %89 : vector<64x32xf32> to vector<64x32xbf16>
    %cst_31 = arith.constant dense<0.000000e+00> : vector<64x32xf32>
    %105 = tpu.matmul %103, %104, %cst_31 {dimension_numbers = #tpu.dot_dimension_numbers<[1], [0], [0], [1], [0, 0, 1, 1], [], []>} : vector<64x64xbf16>, vector<64x32xbf16>, vector<64x32xf32> -> vector<64x32xf32>
    %106 = arith.truncf %105 : vector<64x32xf32> to vector<64x32xbf16>
    %107 = vector.extract_strided_slice %8 {offsets = [96, 0], sizes = [32, 128], strides = [1, 1]} : vector<128x128xbf16> to vector<32x128xbf16>
    %cst_32 = arith.constant dense<0.000000e+00> : vector<64x128xf32>
    %108 = tpu.matmul %106, %107, %cst_32 {dimension_numbers = #tpu.dot_dimension_numbers<[1], [0], [0], [1], [0, 0, 1, 1], [], []>} : vector<64x32xbf16>, vector<32x128xbf16>, vector<64x128xf32> -> vector<64x128xf32>
    %109 = arith.addf %84, %108 : vector<64x128xf32>
    %110 = arith.addf %1, %109 : vector<64x128xf32>
    %c0_33 = arith.constant 0 : index
    %c0_34 = arith.constant 0 : index
    %111 = vector.load %arg5[%c0_33, %c0_34] : memref<1x128xf32, #tpu.memory_space<vmem>>, vector<1x128xf32>
    %112 = vector.broadcast %111 : vector<1x128xf32> to vector<64x128xf32>
    %113 = arith.addf %110, %112 : vector<64x128xf32>
    %c0_35 = arith.constant 0 : index
    %c0_36 = arith.constant 0 : index
    %114 = vector.load %arg6[%c0_35, %c0_36] : memref<1x128xf32, #tpu.memory_space<vmem>>, vector<1x128xf32>
    %c0_37 = arith.constant 0 : index
    %c0_38 = arith.constant 0 : index
    %115 = vector.load %arg7[%c0_37, %c0_38] : memref<1x128xf32, #tpu.memory_space<vmem>>, vector<1x128xf32>
    %cst_39 = arith.constant dense<0.000000e+00> : vector<64xf32>
    %116 = vector.multi_reduction <add>, %113, %cst_39 [1] : vector<64x128xf32> to vector<64xf32>
    %117 = vector.shape_cast %116 : vector<64xf32> to vector<64x1xf32>
    %cst_40 = arith.constant 1.280000e+02 : f32
    %118 = vector.broadcast %cst_40 : f32 to vector<64x1xf32>
    %119 = arith.divf %117, %118 : vector<64x1xf32>
    %120 = vector.broadcast %119 : vector<64x1xf32> to vector<64x128xf32>
    %121 = arith.subf %113, %120 : vector<64x128xf32>
    %122 = arith.mulf %121, %121 : vector<64x128xf32>
    %cst_41 = arith.constant dense<0.000000e+00> : vector<64xf32>
    %123 = vector.multi_reduction <add>, %122, %cst_41 [1] : vector<64x128xf32> to vector<64xf32>
    %124 = vector.shape_cast %123 : vector<64xf32> to vector<64x1xf32>
    %cst_42 = arith.constant 1.280000e+02 : f32
    %125 = vector.broadcast %cst_42 : f32 to vector<64x1xf32>
    %126 = arith.divf %124, %125 : vector<64x1xf32>
    %127 = vector.broadcast %119 : vector<64x1xf32> to vector<64x128xf32>
    %128 = arith.subf %113, %127 : vector<64x128xf32>
    %cst_43 = arith.constant 9.99999974E-6 : f32
    %129 = vector.broadcast %cst_43 : f32 to vector<64x1xf32>
    %130 = arith.addf %126, %129 : vector<64x1xf32>
    %131 = math.rsqrt %130 : vector<64x1xf32>
    %132 = vector.broadcast %131 : vector<64x1xf32> to vector<64x128xf32>
    %133 = arith.mulf %128, %132 : vector<64x128xf32>
    %134 = vector.broadcast %114 : vector<1x128xf32> to vector<64x128xf32>
    %135 = arith.mulf %133, %134 : vector<64x128xf32>
    %136 = vector.broadcast %115 : vector<1x128xf32> to vector<64x128xf32>
    %137 = arith.addf %135, %136 : vector<64x128xf32>
    %c0_44 = arith.constant 0 : index
    %c0_45 = arith.constant 0 : index
    %138 = vector.load %arg8[%c0_44, %c0_45] : memref<128x512xbf16, #tpu.memory_space<vmem>>, vector<128x512xbf16>
    %139 = arith.truncf %137 : vector<64x128xf32> to vector<64x128xbf16>
    %cst_46 = arith.constant dense<0.000000e+00> : vector<64x512xf32>
    %140 = tpu.matmul %139, %138, %cst_46 {dimension_numbers = #tpu.dot_dimension_numbers<[1], [0], [0], [1], [0, 0, 1, 1], [], []>} : vector<64x128xbf16>, vector<128x512xbf16>, vector<64x512xf32> -> vector<64x512xf32>
    %c0_47 = arith.constant 0 : index
    %c0_48 = arith.constant 0 : index
    %141 = vector.load %arg9[%c0_47, %c0_48] : memref<1x512xf32, #tpu.memory_space<vmem>>, vector<1x512xf32>
    %142 = vector.broadcast %141 : vector<1x512xf32> to vector<64x512xf32>
    %143 = arith.addf %140, %142 : vector<64x512xf32>
    %144 = arith.mulf %143, %143 : vector<64x512xf32>
    %145 = arith.mulf %143, %144 : vector<64x512xf32>
    %cst_49 = arith.constant 4.471500e-02 : f32
    %146 = vector.broadcast %cst_49 : f32 to vector<64x512xf32>
    %147 = arith.mulf %146, %145 : vector<64x512xf32>
    %148 = arith.addf %143, %147 : vector<64x512xf32>
    %cst_50 = arith.constant 0.797884583 : f32
    %149 = vector.broadcast %cst_50 : f32 to vector<64x512xf32>
    %150 = arith.mulf %149, %148 : vector<64x512xf32>
    %151 = math.tanh %150 : vector<64x512xf32>
    %cst_51 = arith.constant 1.000000e+00 : f32
    %152 = vector.broadcast %cst_51 : f32 to vector<64x512xf32>
    %153 = arith.addf %152, %151 : vector<64x512xf32>
    %cst_52 = arith.constant 5.000000e-01 : f32
    %154 = vector.broadcast %cst_52 : f32 to vector<64x512xf32>
    %155 = arith.mulf %154, %153 : vector<64x512xf32>
    %156 = arith.mulf %143, %155 : vector<64x512xf32>
    %c0_53 = arith.constant 0 : index
    %c0_54 = arith.constant 0 : index
    %157 = vector.load %arg10[%c0_53, %c0_54] : memref<512x128xbf16, #tpu.memory_space<vmem>>, vector<512x128xbf16>
    %158 = arith.truncf %156 : vector<64x512xf32> to vector<64x512xbf16>
    %cst_55 = arith.constant dense<0.000000e+00> : vector<64x128xf32>
    %159 = tpu.matmul %158, %157, %cst_55 {dimension_numbers = #tpu.dot_dimension_numbers<[1], [0], [0], [1], [0, 0, 1, 1], [], []>} : vector<64x512xbf16>, vector<512x128xbf16>, vector<64x128xf32> -> vector<64x128xf32>
    %c0_56 = arith.constant 0 : index
    %c0_57 = arith.constant 0 : index
    %160 = vector.load %arg11[%c0_56, %c0_57] : memref<1x128xf32, #tpu.memory_space<vmem>>, vector<1x128xf32>
    %161 = vector.broadcast %160 : vector<1x128xf32> to vector<64x128xf32>
    %162 = arith.addf %159, %161 : vector<64x128xf32>
    %163 = arith.addf %137, %162 : vector<64x128xf32>
    %c0_58 = arith.constant 0 : index
    %c0_59 = arith.constant 0 : index
    %164 = vector.load %arg12[%c0_58, %c0_59] : memref<1x128xf32, #tpu.memory_space<vmem>>, vector<1x128xf32>
    %c0_60 = arith.constant 0 : index
    %c0_61 = arith.constant 0 : index
    %165 = vector.load %arg13[%c0_60, %c0_61] : memref<1x128xf32, #tpu.memory_space<vmem>>, vector<1x128xf32>
    %cst_62 = arith.constant dense<0.000000e+00> : vector<64xf32>
    %166 = vector.multi_reduction <add>, %163, %cst_62 [1] : vector<64x128xf32> to vector<64xf32>
    %167 = vector.shape_cast %166 : vector<64xf32> to vector<64x1xf32>
    %cst_63 = arith.constant 1.280000e+02 : f32
    %168 = vector.broadcast %cst_63 : f32 to vector<64x1xf32>
    %169 = arith.divf %167, %168 : vector<64x1xf32>
    %170 = vector.broadcast %169 : vector<64x1xf32> to vector<64x128xf32>
    %171 = arith.subf %163, %170 : vector<64x128xf32>
    %172 = arith.mulf %171, %171 : vector<64x128xf32>
    %cst_64 = arith.constant dense<0.000000e+00> : vector<64xf32>
    %173 = vector.multi_reduction <add>, %172, %cst_64 [1] : vector<64x128xf32> to vector<64xf32>
    %174 = vector.shape_cast %173 : vector<64xf32> to vector<64x1xf32>
    %cst_65 = arith.constant 1.280000e+02 : f32
    %175 = vector.broadcast %cst_65 : f32 to vector<64x1xf32>
    %176 = arith.divf %174, %175 : vector<64x1xf32>
    %177 = vector.broadcast %169 : vector<64x1xf32> to vector<64x128xf32>
    %178 = arith.subf %163, %177 : vector<64x128xf32>
    %cst_66 = arith.constant 9.99999974E-6 : f32
    %179 = vector.broadcast %cst_66 : f32 to vector<64x1xf32>
    %180 = arith.addf %176, %179 : vector<64x1xf32>
    %181 = math.rsqrt %180 : vector<64x1xf32>
    %182 = vector.broadcast %181 : vector<64x1xf32> to vector<64x128xf32>
    %183 = arith.mulf %178, %182 : vector<64x128xf32>
    %184 = vector.broadcast %164 : vector<1x128xf32> to vector<64x128xf32>
    %185 = arith.mulf %183, %184 : vector<64x128xf32>
    %186 = vector.broadcast %165 : vector<1x128xf32> to vector<64x128xf32>
    %187 = arith.addf %185, %186 : vector<64x128xf32>
    %188 = tpu.iota {dimensions = array<i32: 0>} : vector<8x64xi32>
    %189 = tpu.iota {dimensions = array<i32: 1>} : vector<8x64xi32>
    %c8_i32 = arith.constant 8 : i32
    %190 = vector.broadcast %c8_i32 : i32 to vector<8x64xi32>
    %191 = arith.muli %188, %190 : vector<8x64xi32>
    %192 = arith.cmpi sge, %189, %191 : vector<8x64xi32>
    %c8_i32_67 = arith.constant 8 : i32
    %193 = vector.broadcast %c8_i32_67 : i32 to vector<8x64xi32>
    %194 = arith.muli %188, %193 : vector<8x64xi32>
    %c8_i32_68 = arith.constant 8 : i32
    %195 = vector.broadcast %c8_i32_68 : i32 to vector<8x64xi32>
    %196 = arith.addi %194, %195 : vector<8x64xi32>
    %197 = arith.cmpi slt, %189, %196 : vector<8x64xi32>
    %198 = arith.andi %192, %197 : vector<8x64xi1>
    %cst_69 = arith.constant 1.250000e-01 : f32
    %cst_70 = arith.constant 0.000000e+00 : f32
    %199 = vector.broadcast %cst_69 : f32 to vector<8x64xf32>
    %200 = vector.broadcast %cst_70 : f32 to vector<8x64xf32>
    %201 = arith.select %198, %199, %200 : vector<8x64xi1>, vector<8x64xf32>
    %cst_71 = arith.constant dense<0.000000e+00> : vector<8x128xf32>
    %202 = tpu.matmul %201, %187, %cst_71 {dimension_numbers = #tpu.dot_dimension_numbers<[1], [0], [0], [1], [0, 0, 1, 1], [], []>} : vector<8x64xf32>, vector<64x128xf32>, vector<8x128xf32> -> vector<8x128xf32>
    %c0_72 = arith.constant 0 : index
    %c0_73 = arith.constant 0 : index
    %c0_74 = arith.constant 0 : index
    %203 = vector.load %arg14[%c0_72, %c0_73, %c0_74] : memref<1x8x128xf32, #tpu.memory_space<vmem>>, vector<1x8x128xf32>
    %204 = vector.shape_cast %203 : vector<1x8x128xf32> to vector<8x128xf32>
    %205 = vector.shape_cast %202 : vector<8x128xf32> to vector<1x8x128xf32>
    tpu.vector_store %arg14[%c0_72, %c0_73, %c0_74], %205 {strides = array<i32>} : memref<1x8x128xf32, #tpu.memory_space<vmem>>, vector<1x8x128xf32>,
    return
  }
  func.func @transform_0(%arg0: i32) -> (i32, i32, i32) {
    %c0_i32 = arith.constant 0 : i32
    %c0_i32_0 = arith.constant 0 : i32
    %c0_i32_1 = arith.constant 0 : i32
    return %arg0, %c0_i32, %c0_i32_0 : i32, i32, i32
  }
  func.func @transform_1(%arg0: i32) -> (i32, i32) {
    %c0_i32 = arith.constant 0 : i32
    %c0_i32_0 = arith.constant 0 : i32
    %c0_i32_1 = arith.constant 0 : i32
    return %c0_i32, %c0_i32_0 : i32, i32
  }
  func.func @transform_2(%arg0: i32) -> (i32, i32) {
    %c0_i32 = arith.constant 0 : i32
    %c0_i32_0 = arith.constant 0 : i32
    %c0_i32_1 = arith.constant 0 : i32
    return %c0_i32, %c0_i32_0 : i32, i32
  }
  func.func @transform_3(%arg0: i32) -> (i32, i32) {
    %c0_i32 = arith.constant 0 : i32
    %c0_i32_0 = arith.constant 0 : i32
    %c0_i32_1 = arith.constant 0 : i32
    return %c0_i32, %c0_i32_0 : i32, i32
  }
  func.func @transform_4(%arg0: i32) -> (i32, i32) {
    %c0_i32 = arith.constant 0 : i32
    %c0_i32_0 = arith.constant 0 : i32
    %c0_i32_1 = arith.constant 0 : i32
    return %c0_i32, %c0_i32_0 : i32, i32
  }
  func.func @transform_5(%arg0: i32) -> (i32, i32) {
    %c0_i32 = arith.constant 0 : i32
    %c0_i32_0 = arith.constant 0 : i32
    %c0_i32_1 = arith.constant 0 : i32
    return %c0_i32, %c0_i32_0 : i32, i32
  }
  func.func @transform_6(%arg0: i32) -> (i32, i32) {
    %c0_i32 = arith.constant 0 : i32
    %c0_i32_0 = arith.constant 0 : i32
    %c0_i32_1 = arith.constant 0 : i32
    return %c0_i32, %c0_i32_0 : i32, i32
  }
  func.func @transform_7(%arg0: i32) -> (i32, i32) {
    %c0_i32 = arith.constant 0 : i32
    %c0_i32_0 = arith.constant 0 : i32
    %c0_i32_1 = arith.constant 0 : i32
    return %c0_i32, %c0_i32_0 : i32, i32
  }
  func.func @transform_8(%arg0: i32) -> (i32, i32) {
    %c0_i32 = arith.constant 0 : i32
    %c0_i32_0 = arith.constant 0 : i32
    %c0_i32_1 = arith.constant 0 : i32
    return %c0_i32, %c0_i32_0 : i32, i32
  }
  func.func @transform_9(%arg0: i32) -> (i32, i32) {
    %c0_i32 = arith.constant 0 : i32
    %c0_i32_0 = arith.constant 0 : i32
    %c0_i32_1 = arith.constant 0 : i32
    return %c0_i32, %c0_i32_0 : i32, i32
  }
  func.func @transform_10(%arg0: i32) -> (i32, i32) {
    %c0_i32 = arith.constant 0 : i32
    %c0_i32_0 = arith.constant 0 : i32
    %c0_i32_1 = arith.constant 0 : i32
    return %c0_i32, %c0_i32_0 : i32, i32
  }
  func.func @transform_11(%arg0: i32) -> (i32, i32) {
    %c0_i32 = arith.constant 0 : i32
    %c0_i32_0 = arith.constant 0 : i32
    %c0_i32_1 = arith.constant 0 : i32
    return %c0_i32, %c0_i32_0 : i32, i32
  }
  func.func @transform_12(%arg0: i32) -> (i32, i32) {
    %c0_i32 = arith.constant 0 : i32
    %c0_i32_0 = arith.constant 0 : i32
    %c0_i32_1 = arith.constant 0 : i32
    return %c0_i32, %c0_i32_0 : i32, i32
  }
  func.func @transform_13(%arg0: i32) -> (i32, i32, i32) {
    %c0_i32 = arith.constant 0 : i32
    %c0_i32_0 = arith.constant 0 : i32
    %c0_i32_1 = arith.constant 0 : i32
    return %arg0, %c0_i32, %c0_i32_0 : i32, i32, i32
  }
}

module attributes {stable_mosaic.version = 11 : i64} {
  func.func @_layer_kernel(%arg0: i32, %arg1: memref<1x64x128xf32, #tpu.memory_space<vmem>>, %arg2: memref<128x384xbf16, #tpu.memory_space<vmem>>, %arg3: memref<1x384xf32, #tpu.memory_space<vmem>>, %arg4: memref<128x128xbf16, #tpu.memory_space<vmem>>, %arg5: memref<1x128xf32, #tpu.memory_space<vmem>>, %arg6: memref<1x128xf32, #tpu.memory_space<vmem>>, %arg7: memref<1x128xf32, #tpu.memory_space<vmem>>, %arg8: memref<128x512xbf16, #tpu.memory_space<vmem>>, %arg9: memref<1x512xf32, #tpu.memory_space<vmem>>, %arg10: memref<512x128xbf16, #tpu.memory_space<vmem>>, %arg11: memref<1x128xf32, #tpu.memory_space<vmem>>, %arg12: memref<1x128xf32, #tpu.memory_space<vmem>>, %arg13: memref<1x128xf32, #tpu.memory_space<vmem>>, %arg14: memref<1x64x128xf32, #tpu.memory_space<vmem>>) attributes {dimension_semantics = [#tpu.dimension_semantics<parallel>], iteration_bounds = array<i64: 2>, scalar_prefetch = 0 : i64, scratch_operands = 0 : i64, tpu.core_type = #tpu.core_type<tc>, window_params = [{transform_indices = @transform_0, window_bounds = array<i64: 1, 64, 128>}, {pipeline_mode = #tpu.pipeline_mode<synchronous>, transform_indices = @transform_1, window_bounds = array<i64: 128, 384>}, {pipeline_mode = #tpu.pipeline_mode<synchronous>, transform_indices = @transform_2, window_bounds = array<i64: 1, 384>}, {pipeline_mode = #tpu.pipeline_mode<synchronous>, transform_indices = @transform_3, window_bounds = array<i64: 128, 128>}, {pipeline_mode = #tpu.pipeline_mode<synchronous>, transform_indices = @transform_4, window_bounds = array<i64: 1, 128>}, {pipeline_mode = #tpu.pipeline_mode<synchronous>, transform_indices = @transform_5, window_bounds = array<i64: 1, 128>}, {pipeline_mode = #tpu.pipeline_mode<synchronous>, transform_indices = @transform_6, window_bounds = array<i64: 1, 128>}, {pipeline_mode = #tpu.pipeline_mode<synchronous>, transform_indices = @transform_7, window_bounds = array<i64: 128, 512>}, {pipeline_mode = #tpu.pipeline_mode<synchronous>, transform_indices = @transform_8, window_bounds = array<i64: 1, 512>}, {pipeline_mode = #tpu.pipeline_mode<synchronous>, transform_indices = @transform_9, window_bounds = array<i64: 512, 128>}, {pipeline_mode = #tpu.pipeline_mode<synchronous>, transform_indices = @transform_10, window_bounds = array<i64: 1, 128>}, {pipeline_mode = #tpu.pipeline_mode<synchronous>, transform_indices = @transform_11, window_bounds = array<i64: 1, 128>}, {pipeline_mode = #tpu.pipeline_mode<synchronous>, transform_indices = @transform_12, window_bounds = array<i64: 1, 128>}, {transform_indices = @transform_13, window_bounds = array<i64: 1, 64, 128>}]} {
    %c0 = arith.constant 0 : index
    %c0_0 = arith.constant 0 : index
    %c0_1 = arith.constant 0 : index
    %0 = vector.load %arg1[%c0, %c0_0, %c0_1] : memref<1x64x128xf32, #tpu.memory_space<vmem>>, vector<1x64x128xf32>
    %1 = vector.shape_cast %0 : vector<1x64x128xf32> to vector<64x128xf32>
    %c0_2 = arith.constant 0 : index
    %c0_3 = arith.constant 0 : index
    %2 = vector.load %arg2[%c0_2, %c0_3] : memref<128x384xbf16, #tpu.memory_space<vmem>>, vector<128x384xbf16>
    %3 = arith.truncf %1 : vector<64x128xf32> to vector<64x128xbf16>
    %cst = arith.constant dense<0.000000e+00> : vector<64x384xf32>
    %4 = tpu.matmul %3, %2, %cst {dimension_numbers = #tpu.dot_dimension_numbers<[1], [0], [0], [1], [0, 0, 1, 1], [], []>} : vector<64x128xbf16>, vector<128x384xbf16>, vector<64x384xf32> -> vector<64x384xf32>
    %c0_4 = arith.constant 0 : index
    %c0_5 = arith.constant 0 : index
    %5 = vector.load %arg3[%c0_4, %c0_5] : memref<1x384xf32, #tpu.memory_space<vmem>>, vector<1x384xf32>
    %6 = vector.broadcast %5 : vector<1x384xf32> to vector<64x384xf32>
    %7 = arith.addf %4, %6 : vector<64x384xf32>
    %c0_6 = arith.constant 0 : index
    %c0_7 = arith.constant 0 : index
    %8 = vector.load %arg4[%c0_6, %c0_7] : memref<128x128xbf16, #tpu.memory_space<vmem>>, vector<128x128xbf16>
    %cst_8 = arith.constant 0.000000e+00 : f32
    %9 = vector.broadcast %cst_8 : f32 to vector<64x128xf32>
    %10 = vector.extract_strided_slice %7 {offsets = [0, 0], sizes = [64, 32], strides = [1, 1]} : vector<64x384xf32> to vector<64x32xf32>
    %cst_9 = arith.constant 0.176776692 : f32
    %11 = vector.broadcast %cst_9 : f32 to vector<64x32xf32>
    %12 = arith.mulf %10, %11 : vector<64x32xf32>
    %13 = vector.extract_strided_slice %7 {offsets = [0, 128], sizes = [64, 32], strides = [1, 1]} : vector<64x384xf32> to vector<64x32xf32>
    %14 = vector.extract_strided_slice %7 {offsets = [0, 256], sizes = [64, 32], strides = [1, 1]} : vector<64x384xf32> to vector<64x32xf32>
    %15 = arith.truncf %12 : vector<64x32xf32> to vector<64x32xbf16>
    %16 = arith.truncf %13 : vector<64x32xf32> to vector<64x32xbf16>
    %cst_10 = arith.constant dense<0.000000e+00> : vector<64x64xf32>
    %17 = tpu.matmul %15, %16, %cst_10 {dimension_numbers = #tpu.dot_dimension_numbers<[1], [1], [0], [0], [0, 0, 1, 0], [], []>} : vector<64x32xbf16>, vector<64x32xbf16>, vector<64x64xf32> -> vector<64x64xf32>
    %cst_11 = arith.constant dense<0xFF800000> : vector<64xf32>
    %18 = vector.multi_reduction <maximumf>, %17, %cst_11 [1] : vector<64x64xf32> to vector<64xf32>
    %19 = vector.shape_cast %18 : vector<64xf32> to vector<64x1xf32>
    %20 = vector.broadcast %19 : vector<64x1xf32> to vector<64x64xf32>
    %21 = arith.subf %17, %20 : vector<64x64xf32>
    %22 = math.exp %21 : vector<64x64xf32>
    %cst_12 = arith.constant dense<0.000000e+00> : vector<64xf32>
    %23 = vector.multi_reduction <add>, %22, %cst_12 [1] : vector<64x64xf32> to vector<64xf32>
    %24 = vector.shape_cast %23 : vector<64xf32> to vector<64x1xf32>
    %25 = tpu.reciprocal %24 {approx = true} : vector<64x1xf32> -> vector<64x1xf32>
    %26 = vector.broadcast %25 : vector<64x1xf32> to vector<64x64xf32>
    %27 = arith.mulf %22, %26 : vector<64x64xf32>
    %28 = arith.truncf %27 : vector<64x64xf32> to vector<64x64xbf16>
    %29 = arith.truncf %14 : vector<64x32xf32> to vector<64x32xbf16>
    %cst_13 = arith.constant dense<0.000000e+00> : vector<64x32xf32>
    %30 = tpu.matmul %28, %29, %cst_13 {dimension_numbers = #tpu.dot_dimension_numbers<[1], [0], [0], [1], [0, 0, 1, 1], [], []>} : vector<64x64xbf16>, vector<64x32xbf16>, vector<64x32xf32> -> vector<64x32xf32>
    %31 = arith.truncf %30 : vector<64x32xf32> to vector<64x32xbf16>
    %32 = vector.extract_strided_slice %8 {offsets = [0, 0], sizes = [32, 128], strides = [1, 1]} : vector<128x128xbf16> to vector<32x128xbf16>
    %cst_14 = arith.constant dense<0.000000e+00> : vector<64x128xf32>
    %33 = tpu.matmul %31, %32, %cst_14 {dimension_numbers = #tpu.dot_dimension_numbers<[1], [0], [0], [1], [0, 0, 1, 1], [], []>} : vector<64x32xbf16>, vector<32x128xbf16>, vector<64x128xf32> -> vector<64x128xf32>
    %34 = arith.addf %9, %33 : vector<64x128xf32>
    %35 = vector.extract_strided_slice %7 {offsets = [0, 32], sizes = [64, 32], strides = [1, 1]} : vector<64x384xf32> to vector<64x32xf32>
    %cst_15 = arith.constant 0.176776692 : f32
    %36 = vector.broadcast %cst_15 : f32 to vector<64x32xf32>
    %37 = arith.mulf %35, %36 : vector<64x32xf32>
    %38 = vector.extract_strided_slice %7 {offsets = [0, 160], sizes = [64, 32], strides = [1, 1]} : vector<64x384xf32> to vector<64x32xf32>
    %39 = vector.extract_strided_slice %7 {offsets = [0, 288], sizes = [64, 32], strides = [1, 1]} : vector<64x384xf32> to vector<64x32xf32>
    %40 = arith.truncf %37 : vector<64x32xf32> to vector<64x32xbf16>
    %41 = arith.truncf %38 : vector<64x32xf32> to vector<64x32xbf16>
    %cst_16 = arith.constant dense<0.000000e+00> : vector<64x64xf32>
    %42 = tpu.matmul %40, %41, %cst_16 {dimension_numbers = #tpu.dot_dimension_numbers<[1], [1], [0], [0], [0, 0, 1, 0], [], []>} : vector<64x32xbf16>, vector<64x32xbf16>, vector<64x64xf32> -> vector<64x64xf32>
    %cst_17 = arith.constant dense<0xFF800000> : vector<64xf32>
    %43 = vector.multi_reduction <maximumf>, %42, %cst_17 [1] : vector<64x64xf32> to vector<64xf32>
    %44 = vector.shape_cast %43 : vector<64xf32> to vector<64x1xf32>
    %45 = vector.broadcast %44 : vector<64x1xf32> to vector<64x64xf32>
    %46 = arith.subf %42, %45 : vector<64x64xf32>
    %47 = math.exp %46 : vector<64x64xf32>
    %cst_18 = arith.constant dense<0.000000e+00> : vector<64xf32>
    %48 = vector.multi_reduction <add>, %47, %cst_18 [1] : vector<64x64xf32> to vector<64xf32>
    %49 = vector.shape_cast %48 : vector<64xf32> to vector<64x1xf32>
    %50 = tpu.reciprocal %49 {approx = true} : vector<64x1xf32> -> vector<64x1xf32>
    %51 = vector.broadcast %50 : vector<64x1xf32> to vector<64x64xf32>
    %52 = arith.mulf %47, %51 : vector<64x64xf32>
    %53 = arith.truncf %52 : vector<64x64xf32> to vector<64x64xbf16>
    %54 = arith.truncf %39 : vector<64x32xf32> to vector<64x32xbf16>
    %cst_19 = arith.constant dense<0.000000e+00> : vector<64x32xf32>
    %55 = tpu.matmul %53, %54, %cst_19 {dimension_numbers = #tpu.dot_dimension_numbers<[1], [0], [0], [1], [0, 0, 1, 1], [], []>} : vector<64x64xbf16>, vector<64x32xbf16>, vector<64x32xf32> -> vector<64x32xf32>
    %56 = arith.truncf %55 : vector<64x32xf32> to vector<64x32xbf16>
    %57 = vector.extract_strided_slice %8 {offsets = [32, 0], sizes = [32, 128], strides = [1, 1]} : vector<128x128xbf16> to vector<32x128xbf16>
    %cst_20 = arith.constant dense<0.000000e+00> : vector<64x128xf32>
    %58 = tpu.matmul %56, %57, %cst_20 {dimension_numbers = #tpu.dot_dimension_numbers<[1], [0], [0], [1], [0, 0, 1, 1], [], []>} : vector<64x32xbf16>, vector<32x128xbf16>, vector<64x128xf32> -> vector<64x128xf32>
    %59 = arith.addf %34, %58 : vector<64x128xf32>
    %60 = vector.extract_strided_slice %7 {offsets = [0, 64], sizes = [64, 32], strides = [1, 1]} : vector<64x384xf32> to vector<64x32xf32>
    %cst_21 = arith.constant 0.176776692 : f32
    %61 = vector.broadcast %cst_21 : f32 to vector<64x32xf32>
    %62 = arith.mulf %60, %61 : vector<64x32xf32>
    %63 = vector.extract_strided_slice %7 {offsets = [0, 192], sizes = [64, 32], strides = [1, 1]} : vector<64x384xf32> to vector<64x32xf32>
    %64 = vector.extract_strided_slice %7 {offsets = [0, 320], sizes = [64, 32], strides = [1, 1]} : vector<64x384xf32> to vector<64x32xf32>
    %65 = arith.truncf %62 : vector<64x32xf32> to vector<64x32xbf16>
    %66 = arith.truncf %63 : vector<64x32xf32> to vector<64x32xbf16>
    %cst_22 = arith.constant dense<0.000000e+00> : vector<64x64xf32>
    %67 = tpu.matmul %65, %66, %cst_22 {dimension_numbers = #tpu.dot_dimension_numbers<[1], [1], [0], [0], [0, 0, 1, 0], [], []>} : vector<64x32xbf16>, vector<64x32xbf16>, vector<64x64xf32> -> vector<64x64xf32>
    %cst_23 = arith.constant dense<0xFF800000> : vector<64xf32>
    %68 = vector.multi_reduction <maximumf>, %67, %cst_23 [1] : vector<64x64xf32> to vector<64xf32>
    %69 = vector.shape_cast %68 : vector<64xf32> to vector<64x1xf32>
    %70 = vector.broadcast %69 : vector<64x1xf32> to vector<64x64xf32>
    %71 = arith.subf %67, %70 : vector<64x64xf32>
    %72 = math.exp %71 : vector<64x64xf32>
    %cst_24 = arith.constant dense<0.000000e+00> : vector<64xf32>
    %73 = vector.multi_reduction <add>, %72, %cst_24 [1] : vector<64x64xf32> to vector<64xf32>
    %74 = vector.shape_cast %73 : vector<64xf32> to vector<64x1xf32>
    %75 = tpu.reciprocal %74 {approx = true} : vector<64x1xf32> -> vector<64x1xf32>
    %76 = vector.broadcast %75 : vector<64x1xf32> to vector<64x64xf32>
    %77 = arith.mulf %72, %76 : vector<64x64xf32>
    %78 = arith.truncf %77 : vector<64x64xf32> to vector<64x64xbf16>
    %79 = arith.truncf %64 : vector<64x32xf32> to vector<64x32xbf16>
    %cst_25 = arith.constant dense<0.000000e+00> : vector<64x32xf32>
    %80 = tpu.matmul %78, %79, %cst_25 {dimension_numbers = #tpu.dot_dimension_numbers<[1], [0], [0], [1], [0, 0, 1, 1], [], []>} : vector<64x64xbf16>, vector<64x32xbf16>, vector<64x32xf32> -> vector<64x32xf32>
    %81 = arith.truncf %80 : vector<64x32xf32> to vector<64x32xbf16>
    %82 = vector.extract_strided_slice %8 {offsets = [64, 0], sizes = [32, 128], strides = [1, 1]} : vector<128x128xbf16> to vector<32x128xbf16>
    %cst_26 = arith.constant dense<0.000000e+00> : vector<64x128xf32>
    %83 = tpu.matmul %81, %82, %cst_26 {dimension_numbers = #tpu.dot_dimension_numbers<[1], [0], [0], [1], [0, 0, 1, 1], [], []>} : vector<64x32xbf16>, vector<32x128xbf16>, vector<64x128xf32> -> vector<64x128xf32>
    %84 = arith.addf %59, %83 : vector<64x128xf32>
    %85 = vector.extract_strided_slice %7 {offsets = [0, 96], sizes = [64, 32], strides = [1, 1]} : vector<64x384xf32> to vector<64x32xf32>
    %cst_27 = arith.constant 0.176776692 : f32
    %86 = vector.broadcast %cst_27 : f32 to vector<64x32xf32>
    %87 = arith.mulf %85, %86 : vector<64x32xf32>
    %88 = vector.extract_strided_slice %7 {offsets = [0, 224], sizes = [64, 32], strides = [1, 1]} : vector<64x384xf32> to vector<64x32xf32>
    %89 = vector.extract_strided_slice %7 {offsets = [0, 352], sizes = [64, 32], strides = [1, 1]} : vector<64x384xf32> to vector<64x32xf32>
    %90 = arith.truncf %87 : vector<64x32xf32> to vector<64x32xbf16>
    %91 = arith.truncf %88 : vector<64x32xf32> to vector<64x32xbf16>
    %cst_28 = arith.constant dense<0.000000e+00> : vector<64x64xf32>
    %92 = tpu.matmul %90, %91, %cst_28 {dimension_numbers = #tpu.dot_dimension_numbers<[1], [1], [0], [0], [0, 0, 1, 0], [], []>} : vector<64x32xbf16>, vector<64x32xbf16>, vector<64x64xf32> -> vector<64x64xf32>
    %cst_29 = arith.constant dense<0xFF800000> : vector<64xf32>
    %93 = vector.multi_reduction <maximumf>, %92, %cst_29 [1] : vector<64x64xf32> to vector<64xf32>
    %94 = vector.shape_cast %93 : vector<64xf32> to vector<64x1xf32>
    %95 = vector.broadcast %94 : vector<64x1xf32> to vector<64x64xf32>
    %96 = arith.subf %92, %95 : vector<64x64xf32>
    %97 = math.exp %96 : vector<64x64xf32>
    %cst_30 = arith.constant dense<0.000000e+00> : vector<64xf32>
    %98 = vector.multi_reduction <add>, %97, %cst_30 [1] : vector<64x64xf32> to vector<64xf32>
    %99 = vector.shape_cast %98 : vector<64xf32> to vector<64x1xf32>
    %100 = tpu.reciprocal %99 {approx = true} : vector<64x1xf32> -> vector<64x1xf32>
    %101 = vector.broadcast %100 : vector<64x1xf32> to vector<64x64xf32>
    %102 = arith.mulf %97, %101 : vector<64x64xf32>
    %103 = arith.truncf %102 : vector<64x64xf32> to vector<64x64xbf16>
    %104 = arith.truncf %89 : vector<64x32xf32> to vector<64x32xbf16>
    %cst_31 = arith.constant dense<0.000000e+00> : vector<64x32xf32>
    %105 = tpu.matmul %103, %104, %cst_31 {dimension_numbers = #tpu.dot_dimension_numbers<[1], [0], [0], [1], [0, 0, 1, 1], [], []>} : vector<64x64xbf16>, vector<64x32xbf16>, vector<64x32xf32> -> vector<64x32xf32>
    %106 = arith.truncf %105 : vector<64x32xf32> to vector<64x32xbf16>
    %107 = vector.extract_strided_slice %8 {offsets = [96, 0], sizes = [32, 128], strides = [1, 1]} : vector<128x128xbf16> to vector<32x128xbf16>
    %cst_32 = arith.constant dense<0.000000e+00> : vector<64x128xf32>
    %108 = tpu.matmul %106, %107, %cst_32 {dimension_numbers = #tpu.dot_dimension_numbers<[1], [0], [0], [1], [0, 0, 1, 1], [], []>} : vector<64x32xbf16>, vector<32x128xbf16>, vector<64x128xf32> -> vector<64x128xf32>
    %109 = arith.addf %84, %108 : vector<64x128xf32>
    %110 = arith.addf %1, %109 : vector<64x128xf32>
    %c0_33 = arith.constant 0 : index
    %c0_34 = arith.constant 0 : index
    %111 = vector.load %arg5[%c0_33, %c0_34] : memref<1x128xf32, #tpu.memory_space<vmem>>, vector<1x128xf32>
    %112 = vector.broadcast %111 : vector<1x128xf32> to vector<64x128xf32>
    %113 = arith.addf %110, %112 : vector<64x128xf32>
    %c0_35 = arith.constant 0 : index
    %c0_36 = arith.constant 0 : index
    %114 = vector.load %arg6[%c0_35, %c0_36] : memref<1x128xf32, #tpu.memory_space<vmem>>, vector<1x128xf32>
    %c0_37 = arith.constant 0 : index
    %c0_38 = arith.constant 0 : index
    %115 = vector.load %arg7[%c0_37, %c0_38] : memref<1x128xf32, #tpu.memory_space<vmem>>, vector<1x128xf32>
    %cst_39 = arith.constant dense<0.000000e+00> : vector<64xf32>
    %116 = vector.multi_reduction <add>, %113, %cst_39 [1] : vector<64x128xf32> to vector<64xf32>
    %117 = vector.shape_cast %116 : vector<64xf32> to vector<64x1xf32>
    %cst_40 = arith.constant 1.280000e+02 : f32
    %118 = vector.broadcast %cst_40 : f32 to vector<64x1xf32>
    %119 = arith.divf %117, %118 : vector<64x1xf32>
    %120 = vector.broadcast %119 : vector<64x1xf32> to vector<64x128xf32>
    %121 = arith.subf %113, %120 : vector<64x128xf32>
    %122 = arith.mulf %121, %121 : vector<64x128xf32>
    %cst_41 = arith.constant dense<0.000000e+00> : vector<64xf32>
    %123 = vector.multi_reduction <add>, %122, %cst_41 [1] : vector<64x128xf32> to vector<64xf32>
    %124 = vector.shape_cast %123 : vector<64xf32> to vector<64x1xf32>
    %cst_42 = arith.constant 1.280000e+02 : f32
    %125 = vector.broadcast %cst_42 : f32 to vector<64x1xf32>
    %126 = arith.divf %124, %125 : vector<64x1xf32>
    %127 = vector.broadcast %119 : vector<64x1xf32> to vector<64x128xf32>
    %128 = arith.subf %113, %127 : vector<64x128xf32>
    %cst_43 = arith.constant 9.99999974E-6 : f32
    %129 = vector.broadcast %cst_43 : f32 to vector<64x1xf32>
    %130 = arith.addf %126, %129 : vector<64x1xf32>
    %131 = math.rsqrt %130 : vector<64x1xf32>
    %132 = vector.broadcast %131 : vector<64x1xf32> to vector<64x128xf32>
    %133 = arith.mulf %128, %132 : vector<64x128xf32>
    %134 = vector.broadcast %114 : vector<1x128xf32> to vector<64x128xf32>
    %135 = arith.mulf %133, %134 : vector<64x128xf32>
    %136 = vector.broadcast %115 : vector<1x128xf32> to vector<64x128xf32>
    %137 = arith.addf %135, %136 : vector<64x128xf32>
    %c0_44 = arith.constant 0 : index
    %c0_45 = arith.constant 0 : index
    %138 = vector.load %arg8[%c0_44, %c0_45] : memref<128x512xbf16, #tpu.memory_space<vmem>>, vector<128x512xbf16>
    %139 = arith.truncf %137 : vector<64x128xf32> to vector<64x128xbf16>
    %cst_46 = arith.constant dense<0.000000e+00> : vector<64x512xf32>
    %140 = tpu.matmul %139, %138, %cst_46 {dimension_numbers = #tpu.dot_dimension_numbers<[1], [0], [0], [1], [0, 0, 1, 1], [], []>} : vector<64x128xbf16>, vector<128x512xbf16>, vector<64x512xf32> -> vector<64x512xf32>
    %c0_47 = arith.constant 0 : index
    %c0_48 = arith.constant 0 : index
    %141 = vector.load %arg9[%c0_47, %c0_48] : memref<1x512xf32, #tpu.memory_space<vmem>>, vector<1x512xf32>
    %142 = vector.broadcast %141 : vector<1x512xf32> to vector<64x512xf32>
    %143 = arith.addf %140, %142 : vector<64x512xf32>
    %144 = arith.mulf %143, %143 : vector<64x512xf32>
    %145 = arith.mulf %143, %144 : vector<64x512xf32>
    %cst_49 = arith.constant 4.471500e-02 : f32
    %146 = vector.broadcast %cst_49 : f32 to vector<64x512xf32>
    %147 = arith.mulf %146, %145 : vector<64x512xf32>
    %148 = arith.addf %143, %147 : vector<64x512xf32>
    %cst_50 = arith.constant 0.797884583 : f32
    %149 = vector.broadcast %cst_50 : f32 to vector<64x512xf32>
    %150 = arith.mulf %149, %148 : vector<64x512xf32>
    %151 = math.tanh %150 : vector<64x512xf32>
    %cst_51 = arith.constant 1.000000e+00 : f32
    %152 = vector.broadcast %cst_51 : f32 to vector<64x512xf32>
    %153 = arith.addf %152, %151 : vector<64x512xf32>
    %cst_52 = arith.constant 5.000000e-01 : f32
    %154 = vector.broadcast %cst_52 : f32 to vector<64x512xf32>
    %155 = arith.mulf %154, %153 : vector<64x512xf32>
    %156 = arith.mulf %143, %155 : vector<64x512xf32>
    %c0_53 = arith.constant 0 : index
    %c0_54 = arith.constant 0 : index
    %157 = vector.load %arg10[%c0_53, %c0_54] : memref<512x128xbf16, #tpu.memory_space<vmem>>, vector<512x128xbf16>
    %158 = arith.truncf %156 : vector<64x512xf32> to vector<64x512xbf16>
    %cst_55 = arith.constant dense<0.000000e+00> : vector<64x128xf32>
    %159 = tpu.matmul %158, %157, %cst_55 {dimension_numbers = #tpu.dot_dimension_numbers<[1], [0], [0], [1], [0, 0, 1, 1], [], []>} : vector<64x512xbf16>, vector<512x128xbf16>, vector<64x128xf32> -> vector<64x128xf32>
    %c0_56 = arith.constant 0 : index
    %c0_57 = arith.constant 0 : index
    %160 = vector.load %arg11[%c0_56, %c0_57] : memref<1x128xf32, #tpu.memory_space<vmem>>, vector<1x128xf32>
    %161 = vector.broadcast %160 : vector<1x128xf32> to vector<64x128xf32>
    %162 = arith.addf %159, %161 : vector<64x128xf32>
    %163 = arith.addf %137, %162 : vector<64x128xf32>
    %c0_58 = arith.constant 0 : index
    %c0_59 = arith.constant 0 : index
    %164 = vector.load %arg12[%c0_58, %c0_59] : memref<1x128xf32, #tpu.memory_space<vmem>>, vector<1x128xf32>
    %c0_60 = arith.constant 0 : index
    %c0_61 = arith.constant 0 : index
    %165 = vector.load %arg13[%c0_60, %c0_61] : memref<1x128xf32, #tpu.memory_space<vmem>>, vector<1x128xf32>
    %cst_62 = arith.constant dense<0.000000e+00> : vector<64xf32>
    %166 = vector.multi_reduction <add>, %163, %cst_62 [1] : vector<64x128xf32> to vector<64xf32>
    %167 = vector.shape_cast %166 : vector<64xf32> to vector<64x1xf32>
    %cst_63 = arith.constant 1.280000e+02 : f32
    %168 = vector.broadcast %cst_63 : f32 to vector<64x1xf32>
    %169 = arith.divf %167, %168 : vector<64x1xf32>
    %170 = vector.broadcast %169 : vector<64x1xf32> to vector<64x128xf32>
    %171 = arith.subf %163, %170 : vector<64x128xf32>
    %172 = arith.mulf %171, %171 : vector<64x128xf32>
    %cst_64 = arith.constant dense<0.000000e+00> : vector<64xf32>
    %173 = vector.multi_reduction <add>, %172, %cst_64 [1] : vector<64x128xf32> to vector<64xf32>
    %174 = vector.shape_cast %173 : vector<64xf32> to vector<64x1xf32>
    %cst_65 = arith.constant 1.280000e+02 : f32
    %175 = vector.broadcast %cst_65 : f32 to vector<64x1xf32>
    %176 = arith.divf %174, %175 : vector<64x1xf32>
    %177 = vector.broadcast %169 : vector<64x1xf32> to vector<64x128xf32>
    %178 = arith.subf %163, %177 : vector<64x128xf32>
    %cst_66 = arith.constant 9.99999974E-6 : f32
    %179 = vector.broadcast %cst_66 : f32 to vector<64x1xf32>
    %180 = arith.addf %176, %179 : vector<64x1xf32>
    %181 = math.rsqrt %180 : vector<64x1xf32>
    %182 = vector.broadcast %181 : vector<64x1xf32> to vector<64x128xf32>
    %183 = arith.mulf %178, %182 : vector<64x128xf32>
    %184 = vector.broadcast %164 : vector<1x128xf32> to vector<64x128xf32>
    %185 = arith.mulf %183, %184 : vector<64x128xf32>
    %186 = vector.broadcast %165 : vector<1x128xf32> to vector<64x128xf32>
    %187 = arith.addf %185, %186 : vector<64x128xf32>
    %c0_67 = arith.constant 0 : index
    %c0_68 = arith.constant 0 : index
    %c0_69 = arith.constant 0 : index
    %188 = vector.load %arg14[%c0_67, %c0_68, %c0_69] : memref<1x64x128xf32, #tpu.memory_space<vmem>>, vector<1x64x128xf32>
    %189 = vector.shape_cast %188 : vector<1x64x128xf32> to vector<64x128xf32>
    %190 = vector.shape_cast %187 : vector<64x128xf32> to vector<1x64x128xf32>
    tpu.vector_store %arg14[%c0_67, %c0_68, %c0_69], %190 {strides = array<i32>} : memref<1x64x128xf32, #tpu.memory_space<vmem>>, vector<1x64x128xf32>,
    return
  }
  func.func @transform_0(%arg0: i32) -> (i32, i32, i32) {
    %c0_i32 = arith.constant 0 : i32
    %c0_i32_0 = arith.constant 0 : i32
    %c0_i32_1 = arith.constant 0 : i32
    return %arg0, %c0_i32, %c0_i32_0 : i32, i32, i32
  }
  func.func @transform_1(%arg0: i32) -> (i32, i32) {
    %c0_i32 = arith.constant 0 : i32
    %c0_i32_0 = arith.constant 0 : i32
    %c0_i32_1 = arith.constant 0 : i32
    return %c0_i32, %c0_i32_0 : i32, i32
  }
  func.func @transform_2(%arg0: i32) -> (i32, i32) {
    %c0_i32 = arith.constant 0 : i32
    %c0_i32_0 = arith.constant 0 : i32
    %c0_i32_1 = arith.constant 0 : i32
    return %c0_i32, %c0_i32_0 : i32, i32
  }
  func.func @transform_3(%arg0: i32) -> (i32, i32) {
    %c0_i32 = arith.constant 0 : i32
    %c0_i32_0 = arith.constant 0 : i32
    %c0_i32_1 = arith.constant 0 : i32
    return %c0_i32, %c0_i32_0 : i32, i32
  }
  func.func @transform_4(%arg0: i32) -> (i32, i32) {
    %c0_i32 = arith.constant 0 : i32
    %c0_i32_0 = arith.constant 0 : i32
    %c0_i32_1 = arith.constant 0 : i32
    return %c0_i32, %c0_i32_0 : i32, i32
  }
  func.func @transform_5(%arg0: i32) -> (i32, i32) {
    %c0_i32 = arith.constant 0 : i32
    %c0_i32_0 = arith.constant 0 : i32
    %c0_i32_1 = arith.constant 0 : i32
    return %c0_i32, %c0_i32_0 : i32, i32
  }
  func.func @transform_6(%arg0: i32) -> (i32, i32) {
    %c0_i32 = arith.constant 0 : i32
    %c0_i32_0 = arith.constant 0 : i32
    %c0_i32_1 = arith.constant 0 : i32
    return %c0_i32, %c0_i32_0 : i32, i32
  }
  func.func @transform_7(%arg0: i32) -> (i32, i32) {
    %c0_i32 = arith.constant 0 : i32
    %c0_i32_0 = arith.constant 0 : i32
    %c0_i32_1 = arith.constant 0 : i32
    return %c0_i32, %c0_i32_0 : i32, i32
  }
  func.func @transform_8(%arg0: i32) -> (i32, i32) {
    %c0_i32 = arith.constant 0 : i32
    %c0_i32_0 = arith.constant 0 : i32
    %c0_i32_1 = arith.constant 0 : i32
    return %c0_i32, %c0_i32_0 : i32, i32
  }
  func.func @transform_9(%arg0: i32) -> (i32, i32) {
    %c0_i32 = arith.constant 0 : i32
    %c0_i32_0 = arith.constant 0 : i32
    %c0_i32_1 = arith.constant 0 : i32
    return %c0_i32, %c0_i32_0 : i32, i32
  }
  func.func @transform_10(%arg0: i32) -> (i32, i32) {
    %c0_i32 = arith.constant 0 : i32
    %c0_i32_0 = arith.constant 0 : i32
    %c0_i32_1 = arith.constant 0 : i32
    return %c0_i32, %c0_i32_0 : i32, i32
  }
  func.func @transform_11(%arg0: i32) -> (i32, i32) {
    %c0_i32 = arith.constant 0 : i32
    %c0_i32_0 = arith.constant 0 : i32
    %c0_i32_1 = arith.constant 0 : i32
    return %c0_i32, %c0_i32_0 : i32, i32
  }
  func.func @transform_12(%arg0: i32) -> (i32, i32) {
    %c0_i32 = arith.constant 0 : i32
    %c0_i32_0 = arith.constant 0 : i32
    %c0_i32_1 = arith.constant 0 : i32
    return %c0_i32, %c0_i32_0 : i32, i32
  }
  func.func @transform_13(%arg0: i32) -> (i32, i32, i32) {
    %c0_i32 = arith.constant 0 : i32
    %c0_i32_0 = arith.constant 0 : i32
    %c0_i32_1 = arith.constant 0 : i32
    return %arg0, %c0_i32, %c0_i32_0 : i32, i32, i32
  }
}

</mosaic_0001>

<bundles_post_ra>
// kernel: mae_ast_model_forward.3
= control target key start
LH: loop header
LB: loop body
LE: loop exit
PB: predicated region body
PF: predicated region fallthrough
CT: control target
= control target key end

     0   :  { %s1156_s0 = inlined_call_operand.vmem [shape: f32[2,64,16], index: 0, kind: input, shape index: {}]   ;;  %s1157_s1 = inlined_call_operand.vmem [shape: bf16[16,128], index: 1, kind: input, shape index: {}]   ;;  %s1158_s2 = inlined_call_operand.vmem [shape: f32[1,128], index: 2, kind: input, shape index: {}]   ;;  %s1159_s3 = inlined_call_operand.vmem [shape: f32[64,128], index: 3, kind: input, shape index: {}]   ;;  %s1160_s4 = inlined_call_operand.vmem [shape: f32[1,128], index: 4, kind: input, shape index: {}]   ;;  %s1161_s5 = inlined_call_operand.vmem [shape: f32[1,128], index: 5, kind: input, shape index: {}]   ;;  %s1162_s6 = inlined_call_operand.hbm [shape: f32[2,64,128], index: 6, kind: output, shape index: {0}]   ;;  %s1163_s7 = inlined_call_operand.vmem [shape: f32[2,64,128], index: 7, kind: output, shape index: {1}]  }
   0x1   :  { %1165 = sst [smem:[#allocation5_spill]] %s1156_s0 }
   0x2   :  { %13 = vsyncpa [#allocation3], 0 }
   0x3   :  { %15 = vsyncpa [#allocation3 + $0x1], 0  ;;  %s890_s24 = smov 0   ;;  %s892_s25 = smov 0  }
   0x4   :  { %s894_s26 = smov 0   ;;  %s896_s27 = smov 0  }
   0x5 LB: > { %s911_s28 = sadd.s32 4294967295, %s845_s27   ;;  %s691_s29 = sadd.s32 4294967294, %s845_s27   ;;  %s845_s27 = sphi %s896_s27, %s1173_s27   ;;  %s841_s26 = sphi %s894_s26, %s1172_s26   ;;  %s837_s25 = sphi %s892_s25, %s1171_s25   ;;  %s833_s24 = sphi %s890_s24, %s1170_s24  }
   0x6   : > { %s915_s30 = sadd.s32 1, %s845_s27   ;;  %s159_s8 = sadd.s32 1, %s841_s26 }
   0x7   : > { %s156_s9 = ssub.s32 %s845_s27, %s915_s30  ;;  %p169_p0 = scmp.ne.s32.totalorder %s841_s26, %s837_s25 }
   0x8   : > { %p157_p1 = scmp.eq.s32.totalorder %s156_s9, 0  ;;  %p170_p2 = scmp.eq.s32.totalorder %s911_s28, 1 }
   0x9   : > { %p175_p3 = scmp.ne.s32.totalorder %s837_s25, %s833_s24  ;;  %p176_p4 = scmp.eq.s32.totalorder %s691_s29, 1 }
   0xa   : > { %s926_s10 = scalar_select %p157_p1, %s841_s26, %s159_s8  }
   0xb   : > { %p928_p5 = por %p170_p2, %p169_p0  ;;  %p932_p6 = por %p176_p4, %p175_p3 }
   0xc   : > { %p694_p7 = scmp.ge.s32.totalorder %s845_s27, 1  ;;  %p243_p8 = scmp.lt.s32.totalorder %s845_s27, 3 }
   0xe   : > { %p244_p9 = pnand %p694_p7, %p243_p8 }
   0xf   : > { %p280_p10 = scmp.lt.s32.totalorder (!%p244_p9), %s911_s28, 1  ;;  %s1168_s0 = sld [smem:[#allocation5_spill]] (!%p244_p9) }
  0x10   : > { %247 = sbr.rel (%p244_p9) target bundleno = 448 (0x1c0), region = 44  ;;  %s270_s20 = sand.u32 (!%p244_p9), 1, %s837_s25  }
  0x11   : > { %s695_s21 = sshll.u32 (!%p244_p9), %s270_s20, 6  ;;  %s581_s9 = scalar_lea.sflag (!%p244_p9), [#allocation3], %s270_s20 }
  0x12   : > { %s963_s14 = scalar_lea.vmem (!%p244_p9), [#allocation2], %s695_s21 }
  0x13   : > { %s598_s29 = sshll.u32 (!%p244_p9), %s963_s14, 4  ;;  %s599_s29 = int_to_ptr.vmem [resolvable:$true] %s598_s29 }
  0x15   : > { %v715_v0 = vld [vmem:[%s1157_s1] sm:$0xff]  ;;  %s943_s15 = scalar_select %p280_p10, %s911_s28, 1  ;;  %vm315_vm0 = vcmask 130048   ;;  %v367_v18 = vld [vmem:[%s1159_s3 + $0x10] sm:$0xff]  ;;  %v366_v27 = vld [vmem:[%s1159_s3 + $0x8] sm:$0xff]  ;;  %v847_v46 = vmov 128.0  }
  0x16   : > { %335 = vmatpush.bf16.msra.mxu0 %v715_v0  ;;  %717 = vmatpush.bf16.msra.mxu1 %v715_v0  ;;  %v762_v13 = vld [vmem:[%s1158_s2] ss:$0 sm:$0xff]  ;;  %v368_v31 = vld [vmem:[%s1159_s3 + $0x18] sm:$0xff]  ;;  %v370_v37 = vld [vmem:[%s1159_s3 + $0x28] sm:$0xff]  ;;  %765 = vrcp.f32 %v847_v46 }
  0x17   : > { %718 = vmatpush.bf16.msra.mxu2 %v715_v0  ;;  %719 = vmatpush.bf16.msra.mxu3 %v715_v0  ;;  %s1164_s16 = sshll.u32 %s943_s15, 6  ;;  %v365_v15 = vld [vmem:[%s1159_s3] sm:$0xff]  ;;  %v371_v40 = vld [vmem:[%s1159_s3 + $0x30] sm:$0xff]  ;;  %v372_v42 = vld [vmem:[%s1159_s3 + $0x38] sm:$0xff] }
  0x18   : > { %s284_s19 = scalar_lea.vmem %s1168_s0, %s1164_s16  ;;  %v369_v23 = vld [vmem:[%s1159_s3 + $0x20] sm:$0xff] }
  0x19   : > { %v291_v1 = vld [vmem:[%s284_s19] sm:$0xff]  ;;  %v292_v2 = vld [vmem:[%s284_s19 + $0x8] sm:$0xff]  ;;  %v293_v3 = vld [vmem:[%s284_s19 + $0x10] sm:$0xff] }
  0x1a   : > { %v301_v4 = vpack.c.bf16 %v292_v2, %v291_v1  ;;  %v294_v5 = vld [vmem:[%s284_s19 + $0x18] sm:$0xff]  ;;  %v295_v6 = vld [vmem:[%s284_s19 + $0x20] sm:$0xff]  ;;  %v296_v7 = vld [vmem:[%s284_s19 + $0x28] sm:$0xff] }
  0x1b   : > { %v302_v8 = vpack.c.bf16 %v294_v5, %v293_v3  ;;  %v303_v9 = vpack.c.bf16 %v296_v7, %v295_v6  ;;  %v297_v10 = vld [vmem:[%s284_s19 + $0x30] sm:$0xff]  ;;  %v298_v11 = vld [vmem:[%s284_s19 + $0x38] sm:$0xff]  ;;  %s716_s19 = sshll.u32 %s911_s28, 6  ;;  %s803_s28 = scalar_lea.hbm %s1162_s6, 128 }
  0x1c   : > { %704 = vmatmul.msk.bf16.vlgmr.msra.gmra.mxu0 %vm315_vm0, %v301_v4  ;;  %v304_v12 = vpack.c.bf16 %v298_v11, %v297_v10  ;;  %v766_v47 = vpop.eup %765  ;;  %s597_s23 = scalar_lea.hbm %s1162_s6, %s716_s19 }
  0x1d   : > { %705 = vmatmul.msk.bf16.vlgmr.msra.gmra.mxu1 %vm315_vm0, %v302_v8  ;;  %706 = vmatmul.msk.bf16.vlgmr.msra.gmra.mxu2 %vm315_vm0, %v303_v9  ;;  %v400_v48 = vmul.f32 128.0, %v766_v47  ;;  %vm404_vm1 = vweird.f32 %v766_v47  ;;  %s600_s8 = sshll.u32 %s597_s23, 4  ;;  %s601_s8 = int_to_ptr.hbm [resolvable:$true] %s600_s8 }
  0x1e   : > { %707 = vmatmul.msk.bf16.vlgmr.msra.gmra.mxu3 %vm315_vm0, %v304_v12  ;;  %s797_s13 = sshra.s32 %s601_s8, 4  ;;  %s798_s13 = int_to_ptr.hbm [resolvable:$true] %s797_s13 }
  0x1f   : > { %v401_v49 = vsub.f32 1.0, %v400_v48  ;;  %s799_s17 = scalar_lea.hbm %s798_s13, 64  ;;  %p804_p0 = scmp.lt.s32.totalorder %s798_s13, %s1162_s6 }
  0x20   : > { %p800_p11 = scmp.ne.s32.totalorder %s798_s13, %s799_s17  ;;  %p805_p1 = scmp.lt.s32.totalorder %s803_s28, %s799_s17 }
  0x21   : > { %v402_v50 = vmul.f32 %v766_v47, %v401_v49 }
  0x22   : > { %p801_p12 = pnand %p800_p11, %p928_p5  ;;  %p806_p2 = por %p805_p1, %p804_p0 }
  0x23   : > { %v403_v51 = vadd.f32 %v766_v47, %v402_v50 }
  0x24   : > { %p802_p13 = pneg %p801_p12 }
  0x25   : > { %v991_v52 = vsel %vm404_vm1, %v766_v47, %v403_v51 }
  0x26   : > { %p807_p3 = pnand %p806_p2, %p802_p13 }
  0x99   : > { %v337_v14 = vpop.f32.mrf.mxu0 }
  0x9a   : > { %v338_v16 = vadd.f32 %v762_v13, %v337_v14  ;;  %v342_v17 = vpop.f32.mrf.mxu1 }
  0x9b   : > { %v343_v19 = vadd.f32 %v762_v13, %v342_v17 }
  0x9c   : > { %357 = vst [vmem:[%s963_s14] sm:$0xff] %v338_v16  ;;  %v373_v20 = vadd.f32 %v365_v15, %v338_v16 }
  0x9d   : > { %359 = vst [vmem:[%s963_s14 + $0x10] sm:$0xff] %v343_v19  ;;  %v375_v21 = vadd.f32 %v367_v18, %v343_v19 }
  0x9e   : > { %383 = vadd.xlane.f32.xlu0 %v373_v20 }
  0x9f   : > { %387 = vadd.xlane.f32.xlu1 %v375_v21 }
  0xa0   : > { %v347_v22 = vpop.f32.mrf.mxu2 }
  0xa1   : > { %v348_v24 = vadd.f32 %v762_v13, %v347_v22  ;;  %v352_v25 = vpop.f32.mrf.mxu3  ;;  %v339_v26 = vpop.f32.mrf.mxu0 }
  0xa2   : > { %v353_v28 = vadd.f32 %v762_v13, %v352_v25  ;;  %v340_v29 = vadd.f32 %v762_v13, %v339_v26  ;;  %v344_v30 = vpop.f32.mrf.mxu1 }
  0xa3   : > { %361 = vst [vmem:[%s963_s14 + $0x20] sm:$0xff] %v348_v24  ;;  %v345_v32 = vadd.f32 %v762_v13, %v344_v30  ;;  %v377_v33 = vadd.f32 %v369_v23, %v348_v24 }
  0xa4   : > { %363 = vst [vmem:[%s963_s14 + $0x30] sm:$0xff] %v353_v28  ;;  %v374_v34 = vadd.f32 %v366_v27, %v340_v29  ;;  %v379_v44 = vadd.f32 %v371_v40, %v353_v28 }
  0xa5   : > { %358 = vst [vmem:[%s963_s14 + $0x8] sm:$0xff] %v340_v29  ;;  %391 = vadd.xlane.f32.xlu2 %v377_v33  ;;  %v376_v35 = vadd.f32 %v368_v31, %v345_v32 }
  0xa6   : > { %360 = vst [vmem:[%s963_s14 + $0x18] sm:$0xff] %v345_v32  ;;  %385 = vadd.xlane.f32.xlu0 %v374_v34 }
  0xa7   : > { %389 = vadd.xlane.f32.xlu1 %v376_v35 }
  0xa8   : > { %v349_v36 = vpop.f32.mrf.mxu2 }
  0xa9   : > { %v350_v38 = vadd.f32 %v762_v13, %v349_v36  ;;  %v354_v39 = vpop.f32.mrf.mxu3 }
  0xaa   : > { %v355_v41 = vadd.f32 %v762_v13, %v354_v39 }
  0xab   : > { %362 = vst [vmem:[%s963_s14 + $0x28] sm:$0xff] %v350_v38  ;;  %v378_v43 = vadd.f32 %v370_v37, %v350_v38 }
  0xac   : > { %364 = vst [vmem:[%s963_s14 + $0x38] sm:$0xff] %v355_v41  ;;  %v380_v45 = vadd.f32 %v372_v42, %v355_v41 }
  0xad   : > { %393 = vadd.xlane.f32.xlu2 %v378_v43 }
  0xae   : > { %395 = vadd.xlane.f32.xlu0 %v379_v44 }
  0xaf   : > { %397 = vadd.xlane.f32.xlu1 %v380_v45 }
 0x111   : > { %v384_v53 = vpop.xlane.xlu0 %383 }
 0x112   : > { %v388_v54 = vpop.xlane.xlu1 %387  ;;  %v406_v55 = vmul.f32 %v991_v52, %v384_v53 }
 0x113   : > { %v408_v56 = vmul.f32 %v991_v52, %v388_v54 }
 0x114   : > { %v995_v57 = vsub.f32 %v373_v20, %v406_v55 }
 0x115   : > { %v997_v58 = vsub.f32 %v375_v21, %v408_v56 }
 0x116   : > { %v422_v59 = vmul.f32 %v995_v57, %v995_v57 }
 0x117   : > { %v424_v60 = vmul.f32 %v997_v58, %v997_v58 }
 0x118   : > { %v392_v61 = vpop.xlane.xlu2 %391  ;;  %430 = vadd.xlane.f32.xlu2 %v422_v59 }
 0x119   : > { %v410_v62 = vmul.f32 %v991_v52, %v392_v61  ;;  %434 = vadd.xlane.f32.xlu1 %v424_v60  ;;  %v386_v63 = vpop.xlane.xlu0 %385 }
 0x11a   : > { %v390_v0 = vpop.xlane.xlu1 %389  ;;  %v407_v4 = vmul.f32 %v991_v52, %v386_v63 }
 0x11b   : > { %v1004_v1 = vsub.f32 %v377_v33, %v410_v62  ;;  %v409_v2 = vmul.f32 %v991_v52, %v390_v0 }
 0x11c   : > { %v1014_v8 = vsub.f32 %v374_v34, %v407_v4 }
 0x11d   : > { %v1007_v3 = vsub.f32 %v376_v35, %v409_v2  ;;  %v426_v5 = vmul.f32 %v1004_v1, %v1004_v1 }
 0x11e   : > { %v423_v17 = vmul.f32 %v1014_v8, %v1014_v8 }
 0x11f   : > { %438 = vadd.xlane.f32.xlu0 %v426_v5  ;;  %v425_v6 = vmul.f32 %v1007_v3, %v1007_v3 }
 0x120   : > { %v394_v7 = vpop.xlane.xlu2 %393 }
 0x121   : > { %v411_v9 = vmul.f32 %v991_v52, %v394_v7  ;;  %436 = vadd.xlane.f32.xlu2 %v425_v6  ;;  %v396_v10 = vpop.xlane.xlu0 %395 }
 0x122   : > { %v398_v11 = vpop.xlane.xlu1 %397  ;;  %v412_v12 = vmul.f32 %v991_v52, %v396_v10 }
 0x123   : > { %v1018_v13 = vsub.f32 %v378_v43, %v411_v9  ;;  %v413_v15 = vmul.f32 %v991_v52, %v398_v11 }
 0x124   : > { %v1020_v14 = vsub.f32 %v379_v44, %v412_v12 }
 0x125   : > { %v427_v16 = vmul.f32 %v1018_v13, %v1018_v13  ;;  %v1029_v19 = vsub.f32 %v380_v45, %v413_v15 }
 0x126   : > { %v428_v18 = vmul.f32 %v1020_v14, %v1020_v14 }
 0x127   : > { %440 = vadd.xlane.f32.xlu1 %v427_v16  ;;  %432 = vadd.xlane.f32.xlu0 %v423_v17  ;;  %v429_v20 = vmul.f32 %v1029_v19, %v1029_v19 }
 0x129   : > { %442 = vadd.xlane.f32.xlu2 %v428_v18 }
 0x12f   : > { %444 = vadd.xlane.f32.xlu0 %v429_v20 }
 0x130   : > { %810 = shalt.err (!%p807_p3)
}
 0x131   : > { %s848_s20 = smov 128   ;;  %s849_s14 = smov 8   ;;  %v1072_v56 = vld [vmem:[%s1160_s4] ss:$0 sm:$0xff] }
 0x132   : > { %720 = dma.vmem_to_hbm [thread:$0]  (%p928_p5), %s599_s29, 1024, %s601_s8, %s581_s9, %s848_s20, %s848_s20, %s849_s14  }
 0x133   : > { %v1082_v0 = vld [vmem:[%s1161_s5] ss:$0 sm:$0xff]  ;;  %s1169_s22 = sshll.u32 %s943_s15, 6 }
 0x134   : > { %s1094_s8 = scalar_lea.vmem %s1163_s7, %s1169_s22 }
 0x18b   : > { %v431_v21 = vpop.xlane.xlu2 %430 }
 0x18c   : > { %v435_v22 = vpop.xlane.xlu1 %434  ;;  %v446_v23 = vmul.f32 %v431_v21, %v991_v52 }
 0x18d   : > { %v448_v24 = vmul.f32 %v435_v22, %v991_v52 }
 0x18e   : > { %v454_v25 = vadd.f32 1e-05, %v446_v23 }
 0x18f   : > { %v456_v26 = vadd.f32 1e-05, %v448_v24 }
 0x190   : > { %767 = vrsqrt.f32 %v454_v25  ;;  %vm468_vm5 = vweird.f32 %v454_v25 }
 0x191   : > { %769 = vrsqrt.f32 %v456_v26  ;;  %vm488_vm4 = vweird.f32 %v456_v26 }
 0x192   : > { %v439_v27 = vpop.xlane.xlu0 %438 }
 0x193   : > { %v450_v28 = vmul.f32 %v439_v27, %v991_v52 }
 0x194   : > { %v437_v29 = vpop.xlane.xlu2 %436 }
 0x195   : > { %v1053_v30 = vadd.f32 1e-05, %v450_v28  ;;  %v449_v31 = vmul.f32 %v437_v29, %v991_v52 }
 0x196   : > { %v768_v32 = vpop.eup %767 }
 0x197   : > { %v770_v33 = vpop.eup %769  ;;  %v463_v34 = vmul.f32 %v768_v32, %v454_v25  ;;  %771 = vrsqrt.f32 %v1053_v30  ;;  %v1057_v36 = vadd.f32 1e-05, %v449_v31  ;;  %vm469_vm2 = vweird.f32 %v768_v32 }
 0x198   : > { %v483_v35 = vmul.f32 %v770_v33, %v456_v26  ;;  %vm489_vm3 = vweird.f32 %v770_v33  ;;  %vm470_vm6 = vmor %vm468_vm5, %vm469_vm2  ;;  %vm508_vm9 = vweird.f32 %v1053_v30 }
 0x199   : > { %v464_v37 = vmul.f32 %v768_v32, %v463_v34  ;;  %773 = vrsqrt.f32 %v1057_v36  ;;  %vm490_vm7 = vmor %vm488_vm4, %vm489_vm3  ;;  %vm498_vm12 = vweird.f32 %v1057_v36 }
 0x19a   : > { %v484_v38 = vmul.f32 %v770_v33, %v483_v35  ;;  %v441_v39 = vpop.xlane.xlu1 %440  ;;  %v433_v40 = vpop.xlane.xlu0 %432 }
 0x19b   : > { %v465_v41 = vmul.f32 0.5, %v464_v37  ;;  %v451_v42 = vmul.f32 %v441_v39, %v991_v52  ;;  %v447_v43 = vmul.f32 %v433_v40, %v991_v52 }
 0x19c   : > { %v485_v44 = vmul.f32 0.5, %v484_v38  ;;  %v443_v45 = vpop.xlane.xlu2 %442 }
 0x19d   : > { %v772_v46 = vpop.eup %771  ;;  %v466_v47 = vsub.f32 1.5, %v465_v41  ;;  %v1062_v48 = vadd.f32 1e-05, %v451_v42  ;;  %v1064_v49 = vadd.f32 1e-05, %v447_v43  ;;  %v452_v50 = vmul.f32 %v443_v45, %v991_v52 }
 0x19e   : > { %v486_v51 = vsub.f32 1.5, %v485_v44  ;;  %v503_v53 = vmul.f32 %v772_v46, %v1053_v30  ;;  %vm509_vm8 = vweird.f32 %v772_v46 }
 0x19f   : > { %v467_v54 = vmul.f32 %v768_v32, %v466_v47  ;;  %775 = vrsqrt.f32 %v1062_v48  ;;  %v774_v55 = vpop.eup %773  ;;  %v1076_v61 = vadd.f32 1e-05, %v452_v50  ;;  %vm510_vm10 = vmor %vm508_vm9, %vm509_vm8  ;;  %vm518_vm0 = vweird.f32 %v1062_v48 }
 0x1a0   : > { %v487_v59 = vmul.f32 %v770_v33, %v486_v51  ;;  %v504_v60 = vmul.f32 %v772_v46, %v503_v53  ;;  %777 = vrsqrt.f32 %v1064_v49  ;;  %v493_v63 = vmul.f32 %v774_v55, %v1057_v36 }
 0x1a1   : > { %v471_v62 = vsel %vm470_vm6, %v768_v32, %v467_v54  ;;  %779 = vrsqrt.f32 %v1076_v61  ;;  %vm499_vm11 = vweird.f32 %v774_v55  ;;  %vm478_vm1 = vweird.f32 %v1064_v49 }
 0x1a2   : > { %v491_v2 = vsel %vm490_vm7, %v770_v33, %v487_v59  ;;  %v542_v4 = vmul.f32 %v471_v62, %v995_v57  ;;  %v505_v5 = vmul.f32 0.5, %v504_v60  ;;  %v445_v6 = vpop.xlane.xlu0 %444  ;;  %v494_v9 = vmul.f32 %v774_v55, %v493_v63  ;;  %vm500_vm13 = vmor %vm498_vm12, %vm499_vm11 }
 0x1a3   : > { %v544_v7 = vmul.f32 %v491_v2, %v997_v58  ;;  %v453_v10 = vmul.f32 %v445_v6, %v991_v52  ;;  %vm528_vm5 = vweird.f32 %v1076_v61 }
 0x1a4   : > { %v553_v11 = vmul.f32 %v1072_v56, %v542_v4  ;;  %v506_v12 = vsub.f32 1.5, %v505_v5  ;;  %v495_v16 = vmul.f32 0.5, %v494_v9 }
 0x1a5   : > { %v776_v15 = vpop.eup %775  ;;  %v555_v57 = vmul.f32 %v1072_v56, %v544_v7  ;;  %v1097_v17 = vadd.f32 1e-05, %v453_v10 }
 0x1a6   : > { %v778_v58 = vpop.eup %777  ;;  %v564_v52 = vadd.f32 %v1082_v0, %v553_v11  ;;  %v507_v18 = vmul.f32 %v772_v46, %v506_v12  ;;  %v513_v20 = vmul.f32 %v776_v15, %v1062_v48  ;;  %v496_v22 = vsub.f32 1.5, %v495_v16 }
 0x1a7   : > { %v566_v21 = vadd.f32 %v1082_v0, %v555_v57  ;;  %v473_v23 = vmul.f32 %v778_v58, %v1064_v49  ;;  %v780_v24 = vpop.eup %779  ;;  %781 = vrsqrt.f32 %v1097_v17  ;;  %vm519_vm14 = vweird.f32 %v776_v15 }
 0x1a8   : > { %572 = vst [vmem:[%s1094_s8] sm:$0xff] %v564_v52  ;;  %v511_v25 = vsel %vm510_vm10, %v772_v46, %v507_v18  ;;  %v514_v26 = vmul.f32 %v776_v15, %v513_v20  ;;  %v497_v28 = vmul.f32 %v774_v55, %v496_v22  ;;  %v523_v30 = vmul.f32 %v780_v24, %v1076_v61  ;;  %vm520_vm2 = vmor %vm518_vm0, %vm519_vm14 }
 0x1a9   : > { %574 = vst [vmem:[%s1094_s8 + $0x10] sm:$0xff] %v566_v21  ;;  %v546_v27 = vmul.f32 %v511_v25, %v1004_v1  ;;  %v474_v29 = vmul.f32 %v778_v58, %v473_v23  ;;  %vm479_vm15 = vweird.f32 %v778_v58  ;;  %vm529_vm3 = vweird.f32 %v780_v24 }
 0x1aa   : > { %v515_v31 = vmul.f32 0.5, %v514_v26  ;;  %v501_v33 = vsel %vm500_vm13, %v774_v55, %v497_v28  ;;  %v524_v35 = vmul.f32 %v780_v24, %v523_v30  ;;  %vm480_vm4 = vmor %vm478_vm1, %vm479_vm15  ;;  %vm538_vm8 = vweird.f32 %v1097_v17 }
 0x1ab   : > { %v557_v32 = vmul.f32 %v1072_v56, %v546_v27  ;;  %v475_v34 = vmul.f32 0.5, %v474_v29  ;;  %v545_v36 = vmul.f32 %v501_v33, %v1007_v3  ;;  %vm530_vm6 = vmor %vm528_vm5, %vm529_vm3 }
 0x1ac   : > { %v516_v37 = vsub.f32 1.5, %v515_v31  ;;  %v525_v1 = vmul.f32 0.5, %v524_v35 }
 0x1ad   : > { %v568_v38 = vadd.f32 %v1082_v0, %v557_v32  ;;  %v476_v39 = vsub.f32 1.5, %v475_v34  ;;  %v782_v40 = vpop.eup %781  ;;  %v556_v41 = vmul.f32 %v1072_v56, %v545_v36 }
 0x1ae   : > { %v517_v42 = vmul.f32 %v776_v15, %v516_v37  ;;  %v526_v3 = vsub.f32 1.5, %v525_v1  ;;  %v533_v44 = vmul.f32 %v782_v40, %v1097_v17  ;;  %vm539_vm7 = vweird.f32 %v782_v40 }
 0x1af   : > { %576 = vst [vmem:[%s1094_s8 + $0x20] sm:$0xff] %v568_v38  ;;  %v477_v43 = vmul.f32 %v778_v58, %v476_v39  ;;  %v567_v45 = vadd.f32 %v1082_v0, %v556_v41  ;;  %vm540_vm9 = vmor %vm538_vm8, %vm539_vm7 }
 0x1b0   : > { %v521_v46 = vsel %vm520_vm2, %v776_v15, %v517_v42  ;;  %v527_v50 = vmul.f32 %v780_v24, %v526_v3  ;;  %v534_v49 = vmul.f32 %v782_v40, %v533_v44 }
 0x1b1   : > { %v547_v47 = vmul.f32 %v521_v46, %v1018_v13  ;;  %v481_v48 = vsel %vm480_vm4, %v778_v58, %v477_v43  ;;  %575 = vst [vmem:[%s1094_s8 + $0x18] sm:$0xff] %v567_v45 }
 0x1b2   : > { %v543_v51 = vmul.f32 %v481_v48, %v1014_v8  ;;  %v531_v54 = vsel %vm530_vm6, %v780_v24, %v527_v50  ;;  %v535_v55 = vmul.f32 0.5, %v534_v49 }
 0x1b3   : > { %v558_v53 = vmul.f32 %v1072_v56, %v547_v47  ;;  %v548_v60 = vmul.f32 %v531_v54, %v1020_v14 }
 0x1b4   : > { %v554_v59 = vmul.f32 %v1072_v56, %v543_v51  ;;  %v536_v61 = vsub.f32 1.5, %v535_v55 }
 0x1b5   : > { %v569_v13 = vadd.f32 %v1082_v0, %v558_v53  ;;  %v559_v63 = vmul.f32 %v1072_v56, %v548_v60 }
 0x1b6   : > { %v565_v62 = vadd.f32 %v1082_v0, %v554_v59  ;;  %v537_v8 = vmul.f32 %v782_v40, %v536_v61 }
 0x1b7   : > { %577 = vst [vmem:[%s1094_s8 + $0x28] sm:$0xff] %v569_v13  ;;  %v570_v2 = vadd.f32 %v1082_v0, %v559_v63 }
 0x1b8   : > { %573 = vst [vmem:[%s1094_s8 + $0x8] sm:$0xff] %v565_v62  ;;  %v541_v4 = vsel %vm540_vm9, %v782_v40, %v537_v8 }
 0x1b9   : > { %578 = vst [vmem:[%s1094_s8 + $0x30] sm:$0xff] %v570_v2  ;;  %v549_v14 = vmul.f32 %v541_v4, %v1029_v19 }
 0x1bb   : > { %v560_v5 = vmul.f32 %v1072_v56, %v549_v14 }
 0x1bd   : > { %v571_v6 = vadd.f32 %v1082_v0, %v560_v5 }
 0x1bf   : > { %579 = vst [vmem:[%s1094_s8 + $0x38] sm:$0xff] %v571_v6 }
 0x1c0 PF: > { %p726_p4 = scmp.ge.s32.totalorder %s845_s27, 2  ;;  %s618_s15 = sand.u32 1, %s833_s24  }
 0x1c1   : > { %s619_s9 = scalar_lea.sflag [#allocation3], %s618_s15 }
 0x1c2   : > { %p723_p5 = pnand %p726_p4, %p932_p6 }
 0x1c4   : > { %p724_p7 = pneg %p723_p5 }
 0x1c6   : > { %828 = dma.done.wait (%p724_p7), %s619_s9, 1024  }
 0x1c7   : > { %830 = vsyncadd (%p724_p7), %s619_s9, 4294966272  ;;  %p18_p8 = scmp.ge.s32.totalorder %s915_s30, 4   ;;  %s1170_s24 = smov %s837_s25 }
 0x1c8   : > { %s1171_s25 = smov %s841_s26  ;;  %s1172_s26 = smov %s926_s10 }
 0x1c9   : > { %s1173_s27 = smov %s915_s30  ;;  %20 = sbr.rel (!%p18_p8) target bundleno = 5 (0x5), region = 91 }
 0x1ce   :  { %633 = vsyncpa [#allocation3], 1 }
 0x1cf   :  { %635 = vsyncpa [#allocation3 + $0x1], 1 }

// kernel: mae_ast_model_forward.5
= control target key start
LH: loop header
LB: loop body
LE: loop exit
PB: predicated region body
PF: predicated region fallthrough
CT: control target
= control target key end

     0   :  { %s6022_s0 = inlined_call_operand.vmem [shape: f32[2,64,128], index: 0, kind: input, shape index: {}]   ;;  %s6023_s1 = inlined_call_operand.vmem [shape: bf16[128,384], index: 1, kind: input, shape index: {}]   ;;  %s6024_s2 = inlined_call_operand.vmem [shape: f32[1,384], index: 2, kind: input, shape index: {}]   ;;  %s6025_s3 = inlined_call_operand.vmem [shape: bf16[128,128], index: 3, kind: input, shape index: {}]   ;;  %s6026_s4 = inlined_call_operand.vmem [shape: f32[1,128], index: 4, kind: input, shape index: {}]   ;;  %s6027_s5 = inlined_call_operand.vmem [shape: f32[1,128], index: 5, kind: input, shape index: {}]   ;;  %s6028_s6 = inlined_call_operand.vmem [shape: f32[1,128], index: 6, kind: input, shape index: {}]   ;;  %s6029_s7 = inlined_call_operand.vmem [shape: bf16[128,512], index: 7, kind: input, shape index: {}]   ;;  %s6030_s8 = inlined_call_operand.vmem [shape: f32[1,512], index: 8, kind: input, shape index: {}]   ;;  %s6031_s9 = inlined_call_operand.vmem [shape: bf16[512,128], index: 9, kind: input, shape index: {}]   ;;  %s6032_s10 = inlined_call_operand.vmem [shape: f32[1,128], index: 10, kind: input, shape index: {}]   ;;  %s6033_s11 = inlined_call_operand.vmem [shape: f32[1,128], index: 11, kind: input, shape index: {}]   ;;  %s6034_s12 = inlined_call_operand.vmem [shape: f32[1,128], index: 12, kind: input, shape index: {}]   ;;  %s6035_s13 = inlined_call_operand.hbm [shape: f32[2,8,128], index: 13, kind: output, shape index: {}]  }
   0x1   :  { %6043 = sst [smem:[#allocation8_spill]] %s6022_s0 }
   0x2   :  { %6044 = sst [smem:[#allocation9_spill]] %s6023_s1 }
   0x3   :  { %18 = vsyncpa [#allocation3], 0 }
   0x4   :  { %20 = vsyncpa [#allocation3 + $0x1], 0  ;;  %s4309_s25 = smov 0   ;;  %s4311_s26 = smov 0  }
   0x5   :  { %s4313_s27 = smov 0   ;;  %s4315_s28 = smov 0  }
   0x6 LB: > { %6045 = sst [smem:[#allocation5_spill]] %s4228_s27  ;;  %s4330_s29 = sadd.s32 4294967295, %s4232_s28   ;;  %s4232_s28 = sphi %s4315_s28, %s6064_s28   ;;  %s4228_s27 = sphi %s4313_s27, %s6066_s27   ;;  %s4224_s26 = sphi %s4311_s26, %s6068_s26   ;;  %s4220_s25 = sphi %s4309_s25, %s6067_s25  }
   0x7   : > { %s3343_s30 = sadd.s32 4294967294, %s4232_s28   ;;  %s4334_s14 = sadd.s32 1, %s4232_s28  }
   0x8   : > { %6046 = sst [smem:[#allocation6_spill]] %s4334_s14  ;;  %s311_s15 = sadd.s32 1, %s4228_s27 }
   0x9   : > { %s308_s16 = ssub.s32 %s4232_s28, %s4334_s14  ;;  %p321_p0 = scmp.ne.s32.totalorder %s4228_s27, %s4224_s26 }
   0xa   : > { %p309_p1 = scmp.eq.s32.totalorder %s308_s16, 0  ;;  %p322_p2 = scmp.eq.s32.totalorder %s4330_s29, 1 }
   0xb   : > { %p327_p3 = scmp.ne.s32.totalorder %s4224_s26, %s4220_s25  ;;  %p328_p4 = scmp.eq.s32.totalorder %s3343_s30, 1 }
   0xc   : > { %s4345_s17 = scalar_select %p309_p1, %s4228_s27, %s311_s15  }
   0xd   : > { %p4347_p5 = por %p322_p2, %p321_p0  ;;  %p4351_p6 = por %p328_p4, %p327_p3 }
   0xe   : > { %6047 = sst [smem:[#allocation7_spill]] %s4345_s17  ;;  %p3346_p7 = scmp.ge.s32.totalorder %s4232_s28, 1 }
   0xf   : > { %p390_p8 = scmp.lt.s32.totalorder %s4232_s28, 3 }
  0x11   : > { %p391_p9 = pnand %p3346_p7, %p390_p8 }
  0x12   : > { %s6050_s1 = sld [smem:[#allocation9_spill]] (!%p391_p9)  ;;  %p434_p10 = scmp.lt.s32.totalorder (!%p391_p9), %s4330_s29, 1 }
  0x13   : > { %394 = sbr.rel (%p391_p9) target bundleno = 2655 (0xa5f), region = 72  ;;  %s6051_s0 = sld [smem:[#allocation8_spill]] (!%p391_p9) }
  0x14   : > { %s6041_s15 = smov (!%p391_p9), 96   ;;  %s6039_s27 = smov (!%p391_p9), 64  }
  0x15   : > { %s6053_s23 = smov (!%p391_p9), 64   ;;  %s431_s17 = sand.u32 (!%p391_p9), 1, %s4224_s26  }
  0x16   : > { %s3347_s14 = sshll.u32 (!%p391_p9), %s431_s17, 3  ;;  %s3784_s20 = sshll.u32 (!%p391_p9), %s4330_s29, 3 }
  0x17   : > { %s4190_s21 = scalar_lea.hbm (!%p391_p9), %s6035_s13, 16 }
  0x18   : > { %v3809_v0 = vld [vmem:[%s6050_s1 + $0xac] sm:$0xf]  ;;  %v3438_v1 = vld [vmem:[%s6050_s1 + $0xb4] sm:$0xf0]  ;;  %v3806_v2 = vld [vmem:[%s6050_s1 + $0x94] sm:$0xf] }
  0x19   : > { %v3441_v3 = vor.u32 %v3809_v0, %v3438_v1  ;;  %v3426_v4 = vld [vmem:[%s6050_s1 + $0x9c] sm:$0xf0]  ;;  %v3436_v5 = vld [vmem:[%s6050_s1 + $0xa8] sm:$0xf]  ;;  %v3810_v6 = vld [vmem:[%s6050_s1 + $0xb0] sm:$0xf0] }
  0x1a   : > { %v3437_v7 = vor.u32 %v3810_v6, %v3436_v5  ;;  %v3424_v8 = vld [vmem:[%s6050_s1 + $0x90] sm:$0xf]  ;;  %v3429_v9 = vor.u32 %v3806_v2, %v3426_v4  ;;  %v3807_v10 = vld [vmem:[%s6050_s1 + $0x98] sm:$0xf0]  ;;  %v3414_v12 = vld [vmem:[%s6050_s1 + $0x84] sm:$0xf0] }
  0x1b   : > { %649 = vmatpush.bf16.msra.mxu1 %v3441_v3  ;;  %v3803_v11 = vld [vmem:[%s6050_s1 + $0x7c] sm:$0xf]  ;;  %v3425_v13 = vor.u32 %v3807_v10, %v3424_v8  ;;  %v3412_v14 = vld [vmem:[%s6050_s1 + $0x78] sm:$0xf]  ;;  %v3804_v15 = vld [vmem:[%s6050_s1 + $0x80] sm:$0xf0] }
  0x1c   : > { %620 = vmatpush.bf16.msra.mxu0 %v3437_v7  ;;  %v3417_v16 = vor.u32 %v3803_v11, %v3414_v12  ;;  %v3800_v17 = vld [vmem:[%s6050_s1 + $0x64] sm:$0xf]  ;;  %v3402_v18 = vld [vmem:[%s6050_s1 + $0x6c] sm:$0xf0]  ;;  %v3413_v19 = vor.u32 %v3804_v15, %v3412_v14  ;;  %v3400_v20 = vld [vmem:[%s6050_s1 + $0x60] sm:$0xf] }
  0x1d   : > { %v3801_v21 = vld [vmem:[%s6050_s1 + $0x68] sm:$0xf0]  ;;  %v3390_v23 = vld [vmem:[%s6050_s1 + $0x54] sm:$0xf0]  ;;  %v3405_v24 = vor.u32 %v3800_v17, %v3402_v18  ;;  %v3388_v26 = vld [vmem:[%s6050_s1 + $0x48] sm:$0xf] }
  0x1e   : > { %v3797_v22 = vld [vmem:[%s6050_s1 + $0x4c] sm:$0xf]  ;;  %v3401_v25 = vor.u32 %v3801_v21, %v3400_v20  ;;  %v3798_v27 = vld [vmem:[%s6050_s1 + $0x50] sm:$0xf0]  ;;  %v3378_v30 = vld [vmem:[%s6050_s1 + $0x3c] sm:$0xf0] }
  0x1f   : > { %650 = vmatpush.bf16.msra.mxu1 %v3429_v9  ;;  %v3393_v28 = vor.u32 %v3797_v22, %v3390_v23  ;;  %v3794_v29 = vld [vmem:[%s6050_s1 + $0x34] sm:$0xf]  ;;  %v3389_v31 = vor.u32 %v3798_v27, %v3388_v26  ;;  %v3376_v32 = vld [vmem:[%s6050_s1 + $0x30] sm:$0xf]  ;;  %v3795_v33 = vld [vmem:[%s6050_s1 + $0x38] sm:$0xf0] }
  0x20   : > { %621 = vmatpush.bf16.msra.mxu0 %v3425_v13  ;;  %s435_s24 = scalar_select %p434_p10, %s4330_s29, 1  ;;  %v3381_v34 = vor.u32 %v3794_v29, %v3378_v30  ;;  %v3791_v35 = vld [vmem:[%s6050_s1 + $0x1c] sm:$0xf]  ;;  %v3366_v36 = vld [vmem:[%s6050_s1 + $0x24] sm:$0xf0]  ;;  %v3377_v37 = vor.u32 %v3795_v33, %v3376_v32  ;;  %vm739_vm0 = vcmask 261120  }
  0x21   : > { %v3364_v38 = vld [vmem:[%s6050_s1 + $0x18] sm:$0xf]  ;;  %v3792_v39 = vld [vmem:[%s6050_s1 + $0x20] sm:$0xf0]  ;;  %v3369_v40 = vor.u32 %v3791_v35, %v3366_v36  ;;  %v3354_v42 = vld [vmem:[%s6050_s1 + $0xc] sm:$0xf0] }
  0x22   : > { %s3787_s22 = sshll.u32 %s435_s24, 6  ;;  %v3788_v41 = vld [vmem:[%s6050_s1 + $0x4] sm:$0xf]  ;;  %v3365_v43 = vor.u32 %v3792_v39, %v3364_v38  ;;  %v3352_v44 = vld [vmem:[%s6050_s1] sm:$0xf]  ;;  %vm793_vm1 = vcmask 523264  }
  0x23   : > { %651 = vmatpush.bf16.msra.mxu1 %v3417_v16  ;;  %s4452_s16 = scalar_lea.vmem %s6051_s0, %s3787_s22  ;;  %v3789_v45 = vld [vmem:[%s6050_s1 + $0x8] sm:$0xf0]  ;;  %v3357_v46 = vor.u32 %v3788_v41, %v3354_v42  ;;  %v4487_v62 = vld [vmem:[%s6024_s2] sm:$0x7]  ;;  %s6052_s24 = smov 96  }
  0x24   : > { %622 = vmatpush.bf16.msra.mxu0 %v3413_v19  ;;  %v440_v47 = vld [vmem:[%s4452_s16] sm:$0xff]  ;;  %v441_v48 = vld [vmem:[%s4452_s16 + $0x8] sm:$0xff]  ;;  %v3353_v49 = vor.u32 %v3789_v45, %v3352_v44  ;;  %v442_v51 = vld [vmem:[%s4452_s16 + $0x10] sm:$0xff]  ;;  %v487_v63 = vperm.slane %v4487_v62, 1  ;;  %v4491_v0 = vperm.slane %v4487_v62, 0  ;;  %s3269_s22 = scalar_lea.sflag [#allocation3], %s431_s17 }
  0x25   : > { %v4462_v50 = vpack.c.bf16 %v441_v48, %v440_v47  ;;  %v443_v52 = vld [vmem:[%s4452_s16 + $0x18] sm:$0xff]  ;;  %v444_v54 = vld [vmem:[%s4452_s16 + $0x20] sm:$0xff]  ;;  %v445_v55 = vld [vmem:[%s4452_s16 + $0x28] sm:$0xff] }
  0x26   : > { %v4468_v53 = vpack.c.bf16 %v443_v52, %v442_v51  ;;  %v4474_v56 = vpack.c.bf16 %v445_v55, %v444_v54  ;;  %v446_v57 = vld [vmem:[%s4452_s16 + $0x30] sm:$0xff]  ;;  %v447_v58 = vld [vmem:[%s4452_s16 + $0x38] sm:$0xff] }
  0x27   : > { %652 = vmatpush.bf16.msra.mxu1 %v3405_v24  ;;  %v4480_v59 = vpack.c.bf16 %v447_v58, %v446_v57  ;;  %v3444_v54 = vld [vmem:[%s6050_s1 + $0xb0] sm:$0xf]  ;;  %v3811_v55 = vld [vmem:[%s6050_s1 + $0xb8] sm:$0xf0]  ;;  %v3432_v57 = vld [vmem:[%s6050_s1 + $0x98] sm:$0xf] }
  0x28   : > { %623 = vmatpush.bf16.msra.mxu0 %v3401_v25  ;;  %v3445_v58 = vor.u32 %v3811_v55, %v3444_v54 }
  0x2a   : > { %678 = vmatpush.bf16.msra.mxu2 %v3445_v58 }
  0x2b   : > { %653 = vmatpush.bf16.msra.mxu1 %v3393_v28 }
  0x2c   : > { %624 = vmatpush.bf16.msra.mxu0 %v3389_v31 }
  0x2f   : > { %654 = vmatpush.bf16.msra.mxu1 %v3381_v34 }
  0x30   : > { %625 = vmatpush.bf16.msra.mxu0 %v3377_v37 }
  0x33   : > { %655 = vmatpush.bf16.msra.mxu1 %v3369_v40 }
  0x34   : > { %626 = vmatpush.bf16.msra.mxu0 %v3365_v43 }
  0x37   : > { %656 = vmatpush.bf16.msra.mxu1 %v3357_v46 }
  0x38   : > { %627 = vmatpush.bf16.msra.mxu0 %v3353_v49 }
  0x3a   : > { %657 = vmatmul.bf16.vlgmr.msra.gmra.mxu1 %v4462_v50 }
  0x3b   : > { %628 = vmatmul.bf16.vlgmr.msra.gmra.mxu0 %v4462_v50 }
  0x4a   : > { %662 = vmatmul.bf16.gmra.mxu1 %v4468_v53 }
  0x4b   : > { %633 = vmatmul.bf16.gmra.mxu0 %v4468_v53 }
  0x5a   : > { %667 = vmatmul.bf16.gmra.mxu1 %v4474_v56 }
  0x5b   : > { %638 = vmatmul.bf16.gmra.mxu0 %v4474_v56 }
  0x6a   : > { %672 = vmatmul.bf16.gmra.mxu1 %v4480_v59 }
  0x6b   : > { %643 = vmatmul.bf16.gmra.mxu0 %v4480_v59 }
  0xb7   : > { %v658_v60 = vpop.f32.mrf.mxu1 }
  0xb8   : > { %v629_v61 = vpop.f32.mrf.mxu0  ;;  %v659_v2 = vadd.f32 %v658_v60, %v487_v63  ;;  %v3808_v60 = vld [vmem:[%s6050_s1 + $0xa0] sm:$0xf0] }
  0xb9   : > { %v630_v3 = vadd.f32 %v629_v61, %v4491_v0  ;;  %v3433_v61 = vor.u32 %v3808_v60, %v3432_v57 }
  0xbb   : > { %v723_v8 = vmul.f32 0.17677669, %v630_v3  ;;  %679 = vmatpush.bf16.msra.mxu2 %v3433_v61  ;;  %v3408_v3 = vld [vmem:[%s6050_s1 + $0x68] sm:$0xf] }
  0xbf   : > { %v660_v1 = vpop.f32.mrf.mxu1 }
  0xc0   : > { %v661_v4 = vadd.f32 %v660_v1, %v487_v63  ;;  %v631_v5 = vpop.f32.mrf.mxu0  ;;  %v3420_v1 = vld [vmem:[%s6050_s1 + $0x80] sm:$0xf] }
  0xc1   : > { %v632_v6 = vadd.f32 %v631_v5, %v4491_v0 }
  0xc2   : > { %v4495_v7 = vpack.c.bf16 %v661_v4, %v659_v2  ;;  %v3805_v2 = vld [vmem:[%s6050_s1 + $0x88] sm:$0xf0] }
  0xc3   : > { %v724_v9 = vmul.f32 0.17677669, %v632_v6  ;;  %v3421_v5 = vor.u32 %v3805_v2, %v3420_v1  ;;  %v3802_v6 = vld [vmem:[%s6050_s1 + $0x70] sm:$0xf0] }
  0xc4   : > { %951 = vrot.lane.b32.xlu1 %v4495_v7, %s6041_s15  ;;  %v753_v38 = vsel %vm739_vm0, %v4495_v7, 0 }
  0xc5   : > { %v4499_v11 = vpack.c.bf16 %v724_v9, %v723_v8  ;;  %680 = vmatpush.bf16.msra.mxu2 %v3421_v5  ;;  %v3409_v8 = vor.u32 %v3802_v6, %v3408_v3  ;;  %v3396_v9 = vld [vmem:[%s6050_s1 + $0x50] sm:$0xf] }
  0xc7   : > { %v663_v10 = vpop.f32.mrf.mxu1 }
  0xc8   : > { %v634_v13 = vpop.f32.mrf.mxu0  ;;  %v664_v14 = vadd.f32 %v663_v10, %v487_v63  ;;  %v3799_v10 = vld [vmem:[%s6050_s1 + $0x58] sm:$0xf0] }
  0xc9   : > { %v635_v39 = vadd.f32 %v634_v13, %v4491_v0  ;;  %681 = vmatpush.bf16.msra.mxu2 %v3409_v8 }
  0xcb   : > { %v725_v41 = vmul.f32 0.17677669, %v635_v39 }
  0xcc   : > { %939 = vrot.lane.b32.xlu1 %v4499_v11, %s6041_s15 }
  0xcf   : > { %v665_v12 = vpop.f32.mrf.mxu1 }
  0xd0   : > { %v666_v15 = vadd.f32 %v665_v12, %v487_v63  ;;  %v636_v18 = vpop.f32.mrf.mxu0 }
  0xd1   : > { %v637_v40 = vadd.f32 %v636_v18, %v4491_v0  ;;  %v3796_v18 = vld [vmem:[%s6050_s1 + $0x40] sm:$0xf0] }
  0xd2   : > { %v4503_v16 = vpack.c.bf16 %v666_v15, %v664_v14  ;;  %v3397_v14 = vor.u32 %v3799_v10, %v3396_v9 }
  0xd3   : > { %v726_v42 = vmul.f32 0.17677669, %v637_v40 }
  0xd4   : > { %953 = vrot.lane.b32.xlu1 %v4503_v16, %s6041_s15  ;;  %v756_v37 = vsel %vm739_vm0, %v4503_v16, 0  ;;  %682 = vmatpush.bf16.msra.mxu2 %v3397_v14 }
  0xd5   : > { %v4537_v43 = vpack.c.bf16 %v726_v42, %v725_v41 }
  0xd7   : > { %v668_v17 = vpop.f32.mrf.mxu1 }
  0xd8   : > { %v669_v20 = vadd.f32 %v668_v17, %v487_v63  ;;  %v639_v23 = vpop.f32.mrf.mxu0  ;;  %v3384_v17 = vld [vmem:[%s6050_s1 + $0x38] sm:$0xf] }
  0xd9   : > { %v640_v28 = vadd.f32 %v639_v23, %v4491_v0  ;;  %v3793_v23 = vld [vmem:[%s6050_s1 + $0x28] sm:$0xf0] }
  0xdb   : > { %v727_v32 = vmul.f32 0.17677669, %v640_v28 }
  0xdf   : > { %v670_v19 = vpop.f32.mrf.mxu1 }
  0xe0   : > { %v671_v21 = vadd.f32 %v670_v19, %v487_v63  ;;  %v641_v25 = vpop.f32.mrf.mxu0 }
  0xe1   : > { %v642_v30 = vadd.f32 %v641_v25, %v4491_v0 }
  0xe2   : > { %v4507_v22 = vpack.c.bf16 %v671_v21, %v669_v20  ;;  %v3385_v20 = vor.u32 %v3796_v18, %v3384_v17  ;;  %v3372_v21 = vld [vmem:[%s6050_s1 + $0x20] sm:$0xf] }
  0xe3   : > { %v728_v33 = vmul.f32 0.17677669, %v642_v30  ;;  %v3373_v25 = vor.u32 %v3793_v23, %v3372_v21 }
  0xe4   : > { %955 = vrot.lane.b32.xlu0 %v4507_v22, %s6041_s15  ;;  %v759_v36 = vsel %vm739_vm0, %v4507_v22, 0  ;;  %683 = vmatpush.bf16.msra.mxu2 %v3385_v20 }
  0xe5   : > { %v4519_v35 = vpack.c.bf16 %v728_v33, %v727_v32 }
  0xe7   : > { %v673_v24 = vpop.f32.mrf.mxu1 }
  0xe8   : > { %v674_v27 = vadd.f32 %v673_v24, %v487_v63  ;;  %v644_v44 = vpop.f32.mrf.mxu0  ;;  %684 = vmatpush.bf16.msra.mxu2 %v3373_v25 }
  0xe9   : > { %v645_v46 = vadd.f32 %v644_v44, %v4491_v0 }
  0xeb   : > { %v729_v48 = vmul.f32 0.17677669, %v645_v46 }
  0xef   : > { %v675_v26 = vpop.f32.mrf.mxu1 }
  0xf0   : > { %v676_v29 = vadd.f32 %v675_v26, %v487_v63  ;;  %v646_v45 = vpop.f32.mrf.mxu0  ;;  %v3360_v26 = vld [vmem:[%s6050_s1 + $0x8] sm:$0xf] }
  0xf1   : > { %v647_v47 = vadd.f32 %v646_v45, %v4491_v0 }
  0xf2   : > { %v4513_v31 = vpack.c.bf16 %v676_v29, %v674_v27  ;;  %v3790_v27 = vld [vmem:[%s6050_s1 + $0x10] sm:$0xf0] }
  0xf3   : > { %v730_v49 = vmul.f32 0.17677669, %v647_v47  ;;  %v3361_v29 = vor.u32 %v3790_v27, %v3360_v26 }
  0xf4   : > { %957 = vrot.lane.b32.xlu2 %v4513_v31, %s6041_s15  ;;  %v762_v34 = vsel %vm739_vm0, %v4513_v31, 0 }
  0xf5   : > { %768 = vmatpush.bf16.xpose.msra.mxu3 %v762_v34  ;;  %v4545_v51 = vpack.c.bf16 %v730_v49, %v729_v48  ;;  %685 = vmatpush.bf16.msra.mxu2 %v3361_v29 }
  0xf8   : > { %686 = vmatmul.bf16.vlgmr.msra.gmra.mxu2 %v4462_v50 }
  0xfc   : > { %943 = vrot.lane.b32.xlu2 %v4519_v35, %s6041_s15  ;;  %s4236_s15 = smov 32  }
  0xfd   : > { %769 = vmatpush.bf16.xpose.msra.mxu3 %v759_v36 }
 0x104   : > { %1285 = vrot.lane.b32.xlu2 %v4513_v31, %s6039_s27 }
 0x105   : > { %770 = vmatpush.bf16.xpose.msra.mxu3 %v756_v37 }
 0x108   : > { %691 = vmatmul.bf16.gmra.mxu2 %v4468_v53 }
 0x10c   : > { %1283 = vrot.lane.b32.xlu2 %v4507_v22, %s6039_s27 }
 0x10d   : > { %771 = vmatpush.bf16.xpose.msra.mxu3 %v753_v38 }
 0x114   : > { %3446 = vmatmul.msk.bf16.vlgmr.msra.gmra.mxu3 %vm739_vm0, %v4499_v11 }
 0x118   : > { %696 = vmatmul.bf16.gmra.mxu2 %v4474_v56 }
 0x124   : > { %3447 = vmatmul.msk.bf16.gmra.mxu3 %vm739_vm0, %v4537_v43 }
 0x128   : > { %701 = vmatmul.bf16.gmra.mxu2 %v4480_v59 }
 0x134   : > { %3448 = vmatmul.msk.bf16.gmra.mxu3 %vm739_vm0, %v4519_v35 }
 0x136   : > { %v952_v52 = vpop.permute.xlu1 %951 }
 0x137   : > { %v972_v30 = vsel %vm739_vm0, %v952_v52, 0 }
 0x13e   : > { %v940_v4 = vpop.permute.xlu1 %939 }
 0x144   : > { %3449 = vmatmul.msk.bf16.gmra.mxu3 %vm739_vm0, %v4545_v51 }
 0x146   : > { %v954_v19 = vpop.permute.xlu1 %953 }
 0x147   : > { %v975_v24 = vsel %vm739_vm0, %v954_v19, 0 }
 0x14e   : > { %v958_v63 = vpop.permute.xlu2 %957 }
 0x14f   : > { %v981_v0 = vsel %vm739_vm0, %v958_v63, 0 }
 0x150   : > { %987 = vmatpush.bf16.xpose.msrb.mxu1 %v981_v0 }
 0x156   : > { %v956_v12 = vpop.permute.xlu0 %955  ;;  %v4581_v15 = vpop.permute.xlu2 %943 }
 0x157   : > { %v978_v13 = vsel %vm739_vm0, %v956_v12, 0 }
 0x158   : > { %988 = vmatpush.bf16.xpose.msrb.mxu1 %v978_v13  ;;  %v488_v13 = vperm.slane %v4487_v62, 2 }
 0x15e   : > { %v1286_v28 = vpop.permute.xlu2 %1285 }
 0x15f   : > { %v1309_v32 = vsel %vm739_vm0, %v1286_v28, 0 }
 0x160   : > { %989 = vmatpush.bf16.xpose.msrb.mxu1 %v975_v24 }
 0x166   : > { %v1284_v33 = vpop.permute.xlu2 %1283 }
 0x167   : > { %v1306_v34 = vsel %vm739_vm0, %v1284_v33, 0 }
 0x168   : > { %990 = vmatpush.bf16.xpose.msrb.mxu1 %v972_v30 }
 0x16f   : > { %3454 = vmatmul.msk.bf16.vlgmr.msrb.gmra.mxu1 %vm739_vm0, %v940_v4 }
 0x170   : > { %1315 = vmatpush.bf16.xpose.msra.mxu1 %v1309_v32 }
 0x178   : > { %1316 = vmatpush.bf16.xpose.msra.mxu1 %v1306_v34 }
 0x17b   : > { %v687_v48 = vpop.f32.mrf.mxu2 }
 0x17c   : > { %v688_v32 = vadd.f32 %v687_v48, %v488_v13 }
 0x183   : > { %v689_v52 = vpop.f32.mrf.mxu2 }
 0x184   : > { %v690_v33 = vadd.f32 %v689_v52, %v488_v13 }
 0x18b   : > { %v692_v54 = vpop.f32.mrf.mxu2 }
 0x18c   : > { %v693_v62 = vadd.f32 %v692_v54, %v488_v13 }
 0x193   : > { %v694_v55 = vpop.f32.mrf.mxu2 }
 0x194   : > { %v695_v28 = vadd.f32 %v694_v55, %v488_v13 }
 0x196   : > { %v4654_v34 = vpack.c.bf16 %v695_v28, %v693_v62 }
 0x197   : > { %v773_v36 = vpop.f32.mrf.mxu3 }
 0x198   : > { %v794_v37 = vsel %vm793_vm1, %v773_v36, -inf }
 0x199   : > { %795 = vmax.xlane.f32.xlu0 %v794_v37  ;;  %v4659_v37 = vpack.c.bf16 %v690_v33, %v688_v32 }
 0x19b   : > { %v697_v60 = vpop.f32.mrf.mxu2 }
 0x19c   : > { %v698_v23 = vadd.f32 %v697_v60, %v488_v13  ;;  %v4722_v60 = vld [vmem:[%s6025_s3 + $0x8] sm:$0xff] }
 0x19f   : > { %v775_v38 = vpop.f32.mrf.mxu3 }
 0x1a0   : > { %v797_v50 = vsel %vm793_vm1, %v775_v38, -inf }
 0x1a1   : > { %798 = vmax.xlane.f32.xlu0 %v797_v50 }
 0x1a3   : > { %v699_v1 = vpop.f32.mrf.mxu2 }
 0x1a4   : > { %v700_v24 = vadd.f32 %v699_v1, %v488_v13 }
 0x1a6   : > { %v4649_v29 = vpack.c.bf16 %v700_v24, %v698_v23 }
 0x1a7   : > { %v778_v39 = vpop.f32.mrf.mxu3 }
 0x1a8   : > { %v800_v40 = vsel %vm793_vm1, %v778_v39, -inf }
 0x1a9   : > { %801 = vmax.xlane.f32.xlu1 %v800_v40 }
 0x1ab   : > { %v702_v8 = vpop.f32.mrf.mxu2 }
 0x1ac   : > { %v703_v18 = vadd.f32 %v702_v8, %v488_v13 }
 0x1af   : > { %v780_v41 = vpop.f32.mrf.mxu3 }
 0x1b0   : > { %v803_v53 = vsel %vm793_vm1, %v780_v41, -inf }
 0x1b1   : > { %804 = vmax.xlane.f32.xlu1 %v803_v53 }
 0x1b3   : > { %v704_v19 = vpop.f32.mrf.mxu2 }
 0x1b4   : > { %v705_v25 = vadd.f32 %v704_v19, %v488_v13 }
 0x1b5   : > { %945 = vrot.lane.b32.xlu0 %v4545_v51, %s6052_s24 }
 0x1b6   : > { %v4647_v27 = vpack.c.bf16 %v705_v25, %v703_v18 }
 0x1b7   : > { %v4616_v56 = vpop.f32.mrf.mxu3 }
 0x1b8   : > { %v806_v45 = vsel %vm793_vm1, %v4616_v56, -inf  ;;  %906 = vmatpush.bf16.msrb.mxu0 %v4647_v27 }
 0x1bc   : > { %907 = vmatpush.bf16.msrb.mxu0 %v4649_v29 }
 0x1bf   : > { %v4618_v42 = vpop.f32.mrf.mxu3 }
 0x1c0   : > { %v809_v49 = vsel %vm793_vm1, %v4618_v42, -inf  ;;  %908 = vmatpush.bf16.msrb.mxu0 %v4654_v34 }
 0x1c4   : > { %909 = vmatpush.bf16.msrb.mxu0 %v4659_v37 }
 0x1c7   : > { %v4620_v59 = vpop.f32.mrf.mxu3 }
 0x1c8   : > { %v812_v44 = vsel %vm793_vm1, %v4620_v59, -inf  ;;  %1248 = vmatpush.bf16.msra.mxu0 %v4722_v60 }
 0x1c9   : > { %813 = vmax.xlane.f32.xlu2 %v812_v44 }
 0x1ca   : > { %941 = vrot.lane.b32.xlu1 %v4537_v43, %s6052_s24 }
 0x1cf   : > { %v4628_v46 = vpop.f32.mrf.mxu3 }
 0x1d0   : > { %v815_v47 = vsel %vm793_vm1, %v4628_v46, -inf }
 0x1df   : > { %807 = vmax.xlane.f32.xlu0 %v806_v45 }
 0x1e7   : > { %816 = vmax.xlane.f32.xlu0 %v815_v47 }
 0x1f4   : > { %810 = vmax.xlane.f32.xlu1 %v809_v49  ;;  %v4707_v49 = vpop.f32.mrf.mxu1 }
 0x1fc   : > { %v4715_v55 = vpop.f32.mrf.mxu1 }
 0x20c   : > { %v796_v57 = vpop.xlane.xlu0 %795 }
 0x20d   : > { %v818_v58 = vsub.f32 %v773_v36, %v796_v57 }
 0x20f   : > { %v826_v61 = vmul.f32 1.442695, %v818_v58  ;;  %v1015_v58 = vsel %vm793_vm1, %v4715_v55, -inf }
 0x211   : > { %3936 = vpow2.f32 %v826_v61 }
 0x214   : > { %v799_v63 = vpop.xlane.xlu0 %798 }
 0x215   : > { %v819_v0 = vsub.f32 %v775_v38, %v799_v63 }
 0x217   : > { %v4634_v2 = vpop.eup %3936  ;;  %v828_v3 = vmul.f32 1.442695, %v819_v0 }
 0x218   : > { %v842_v4 = vsel %vm793_vm1, %v4634_v2, 0.0 }
 0x219   : > { %3938 = vpow2.f32 %v828_v3  ;;  %843 = vadd.xlane.f32.xlu2 %v842_v4 }
 0x21c   : > { %v802_v5 = vpop.xlane.xlu1 %801 }
 0x21d   : > { %v820_v6 = vsub.f32 %v778_v39, %v802_v5 }
 0x21f   : > { %v4638_v9 = vpop.eup %3938  ;;  %v830_v10 = vmul.f32 1.442695, %v820_v6 }
 0x220   : > { %v845_v12 = vsel %vm793_vm1, %v4638_v9, 0.0 }
 0x221   : > { %3940 = vpow2.f32 %v830_v10  ;;  %846 = vadd.xlane.f32.xlu2 %v845_v12 }
 0x224   : > { %v805_v14 = vpop.xlane.xlu1 %804 }
 0x225   : > { %v821_v17 = vsub.f32 %v780_v41, %v805_v14 }
 0x227   : > { %v4643_v20 = vpop.eup %3940  ;;  %v832_v21 = vmul.f32 1.442695, %v821_v17 }
 0x228   : > { %v848_v26 = vsel %vm793_vm1, %v4643_v20, 0.0 }
 0x229   : > { %3942 = vpow2.f32 %v832_v21  ;;  %849 = vadd.xlane.f32.xlu0 %v848_v26  ;;  %v1012_v21 = vsel %vm793_vm1, %v4707_v49, -inf }
 0x22f   : > { %v4652_v30 = vpop.eup %3942 }
 0x230   : > { %v851_v36 = vsel %vm793_vm1, %v4652_v30, 0.0 }
 0x231   : > { %852 = vadd.xlane.f32.xlu1 %v851_v36 }
 0x239   : > { %1281 = vrot.lane.b32.xlu2 %v4503_v16, %s6053_s23 }
 0x23c   : > { %v942_v38 = vpop.permute.xlu1 %941  ;;  %v814_v50 = vpop.xlane.xlu2 %813 }
 0x23d   : > { %3455 = vmatmul.msk.bf16.gmra.mxu1 %vm739_vm0, %v942_v38  ;;  %1562 = vrot.lane.b32.xlu0 %v4507_v22, %s4236_s15 }
 0x241   : > { %1279 = vrot.lane.b32.xlu2 %v4495_v7, %s6053_s23 }
 0x245   : > { %1560 = vrot.lane.b32.xlu0 %v4503_v16, %s4236_s15  ;;  %v946_v16 = vpop.permute.xlu0 %945 }
 0x249   : > { %1271 = vrot.lane.b32.xlu2 %v4499_v11, %s6053_s23 }
 0x24a   : > { %1564 = vrot.lane.b32.xlu1 %v4513_v31, %s4236_s15 }
 0x24d   : > { %3456 = vmatmul.msk.bf16.gmra.mxu1 %vm739_vm0, %v4581_v15  ;;  %1558 = vrot.lane.b32.xlu0 %v4495_v7, %s4236_s15 }
 0x251   : > { %1273 = vrot.lane.b32.xlu2 %v4537_v43, %s6053_s23 }
 0x252   : > { %1550 = vrot.lane.b32.xlu1 %v4499_v11, %s4236_s15  ;;  %v808_v15 = vpop.xlane.xlu0 %807 }
 0x253   : > { %v822_v11 = vsub.f32 %v4616_v56, %v808_v15 }
 0x255   : > { %1552 = vrot.lane.b32.xlu0 %v4537_v43, %s4236_s15  ;;  %v824_v43 = vsub.f32 %v4620_v59, %v814_v50  ;;  %v834_v40 = vmul.f32 1.442695, %v822_v11 }
 0x257   : > { %v838_v41 = vmul.f32 1.442695, %v824_v43 }
 0x25a   : > { %1275 = vrot.lane.b32.xlu1 %v4519_v35, %s6053_s23  ;;  %v817_v44 = vpop.xlane.xlu0 %816 }
 0x25d   : > { %3457 = vmatmul.msk.bf16.gmra.mxu1 %vm739_vm0, %v946_v16  ;;  %1277 = vrot.lane.b32.xlu0 %v4545_v51, %s6053_s23 }
 0x267   : > { %v811_v22 = vpop.xlane.xlu1 %810 }
 0x268   : > { %v823_v7 = vsub.f32 %v4618_v42, %v811_v22  ;;  %v825_v42 = vsub.f32 %v4628_v46, %v817_v44 }
 0x26a   : > { %v836_v31 = vmul.f32 1.442695, %v823_v7  ;;  %v840_v47 = vmul.f32 1.442695, %v825_v42 }
 0x26c   : > { %3944 = vpow2.f32 %v836_v31 }
 0x26d   : > { %3946 = vpow2.f32 %v834_v40 }
 0x26e   : > { %3948 = vpow2.f32 %v838_v41 }
 0x26f   : > { %3950 = vpow2.f32 %v840_v47 }
 0x272   : > { %v4694_v39 = vpop.eup %3944 }
 0x273   : > { %v857_v53 = vsel %vm793_vm1, %v4694_v39, 0.0  ;;  %v4699_v45 = vpop.eup %3946 }
 0x274   : > { %v4701_v48 = vpop.eup %3948  ;;  %v854_v56 = vsel %vm793_vm1, %v4699_v45, 0.0 }
 0x275   : > { %v860_v59 = vsel %vm793_vm1, %v4701_v48, 0.0  ;;  %v4709_v52 = vpop.eup %3950 }
 0x276   : > { %v863_v46 = vsel %vm793_vm1, %v4709_v52, 0.0 }
 0x27a   : > { %858 = vadd.xlane.f32.xlu2 %v857_v53 }
 0x284   : > { %855 = vadd.xlane.f32.xlu1 %v854_v56 }
 0x287   : > { %861 = vadd.xlane.f32.xlu0 %v860_v59 }
 0x28c   : > { %v844_v54 = vpop.xlane.xlu2 %843 }
 0x28d   : > { %3952 = vrcp.f32 %v844_v54 }
 0x28f   : > { %864 = vadd.xlane.f32.xlu0 %v863_v46 }
 0x292   : > { %1554 = vrot.lane.b32.xlu2 %v4519_v35, %s4236_s15  ;;  %v4728_v35 = vld [vmem:[%s6025_s3] sm:$0xff] }
 0x293   : > { %v3953_v61 = vpop.eup %3952  ;;  %1249 = vmatpush.bf16.msra.mxu0 %v4728_v35 }
 0x294   : > { %v847_v57 = vpop.xlane.xlu2 %846  ;;  %v874_v0 = vmul.f32 %v3953_v61, %v4634_v2 }
 0x295   : > { %3954 = vrcp.f32 %v847_v57 }
 0x297   : > { %1016 = vmax.xlane.f32.xlu0 %v1015_v58 }
 0x29b   : > { %v3955_v63 = vpop.eup %3954 }
 0x29c   : > { %v875_v1 = vmul.f32 %v3955_v63, %v4638_v9  ;;  %v1282_v3 = vpop.permute.xlu2 %1281  ;;  %v850_v6 = vpop.xlane.xlu0 %849 }
 0x29d   : > { %v1303_v4 = vsel %vm739_vm0, %v1282_v3, 0  ;;  %1556 = vrot.lane.b32.xlu1 %v4545_v51, %s4236_s15  ;;  %3956 = vrcp.f32 %v850_v6 }
 0x29e   : > { %1317 = vmatpush.bf16.xpose.msra.mxu1 %v1303_v4  ;;  %v882_v5 = vpack.c.bf16 %v875_v1, %v874_v0 }
 0x2a0   : > { %3450 = vmatmul.msk.bf16.vlgmr.msrb.gmra.mxu0 %vm793_vm1, %v882_v5 }
 0x2a3   : > { %v3957_v9 = vpop.eup %3956 }
 0x2a4   : > { %v853_v8 = vpop.xlane.xlu1 %852  ;;  %v1280_v10 = vpop.permute.xlu2 %1279  ;;  %v876_v14 = vmul.f32 %v3957_v9, %v4643_v20 }
 0x2a5   : > { %3958 = vrcp.f32 %v853_v8  ;;  %v1300_v2 = vsel %vm739_vm0, %v1280_v10, 0 }
 0x2a6   : > { %1318 = vmatpush.bf16.xpose.msra.mxu1 %v1300_v2 }
 0x2ab   : > { %v3959_v12 = vpop.eup %3958 }
 0x2ac   : > { %v1272_v13 = vpop.permute.xlu2 %1271  ;;  %v877_v51 = vmul.f32 %v3959_v12, %v4652_v30 }
 0x2ad   : > { %3486 = vmatmul.msk.bf16.vlgmr.msra.gmra.mxu1 %vm739_vm0, %v1272_v13 }
 0x2ae   : > { %v883_v17 = vpack.c.bf16 %v877_v51, %v876_v14 }
 0x2af   : > { %v1563_v18 = vpop.permute.xlu0 %1562 }
 0x2b0   : > { %3451 = vmatmul.msk.bf16.gmra.mxu0 %vm793_vm1, %v883_v17  ;;  %v1585_v30 = vsel %vm739_vm0, %v1563_v18, 0 }
 0x2b4   : > { %v1274_v23 = vpop.permute.xlu2 %1273 }
 0x2b7   : > { %v1561_v20 = vpop.permute.xlu0 %1560 }
 0x2b8   : > { %v1582_v22 = vsel %vm739_vm0, %v1561_v20, 0 }
 0x2ba   : > { %v4742_v19 = vpop.f32.mrf.mxu1 }
 0x2bb   : > { %1013 = vmax.xlane.f32.xlu2 %v1012_v21  ;;  %v1018_v32 = vsel %vm793_vm1, %v4742_v19, -inf }
 0x2bc   : > { %v1565_v24 = vpop.permute.xlu1 %1564 }
 0x2bd   : > { %v1588_v25 = vsel %vm739_vm0, %v1565_v24, 0  ;;  %3487 = vmatmul.msk.bf16.gmra.mxu1 %vm739_vm0, %v1274_v23 }
 0x2be   : > { %1594 = vmatpush.bf16.xpose.msrb.mxu0 %v1588_v25 }
 0x2bf   : > { %v1559_v33 = vpop.permute.xlu0 %1558 }
 0x2c0   : > { %v1579_v50 = vsel %vm739_vm0, %v1559_v33, 0 }
 0x2c2   : > { %v4748_v26 = vpop.f32.mrf.mxu1 }
 0x2c3   : > { %v1021_v62 = vsel %vm793_vm1, %v4748_v26, -inf }
 0x2c4   : > { %v4752_v28 = vpop.permute.xlu1 %1550  ;;  %1022 = vmax.xlane.f32.xlu2 %v1021_v62 }
 0x2c6   : > { %1595 = vmatpush.bf16.xpose.msrb.mxu0 %v1585_v30 }
 0x2c7   : > { %1019 = vmax.xlane.f32.xlu1 %v1018_v32  ;;  %v4763_v7 = vpop.permute.xlu0 %1552 }
 0x2ca   : > { %v4757_v36 = vpop.f32.mrf.mxu1 }
 0x2cb   : > { %v1024_v38 = vsel %vm793_vm1, %v4757_v36, -inf }
 0x2cc   : > { %v1276_v16 = vpop.permute.xlu1 %1275  ;;  %1025 = vmax.xlane.f32.xlu0 %v1024_v38 }
 0x2cd   : > { %3488 = vmatmul.msk.bf16.gmra.mxu1 %vm739_vm0, %v1276_v16 }
 0x2ce   : > { %1596 = vmatpush.bf16.xpose.msrb.mxu0 %v1582_v22 }
 0x2cf   : > { %v1278_v40 = vpop.permute.xlu0 %1277 }
 0x2d2   : > { %v4765_v31 = vpop.f32.mrf.mxu1 }
 0x2d3   : > { %v1027_v15 = vsel %vm793_vm1, %v4765_v31, -inf }
 0x2d4   : > { %1028 = vmax.xlane.f32.xlu1 %v1027_v15 }
 0x2d6   : > { %1597 = vmatpush.bf16.xpose.msrb.mxu0 %v1579_v50 }
 0x2da   : > { %v4770_v11 = vpop.f32.mrf.mxu1 }
 0x2db   : > { %v1030_v43 = vsel %vm793_vm1, %v4770_v11, -inf }
 0x2dc   : > { %1031 = vmax.xlane.f32.xlu2 %v1030_v43 }
 0x2dd   : > { %3489 = vmatmul.msk.bf16.gmra.mxu1 %vm739_vm0, %v1278_v40 }
 0x2e2   : > { %v4775_v41 = vpop.f32.mrf.mxu1 }
 0x2e3   : > { %v1033_v53 = vsel %vm793_vm1, %v4775_v41, -inf }
 0x2e4   : > { %1034 = vmax.xlane.f32.xlu0 %v1033_v53 }
 0x2ed   : > { %1114 = vrot.lane.b32.xlu1 %v4647_v27, %s6052_s24  ;;  %v859_v44 = vpop.xlane.xlu2 %858 }
 0x2ee   : > { %3960 = vrcp.f32 %v859_v44 }
 0x2f4   : > { %1112 = vrot.lane.b32.xlu2 %v4649_v29, %s6052_s24  ;;  %v3961_v56 = vpop.eup %3960 }
 0x2f5   : > { %1108 = vrot.lane.b32.xlu1 %v4659_v37, %s6052_s24  ;;  %v879_v46 = vmul.f32 %v3961_v56, %v4694_v39  ;;  %v1555_v13 = vpop.permute.xlu2 %1554 }
 0x2f7   : > { %v856_v42 = vpop.xlane.xlu1 %855 }
 0x2f8   : > { %3962 = vrcp.f32 %v856_v42  ;;  %1110 = vrot.lane.b32.xlu0 %v4654_v34, %s6052_s24 }
 0x2fa   : > { %v862_v47 = vpop.xlane.xlu0 %861 }
 0x2fe   : > { %v3963_v59 = vpop.eup %3962 }
 0x2ff   : > { %v878_v54 = vmul.f32 %v3963_v59, %v4699_v45 }
 0x301   : > { %v884_v57 = vpack.c.bf16 %v879_v46, %v878_v54 }
 0x302   : > { %v865_v58 = vpop.xlane.xlu0 %864 }
 0x303   : > { %3452 = vmatmul.msk.bf16.gmra.mxu0 %vm793_vm1, %v884_v57  ;;  %3964 = vrcp.f32 %v865_v58 }
 0x304   : > { %3966 = vrcp.f32 %v862_v47 }
 0x309   : > { %v3965_v61 = vpop.eup %3964 }
 0x30a   : > { %v3967_v63 = vpop.eup %3966  ;;  %v881_v0 = vmul.f32 %v3965_v61, %v4709_v52  ;;  %v1017_v24 = vpop.xlane.xlu0 %1016 }
 0x30b   : > { %v880_v1 = vmul.f32 %v3967_v63, %v4701_v48 }
 0x30d   : > { %v885_v3 = vpack.c.bf16 %v881_v0, %v880_v1 }
 0x30f   : > { %v4809_v51 = vpop.permute.xlu1 %1556 }
 0x313   : > { %3453 = vmatmul.msk.bf16.gmra.mxu0 %vm793_vm1, %v885_v3 }
 0x31d   : > { %v911_v4 = vpop.f32.mrf.mxu0 }
 0x325   : > { %v913_v5 = vpop.f32.mrf.mxu0 }
 0x326   : > { %v931_v45 = vpack.c.bf16 %v913_v5, %v911_v4 }
 0x328   : > { %3482 = vmatmul.msk.bf16.vlgmr.msra.gmra.mxu0 %vm739_vm0, %v931_v45 }
 0x32a   : > { %v4794_v39 = vpop.f32.mrf.mxu1 }
 0x32b   : > { %v1340_v6 = vsel %vm793_vm1, %v4794_v39, -inf }
 0x32c   : > { %1341 = vmax.xlane.f32.xlu0 %v1340_v6 }
 0x32d   : > { %v916_v8 = vpop.f32.mrf.mxu0 }
 0x32e   : > { %v4811_v17 = vpop.xlane.xlu2 %1013 }
 0x32f   : > { %v1036_v3 = vsub.f32 %v4707_v49, %v4811_v17 }
 0x331   : > { %v1044_v45 = vmul.f32 1.442695, %v1036_v3 }
 0x332   : > { %v4798_v10 = vpop.f32.mrf.mxu1 }
 0x333   : > { %v1343_v48 = vsel %vm793_vm1, %v4798_v10, -inf }
 0x334   : > { %1344 = vmax.xlane.f32.xlu2 %v1343_v48 }
 0x335   : > { %v918_v52 = vpop.f32.mrf.mxu0 }
 0x336   : > { %v932_v2 = vpack.c.bf16 %v918_v52, %v916_v8 }
 0x337   : > { %v1023_v23 = vpop.xlane.xlu2 %1022 }
 0x338   : > { %3483 = vmatmul.msk.bf16.gmra.mxu0 %vm739_vm0, %v932_v2 }
 0x33a   : > { %v4803_v9 = vpop.f32.mrf.mxu1  ;;  %v1020_v21 = vpop.xlane.xlu1 %1019 }
 0x33b   : > { %v1346_v12 = vsel %vm793_vm1, %v4803_v9, -inf  ;;  %v1038_v25 = vsub.f32 %v4742_v19, %v1020_v21  ;;  %v1037_v19 = vsub.f32 %v4715_v55, %v1017_v24 }
 0x33c   : > { %1347 = vmax.xlane.f32.xlu0 %v1346_v12 }
 0x33d   : > { %v1048_v30 = vmul.f32 1.442695, %v1038_v25  ;;  %v1046_v50 = vmul.f32 1.442695, %v1037_v19 }
 0x33f   : > { %3968 = vpow2.f32 %v1048_v30  ;;  %v1026_v33 = vpop.xlane.xlu0 %1025 }
 0x340   : > { %v1040_v49 = vsub.f32 %v4757_v36, %v1026_v33 }
 0x342   : > { %v4807_v14 = vpop.f32.mrf.mxu1  ;;  %v1052_v52 = vmul.f32 1.442695, %v1040_v49 }
 0x343   : > { %v1349_v5 = vsel %vm793_vm1, %v4807_v14, -inf }
 0x345   : > { %v4832_v40 = vpop.eup %3968 }
 0x346   : > { %v1066_v42 = vsel %vm793_vm1, %v4832_v40, 0.0 }
 0x347   : > { %v1029_v32 = vpop.xlane.xlu1 %1028 }
 0x348   : > { %3506 = vmatmul.msk.bf16.vlgmr.msrb.gmra.mxu0 %vm739_vm0, %v4752_v28  ;;  %v1041_v38 = vsub.f32 %v4765_v31, %v1029_v32  ;;  %v1039_v31 = vsub.f32 %v4748_v26, %v1023_v23 }
 0x34a   : > { %v4815_v18 = vpop.f32.mrf.mxu1  ;;  %v1054_v15 = vmul.f32 1.442695, %v1041_v38  ;;  %v1050_v59 = vmul.f32 1.442695, %v1039_v31 }
 0x34b   : > { %v1352_v48 = vsel %vm793_vm1, %v4815_v18, -inf }
 0x34c   : > { %1438 = vrot.lane.b32.xlu2 %v4647_v27, %s6053_s23  ;;  %3970 = vpow2.f32 %v1054_v15 }
 0x34d   : > { %3972 = vpow2.f32 %v1046_v50 }
 0x34f   : > { %v1032_v28 = vpop.xlane.xlu2 %1031 }
 0x352   : > { %v4820_v20 = vpop.f32.mrf.mxu1  ;;  %v4842_v54 = vpop.eup %3970 }
 0x353   : > { %v1355_v62 = vsel %vm793_vm1, %v4820_v20, -inf  ;;  %v1075_v57 = vsel %vm793_vm1, %v4842_v54, 0.0 }
 0x354   : > { %1356 = vmax.xlane.f32.xlu1 %v1355_v62 }
 0x357   : > { %v1035_v53 = vpop.xlane.xlu0 %1034  ;;  %v1113_v55 = vpop.permute.xlu2 %1112 }
 0x358   : > { %3507 = vmatmul.msk.bf16.gmra.mxu0 %vm739_vm0, %v4763_v7  ;;  %v1042_v7 = vsub.f32 %v4770_v11, %v1032_v28  ;;  %v4845_v11 = vpop.eup %3972  ;;  %v1043_v46 = vsub.f32 %v4775_v41, %v1035_v53 }
 0x359   : > { %v1063_v58 = vsel %vm793_vm1, %v4845_v11, 0.0 }
 0x35a   : > { %v4827_v16 = vpop.f32.mrf.mxu1  ;;  %v1056_v56 = vmul.f32 1.442695, %v1042_v7  ;;  %v1058_v63 = vmul.f32 1.442695, %v1043_v46 }
 0x35b   : > { %v1358_v22 = vsel %vm793_vm1, %v4827_v16, -inf }
 0x35c   : > { %1359 = vmax.xlane.f32.xlu1 %v1358_v22  ;;  %3974 = vpow2.f32 %v1056_v56 }
 0x35d   : > { %3976 = vpow2.f32 %v1050_v59 }
 0x35e   : > { %3978 = vpow2.f32 %v1058_v63 }
 0x35f   : > { %v1115_v43 = vpop.permute.xlu1 %1114  ;;  %3980 = vpow2.f32 %v1044_v45 }
 0x360   : > { %1136 = vmatpush.bf16.msrb.mxu2 %v1115_v43  ;;  %3982 = vpow2.f32 %v1052_v52 }
 0x362   : > { %v4835_v44 = vpop.f32.mrf.mxu1  ;;  %v4852_v0 = vpop.eup %3974 }
 0x363   : > { %v1361_v47 = vsel %vm793_vm1, %v4835_v44, -inf  ;;  %v4854_v1 = vpop.eup %3976  ;;  %v1078_v41 = vsel %vm793_vm1, %v4852_v0, 0.0 }
 0x364   : > { %1137 = vmatpush.bf16.msrb.mxu2 %v1113_v55  ;;  %1067 = vadd.xlane.f32.xlu1 %v1066_v42  ;;  %v1069_v4 = vsel %vm793_vm1, %v4854_v1, 0.0  ;;  %v4866_v6 = vpop.eup %3978 }
 0x365   : > { %1362 = vmax.xlane.f32.xlu0 %v1361_v47  ;;  %v1081_v8 = vsel %vm793_vm1, %v4866_v6, 0.0  ;;  %v3981_v12 = vpop.eup %3980 }
 0x367   : > { %v1109_v61 = vpop.permute.xlu1 %1108 }
 0x368   : > { %3508 = vmatmul.msk.bf16.gmra.mxu0 %vm739_vm0, %v1555_v13  ;;  %v1060_v13 = vsel %vm793_vm1, %v3981_v12, 0.0 }
 0x36a   : > { %v1111_v26 = vpop.permute.xlu0 %1110 }
 0x36b   : > { %1138 = vmatpush.bf16.msrb.mxu2 %v1111_v26 }
 0x36c   : > { %1076 = vadd.xlane.f32.xlu1 %v1075_v57 }
 0x36d   : > { %1064 = vadd.xlane.f32.xlu0 %v1063_v58 }
 0x36f   : > { %1139 = vmatpush.bf16.msrb.mxu2 %v1109_v61 }
 0x374   : > { %1079 = vadd.xlane.f32.xlu1 %v1078_v41 }
 0x375   : > { %1070 = vadd.xlane.f32.xlu0 %v1069_v4  ;;  %1350 = vmax.xlane.f32.xlu2 %v1349_v5 }
 0x378   : > { %3509 = vmatmul.msk.bf16.gmra.mxu0 %vm739_vm0, %v4809_v51  ;;  %v4876_v51 = vpop.eup %3982 }
 0x379   : > { %v1072_v36 = vsel %vm793_vm1, %v4876_v51, 0.0 }
 0x37d   : > { %1082 = vadd.xlane.f32.xlu0 %v1081_v8  ;;  %1353 = vmax.xlane.f32.xlu2 %v1352_v48 }
 0x380   : > { %v4873_v2 = vpop.f32.mrf.mxu0 }
 0x385   : > { %1061 = vadd.xlane.f32.xlu2 %v1060_v13 }
 0x388   : > { %v4878_v17 = vpop.f32.mrf.mxu0 }
 0x38d   : > { %1073 = vadd.xlane.f32.xlu2 %v1072_v36 }
 0x390   : > { %v4882_v21 = vpop.f32.mrf.mxu0 }
 0x398   : > { %v4884_v23 = vpop.f32.mrf.mxu0 }
 0x39f   : > { %v1342_v24 = vpop.xlane.xlu0 %1341 }
 0x3a0   : > { %v1364_v25 = vsub.f32 %v4794_v39, %v1342_v24 }
 0x3a2   : > { %v1372_v62 = vmul.f32 1.442695, %v1364_v25 }
 0x3a4   : > { %3984 = vpow2.f32 %v1372_v62 }
 0x3a5   : > { %v4887_v30 = vpop.f32.mrf.mxu0 }
 0x3a7   : > { %v1345_v32 = vpop.xlane.xlu2 %1344 }
 0x3a8   : > { %v1365_v28 = vsub.f32 %v4798_v10, %v1345_v32 }
 0x3aa   : > { %v4890_v33 = vpop.eup %3984  ;;  %v1374_v38 = vmul.f32 1.442695, %v1365_v28 }
 0x3ab   : > { %v1388_v19 = vsel %vm793_vm1, %v4890_v33, 0.0 }
 0x3ac   : > { %3986 = vpow2.f32 %v1374_v38  ;;  %1389 = vadd.xlane.f32.xlu1 %v1388_v19 }
 0x3ad   : > { %v4894_v22 = vpop.f32.mrf.mxu0 }
 0x3af   : > { %v1439_v15 = vpop.permute.xlu2 %1438  ;;  %v1348_v42 = vpop.xlane.xlu0 %1347 }
 0x3b0   : > { %1460 = vmatpush.bf16.msra.mxu2 %v1439_v15  ;;  %v1366_v41 = vsub.f32 %v4803_v9, %v1348_v42 }
 0x3b2   : > { %v4896_v39 = vpop.eup %3986  ;;  %v1376_v49 = vmul.f32 1.442695, %v1366_v41 }
 0x3b3   : > { %v1391_v50 = vsel %vm793_vm1, %v4896_v39, 0.0 }
 0x3b4   : > { %1392 = vadd.xlane.f32.xlu0 %v1391_v50 }
 0x3b5   : > { %v4900_v43 = vpop.f32.mrf.mxu0 }
 0x3bd   : > { %v4902_v10 = vpop.f32.mrf.mxu0 }
 0x3c5   : > { %v4904_v7 = vpop.f32.mrf.mxu0 }
 0x3c6   : > { %v1619_v53 = vsel %vm793_vm1, %v4904_v7, -inf }
 0x3c7   : > { %1620 = vmax.xlane.f32.xlu2 %v1619_v53  ;;  %v4930_v26 = vpop.xlane.xlu1 %1356 }
 0x3c8   : > { %1717 = vrot.lane.b32.xlu0 %v4647_v27, %s4236_s15 }
 0x3cd   : > { %v4910_v31 = vpop.f32.mrf.mxu0 }
 0x3ce   : > { %v1622_v55 = vsel %vm793_vm1, %v4910_v31, -inf }
 0x3cf   : > { %1623 = vmax.xlane.f32.xlu1 %v1622_v55  ;;  %v4936_v63 = vpop.xlane.xlu1 %1359 }
 0x3d0   : > { %1432 = vrot.lane.b32.xlu0 %v4659_v37, %s6053_s23 }
 0x3d5   : > { %v4920_v47 = vpop.f32.mrf.mxu0 }
 0x3d6   : > { %v1625_v19 = vsel %vm793_vm1, %v4920_v47, -inf }
 0x3d7   : > { %v1068_v13 = vpop.xlane.xlu1 %1067 }
 0x3d8   : > { %1715 = vrot.lane.b32.xlu0 %v4649_v29, %s4236_s15  ;;  %v4926_v27 = vpop.xlane.xlu0 %1362 }
 0x3dd   : > { %v4928_v59 = vpop.f32.mrf.mxu0 }
 0x3de   : > { %v1628_v45 = vsel %vm793_vm1, %v4928_v59, -inf }
 0x3df   : > { %1434 = vrot.lane.b32.xlu2 %v4654_v34, %s6053_s23  ;;  %v1077_v53 = vpop.xlane.xlu1 %1076 }
 0x3e0   : > { %v1065_v57 = vpop.xlane.xlu0 %1064 }
 0x3e1   : > { %3988 = vrcp.f32 %v1065_v57 }
 0x3e5   : > { %v4934_v58 = vpop.f32.mrf.mxu0 }
 0x3e7   : > { %v3989_v3 = vpop.eup %3988 }
 0x3e8   : > { %v4922_v56 = vpop.xlane.xlu2 %1350  ;;  %1436 = vrot.lane.b32.xlu1 %v4649_v29, %s6053_s23  ;;  %v1093_v4 = vmul.f32 %v3989_v3, %v4845_v11  ;;  %v1071_v8 = vpop.xlane.xlu0 %1070  ;;  %v1631_v11 = vsel %vm793_vm1, %v4934_v58, -inf  ;;  %s433_s23 = scalar_lea.vmem [#allocation2], %s3347_s14 }
 0x3ed   : > { %v4942_v48 = vpop.f32.mrf.mxu0 }
 0x3ee   : > { %v1634_v9 = vsel %vm793_vm1, %v4942_v48, -inf }
 0x3f0   : > { %v4932_v46 = vpop.xlane.xlu2 %1353  ;;  %v1083_v3 = vpop.xlane.xlu0 %1082 }
 0x3f5   : > { %v4951_v24 = vpop.f32.mrf.mxu0 }
 0x3f6   : > { %v1637_v38 = vsel %vm793_vm1, %v4951_v24, -inf }
 0x3f8   : > { %v1062_v61 = vpop.xlane.xlu2 %1061 }
 0x3f9   : > { %3990 = vrcp.f32 %v1062_v61 }
 0x3fa   : > { %3992 = vrcp.f32 %v1071_v8 }
 0x3fb   : > { %3994 = vpow2.f32 %v1376_v49 }
 0x3fc   : > { %3996 = vrcp.f32 %v1068_v13 }
 0x3ff   : > { %v3991_v29 = vpop.eup %3990 }
 0x400   : > { %v1092_v5 = vmul.f32 %v3991_v29, %v3981_v12  ;;  %v3993_v12 = vpop.eup %3992  ;;  %v1074_v15 = vpop.xlane.xlu2 %1073 }
 0x401   : > { %v4949_v36 = vpop.eup %3994  ;;  %v1095_v62 = vmul.f32 %v3993_v12, %v4854_v1  ;;  %3998 = vrcp.f32 %v1074_v15  ;;  %v4962_v1 = vpop.f32.mrf.mxu0 }
 0x402   : > { %1629 = vmax.xlane.f32.xlu0 %v1628_v45  ;;  %v1100_v52 = vpack.c.bf16 %v1093_v4, %v1092_v5  ;;  %v3997_v25 = vpop.eup %3996  ;;  %v1394_v32 = vsel %vm793_vm1, %v4949_v36, 0.0  ;;  %4000 = vrcp.f32 %v1077_v53  ;;  %v1080_v29 = vpop.xlane.xlu1 %1079 }
 0x403   : > { %v1094_v28 = vmul.f32 %v3997_v25, %v4832_v40  ;;  %v1640_v40 = vsel %vm793_vm1, %v4962_v1, -inf  ;;  %4002 = vrcp.f32 %v1083_v3 }
 0x404   : > { %3458 = vmatmul.msk.bf16.vlgmr.msrb.gmra.mxu2 %vm793_vm1, %v1100_v52  ;;  %4004 = vrcp.f32 %v1080_v29  ;;  %v3815_v29 = vld [vmem:[%s6025_s3 + $0x18] sm:$0xff] }
 0x405   : > { %v1101_v50 = vpack.c.bf16 %v1095_v62, %v1094_v28  ;;  %v1367_v28 = vsub.f32 %v4807_v14, %v4922_v56  ;;  %1195 = vmatpush.bf16.msrb.mxu3 %v3815_v29 }
 0x407   : > { %v3999_v55 = vpop.eup %3998 }
 0x408   : > { %1635 = vmax.xlane.f32.xlu2 %v1634_v9  ;;  %v4001_v42 = vpop.eup %4000  ;;  %v1096_v57 = vmul.f32 %v3999_v55, %v4876_v51 }
 0x409   : > { %v1097_v61 = vmul.f32 %v4001_v42, %v4842_v54  ;;  %v4003_v4 = vpop.eup %4002 }
 0x40a   : > { %1632 = vmax.xlane.f32.xlu0 %v1631_v11  ;;  %v4005_v5 = vpop.eup %4004  ;;  %v1099_v45 = vmul.f32 %v4003_v4, %v4866_v6  ;;  %v1368_v11 = vsub.f32 %v4815_v18, %v4932_v46  ;;  %v1378_v18 = vmul.f32 1.442695, %v1367_v28  ;;  %v3814_v4 = vld [vmem:[%s6025_s3 + $0x10] sm:$0xff] }
 0x40b   : > { %v1102_v41 = vpack.c.bf16 %v1097_v61, %v1096_v57  ;;  %v1098_v49 = vmul.f32 %v4005_v5, %v4852_v0  ;;  %1196 = vmatpush.bf16.msrb.mxu3 %v3814_v4 }
 0x40d   : > { %v1103_v51 = vpack.c.bf16 %v1099_v45, %v1098_v49 }
 0x40f   : > { %3884 = vmatpush.bf16.msra.mxu3 %v4722_v60 }
 0x410   : > { %1395 = vadd.xlane.f32.xlu2 %v1394_v32 }
 0x412   : > { %1638 = vmax.xlane.f32.xlu0 %v1637_v38  ;;  %1626 = vmax.xlane.f32.xlu1 %v1625_v19 }
 0x413   : > { %3885 = vmatpush.bf16.msra.mxu3 %v4728_v35 }
 0x414   : > { %3459 = vmatmul.msk.bf16.gmra.mxu2 %vm793_vm1, %v1101_v50 }
 0x41a   : > { %1641 = vmax.xlane.f32.xlu0 %v1640_v40 }
 0x41f   : > { %v1390_v54 = vpop.xlane.xlu1 %1389 }
 0x424   : > { %3460 = vmatmul.msk.bf16.gmra.mxu2 %vm793_vm1, %v1102_v41 }
 0x427   : > { %v1393_v8 = vpop.xlane.xlu0 %1392 }
 0x42e   : > { %1713 = vrot.lane.b32.xlu0 %v4654_v34, %s4236_s15  ;;  %v1380_v34 = vmul.f32 1.442695, %v1368_v11 }
 0x434   : > { %3461 = vmatmul.msk.bf16.gmra.mxu2 %vm793_vm1, %v1103_v51 }
 0x43a   : > { %v1621_v52 = vpop.xlane.xlu2 %1620  ;;  %v1718_v13 = vpop.permute.xlu0 %1717 }
 0x43b   : > { %v1643_v9 = vsub.f32 %v4904_v7, %v1621_v52  ;;  %1739 = vmatpush.bf16.msrb.mxu1 %v1718_v13 }
 0x43d   : > { %v1651_v12 = vmul.f32 1.442695, %v1643_v9 }
 0x43f   : > { %4006 = vpow2.f32 %v1651_v12  ;;  %v1369_v12 = vsub.f32 %v4820_v20, %v4930_v26 }
 0x440   : > { %4008 = vpow2.f32 %v1380_v34 }
 0x442   : > { %v1624_v25 = vpop.xlane.xlu1 %1623  ;;  %v1433_v0 = vpop.permute.xlu0 %1432 }
 0x443   : > { %v1644_v6 = vsub.f32 %v4910_v31, %v1624_v25  ;;  %v1370_v31 = vsub.f32 %v4827_v16, %v4936_v63  ;;  %v1435_v55 = vpop.permute.xlu2 %1434 }
 0x445   : > { %v4978_v62 = vpop.eup %4006  ;;  %v1653_v32 = vmul.f32 1.442695, %v1644_v6  ;;  %v1384_v56 = vmul.f32 1.442695, %v1370_v31  ;;  %v1382_v6 = vmul.f32 1.442695, %v1369_v12 }
 0x446   : > { %v1667_v7 = vsel %vm793_vm1, %v4978_v62, 0.0  ;;  %v4984_v46 = vpop.eup %4008 }
 0x447   : > { %4010 = vpow2.f32 %v1653_v32  ;;  %1668 = vadd.xlane.f32.xlu2 %v1667_v7  ;;  %v1400_v14 = vsel %vm793_vm1, %v4984_v46, 0.0 }
 0x448   : > { %4012 = vpow2.f32 %v1378_v18 }
 0x449   : > { %4014 = vpow2.f32 %v1384_v56 }
 0x44a   : > { %v1716_v38 = vpop.permute.xlu0 %1715  ;;  %4016 = vrcp.f32 %v1393_v8 }
 0x44b   : > { %1740 = vmatpush.bf16.msrb.mxu1 %v1716_v38  ;;  %4018 = vrcp.f32 %v1390_v54 }
 0x44d   : > { %v4986_v19 = vpop.eup %4010 }
 0x44e   : > { %v1670_v15 = vsel %vm793_vm1, %v4986_v19, 0.0  ;;  %v4994_v50 = vpop.eup %4012 }
 0x44f   : > { %1671 = vadd.xlane.f32.xlu1 %v1670_v15  ;;  %1401 = vadd.xlane.f32.xlu2 %v1400_v14  ;;  %v1397_v53 = vsel %vm793_vm1, %v4994_v50, 0.0  ;;  %v4998_v63 = vpop.eup %4014  ;;  %v1371_v15 = vsub.f32 %v4835_v44, %v4926_v27 }
 0x450   : > { %v4017_v40 = vpop.eup %4016  ;;  %v1406_v57 = vsel %vm793_vm1, %v4998_v63, 0.0 }
 0x451   : > { %v4019_v42 = vpop.eup %4018  ;;  %v1421_v61 = vmul.f32 %v4017_v40, %v4896_v39 }
 0x452   : > { %v1420_v3 = vmul.f32 %v4019_v42, %v4890_v33 }
 0x454   : > { %v1428_v41 = vpack.c.bf16 %v1421_v61, %v1420_v3 }
 0x458   : > { %1398 = vadd.xlane.f32.xlu0 %v1397_v53 }
 0x45a   : > { %v1437_v16 = vpop.permute.xlu1 %1436 }
 0x45b   : > { %1461 = vmatpush.bf16.msra.mxu2 %v1437_v16 }
 0x45f   : > { %1462 = vmatpush.bf16.msra.mxu2 %v1435_v55 }
 0x460   : > { %1407 = vadd.xlane.f32.xlu0 %v1406_v57 }
 0x463   : > { %1463 = vmatpush.bf16.msra.mxu2 %v1433_v0 }
 0x466   : > { %3490 = vmatmul.msk.bf16.vlgmr.msra.gmra.mxu2 %vm793_vm1, %v1428_v41 }
 0x468   : > { %1711 = vrot.lane.b32.xlu1 %v4659_v37, %s4236_s15  ;;  %s3281_s15 = sshll.u32 %s433_s23, 4  ;;  %s3282_s15 = int_to_ptr.vmem [resolvable:$true] %s3281_s15 }
 0x475   : > { %v1630_v33 = vpop.xlane.xlu0 %1629 }
 0x476   : > { %v1646_v52 = vsub.f32 %v4928_v59, %v1630_v33 }
 0x478   : > { %v1657_v60 = vmul.f32 1.442695, %v1646_v52 }
 0x47b   : > { %v1636_v20 = vpop.xlane.xlu2 %1635 }
 0x47c   : > { %v1648_v32 = vsub.f32 %v4942_v48, %v1636_v20  ;;  %v1386_v48 = vmul.f32 1.442695, %v1371_v15 }
 0x47d   : > { %v1633_v39 = vpop.xlane.xlu0 %1632 }
 0x47e   : > { %v1647_v5 = vsub.f32 %v4934_v58, %v1633_v39  ;;  %v1661_v18 = vmul.f32 1.442695, %v1648_v32 }
 0x480   : > { %v1659_v45 = vmul.f32 1.442695, %v1647_v5  ;;  %v3817_v5 = vld [vmem:[%s6025_s3 + $0x28] sm:$0xff] }
 0x482   : > { %4020 = vpow2.f32 %v1659_v45 }
 0x483   : > { %v1396_v39 = vpop.xlane.xlu2 %1395 }
 0x485   : > { %v1627_v37 = vpop.xlane.xlu1 %1626  ;;  %v1639_v49 = vpop.xlane.xlu0 %1638 }
 0x486   : > { %v1645_v8 = vsub.f32 %v4920_v47, %v1627_v37  ;;  %v1649_v51 = vsub.f32 %v4951_v24, %v1639_v49 }
 0x487   : > { %v1141_v54 = vpop.f32.mrf.mxu2 }
 0x488   : > { %v1655_v13 = vmul.f32 1.442695, %v1645_v8  ;;  %v1663_v9 = vmul.f32 1.442695, %v1649_v51  ;;  %v5019_v35 = vpop.eup %4020  ;;  %v933_v51 = vpack.c.bf16 %v4878_v17, %v4873_v2 }
 0x489   : > { %v1679_v34 = vsel %vm793_vm1, %v5019_v35, 0.0 }
 0x48a   : > { %4022 = vpow2.f32 %v1655_v13 }
 0x48b   : > { %4024 = vpow2.f32 %v1663_v9 }
 0x48c   : > { %4026 = vpow2.f32 %v1657_v60 }
 0x48d   : > { %4028 = vpow2.f32 %v1382_v6  ;;  %v1642_v28 = vpop.xlane.xlu0 %1641 }
 0x48e   : > { %4030 = vpow2.f32 %v1661_v18  ;;  %v1650_v55 = vsub.f32 %v4962_v1, %v1642_v28 }
 0x48f   : > { %v1143_v11 = vpop.f32.mrf.mxu2  ;;  %4032 = vpow2.f32 %v1386_v48 }
 0x490   : > { %v5021_v58 = vpop.eup %4022  ;;  %v1161_v47 = vpack.c.bf16 %v1143_v11, %v1141_v54  ;;  %v1665_v27 = vmul.f32 1.442695, %v1650_v55  ;;  %v3816_v54 = vld [vmem:[%s6025_s3 + $0x20] sm:$0xff] }
 0x491   : > { %v5025_v24 = vpop.eup %4024  ;;  %v1673_v59 = vsel %vm793_vm1, %v5021_v58, 0.0 }
 0x492   : > { %1674 = vadd.xlane.f32.xlu2 %v1673_v59  ;;  %3470 = vmatmul.msk.bf16.vlgmr.msrb.gmra.mxu3 %vm739_vm0, %v1161_v47  ;;  %v1685_v25 = vsel %vm793_vm1, %v5025_v24, 0.0  ;;  %v5034_v26 = vpop.eup %4026  ;;  %4034 = vpow2.f32 %v1665_v27 }
 0x493   : > { %1680 = vadd.xlane.f32.xlu1 %v1679_v34  ;;  %1686 = vadd.xlane.f32.xlu0 %v1685_v25  ;;  %v1676_v7 = vsel %vm793_vm1, %v5034_v26, 0.0  ;;  %v5039_v38 = vpop.eup %4028  ;;  %4036 = vrcp.f32 %v1396_v39 }
 0x494   : > { %v1403_v53 = vsel %vm793_vm1, %v5039_v38, 0.0  ;;  %v5046_v16 = vpop.eup %4030  ;;  %1519 = vmatpush.bf16.msrb.mxu3 %v3817_v5 }
 0x495   : > { %v1682_v44 = vsel %vm793_vm1, %v5046_v16, 0.0  ;;  %v5051_v42 = vpop.eup %4032 }
 0x496   : > { %v1409_v3 = vsel %vm793_vm1, %v5051_v42, 0.0 }
 0x497   : > { %v1146_v0 = vpop.f32.mrf.mxu2 }
 0x498   : > { %v5056_v41 = vpop.eup %4034  ;;  %1520 = vmatpush.bf16.msrb.mxu3 %v3816_v54 }
 0x499   : > { %v1688_v1 = vsel %vm793_vm1, %v5056_v41, 0.0  ;;  %v4037_v8 = vpop.eup %4036 }
 0x49a   : > { %1677 = vadd.xlane.f32.xlu2 %v1676_v7  ;;  %v1422_v13 = vmul.f32 %v4037_v8, %v4949_v36  ;;  %v934_v36 = vpack.c.bf16 %v4884_v23, %v4882_v21 }
 0x49f   : > { %v1148_v31 = vpop.f32.mrf.mxu2 }
 0x4a0   : > { %v1162_v14 = vpack.c.bf16 %v1148_v31, %v1146_v0  ;;  %v1714_v56 = vpop.permute.xlu0 %1713 }
 0x4a1   : > { %1741 = vmatpush.bf16.msrb.mxu1 %v1714_v56 }
 0x4a2   : > { %3471 = vmatmul.msk.bf16.gmra.mxu3 %vm739_vm0, %v1162_v14  ;;  %1404 = vadd.xlane.f32.xlu2 %v1403_v53 }
 0x4a7   : > { %v1151_v40 = vpop.f32.mrf.mxu2 }
 0x4aa   : > { %1683 = vadd.xlane.f32.xlu2 %v1682_v44 }
 0x4af   : > { %v1153_v57 = vpop.f32.mrf.mxu2 }
 0x4b0   : > { %v1163_v61 = vpack.c.bf16 %v1153_v57, %v1151_v40 }
 0x4b2   : > { %3472 = vmatmul.msk.bf16.gmra.mxu3 %vm739_vm0, %v1163_v61  ;;  %1410 = vadd.xlane.f32.xlu2 %v1409_v3 }
 0x4b7   : > { %v1156_v29 = vpop.f32.mrf.mxu2 }
 0x4ba   : > { %1689 = vadd.xlane.f32.xlu2 %v1688_v1  ;;  %v1669_v49 = vpop.xlane.xlu2 %1668 }
 0x4bf   : > { %v1158_v4 = vpop.f32.mrf.mxu2 }
 0x4c0   : > { %v1164_v33 = vpack.c.bf16 %v1158_v4, %v1156_v29 }
 0x4c2   : > { %3473 = vmatmul.msk.bf16.gmra.mxu3 %vm739_vm0, %v1164_v33  ;;  %v1672_v37 = vpop.xlane.xlu1 %1671  ;;  %v1402_v6 = vpop.xlane.xlu2 %1401 }
 0x4cb   : > { %v1399_v45 = vpop.xlane.xlu0 %1398 }
 0x4cc   : > { %4038 = vrcp.f32 %v1399_v45 }
 0x4cd   : > { %4040 = vrcp.f32 %v1672_v37 }
 0x4ce   : > { %4042 = vrcp.f32 %v1669_v49 }
 0x4d2   : > { %v4039_v52 = vpop.eup %4038  ;;  %3484 = vmatmul.msk.bf16.vlgmr.msra.gmra.mxu3 %vm739_vm0, %v933_v51 }
 0x4d3   : > { %v1423_v9 = vmul.f32 %v4039_v52, %v4994_v50  ;;  %v4041_v60 = vpop.eup %4040  ;;  %v1408_v48 = vpop.xlane.xlu0 %1407 }
 0x4d4   : > { %v4043_v12 = vpop.eup %4042  ;;  %v1700_v2 = vmul.f32 %v4041_v60, %v4986_v19 }
 0x4d5   : > { %v1429_v11 = vpack.c.bf16 %v1423_v9, %v1422_v13  ;;  %v1699_v17 = vmul.f32 %v4043_v12, %v4978_v62 }
 0x4d7   : > { %3491 = vmatmul.msk.bf16.gmra.mxu2 %vm793_vm1, %v1429_v11  ;;  %v1707_v59 = vpack.c.bf16 %v1700_v2, %v1699_v17 }
 0x4da   : > { %v1712_v47 = vpop.permute.xlu1 %1711 }
 0x4db   : > { %1742 = vmatpush.bf16.msrb.mxu1 %v1712_v47 }
 0x4de   : > { %3510 = vmatmul.msk.bf16.vlgmr.msrb.gmra.mxu1 %vm793_vm1, %v1707_v59 }
 0x4e2   : > { %3485 = vmatmul.msk.bf16.gmra.mxu3 %vm739_vm0, %v934_v36 }
 0x4e9   : > { %v1465_v50 = vpop.f32.mrf.mxu2 }
 0x4f1   : > { %v1467_v34 = vpop.f32.mrf.mxu2 }
 0x4f2   : > { %v1485_v25 = vpack.c.bf16 %v1467_v34, %v1465_v50 }
 0x4f4   : > { %3502 = vmatmul.msk.bf16.vlgmr.msrb.gmra.mxu3 %vm739_vm0, %v1485_v25 }
 0x505   : > { %v1675_v20 = vpop.xlane.xlu2 %1674 }
 0x506   : > { %4044 = vrcp.f32 %v1675_v20  ;;  %v1681_v18 = vpop.xlane.xlu1 %1680 }
 0x50c   : > { %v4045_v62 = vpop.eup %4044 }
 0x50d   : > { %v1678_v19 = vpop.xlane.xlu2 %1677  ;;  %v1701_v32 = vmul.f32 %v4045_v62, %v5021_v58 }
 0x50e   : > { %4046 = vrcp.f32 %v1678_v19 }
 0x50f   : > { %4048 = vrcp.f32 %v1402_v6 }
 0x514   : > { %v4047_v0 = vpop.eup %4046 }
 0x515   : > { %v1702_v28 = vmul.f32 %v4047_v0, %v5034_v26  ;;  %v5082_v21 = vpop.f32.mrf.mxu3  ;;  %v1405_v23 = vpop.xlane.xlu2 %1404 }
 0x516   : > { %4050 = vrcp.f32 %v1405_v23  ;;  %v4049_v31 = vpop.eup %4048 }
 0x517   : > { %v1708_v7 = vpack.c.bf16 %v1702_v28, %v1701_v32  ;;  %4052 = vrcp.f32 %v1681_v18  ;;  %v1424_v53 = vmul.f32 %v4049_v31, %v4984_v46  ;;  %v1687_v46 = vpop.xlane.xlu0 %1686 }
 0x519   : > { %3511 = vmatmul.msk.bf16.gmra.mxu1 %vm793_vm1, %v1708_v7 }
 0x51c   : > { %v4051_v15 = vpop.eup %4050 }
 0x51d   : > { %v5085_v14 = vpop.f32.mrf.mxu3  ;;  %v1684_v56 = vpop.xlane.xlu2 %1683  ;;  %v1425_v58 = vmul.f32 %v4051_v15, %v5039_v38 }
 0x51e   : > { %4054 = vrcp.f32 %v1684_v56  ;;  %v4053_v40 = vpop.eup %4052 }
 0x51f   : > { %v1430_v26 = vpack.c.bf16 %v1425_v58, %v1424_v53  ;;  %4056 = vrcp.f32 %v1408_v48  ;;  %v1703_v44 = vmul.f32 %v4053_v40, %v5019_v35  ;;  %v1252_v53 = vadd.f32 %v4887_v30, %v5082_v21  ;;  %v5133_v40 = vld [vmem:[%s6026_s4] ss:$0 sm:$0xff] }
 0x521   : > { %3492 = vmatmul.msk.bf16.gmra.mxu2 %vm793_vm1, %v1430_v26 }
 0x524   : > { %v4055_v55 = vpop.eup %4054 }
 0x525   : > { %v1704_v27 = vmul.f32 %v4055_v55, %v5046_v16  ;;  %v5092_v57 = vpop.f32.mrf.mxu3  ;;  %v1411_v61 = vpop.xlane.xlu2 %1410  ;;  %v3819_v16 = vld [vmem:[%s6025_s3 + $0x38] sm:$0xff]  ;;  %v4162_v55 = vld [vmem:[%s4452_s16] sm:$0xff] }
 0x526   : > { %4058 = vrcp.f32 %v1411_v61  ;;  %v4057_v38 = vpop.eup %4056  ;;  %1798 = vmatpush.bf16.msrb.mxu2 %v3819_v16  ;;  %v1254_v61 = vadd.f32 %v4894_v22, %v5085_v14  ;;  %v1257_v22 = vadd.f32 %v4900_v43, %v5092_v57 }
 0x527   : > { %v1709_v3 = vpack.c.bf16 %v1704_v27, %v1703_v44  ;;  %4060 = vrcp.f32 %v1687_v46  ;;  %v1426_v33 = vmul.f32 %v4057_v38, %v4998_v63  ;;  %v4163_v38 = vld [vmem:[%s4452_s16 + $0x8] sm:$0xff] }
 0x529   : > { %3512 = vmatmul.msk.bf16.gmra.mxu1 %vm793_vm1, %v1709_v3 }
 0x52c   : > { %v4059_v29 = vpop.eup %4058 }
 0x52d   : > { %v5095_v1 = vpop.f32.mrf.mxu3  ;;  %v1690_v4 = vpop.xlane.xlu2 %1689  ;;  %v1427_v35 = vmul.f32 %v4059_v29, %v5051_v42  ;;  %v3818_v42 = vld [vmem:[%s6025_s3 + $0x30] sm:$0xff] }
 0x52e   : > { %4062 = vrcp.f32 %v1690_v4  ;;  %v4061_v5 = vpop.eup %4060  ;;  %1799 = vmatpush.bf16.msrb.mxu2 %v3818_v42 }
 0x52f   : > { %v1431_v39 = vpack.c.bf16 %v1427_v35, %v1426_v33  ;;  %v1705_v37 = vmul.f32 %v4061_v5, %v5025_v24 }
 0x531   : > { %3493 = vmatmul.msk.bf16.gmra.mxu2 %vm793_vm1, %v1431_v39  ;;  %v4164_v39 = vld [vmem:[%s4452_s16 + $0x10] sm:$0xff] }
 0x534   : > { %v4063_v45 = vpop.eup %4062 }
 0x535   : > { %v1706_v49 = vmul.f32 %v4063_v45, %v5056_v41  ;;  %v1208_v8 = vpop.f32.mrf.mxu3 }
 0x537   : > { %v1710_v51 = vpack.c.bf16 %v1706_v49, %v1705_v37  ;;  %v1259_v37 = vadd.f32 %v4902_v10, %v5095_v1  ;;  %v4166_v10 = vld [vmem:[%s4452_s16 + $0x20] sm:$0xff] }
 0x539   : > { %3513 = vmatmul.msk.bf16.gmra.mxu1 %vm793_vm1, %v1710_v51 }
 0x53d   : > { %v5106_v63 = vpop.f32.mrf.mxu3 }
 0x545   : > { %v1213_v54 = vpop.f32.mrf.mxu3 }
 0x54d   : > { %v5111_v52 = vpop.f32.mrf.mxu3 }
 0x555   : > { %v1261_v13 = vpop.f32.mrf.mxu3 }
 0x556   : > { %v5113_v9 = vadd.f32 %v1261_v13, %v1208_v8 }
 0x55a   : > { %v1470_v24 = vpop.f32.mrf.mxu2 }
 0x55b   : > { %v1744_v60 = vpop.f32.mrf.mxu1 }
 0x55d   : > { %v5115_v41 = vpop.f32.mrf.mxu3 }
 0x562   : > { %v1472_v11 = vpop.f32.mrf.mxu2 }
 0x563   : > { %v1486_v12 = vpack.c.bf16 %v1472_v11, %v1470_v24  ;;  %v1746_v2 = vpop.f32.mrf.mxu1 }
 0x564   : > { %v1764_v17 = vpack.c.bf16 %v1746_v2, %v1744_v60 }
 0x565   : > { %v1266_v47 = vpop.f32.mrf.mxu3  ;;  %3503 = vmatmul.msk.bf16.gmra.mxu3 %vm739_vm0, %v1486_v12  ;;  %v1264_v12 = vadd.f32 %v5115_v41, %v5106_v63  ;;  %v4237_v63 = vmov 128.0  }
 0x566   : > { %v5118_v59 = vadd.f32 %v1266_v47, %v1213_v54  ;;  %3522 = vmatmul.msk.bf16.vlgmr.msrb.gmra.mxu2 %vm739_vm0, %v1764_v17  ;;  %v4165_v54 = vld [vmem:[%s4452_s16 + $0x18] sm:$0xff]  ;;  %4064 = vrcp.f32 %v4237_v63 }
 0x56d   : > { %v5126_v15 = vpop.f32.mrf.mxu3 }
 0x577   : > { %v1522_v56 = vpop.f32.mrf.mxu3 }
 0x578   : > { %v1542_v58 = vadd.f32 %v1522_v56, %v1252_v53 }
 0x57f   : > { %v1524_v27 = vpop.f32.mrf.mxu3 }
 0x580   : > { %v1543_v46 = vadd.f32 %v1524_v27, %v1254_v61 }
 0x596   : > { %v1749_v36 = vpop.f32.mrf.mxu1 }
 0x59e   : > { %v1751_v50 = vpop.f32.mrf.mxu1 }
 0x59f   : > { %v1765_v34 = vpack.c.bf16 %v1751_v50, %v1749_v36 }
 0x5a1   : > { %3523 = vmatmul.msk.bf16.gmra.mxu2 %vm739_vm0, %v1765_v34  ;;  %v4167_v34 = vld [vmem:[%s4452_s16 + $0x28] sm:$0xff] }
 0x5a4   : > { %v1475_v25 = vpop.f32.mrf.mxu2 }
 0x5a6   : > { %v1754_v6 = vpop.f32.mrf.mxu1 }
 0x5ac   : > { %v1477_v20 = vpop.f32.mrf.mxu2 }
 0x5ad   : > { %v1487_v19 = vpack.c.bf16 %v1477_v20, %v1475_v25 }
 0x5ae   : > { %v1756_v62 = vpop.f32.mrf.mxu1 }
 0x5af   : > { %v1766_v0 = vpack.c.bf16 %v1756_v62, %v1754_v6  ;;  %3504 = vmatmul.msk.bf16.gmra.mxu3 %vm739_vm0, %v1487_v19 }
 0x5b1   : > { %3524 = vmatmul.msk.bf16.gmra.mxu2 %vm739_vm0, %v1766_v0  ;;  %v4168_v0 = vld [vmem:[%s4452_s16 + $0x30] sm:$0xff] }
 0x5b4   : > { %v1480_v32 = vpop.f32.mrf.mxu2 }
 0x5b6   : > { %v1759_v28 = vpop.f32.mrf.mxu1 }
 0x5bc   : > { %v1482_v23 = vpop.f32.mrf.mxu2 }
 0x5bd   : > { %v1488_v7 = vpack.c.bf16 %v1482_v23, %v1480_v32 }
 0x5be   : > { %v1761_v18 = vpop.f32.mrf.mxu1 }
 0x5bf   : > { %v1767_v31 = vpack.c.bf16 %v1761_v18, %v1759_v28  ;;  %3505 = vmatmul.msk.bf16.gmra.mxu3 %vm739_vm0, %v1488_v7  ;;  %v4065_v28 = vpop.eup %4064 }
 0x5c0   : > { %v1868_v23 = vmul.f32 128.0, %v4065_v28  ;;  %vm1872_vm2 = vweird.f32 %v4065_v28 }
 0x5c1   : > { %3525 = vmatmul.msk.bf16.gmra.mxu2 %vm739_vm0, %v1767_v31 }
 0x5c2   : > { %v1869_v7 = vsub.f32 1.0, %v1868_v23 }
 0x5c4   : > { %v1870_v18 = vmul.f32 %v4065_v28, %v1869_v7  ;;  %v3608_v7 = vld [vmem:[%s6029_s7 + $0xa0] sm:$0xf] }
 0x5c6   : > { %v1871_v31 = vadd.f32 %v4065_v28, %v1870_v18  ;;  %v3842_v18 = vld [vmem:[%s6029_s7 + $0xac] sm:$0xf0] }
 0x5c8   : > { %v5168_v53 = vsel %vm1872_vm2, %v4065_v28, %v1871_v31  ;;  %v3634_v28 = vld [vmem:[%s6029_s7 + $0xd8] sm:$0xf0]  ;;  %v3840_v31 = vld [vmem:[%s6029_s7 + $0xa4] sm:$0xf] }
 0x5e8   : > { %v1527_v33 = vpop.f32.mrf.mxu3 }
 0x5e9   : > { %v1801_v26 = vpop.f32.mrf.mxu2  ;;  %v1544_v14 = vadd.f32 %v1527_v33, %v1257_v22 }
 0x5ea   : > { %v1821_v48 = vadd.f32 %v1801_v26, %v1542_v58 }
 0x5ec   : > { %v1829_v44 = vadd.f32 %v4162_v55, %v1821_v48 }
 0x5ee   : > { %v5139_v3 = vadd.f32 %v5133_v40, %v1829_v44 }
 0x5f0   : > { %1851 = vadd.xlane.f32.xlu0 %v5139_v3  ;;  %v1529_v45 = vpop.f32.mrf.mxu3 }
 0x5f1   : > { %v1803_v30 = vpop.f32.mrf.mxu2  ;;  %v1545_v8 = vadd.f32 %v1529_v45, %v1259_v37 }
 0x5f2   : > { %v1822_v21 = vadd.f32 %v1803_v30, %v1543_v46  ;;  %v4169_v30 = vld [vmem:[%s4452_s16 + $0x38] sm:$0xff]  ;;  %s3279_s16 = scalar_lea.hbm %s6035_s13, %s3784_s20 }
 0x5f3   : > { %s3283_s27 = sshll.u32 %s3279_s16, 4  ;;  %s3284_s27 = int_to_ptr.hbm [resolvable:$true] %s3283_s27 }
 0x5f4   : > { %v1830_v29 = vadd.f32 %v4163_v38, %v1822_v21  ;;  %s4184_s30 = sshra.s32 %s3284_s27, 4  ;;  %s4185_s30 = int_to_ptr.hbm [resolvable:$true] %s4184_s30 }
 0x5f5   : > { %s4186_s0 = scalar_lea.hbm %s4185_s30, 8  ;;  %p4191_p0 = scmp.lt.s32.totalorder %s4185_s30, %s6035_s13 }
 0x5f6   : > { %v5144_v4 = vadd.f32 %v5133_v40, %v1830_v29  ;;  %p4187_p11 = scmp.ne.s32.totalorder %s4185_s30, %s4186_s0  ;;  %p4192_p1 = scmp.lt.s32.totalorder %s4190_s21, %s4186_s0 }
 0x5f8   : > { %1853 = vadd.xlane.f32.xlu2 %v5144_v4  ;;  %p4188_p12 = pnand %p4187_p11, %p4347_p5  ;;  %p4193_p2 = por %p4192_p1, %p4191_p0 }
 0x5fa   : > { %p4189_p13 = pneg %p4188_p12 }
 0x5fc   : > { %p4194_p3 = pnand %p4193_p2, %p4189_p13 }
 0x624   : > { %v1806_v35 = vpop.f32.mrf.mxu2 }
 0x625   : > { %v1823_v16 = vadd.f32 %v1806_v35, %v1544_v14 }
 0x627   : > { %v1831_v5 = vadd.f32 %v4164_v39, %v1823_v16 }
 0x629   : > { %v5153_v49 = vadd.f32 %v5133_v40, %v1831_v5 }
 0x62b   : > { %1855 = vadd.xlane.f32.xlu0 %v5153_v49 }
 0x62c   : > { %v1808_v51 = vpop.f32.mrf.mxu2 }
 0x62d   : > { %v1824_v42 = vadd.f32 %v1808_v51, %v1545_v8 }
 0x62f   : > { %v1832_v43 = vadd.f32 %v4165_v54, %v1824_v42 }
 0x631   : > { %v1844_v57 = vadd.f32 %v5133_v40, %v1832_v43 }
 0x632   : > { %v1532_v13 = vpop.f32.mrf.mxu3 }
 0x633   : > { %v1546_v24 = vadd.f32 %v1532_v13, %v5113_v9  ;;  %1857 = vadd.xlane.f32.xlu2 %v1844_v57 }
 0x634   : > { %v1811_v60 = vpop.f32.mrf.mxu2 }
 0x635   : > { %v1825_v11 = vadd.f32 %v1811_v60, %v1546_v24  ;;  %v3640_v24 = vld [vmem:[%s6029_s7 + $0xe0] sm:$0xf]  ;;  %v3850_v60 = vld [vmem:[%s6029_s7 + $0xec] sm:$0xf0] }
 0x637   : > { %v1833_v1 = vadd.f32 %v4166_v10, %v1825_v11  ;;  %v3848_v11 = vld [vmem:[%s6029_s7 + $0xe4] sm:$0xf]  ;;  %v3641_v10 = vor.u32 %v3850_v60, %v3640_v24 }
 0x639   : > { %v1845_v2 = vadd.f32 %v5133_v40, %v1833_v1  ;;  %v3642_v1 = vld [vmem:[%s6029_s7 + $0xf0] sm:$0xf0]  ;;  %2246 = vmatpush.bf16.msra.mxu3 %v3641_v10  ;;  %v3586_v10 = vld [vmem:[%s6029_s7 + $0x78] sm:$0xf0] }
 0x63a   : > { %v1534_v17 = vpop.f32.mrf.mxu3 }
 0x63b   : > { %v1547_v47 = vadd.f32 %v1534_v17, %v1264_v12  ;;  %1859 = vadd.xlane.f32.xlu1 %v1845_v2  ;;  %v3648_v12 = vld [vmem:[%s6029_s7 + $0xe8] sm:$0xf]  ;;  %v3645_v17 = vor.u32 %v3848_v11, %v3642_v1  ;;  %v3833_v11 = vld [vmem:[%s6029_s7 + $0x6c] sm:$0xf] }
 0x63c   : > { %v1813_v36 = vpop.f32.mrf.mxu2  ;;  %v3589_v1 = vor.u32 %v3833_v11, %v3586_v10 }
 0x63d   : > { %v1826_v50 = vadd.f32 %v1813_v36, %v1547_v47  ;;  %v3849_v36 = vld [vmem:[%s6029_s7 + $0xec] sm:$0xf]  ;;  %2275 = vmatpush.bf16.msra.mxu0 %v3645_v17  ;;  %v3828_v17 = vld [vmem:[%s6029_s7 + $0x44] sm:$0xf] }
 0x63f   : > { %v1834_v25 = vadd.f32 %v4167_v34, %v1826_v50  ;;  %v3650_v50 = vld [vmem:[%s6029_s7 + $0xf8] sm:$0xf0] }
 0x640   : > { %v3653_v34 = vor.u32 %v3849_v36, %v3650_v50  ;;  %v3562_v36 = vld [vmem:[%s6029_s7 + $0x50] sm:$0xf0]  ;;  %v3568_v50 = vld [vmem:[%s6029_s7 + $0x48] sm:$0xf] }
 0x641   : > { %v1846_v9 = vadd.f32 %v5133_v40, %v1834_v25  ;;  %v3624_v25 = vld [vmem:[%s6029_s7 + $0xc0] sm:$0xf] }
 0x642   : > { %v1537_v6 = vpop.f32.mrf.mxu3  ;;  %2333 = vmatpush.bf16.msra.mxu2 %v3653_v34  ;;  %v3831_v34 = vld [vmem:[%s6029_s7 + $0x54] sm:$0xf0] }
 0x643   : > { %v1548_v20 = vadd.f32 %v1537_v6, %v5118_v59  ;;  %1861 = vadd.xlane.f32.xlu0 %v1846_v9  ;;  %v1269_v59 = vadd.f32 %v5126_v15, %v5111_v52  ;;  %v3844_v6 = vld [vmem:[%s6029_s7 + $0xc4] sm:$0xf] }
 0x644   : > { %v1816_v19 = vpop.f32.mrf.mxu2 }
 0x645   : > { %v1827_v62 = vadd.f32 %v1816_v19, %v1548_v20  ;;  %v3626_v19 = vld [vmem:[%s6029_s7 + $0xd0] sm:$0xf0] }
 0x647   : > { %v1835_v32 = vadd.f32 %v4168_v0, %v1827_v62  ;;  %v3632_v62 = vld [vmem:[%s6029_s7 + $0xc8] sm:$0xf]  ;;  %v3847_v0 = vld [vmem:[%s6029_s7 + $0xd4] sm:$0xf0] }
 0x648   : > { %v3633_v63 = vor.u32 %v3847_v0, %v3632_v62  ;;  %v3544_v62 = vld [vmem:[%s6029_s7 + $0x20] sm:$0xf]  ;;  %v3826_v0 = vld [vmem:[%s6029_s7 + $0x2c] sm:$0xf0] }
 0x649   : > { %v1847_v41 = vadd.f32 %v5133_v40, %v1835_v32  ;;  %v3629_v32 = vor.u32 %v3844_v6, %v3626_v19  ;;  %v3829_v6 = vld [vmem:[%s6029_s7 + $0x4c] sm:$0xf] }
 0x64a   : > { %v1539_v56 = vpop.f32.mrf.mxu3 }
 0x64b   : > { %1863 = vadd.xlane.f32.xlu0 %v1847_v41  ;;  %v1549_v26 = vadd.f32 %v1539_v56, %v1269_v59  ;;  %2276 = vmatpush.bf16.msra.mxu0 %v3629_v32  ;;  %v3609_v56 = vor.u32 %v3842_v18, %v3608_v7  ;;  %v3610_v59 = vld [vmem:[%s6029_s7 + $0xb0] sm:$0xf0]  ;;  %v3824_v32 = vld [vmem:[%s6029_s7 + $0x24] sm:$0xf]  ;;  %v3827_v7 = vld [vmem:[%s6029_s7 + $0x34] sm:$0xf0] }
 0x64c   : > { %v1818_v55 = vpop.f32.mrf.mxu2 }
 0x64d   : > { %v1828_v27 = vadd.f32 %v1818_v55, %v1549_v26  ;;  %v3843_v26 = vld [vmem:[%s6029_s7 + $0xb4] sm:$0xf0] }
 0x64f   : > { %v1836_v21 = vadd.f32 %v4169_v30, %v1828_v27  ;;  %v3841_v27 = vld [vmem:[%s6029_s7 + $0xac] sm:$0xf]  ;;  %v3592_v30 = vld [vmem:[%s6029_s7 + $0x80] sm:$0xf] }
 0x651   : > { %v5186_v29 = vadd.f32 %v5133_v40, %v1836_v21  ;;  %v3838_v21 = vld [vmem:[%s6029_s7 + $0x8c] sm:$0xf0] }
 0x663   : > { %v1852_v58 = vpop.xlane.xlu0 %1851 }
 0x664   : > { %v1874_v48 = vmul.f32 %v5168_v53, %v1852_v58  ;;  %v3616_v58 = vld [vmem:[%s6029_s7 + $0xa8] sm:$0xf] }
 0x665   : > { %v3617_v55 = vor.u32 %v3843_v26, %v3616_v58  ;;  %v3554_v58 = vld [vmem:[%s6029_s7 + $0x38] sm:$0xf0] }
 0x666   : > { %v5174_v44 = vsub.f32 %v5139_v3, %v1874_v48  ;;  %v3613_v48 = vor.u32 %v3840_v31, %v3610_v59  ;;  %v3825_v59 = vld [vmem:[%s6029_s7 + $0x2c] sm:$0xf] }
 0x667   : > { %v3557_v26 = vor.u32 %v3825_v59, %v3554_v58 }
 0x668   : > { %v1890_v61 = vmul.f32 %v5174_v44, %v5174_v44  ;;  %2277 = vmatpush.bf16.msra.mxu0 %v3613_v48 }
 0x66a   : > { %1898 = vadd.xlane.f32.xlu2 %v1890_v61  ;;  %v3618_v61 = vld [vmem:[%s6029_s7 + $0xb8] sm:$0xf0] }
 0x66b   : > { %v1854_v46 = vpop.xlane.xlu2 %1853 }
 0x66c   : > { %v1875_v38 = vmul.f32 %v5168_v53, %v1854_v46  ;;  %v3621_v46 = vor.u32 %v3841_v27, %v3618_v61  ;;  %v3822_v27 = vld [vmem:[%s6029_s7 + $0xc] sm:$0xf0] }
 0x66e   : > { %v5181_v52 = vsub.f32 %v5144_v4, %v1875_v38  ;;  %v3836_v38 = vld [vmem:[%s6029_s7 + $0x84] sm:$0xf] }
 0x670   : > { %v1891_v15 = vmul.f32 %v5181_v52, %v5181_v52 }
 0x672   : > { %1900 = vadd.xlane.f32.xlu1 %v1891_v15  ;;  %1865 = vadd.xlane.f32.xlu2 %v5186_v29  ;;  %v3593_v15 = vor.u32 %v3838_v21, %v3592_v30  ;;  %v3530_v30 = vld [vmem:[%s6029_s7 + $0x10] sm:$0xf0]  ;;  %v3536_v21 = vld [vmem:[%s6029_s7 + $0x8] sm:$0xf] }
 0x69e   : > { %v1856_v3 = vpop.xlane.xlu0 %1855 }
 0x69f   : > { %v1876_v33 = vmul.f32 %v5168_v53, %v1856_v3  ;;  %v3594_v3 = vld [vmem:[%s6029_s7 + $0x90] sm:$0xf0] }
 0x6a1   : > { %v5191_v22 = vsub.f32 %v5153_v49, %v1876_v33  ;;  %v3600_v33 = vld [vmem:[%s6029_s7 + $0x88] sm:$0xf] }
 0x6a3   : > { %v1892_v14 = vmul.f32 %v5191_v22, %v5191_v22 }
 0x6a5   : > { %1902 = vadd.xlane.f32.xlu1 %v1892_v14  ;;  %v3839_v14 = vld [vmem:[%s6029_s7 + $0x94] sm:$0xf0] }
 0x6a6   : > { %v1858_v4 = vpop.xlane.xlu2 %1857 }
 0x6a7   : > { %v1877_v35 = vmul.f32 %v5168_v53, %v1858_v4  ;;  %v3597_v4 = vor.u32 %v3836_v38, %v3594_v3  ;;  %v3821_v3 = vld [vmem:[%s6029_s7 + $0xc] sm:$0xf] }
 0x6a9   : > { %v5196_v16 = vsub.f32 %v1844_v57, %v1877_v35  ;;  %v3601_v35 = vor.u32 %v3839_v14, %v3600_v33  ;;  %2278 = vmatpush.bf16.msra.mxu0 %v3597_v4  ;;  %v3538_v33 = vld [vmem:[%s6029_s7 + $0x18] sm:$0xf0] }
 0x6aa   : > { %v3541_v4 = vor.u32 %v3821_v3, %v3538_v33 }
 0x6ab   : > { %v1893_v40 = vmul.f32 %v5196_v16, %v5196_v16 }
 0x6ad   : > { %1904 = vadd.xlane.f32.xlu0 %v1893_v40  ;;  %v3837_v40 = vld [vmem:[%s6029_s7 + $0x8c] sm:$0xf] }
 0x6ae   : > { %v1860_v39 = vpop.xlane.xlu1 %1859 }
 0x6af   : > { %v1878_v5 = vmul.f32 %v5168_v53, %v1860_v39  ;;  %v3602_v39 = vld [vmem:[%s6029_s7 + $0x98] sm:$0xf0] }
 0x6b1   : > { %v5201_v45 = vsub.f32 %v1845_v2, %v1878_v5  ;;  %v3851_v2 = vld [vmem:[%s6029_s7 + $0xf4] sm:$0xf0]  ;;  %v3605_v5 = vor.u32 %v3837_v40, %v3602_v39 }
 0x6b2   : > { %v3649_v47 = vor.u32 %v3851_v2, %v3648_v12  ;;  %v3560_v12 = vld [vmem:[%s6029_s7 + $0x40] sm:$0xf]  ;;  %v3830_v2 = vld [vmem:[%s6029_s7 + $0x4c] sm:$0xf0] }
 0x6b3   : > { %v1894_v37 = vmul.f32 %v5201_v45, %v5201_v45 }
 0x6b4   : > { %2304 = vmatpush.bf16.msra.mxu1 %v3649_v47  ;;  %v3561_v47 = vor.u32 %v3830_v2, %v3560_v12 }
 0x6b5   : > { %1906 = vadd.xlane.f32.xlu2 %v1894_v37  ;;  %v3576_v37 = vld [vmem:[%s6029_s7 + $0x60] sm:$0xf] }
 0x6b6   : > { %v1862_v49 = vpop.xlane.xlu0 %1861 }
 0x6b7   : > { %v1879_v8 = vmul.f32 %v5168_v53, %v1862_v49  ;;  %v3834_v49 = vld [vmem:[%s6029_s7 + $0x6c] sm:$0xf0] }
 0x6b8   : > { %2305 = vmatpush.bf16.msra.mxu1 %v3633_v63 }
 0x6b9   : > { %v5206_v51 = vsub.f32 %v1846_v9, %v1879_v8  ;;  %v3846_v9 = vld [vmem:[%s6029_s7 + $0xcc] sm:$0xf0]  ;;  %v3832_v8 = vld [vmem:[%s6029_s7 + $0x64] sm:$0xf] }
 0x6ba   : > { %v3625_v20 = vor.u32 %v3846_v9, %v3624_v25  ;;  %v3565_v25 = vor.u32 %v3828_v17, %v3562_v36  ;;  %v3569_v9 = vor.u32 %v3831_v34, %v3568_v50  ;;  %v5418_v17 = vld [vmem:[%s6027_s5] ss:$0 sm:$0xff] }
 0x6bb   : > { %v1895_v42 = vmul.f32 %v5206_v51, %v5206_v51  ;;  %v5424_v34 = vld [vmem:[%s6028_s6] ss:$0 sm:$0xff] }
 0x6bc   : > { %2247 = vmatpush.bf16.msra.mxu3 %v3625_v20  ;;  %2306 = vmatpush.bf16.msra.mxu1 %v3617_v55  ;;  %v3570_v20 = vld [vmem:[%s6029_s7 + $0x58] sm:$0xf0]  ;;  %v3528_v55 = vld [vmem:[%s6029_s7] sm:$0xf] }
 0x6bd   : > { %1908 = vadd.xlane.f32.xlu1 %v1895_v42  ;;  %v3577_v42 = vor.u32 %v3834_v49, %v3576_v37  ;;  %v3573_v19 = vor.u32 %v3829_v6, %v3570_v20  ;;  %v3529_v61 = vor.u32 %v3822_v27, %v3528_v55 }
 0x6be   : > { %v1864_v54 = vpop.xlane.xlu0 %1863 }
 0x6bf   : > { %v1880_v43 = vmul.f32 %v5168_v53, %v1864_v54  ;;  %v3578_v54 = vld [vmem:[%s6029_s7 + $0x70] sm:$0xf0] }
 0x6c0   : > { %2248 = vmatpush.bf16.msra.mxu3 %v3609_v56  ;;  %2307 = vmatpush.bf16.msra.mxu1 %v3601_v35  ;;  %v3581_v24 = vor.u32 %v3832_v8, %v3578_v54 }
 0x6c1   : > { %v5211_v57 = vsub.f32 %v1847_v41, %v1880_v43  ;;  %v3845_v41 = vld [vmem:[%s6029_s7 + $0xcc] sm:$0xf]  ;;  %v3584_v43 = vld [vmem:[%s6029_s7 + $0x68] sm:$0xf] }
 0x6c2   : > { %v3637_v23 = vor.u32 %v3845_v41, %v3634_v28  ;;  %2279 = vmatpush.bf16.msra.mxu0 %v3581_v24  ;;  %v3545_v41 = vor.u32 %v3826_v0, %v3544_v62  ;;  %v3546_v28 = vld [vmem:[%s6029_s7 + $0x30] sm:$0xf0] }
 0x6c3   : > { %v1896_v13 = vmul.f32 %v5211_v57, %v5211_v57  ;;  %v3549_v31 = vor.u32 %v3824_v32, %v3546_v28 }
 0x6c4   : > { %2334 = vmatpush.bf16.msra.mxu2 %v3637_v23  ;;  %2249 = vmatpush.bf16.msra.mxu3 %v3593_v15  ;;  %v3552_v23 = vld [vmem:[%s6029_s7 + $0x28] sm:$0xf]  ;;  %v3823_v15 = vld [vmem:[%s6029_s7 + $0x14] sm:$0xf0] }
 0x6c5   : > { %1910 = vadd.xlane.f32.xlu0 %v1896_v13  ;;  %v3835_v13 = vld [vmem:[%s6029_s7 + $0x74] sm:$0xf0]  ;;  %v3553_v56 = vor.u32 %v3827_v7, %v3552_v23  ;;  %v3537_v14 = vor.u32 %v3823_v15, %v3536_v21 }
 0x6c6   : > { %v3585_v60 = vor.u32 %v3835_v13, %v3584_v43  ;;  %2280 = vmatpush.bf16.msra.mxu0 %v3565_v25 }
 0x6c8   : > { %2335 = vmatpush.bf16.msra.mxu2 %v3621_v46  ;;  %2250 = vmatpush.bf16.msra.mxu3 %v3577_v42  ;;  %v3820_v46 = vld [vmem:[%s6029_s7 + $0x4] sm:$0xf] }
 0x6c9   : > { %2308 = vmatpush.bf16.msra.mxu1 %v3585_v60  ;;  %v3533_v38 = vor.u32 %v3820_v46, %v3530_v30 }
 0x6ca   : > { %2281 = vmatpush.bf16.msra.mxu0 %v3549_v31 }
 0x6cc   : > { %2336 = vmatpush.bf16.msra.mxu2 %v3605_v5  ;;  %2251 = vmatpush.bf16.msra.mxu3 %v3561_v47 }
 0x6cd   : > { %2309 = vmatpush.bf16.msra.mxu1 %v3569_v9 }
 0x6ce   : > { %2282 = vmatpush.bf16.msra.mxu0 %v3533_v38 }
 0x6d0   : > { %2337 = vmatpush.bf16.msra.mxu2 %v3589_v1  ;;  %2252 = vmatpush.bf16.msra.mxu3 %v3545_v41 }
 0x6d1   : > { %2310 = vmatpush.bf16.msra.mxu1 %v3553_v56 }
 0x6d4   : > { %2338 = vmatpush.bf16.msra.mxu2 %v3573_v19  ;;  %2253 = vmatpush.bf16.msra.mxu3 %v3529_v61 }
 0x6d5   : > { %2311 = vmatpush.bf16.msra.mxu1 %v3537_v14 }
 0x6d8   : > { %2339 = vmatpush.bf16.msra.mxu2 %v3557_v26 }
 0x6dc   : > { %2340 = vmatpush.bf16.msra.mxu2 %v3541_v4 }
 0x6dd   : > { %v1899_v63 = vpop.xlane.xlu2 %1898 }
 0x6de   : > { %v1914_v18 = vmul.f32 %v1899_v63, %v5168_v53 }
 0x6e0   : > { %v1922_v48 = vadd.f32 1e-05, %v1914_v18 }
 0x6e2   : > { %4066 = vrsqrt.f32 %v1922_v48  ;;  %vm1936_vm4 = vweird.f32 %v1922_v48 }
 0x6e5   : > { %v1901_v35 = vpop.xlane.xlu1 %1900  ;;  %v1866_v40 = vpop.xlane.xlu2 %1865 }
 0x6e6   : > { %v1915_v39 = vmul.f32 %v1901_v35, %v5168_v53  ;;  %v1881_v5 = vmul.f32 %v5168_v53, %v1866_v40 }
 0x6e8   : > { %v4067_v37 = vpop.eup %4066  ;;  %v1923_v49 = vadd.f32 1e-05, %v1915_v39  ;;  %v5411_v8 = vsub.f32 %v5186_v29, %v1881_v5 }
 0x6e9   : > { %v1931_v42 = vmul.f32 %v4067_v37, %v1922_v48  ;;  %vm1937_vm3 = vweird.f32 %v4067_v37 }
 0x6ea   : > { %4068 = vrsqrt.f32 %v1923_v49  ;;  %v1897_v54 = vmul.f32 %v5411_v8, %v5411_v8  ;;  %vm1938_vm5 = vmor %vm1936_vm4, %vm1937_vm3  ;;  %vm1946_vm7 = vweird.f32 %v1923_v49 }
 0x6eb   : > { %v1932_v43 = vmul.f32 %v4067_v37, %v1931_v42 }
 0x6ec   : > { %1912 = vadd.xlane.f32.xlu2 %v1897_v54 }
 0x6ed   : > { %v1933_v13 = vmul.f32 0.5, %v1932_v43 }
 0x6ef   : > { %v1934_v24 = vsub.f32 1.5, %v1933_v13 }
 0x6f0   : > { %v4069_v60 = vpop.eup %4068 }
 0x6f1   : > { %v1935_v11 = vmul.f32 %v4067_v37, %v1934_v24  ;;  %v1941_v10 = vmul.f32 %v4069_v60, %v1923_v49  ;;  %vm1947_vm6 = vweird.f32 %v4069_v60 }
 0x6f2   : > { %vm1948_vm8 = vmor %vm1946_vm7, %vm1947_vm6 }
 0x6f3   : > { %v1942_v1 = vmul.f32 %v4069_v60, %v1941_v10  ;;  %v1939_v12 = vsel %vm1938_vm5, %v4067_v37, %v1935_v11 }
 0x6f4   : > { %v2010_v47 = vmul.f32 %v1939_v12, %v5174_v44 }
 0x6f5   : > { %v1943_v2 = vmul.f32 0.5, %v1942_v1 }
 0x6f6   : > { %v2021_v25 = vmul.f32 %v5418_v17, %v2010_v47 }
 0x6f7   : > { %v1944_v29 = vsub.f32 1.5, %v1943_v2 }
 0x6f8   : > { %v5430_v20 = vadd.f32 %v5424_v34, %v2021_v25 }
 0x6f9   : > { %v1945_v36 = vmul.f32 %v4069_v60, %v1944_v29 }
 0x6fb   : > { %v1949_v50 = vsel %vm1948_vm8, %v4069_v60, %v1945_v36 }
 0x6fc   : > { %v2011_v9 = vmul.f32 %v1949_v50, %v5181_v52 }
 0x6fe   : > { %v2022_v6 = vmul.f32 %v5418_v17, %v2011_v9 }
 0x700   : > { %v5433_v44 = vadd.f32 %v5424_v34, %v2022_v6 }
 0x702   : > { %v2072_v19 = vpack.c.bf16 %v5433_v44, %v5430_v20 }
 0x704   : > { %2254 = vmatmul.bf16.vlgmr.msra.gmra.mxu3 %v2072_v19  ;;  %2283 = vmatmul.bf16.vlgmr.msra.gmra.mxu0 %v2072_v19 }
 0x705   : > { %2312 = vmatmul.bf16.vlgmr.msra.gmra.mxu1 %v2072_v19  ;;  %2341 = vmatmul.bf16.vlgmr.msra.gmra.mxu2 %v2072_v19 }
 0x718   : > { %v1903_v62 = vpop.xlane.xlu1 %1902 }
 0x719   : > { %v1916_v0 = vmul.f32 %v1903_v62, %v5168_v53 }
 0x71b   : > { %v1924_v32 = vadd.f32 1e-05, %v1916_v0 }
 0x71d   : > { %4070 = vrsqrt.f32 %v1924_v32  ;;  %vm1956_vm10 = vweird.f32 %v1924_v32 }
 0x720   : > { %v1905_v52 = vpop.xlane.xlu0 %1904 }
 0x721   : > { %v1917_v63 = vmul.f32 %v1905_v52, %v5168_v53 }
 0x723   : > { %v4071_v41 = vpop.eup %4070  ;;  %v1925_v28 = vadd.f32 1e-05, %v1917_v63 }
 0x724   : > { %v1951_v23 = vmul.f32 %v4071_v41, %v1924_v32  ;;  %vm1957_vm9 = vweird.f32 %v4071_v41 }
 0x725   : > { %4072 = vrsqrt.f32 %v1925_v28  ;;  %vm1958_vm11 = vmor %vm1956_vm10, %vm1957_vm9  ;;  %vm1966_vm13 = vweird.f32 %v1925_v28 }
 0x726   : > { %v1952_v7 = vmul.f32 %v4071_v41, %v1951_v23  ;;  %v3867_v23 = vld [vmem:[%s6031_s9 + $0x78] sm:$0xff] }
 0x727   : > { %2955 = vmatpush.bf16.msrb.mxu0 %v3867_v23 }
 0x728   : > { %v1953_v18 = vmul.f32 0.5, %v1952_v7  ;;  %v1907_v31 = vpop.xlane.xlu2 %1906  ;;  %v3875_v7 = vld [vmem:[%s6031_s9 + $0xb8] sm:$0xff] }
 0x729   : > { %v1918_v56 = vmul.f32 %v1907_v31, %v5168_v53  ;;  %2984 = vmatpush.bf16.msrb.mxu1 %v3875_v7 }
 0x72a   : > { %v1954_v59 = vsub.f32 1.5, %v1953_v18 }
 0x72b   : > { %v4073_v58 = vpop.eup %4072  ;;  %v1926_v26 = vadd.f32 1e-05, %v1918_v56  ;;  %v3866_v56 = vld [vmem:[%s6031_s9 + $0x70] sm:$0xff] }
 0x72c   : > { %v1955_v48 = vmul.f32 %v4071_v41, %v1954_v59  ;;  %v1961_v55 = vmul.f32 %v4073_v58, %v1925_v28  ;;  %vm1967_vm12 = vweird.f32 %v4073_v58  ;;  %v3874_v59 = vld [vmem:[%s6031_s9 + $0xb0] sm:$0xff]  ;;  %2956 = vmatpush.bf16.msrb.mxu0 %v3866_v56 }
 0x72d   : > { %4074 = vrsqrt.f32 %v1926_v26  ;;  %vm1968_vm14 = vmor %vm1966_vm13, %vm1967_vm12  ;;  %vm1976_vm0 = vweird.f32 %v1926_v26  ;;  %2985 = vmatpush.bf16.msrb.mxu1 %v3874_v59 }
 0x72e   : > { %v1962_v27 = vmul.f32 %v4073_v58, %v1961_v55  ;;  %v1959_v61 = vsel %vm1958_vm11, %v4071_v41, %v1955_v48  ;;  %v3859_v48 = vld [vmem:[%s6031_s9 + $0x38] sm:$0xff] }
 0x72f   : > { %v2012_v3 = vmul.f32 %v1959_v61, %v5191_v22  ;;  %v3883_v55 = vld [vmem:[%s6031_s9 + $0xf8] sm:$0xff]  ;;  %2926 = vmatpush.bf16.msrb.mxu3 %v3859_v48  ;;  %v3865_v61 = vld [vmem:[%s6031_s9 + $0x68] sm:$0xff]  ;;  %v3876_v48 = vld [vmem:[%s6031_s9 + $0xc0] sm:$0xff] }
 0x730   : > { %v1963_v46 = vmul.f32 0.5, %v1962_v27  ;;  %v1909_v30 = vpop.xlane.xlu1 %1908  ;;  %3013 = vmatpush.bf16.msrb.mxu2 %v3883_v55  ;;  %2957 = vmatpush.bf16.msrb.mxu0 %v3865_v61 }
 0x731   : > { %v1919_v21 = vmul.f32 %v1909_v30, %v5168_v53  ;;  %v2023_v5 = vmul.f32 %v5418_v17, %v2012_v3 }
 0x732   : > { %v1964_v38 = vsub.f32 1.5, %v1963_v46  ;;  %v3873_v46 = vld [vmem:[%s6031_s9 + $0xa8] sm:$0xff] }
 0x733   : > { %v4075_v15 = vpop.eup %4074  ;;  %v1927_v33 = vadd.f32 1e-05, %v1919_v21  ;;  %v5446_v43 = vadd.f32 %v5424_v34, %v2023_v5  ;;  %2986 = vmatpush.bf16.msrb.mxu1 %v3873_v46 }
 0x734   : > { %v1965_v14 = vmul.f32 %v4073_v58, %v1964_v38  ;;  %v1971_v4 = vmul.f32 %v4075_v15, %v1926_v26  ;;  %vm1977_vm15 = vweird.f32 %v4075_v15  ;;  %v3858_v38 = vld [vmem:[%s6031_s9 + $0x30] sm:$0xff] }
 0x735   : > { %4076 = vrsqrt.f32 %v1927_v33  ;;  %vm1978_vm2 = vmor %vm1976_vm0, %vm1977_vm15  ;;  %vm1986_vm4 = vweird.f32 %v1927_v33  ;;  %2927 = vmatpush.bf16.msrb.mxu3 %v3858_v38 }
 0x736   : > { %v1969_v35 = vsel %vm1968_vm14, %v4073_v58, %v1965_v14  ;;  %v1972_v40 = vmul.f32 %v4075_v15, %v1971_v4  ;;  %v3864_v14 = vld [vmem:[%s6031_s9 + $0x60] sm:$0xff] }
 0x737   : > { %v2013_v39 = vmul.f32 %v1969_v35, %v5196_v16  ;;  %v3872_v4 = vld [vmem:[%s6031_s9 + $0xa0] sm:$0xff]  ;;  %2958 = vmatpush.bf16.msrb.mxu0 %v3864_v14 }
 0x738   : > { %v1973_v37 = vmul.f32 0.5, %v1972_v40  ;;  %v1911_v36 = vpop.xlane.xlu0 %1910  ;;  %2987 = vmatpush.bf16.msrb.mxu1 %v3872_v4  ;;  %v3857_v40 = vld [vmem:[%s6031_s9 + $0x28] sm:$0xff] }
 0x739   : > { %v2024_v49 = vmul.f32 %v5418_v17, %v2013_v39  ;;  %v1920_v9 = vmul.f32 %v1911_v36, %v5168_v53  ;;  %2928 = vmatpush.bf16.msrb.mxu3 %v3857_v40  ;;  %v3854_v36 = vld [vmem:[%s6031_s9 + $0x10] sm:$0xff] }
 0x73a   : > { %v1974_v42 = vsub.f32 1.5, %v1973_v37 }
 0x73b   : > { %v4077_v54 = vpop.eup %4076  ;;  %v5449_v22 = vadd.f32 %v5424_v34, %v2024_v49  ;;  %v1928_v62 = vadd.f32 1e-05, %v1920_v9  ;;  %v3863_v49 = vld [vmem:[%s6031_s9 + $0x58] sm:$0xff] }
 0x73c   : > { %v1975_v13 = vmul.f32 %v4075_v15, %v1974_v42  ;;  %v1981_v24 = vmul.f32 %v4077_v54, %v1927_v33  ;;  %vm1987_vm3 = vweird.f32 %v4077_v54  ;;  %v3871_v42 = vld [vmem:[%s6031_s9 + $0x98] sm:$0xff]  ;;  %2959 = vmatpush.bf16.msrb.mxu0 %v3863_v49 }
 0x73d   : > { %v2073_v60 = vpack.c.bf16 %v5449_v22, %v5446_v43  ;;  %vm1988_vm5 = vmor %vm1986_vm4, %vm1987_vm3  ;;  %4078 = vrsqrt.f32 %v1928_v62  ;;  %vm1996_vm7 = vweird.f32 %v1928_v62  ;;  %2988 = vmatpush.bf16.msrb.mxu1 %v3871_v42 }
 0x73e   : > { %v1982_v16 = vmul.f32 %v4077_v54, %v1981_v24  ;;  %v1979_v11 = vsel %vm1978_vm2, %v4075_v15, %v1975_v13  ;;  %v3882_v15 = vld [vmem:[%s6031_s9 + $0xf0] sm:$0xff]  ;;  %v3880_v13 = vld [vmem:[%s6031_s9 + $0xe0] sm:$0xff] }
 0x73f   : > { %2259 = vmatmul.bf16.gmra.mxu3 %v2073_v60  ;;  %2288 = vmatmul.bf16.gmra.mxu0 %v2073_v60  ;;  %v2014_v12 = vmul.f32 %v1979_v11, %v5201_v45  ;;  %v2076_v11 = vld [vmem:[%s6030_s8] sm:$0xf] }
 0x740   : > { %v1983_v10 = vmul.f32 0.5, %v1982_v16  ;;  %2317 = vmatmul.bf16.gmra.mxu1 %v2073_v60  ;;  %2346 = vmatmul.bf16.gmra.mxu2 %v2073_v60  ;;  %v3870_v16 = vld [vmem:[%s6031_s9 + $0x90] sm:$0xff]  ;;  %v5588_v23 = vperm.slane %v2076_v11, 3 }
 0x741   : > { %v2025_v50 = vmul.f32 %v5418_v17, %v2014_v12  ;;  %3014 = vmatpush.bf16.msrb.mxu2 %v3882_v15  ;;  %2989 = vmatpush.bf16.msrb.mxu1 %v3870_v16  ;;  %v5548_v12 = vperm.slane %v2076_v11, 1 }
 0x742   : > { %v1984_v1 = vsub.f32 1.5, %v1983_v10 }
 0x743   : > { %v5459_v6 = vadd.f32 %v5424_v34, %v2025_v50  ;;  %v3878_v50 = vld [vmem:[%s6031_s9 + $0xd0] sm:$0xff] }
 0x744   : > { %v1985_v2 = vmul.f32 %v4077_v54, %v1984_v1  ;;  %v3879_v1 = vld [vmem:[%s6031_s9 + $0xd8] sm:$0xff] }
 0x746   : > { %v1989_v29 = vsel %vm1988_vm5, %v4077_v54, %v1985_v2  ;;  %v3861_v2 = vld [vmem:[%s6031_s9 + $0x48] sm:$0xff] }
 0x747   : > { %v2015_v47 = vmul.f32 %v1989_v29, %v5206_v51  ;;  %v4079_v51 = vpop.eup %4078  ;;  %v3869_v29 = vld [vmem:[%s6031_s9 + $0x88] sm:$0xff] }
 0x748   : > { %v1991_v0 = vmul.f32 %v4079_v51, %v1928_v62  ;;  %vm1997_vm6 = vweird.f32 %v4079_v51  ;;  %2990 = vmatpush.bf16.msrb.mxu1 %v3869_v29  ;;  %v3860_v62 = vld [vmem:[%s6031_s9 + $0x40] sm:$0xff] }
 0x749   : > { %v2026_v25 = vmul.f32 %v5418_v17, %v2015_v47  ;;  %vm1998_vm8 = vmor %vm1996_vm7, %vm1997_vm6  ;;  %v5556_v47 = vperm.slane %v2076_v11, 2 }
 0x74a   : > { %v1992_v32 = vmul.f32 %v4079_v51, %v1991_v0 }
 0x74b   : > { %v5462_v19 = vadd.f32 %v5424_v34, %v2026_v25 }
 0x74c   : > { %v1993_v28 = vmul.f32 0.5, %v1992_v32 }
 0x74d   : > { %v2074_v45 = vpack.c.bf16 %v5462_v19, %v5459_v6 }
 0x74e   : > { %v1994_v18 = vsub.f32 1.5, %v1993_v28 }
 0x74f   : > { %2264 = vmatmul.bf16.gmra.mxu3 %v2074_v45  ;;  %2293 = vmatmul.bf16.gmra.mxu0 %v2074_v45 }
 0x750   : > { %2322 = vmatmul.bf16.gmra.mxu1 %v2074_v45  ;;  %2351 = vmatmul.bf16.gmra.mxu2 %v2074_v45  ;;  %v1995_v58 = vmul.f32 %v4079_v51, %v1994_v18 }
 0x752   : > { %v1999_v30 = vsel %vm1998_vm8, %v4079_v51, %v1995_v58  ;;  %v3868_v51 = vld [vmem:[%s6031_s9 + $0x80] sm:$0xff] }
 0x753   : > { %v2016_v33 = vmul.f32 %v1999_v30, %v5211_v57  ;;  %v3881_v57 = vld [vmem:[%s6031_s9 + $0xe8] sm:$0xff]  ;;  %2991 = vmatpush.bf16.msrb.mxu1 %v3868_v51 }
 0x754   : > { %3015 = vmatpush.bf16.msrb.mxu2 %v3881_v57 }
 0x755   : > { %v2027_v37 = vmul.f32 %v5418_v17, %v2016_v33 }
 0x757   : > { %v5526_v24 = vadd.f32 %v5424_v34, %v2027_v37 }
 0x758   : > { %3016 = vmatpush.bf16.msrb.mxu2 %v3880_v13 }
 0x75c   : > { %3017 = vmatpush.bf16.msrb.mxu2 %v3879_v1 }
 0x75f   : > { %v1913_v52 = vpop.xlane.xlu2 %1912 }
 0x760   : > { %v1921_v63 = vmul.f32 %v1913_v52, %v5168_v53  ;;  %v5578_v52 = vperm.slane %v2076_v11, 0  ;;  %3018 = vmatpush.bf16.msrb.mxu2 %v3878_v50 }
 0x762   : > { %v1929_v41 = vadd.f32 1e-05, %v1921_v63  ;;  %v3853_v63 = vld [vmem:[%s6031_s9 + $0x8] sm:$0xff] }
 0x764   : > { %4080 = vrsqrt.f32 %v1929_v41  ;;  %vm2006_vm10 = vweird.f32 %v1929_v41 }
 0x76a   : > { %v4081_v31 = vpop.eup %4080 }
 0x76b   : > { %v2001_v26 = vmul.f32 %v4081_v31, %v1929_v41  ;;  %vm2007_vm9 = vweird.f32 %v4081_v31  ;;  %v3877_v41 = vld [vmem:[%s6031_s9 + $0xc8] sm:$0xff] }
 0x76c   : > { %vm2008_vm11 = vmor %vm2006_vm10, %vm2007_vm9  ;;  %3019 = vmatpush.bf16.msrb.mxu2 %v3877_v41 }
 0x76d   : > { %v2002_v27 = vmul.f32 %v4081_v31, %v2001_v26  ;;  %v3852_v26 = vld [vmem:[%s6031_s9] sm:$0xff] }
 0x76f   : > { %v2003_v21 = vmul.f32 0.5, %v2002_v27 }
 0x770   : > { %3020 = vmatpush.bf16.msrb.mxu2 %v3876_v48 }
 0x771   : > { %v2004_v3 = vsub.f32 1.5, %v2003_v21 }
 0x773   : > { %v2005_v35 = vmul.f32 %v4081_v31, %v2004_v3 }
 0x775   : > { %v2009_v39 = vsel %vm2008_vm11, %v4081_v31, %v2005_v35 }
 0x776   : > { %v2017_v5 = vmul.f32 %v2009_v39, %v5411_v8  ;;  %v3856_v8 = vld [vmem:[%s6031_s9 + $0x20] sm:$0xff] }
 0x777   : > { %2929 = vmatpush.bf16.msrb.mxu3 %v3856_v8 }
 0x778   : > { %v2028_v54 = vmul.f32 %v5418_v17, %v2017_v5  ;;  %v3862_v17 = vld [vmem:[%s6031_s9 + $0x50] sm:$0xff] }
 0x779   : > { %2960 = vmatpush.bf16.msrb.mxu0 %v3862_v17 }
 0x77a   : > { %v5529_v60 = vadd.f32 %v5424_v34, %v2028_v54  ;;  %v3855_v34 = vld [vmem:[%s6031_s9 + $0x18] sm:$0xff] }
 0x77b   : > { %2930 = vmatpush.bf16.msrb.mxu3 %v3855_v34 }
 0x77c   : > { %v2075_v10 = vpack.c.bf16 %v5529_v60, %v5526_v24 }
 0x77d   : > { %2961 = vmatpush.bf16.msrb.mxu0 %v3861_v2 }
 0x77e   : > { %2269 = vmatmul.bf16.gmra.mxu3 %v2075_v10  ;;  %2298 = vmatmul.bf16.gmra.mxu0 %v2075_v10 }
 0x77f   : > { %2327 = vmatmul.bf16.gmra.mxu1 %v2075_v10  ;;  %2356 = vmatmul.bf16.gmra.mxu2 %v2075_v10 }
 0x780   : > { %2931 = vmatpush.bf16.msrb.mxu3 %v3854_v36 }
 0x781   : > { %v2284_v25 = vpop.f32.mrf.mxu0  ;;  %2962 = vmatpush.bf16.msrb.mxu0 %v3860_v62 }
 0x782   : > { %v5565_v9 = vadd.f32 %v2284_v25, %v5548_v12  ;;  %v2313_v45 = vpop.f32.mrf.mxu1 }
 0x783   : > { %v5574_v0 = vadd.f32 %v2313_v45, %v5556_v47 }
 0x784   : > { %v2363_v32 = vmul.f32 %v5565_v9, %v5565_v9  ;;  %2932 = vmatpush.bf16.msrb.mxu3 %v3853_v63 }
 0x785   : > { %v2364_v28 = vmul.f32 %v5574_v0, %v5574_v0 }
 0x786   : > { %v2395_v7 = vmul.f32 %v2363_v32, %v5565_v9 }
 0x787   : > { %v2396_v18 = vmul.f32 %v2364_v28, %v5574_v0  ;;  %v2255_v31 = vpop.f32.mrf.mxu3 }
 0x788   : > { %v2427_v56 = vmul.f32 0.044715, %v2395_v7  ;;  %v5593_v59 = vadd.f32 %v2255_v31, %v5578_v52  ;;  %v2342_v58 = vpop.f32.mrf.mxu2  ;;  %2933 = vmatpush.bf16.msrb.mxu3 %v3852_v26 }
 0x789   : > { %v2428_v55 = vmul.f32 0.044715, %v2396_v18  ;;  %v5602_v27 = vadd.f32 %v2342_v58, %v5588_v23  ;;  %v2286_v61 = vpop.f32.mrf.mxu0 }
 0x78a   : > { %v2459_v46 = vadd.f32 %v2427_v56, %v5565_v9  ;;  %v2362_v30 = vmul.f32 %v5593_v59, %v5593_v59  ;;  %v5608_v21 = vadd.f32 %v2286_v61, %v5548_v12  ;;  %v2315_v38 = vpop.f32.mrf.mxu1 }
 0x78b   : > { %v2460_v15 = vadd.f32 %v2428_v55, %v5574_v0  ;;  %v2365_v3 = vmul.f32 %v5602_v27, %v5602_v27  ;;  %v5614_v33 = vadd.f32 %v2315_v38, %v5556_v47 }
 0x78c   : > { %v2491_v14 = vmul.f32 0.7978846, %v2459_v46  ;;  %v2394_v4 = vmul.f32 %v2362_v30, %v5593_v59  ;;  %v2367_v35 = vmul.f32 %v5608_v21, %v5608_v21 }
 0x78d   : > { %v2492_v40 = vmul.f32 0.7978846, %v2460_v15  ;;  %v2397_v57 = vmul.f32 %v2365_v3, %v5602_v27  ;;  %v2368_v39 = vmul.f32 %v5614_v33, %v5614_v33 }
 0x78e   : > { %v2426_v5 = vmul.f32 0.044715, %v2394_v4  ;;  %v2399_v37 = vmul.f32 %v2367_v35, %v5608_v21  ;;  %4082 = vtanh.f32 %v2491_v14 }
 0x78f   : > { %v2429_v49 = vmul.f32 0.044715, %v2397_v57  ;;  %v2400_v42 = vmul.f32 %v2368_v39, %v5614_v33  ;;  %v2257_v54 = vpop.f32.mrf.mxu3  ;;  %4084 = vtanh.f32 %v2492_v40 }
 0x790   : > { %v2458_v8 = vadd.f32 %v2426_v5, %v5593_v59  ;;  %v2431_v13 = vmul.f32 0.044715, %v2399_v37  ;;  %v2258_v17 = vadd.f32 %v2257_v54, %v5578_v52  ;;  %v2344_v16 = vpop.f32.mrf.mxu2 }
 0x791   : > { %v2461_v11 = vadd.f32 %v2429_v49, %v5602_v27  ;;  %v2432_v10 = vmul.f32 0.044715, %v2400_v42  ;;  %v2345_v34 = vadd.f32 %v2344_v16, %v5588_v23 }
 0x792   : > { %v2490_v1 = vmul.f32 0.7978846, %v2458_v8  ;;  %v2463_v2 = vadd.f32 %v2431_v13, %v5608_v21  ;;  %v2366_v29 = vmul.f32 %v2258_v17, %v2258_v17 }
 0x793   : > { %v2493_v36 = vmul.f32 0.7978846, %v2461_v11  ;;  %v2464_v50 = vadd.f32 %v2432_v10, %v5614_v33  ;;  %v2369_v25 = vmul.f32 %v2345_v34, %v2345_v34 }
 0x794   : > { %4086 = vtanh.f32 %v2490_v1  ;;  %v2495_v45 = vmul.f32 0.7978846, %v2463_v2  ;;  %v2398_v62 = vmul.f32 %v2366_v29, %v2258_v17  ;;  %v4083_v63 = vpop.eup %4082 }
 0x795   : > { %4088 = vtanh.f32 %v2493_v36  ;;  %v2496_v51 = vmul.f32 0.7978846, %v2464_v50  ;;  %v2401_v32 = vmul.f32 %v2369_v25, %v2345_v34  ;;  %v4085_v28 = vpop.eup %4084  ;;  %v2555_v31 = vadd.f32 1.0, %v4083_v63 }
 0x796   : > { %4090 = vtanh.f32 %v2495_v45  ;;  %v2430_v41 = vmul.f32 0.044715, %v2398_v62  ;;  %v2556_v26 = vadd.f32 1.0, %v4085_v28 }
 0x797   : > { %4092 = vtanh.f32 %v2496_v51  ;;  %v2433_v7 = vmul.f32 0.044715, %v2401_v32  ;;  %v2587_v38 = vmul.f32 0.5, %v2555_v31 }
 0x798   : > { %v2462_v18 = vadd.f32 %v2430_v41, %v2258_v17  ;;  %v2588_v3 = vmul.f32 0.5, %v2556_v26 }
 0x799   : > { %v2465_v56 = vadd.f32 %v2433_v7, %v2345_v34  ;;  %v2619_v39 = vmul.f32 %v2587_v38, %v5565_v9 }
 0x79a   : > { %v4087_v58 = vpop.eup %4086  ;;  %v2494_v48 = vmul.f32 0.7978846, %v2462_v18  ;;  %v2620_v49 = vmul.f32 %v2588_v3, %v5574_v0 }
 0x79b   : > { %v4089_v55 = vpop.eup %4088  ;;  %v2497_v61 = vmul.f32 0.7978846, %v2465_v56  ;;  %v2554_v4 = vadd.f32 1.0, %v4087_v58 }
 0x79c   : > { %v4091_v46 = vpop.eup %4090  ;;  %4094 = vtanh.f32 %v2494_v48  ;;  %v2557_v40 = vadd.f32 1.0, %v4089_v55 }
 0x79d   : > { %v4093_v30 = vpop.eup %4092  ;;  %v2559_v15 = vadd.f32 1.0, %v4091_v46  ;;  %4096 = vtanh.f32 %v2497_v61  ;;  %v2586_v8 = vmul.f32 0.5, %v2554_v4 }
 0x79e   : > { %v2560_v14 = vadd.f32 1.0, %v4093_v30  ;;  %v2589_v11 = vmul.f32 0.5, %v2557_v40 }
 0x79f   : > { %v2591_v35 = vmul.f32 0.5, %v2559_v15  ;;  %v2618_v9 = vmul.f32 %v2586_v8, %v5593_v59 }
 0x7a0   : > { %v2592_v57 = vmul.f32 0.5, %v2560_v14 }
 0x7a1   : > { %v2623_v5 = vmul.f32 %v2591_v35, %v5608_v21  ;;  %v2621_v21 = vmul.f32 %v2589_v11, %v5602_v27 }
 0x7a2   : > { %v4095_v37 = vpop.eup %4094  ;;  %v2624_v42 = vmul.f32 %v2592_v57, %v5614_v33 }
 0x7a3   : > { %v4097_v54 = vpop.eup %4096  ;;  %v2715_v13 = vpack.c.bf16 %v2623_v5, %v2619_v39  ;;  %v2558_v16 = vadd.f32 1.0, %v4095_v37 }
 0x7a4   : > { %v2716_v10 = vpack.c.bf16 %v2624_v42, %v2620_v49  ;;  %v2561_v1 = vadd.f32 1.0, %v4097_v54 }
 0x7a5   : > { %v2590_v2 = vmul.f32 0.5, %v2558_v16  ;;  %2963 = vmatmul.bf16.vlgmr.msrb.gmra.mxu0 %v2715_v13 }
 0x7a6   : > { %v2593_v29 = vmul.f32 0.5, %v2561_v1  ;;  %2992 = vmatmul.bf16.vlgmr.msrb.gmra.mxu1 %v2716_v10 }
 0x7a7   : > { %v2622_v36 = vmul.f32 %v2590_v2, %v2258_v17 }
 0x7a8   : > { %v2625_v50 = vmul.f32 %v2593_v29, %v2345_v34 }
 0x7a9   : > { %v2714_v0 = vpack.c.bf16 %v2622_v36, %v2618_v9 }
 0x7aa   : > { %v2717_v25 = vpack.c.bf16 %v2625_v50, %v2621_v21 }
 0x7ab   : > { %2934 = vmatmul.bf16.vlgmr.msrb.gmra.mxu3 %v2714_v0 }
 0x7ac   : > { %3021 = vmatmul.bf16.vlgmr.msrb.gmra.mxu2 %v2717_v25 }
 0x7bc   : > { %v2289_v33 = vpop.f32.mrf.mxu0 }
 0x7bd   : > { %v5637_v45 = vadd.f32 %v2289_v33, %v5548_v12  ;;  %v2318_v62 = vpop.f32.mrf.mxu1 }
 0x7be   : > { %v5640_v51 = vadd.f32 %v2318_v62, %v5556_v47 }
 0x7bf   : > { %v2371_v32 = vmul.f32 %v5637_v45, %v5637_v45 }
 0x7c0   : > { %v2372_v59 = vmul.f32 %v5640_v51, %v5640_v51 }
 0x7c1   : > { %v2403_v27 = vmul.f32 %v2371_v32, %v5637_v45 }
 0x7c2   : > { %v2404_v17 = vmul.f32 %v2372_v59, %v5640_v51  ;;  %v2260_v34 = vpop.f32.mrf.mxu3 }
 0x7c3   : > { %v2435_v63 = vmul.f32 0.044715, %v2403_v27  ;;  %v5649_v41 = vadd.f32 %v2260_v34, %v5578_v52  ;;  %v2347_v28 = vpop.f32.mrf.mxu2 }
 0x7c4   : > { %v2436_v7 = vmul.f32 0.044715, %v2404_v17  ;;  %v5652_v18 = vadd.f32 %v2347_v28, %v5588_v23  ;;  %v2291_v31 = vpop.f32.mrf.mxu0 }
 0x7c5   : > { %v2467_v56 = vadd.f32 %v2435_v63, %v5637_v45  ;;  %v2370_v58 = vmul.f32 %v5649_v41, %v5649_v41  ;;  %v5658_v26 = vadd.f32 %v2291_v31, %v5548_v12  ;;  %v2320_v48 = vpop.f32.mrf.mxu1 }
 0x7c6   : > { %v2468_v55 = vadd.f32 %v2436_v7, %v5640_v51  ;;  %v2373_v61 = vmul.f32 %v5652_v18, %v5652_v18  ;;  %v5664_v46 = vadd.f32 %v2320_v48, %v5556_v47 }
 0x7c7   : > { %v2499_v30 = vmul.f32 0.7978846, %v2467_v56  ;;  %v2402_v38 = vmul.f32 %v2370_v58, %v5649_v41  ;;  %v2375_v15 = vmul.f32 %v5658_v26, %v5658_v26 }
 0x7c8   : > { %v2500_v3 = vmul.f32 0.7978846, %v2468_v55  ;;  %v2405_v14 = vmul.f32 %v2373_v61, %v5652_v18  ;;  %v2376_v4 = vmul.f32 %v5664_v46, %v5664_v46 }
 0x7c9   : > { %4098 = vtanh.f32 %v2499_v30  ;;  %v2434_v35 = vmul.f32 0.044715, %v2402_v38  ;;  %v2407_v40 = vmul.f32 %v2375_v15, %v5658_v26 }
 0x7ca   : > { %4100 = vtanh.f32 %v2500_v3  ;;  %v2437_v57 = vmul.f32 0.044715, %v2405_v14  ;;  %v2408_v39 = vmul.f32 %v2376_v4, %v5664_v46  ;;  %v2262_v5 = vpop.f32.mrf.mxu3 }
 0x7cb   : > { %v2466_v37 = vadd.f32 %v2434_v35, %v5649_v41  ;;  %v2439_v49 = vmul.f32 0.044715, %v2407_v40  ;;  %v5676_v42 = vadd.f32 %v2262_v5, %v5578_v52  ;;  %v2349_v54 = vpop.f32.mrf.mxu2 }
 0x7cc   : > { %v2469_v8 = vadd.f32 %v2437_v57, %v5652_v18  ;;  %v2440_v13 = vmul.f32 0.044715, %v2408_v39  ;;  %v5680_v16 = vadd.f32 %v2349_v54, %v5588_v23  ;;  %v2294_v11 = vpop.f32.mrf.mxu0 }
 0x7cd   : > { %v2498_v10 = vmul.f32 0.7978846, %v2466_v37  ;;  %v2471_v1 = vadd.f32 %v2439_v49, %v5658_v26  ;;  %v2374_v2 = vmul.f32 %v5676_v42, %v5676_v42  ;;  %v5686_v29 = vadd.f32 %v2294_v11, %v5548_v12  ;;  %v2323_v9 = vpop.f32.mrf.mxu1 }
 0x7ce   : > { %v2501_v36 = vmul.f32 0.7978846, %v2469_v8  ;;  %v2472_v21 = vadd.f32 %v2440_v13, %v5664_v46  ;;  %v2377_v50 = vmul.f32 %v5680_v16, %v5680_v16  ;;  %v5692_v0 = vadd.f32 %v2323_v9, %v5556_v47 }
 0x7cf   : > { %v4099_v25 = vpop.eup %4098  ;;  %4102 = vtanh.f32 %v2498_v10  ;;  %v2503_v33 = vmul.f32 0.7978846, %v2471_v1  ;;  %v2406_v62 = vmul.f32 %v2374_v2, %v5676_v42  ;;  %v2379_v32 = vmul.f32 %v5686_v29, %v5686_v29 }
 0x7d0   : > { %v4101_v59 = vpop.eup %4100  ;;  %4104 = vtanh.f32 %v2501_v36  ;;  %v2504_v27 = vmul.f32 0.7978846, %v2472_v21  ;;  %v2409_v17 = vmul.f32 %v2377_v50, %v5680_v16  ;;  %v2380_v34 = vmul.f32 %v5692_v0, %v5692_v0 }
 0x7d1   : > { %4106 = vtanh.f32 %v2503_v33  ;;  %v2438_v63 = vmul.f32 0.044715, %v2406_v62  ;;  %v2411_v28 = vmul.f32 %v2379_v32, %v5686_v29  ;;  %v2563_v7 = vadd.f32 1.0, %v4099_v25 }
 0x7d2   : > { %4108 = vtanh.f32 %v2504_v27  ;;  %v2441_v31 = vmul.f32 0.044715, %v2409_v17  ;;  %v2412_v56 = vmul.f32 %v2380_v34, %v5692_v0  ;;  %v2265_v58 = vpop.f32.mrf.mxu3  ;;  %v2564_v48 = vadd.f32 1.0, %v4101_v59 }
 0x7d3   : > { %v2470_v55 = vadd.f32 %v2438_v63, %v5676_v42  ;;  %v2443_v61 = vmul.f32 0.044715, %v2411_v28  ;;  %v5704_v30 = vadd.f32 %v2265_v58, %v5578_v52  ;;  %v2352_v38 = vpop.f32.mrf.mxu2  ;;  %v2595_v15 = vmul.f32 0.5, %v2563_v7 }
 0x7d4   : > { %v2473_v3 = vadd.f32 %v2441_v31, %v5680_v16  ;;  %v2444_v14 = vmul.f32 0.044715, %v2412_v56  ;;  %v5708_v4 = vadd.f32 %v2352_v38, %v5588_v23  ;;  %v2296_v35 = vpop.f32.mrf.mxu0  ;;  %v2596_v40 = vmul.f32 0.5, %v2564_v48 }
 0x7d5   : > { %v5710_v57 = vpop.eup %4102  ;;  %v2502_v39 = vmul.f32 0.7978846, %v2470_v55  ;;  %v2475_v5 = vadd.f32 %v2443_v61, %v5686_v29  ;;  %v2378_v37 = vmul.f32 %v5704_v30, %v5704_v30  ;;  %v5716_v49 = vadd.f32 %v2296_v35, %v5548_v12  ;;  %v2325_v54 = vpop.f32.mrf.mxu1 }
 0x7d6   : > { %v4105_v8 = vpop.eup %4104  ;;  %v2505_v13 = vmul.f32 0.7978846, %v2473_v3  ;;  %v2476_v11 = vadd.f32 %v2444_v14, %v5692_v0  ;;  %v2381_v10 = vmul.f32 %v5708_v4, %v5708_v4  ;;  %v5722_v1 = vadd.f32 %v2325_v54, %v5556_v47 }
 0x7d7   : > { %v4107_v2 = vpop.eup %4106  ;;  %4110 = vtanh.f32 %v2502_v39  ;;  %v2507_v9 = vmul.f32 0.7978846, %v2475_v5  ;;  %v2410_v36 = vmul.f32 %v2378_v37, %v5704_v30  ;;  %v2383_v21 = vmul.f32 %v5716_v49, %v5716_v49 }
 0x7d8   : > { %v4109_v50 = vpop.eup %4108  ;;  %4112 = vtanh.f32 %v2505_v13  ;;  %v2508_v25 = vmul.f32 0.7978846, %v2476_v11  ;;  %v2413_v33 = vmul.f32 %v2381_v10, %v5708_v4  ;;  %v2384_v62 = vmul.f32 %v5722_v1, %v5722_v1 }
 0x7d9   : > { %4114 = vtanh.f32 %v2507_v9  ;;  %v2442_v32 = vmul.f32 0.044715, %v2410_v36  ;;  %v2415_v59 = vmul.f32 %v2383_v21, %v5716_v49  ;;  %v2567_v27 = vadd.f32 1.0, %v4107_v2 }
 0x7da   : > { %4116 = vtanh.f32 %v2508_v25  ;;  %v2445_v17 = vmul.f32 0.044715, %v2413_v33  ;;  %v2416_v34 = vmul.f32 %v2384_v62, %v5722_v1  ;;  %v2267_v63 = vpop.f32.mrf.mxu3  ;;  %v2627_v28 = vmul.f32 %v2595_v15, %v5637_v45 }
 0x7db   : > { %v2474_v7 = vadd.f32 %v2442_v32, %v5704_v30  ;;  %v2447_v31 = vmul.f32 0.044715, %v2415_v59  ;;  %v5735_v56 = vadd.f32 %v2267_v63, %v5578_v52  ;;  %v2354_v58 = vpop.f32.mrf.mxu2  ;;  %v2599_v48 = vmul.f32 0.5, %v2567_v27 }
 0x7dc   : > { %v2477_v55 = vadd.f32 %v2445_v17, %v5708_v4  ;;  %v2448_v61 = vmul.f32 0.044715, %v2416_v34  ;;  %v5739_v38 = vadd.f32 %v2354_v58, %v5588_v23  ;;  %v2568_v3 = vadd.f32 1.0, %v4109_v50 }
 0x7dd   : > { %v4111_v14 = vpop.eup %4110  ;;  %v2506_v35 = vmul.f32 0.7978846, %v2474_v7  ;;  %v2479_v39 = vadd.f32 %v2447_v31, %v5716_v49  ;;  %v2382_v45 = vmul.f32 %v5735_v56, %v5735_v56  ;;  %v2631_v15 = vmul.f32 %v2599_v48, %v5658_v26 }
 0x7de   : > { %v4113_v5 = vpop.eup %4112  ;;  %v2509_v37 = vmul.f32 0.7978846, %v2477_v55  ;;  %v2480_v54 = vadd.f32 %v2448_v61, %v5722_v1  ;;  %v2385_v13 = vmul.f32 %v5739_v38, %v5739_v38  ;;  %v2600_v11 = vmul.f32 0.5, %v2568_v3 }
 0x7df   : > { %v4115_v10 = vpop.eup %4114  ;;  %4118 = vtanh.f32 %v2506_v35  ;;  %v2511_v2 = vmul.f32 0.7978846, %v2479_v39  ;;  %v2414_v9 = vmul.f32 %v2382_v45, %v5735_v56  ;;  %v2719_v36 = vpack.c.bf16 %v2631_v15, %v2627_v28 }
 0x7e0   : > { %v4117_v21 = vpop.eup %4116  ;;  %4120 = vtanh.f32 %v2509_v37  ;;  %v2512_v50 = vmul.f32 0.7978846, %v2480_v54  ;;  %v2417_v25 = vmul.f32 %v2385_v13, %v5739_v38  ;;  %v2628_v26 = vmul.f32 %v2596_v40, %v5640_v51 }
 0x7e1   : > { %4122 = vtanh.f32 %v2511_v2  ;;  %v2446_v33 = vmul.f32 0.044715, %v2414_v9  ;;  %2968 = vmatmul.bf16.gmra.mxu0 %v2719_v36  ;;  %v2632_v62 = vmul.f32 %v2600_v11, %v5664_v46  ;;  %v2562_v32 = vadd.f32 1.0, %v5710_v57 }
 0x7e2   : > { %4124 = vtanh.f32 %v2512_v50  ;;  %v2449_v59 = vmul.f32 0.044715, %v2417_v25  ;;  %v2566_v27 = vadd.f32 1.0, %v4111_v14  ;;  %v2565_v17 = vadd.f32 1.0, %v4105_v8 }
 0x7e3   : > { %v2478_v34 = vadd.f32 %v2446_v33, %v5735_v56  ;;  %v2720_v63 = vpack.c.bf16 %v2632_v62, %v2628_v26  ;;  %v2594_v28 = vmul.f32 0.5, %v2562_v32  ;;  %v2569_v7 = vadd.f32 1.0, %v4113_v5 }
 0x7e4   : > { %v2481_v31 = vadd.f32 %v2449_v59, %v5739_v38  ;;  %v2598_v58 = vmul.f32 0.5, %v2566_v27  ;;  %v2597_v51 = vmul.f32 0.5, %v2565_v17  ;;  %v2571_v40 = vadd.f32 1.0, %v4115_v10 }
 0x7e5   : > { %v4119_v48 = vpop.eup %4118  ;;  %v2510_v55 = vmul.f32 0.7978846, %v2478_v34  ;;  %2997 = vmatmul.bf16.gmra.mxu1 %v2720_v63  ;;  %v2601_v46 = vmul.f32 0.5, %v2569_v7  ;;  %v2626_v3 = vmul.f32 %v2594_v28, %v5649_v41  ;;  %v2572_v45 = vadd.f32 1.0, %v4117_v21 }
 0x7e6   : > { %v4121_v61 = vpop.eup %4120  ;;  %v2513_v57 = vmul.f32 0.7978846, %v2481_v31  ;;  %v2630_v8 = vmul.f32 %v2598_v58, %v5676_v42  ;;  %v2629_v35 = vmul.f32 %v2597_v51, %v5652_v18  ;;  %v2603_v54 = vmul.f32 0.5, %v2571_v40 }
 0x7e7   : > { %v4123_v14 = vpop.eup %4122  ;;  %4126 = vtanh.f32 %v2510_v55  ;;  %v2633_v39 = vmul.f32 %v2601_v46, %v5680_v16  ;;  %v2604_v41 = vmul.f32 0.5, %v2572_v45  ;;  %v2570_v18 = vadd.f32 1.0, %v4119_v48 }
 0x7e8   : > { %v4125_v15 = vpop.eup %4124  ;;  %4128 = vtanh.f32 %v2513_v57  ;;  %v2718_v5 = vpack.c.bf16 %v2630_v8, %v2626_v3  ;;  %v2575_v37 = vadd.f32 1.0, %v4123_v14  ;;  %v2635_v42 = vmul.f32 %v2603_v54, %v5686_v29 }
 0x7e9   : > { %v2721_v13 = vpack.c.bf16 %v2633_v39, %v2629_v35  ;;  %v2576_v11 = vadd.f32 1.0, %v4125_v15  ;;  %v2573_v21 = vadd.f32 1.0, %v4121_v61  ;;  %v2636_v33 = vmul.f32 %v2604_v41, %v5692_v0 }
 0x7ea   : > { %2939 = vmatmul.bf16.gmra.mxu3 %v2718_v5  ;;  %v2607_v10 = vmul.f32 0.5, %v2575_v37  ;;  %v2602_v32 = vmul.f32 0.5, %v2570_v18 }
 0x7eb   : > { %3026 = vmatmul.bf16.gmra.mxu2 %v2721_v13  ;;  %v2608_v2 = vmul.f32 0.5, %v2576_v11  ;;  %v2605_v17 = vmul.f32 0.5, %v2573_v21 }
 0x7ec   : > { %v2639_v9 = vmul.f32 %v2607_v10, %v5716_v49  ;;  %v2634_v63 = vmul.f32 %v2602_v32, %v5704_v30 }
 0x7ed   : > { %v4127_v36 = vpop.eup %4126  ;;  %v2640_v16 = vmul.f32 %v2608_v2, %v5722_v1  ;;  %v2637_v1 = vmul.f32 %v2605_v17, %v5708_v4 }
 0x7ee   : > { %v4129_v50 = vpop.eup %4128  ;;  %v2723_v25 = vpack.c.bf16 %v2639_v9, %v2635_v42  ;;  %v2574_v26 = vadd.f32 1.0, %v4127_v36 }
 0x7ef   : > { %v2577_v62 = vadd.f32 1.0, %v4129_v50  ;;  %v2724_v27 = vpack.c.bf16 %v2640_v16, %v2636_v33 }
 0x7f0   : > { %v2606_v59 = vmul.f32 0.5, %v2574_v26 }
 0x7f1   : > { %2973 = vmatmul.bf16.gmra.mxu0 %v2723_v25  ;;  %v2609_v34 = vmul.f32 0.5, %v2577_v62 }
 0x7f2   : > { %v2638_v29 = vmul.f32 %v2606_v59, %v5735_v56 }
 0x7f3   : > { %v2641_v49 = vmul.f32 %v2609_v34, %v5739_v38 }
 0x7f4   : > { %v2722_v28 = vpack.c.bf16 %v2638_v29, %v2634_v63 }
 0x7f5   : > { %3002 = vmatmul.bf16.gmra.mxu1 %v2724_v27  ;;  %v2725_v7 = vpack.c.bf16 %v2641_v49, %v2637_v1 }
 0x7fa   : > { %2944 = vmatmul.bf16.gmra.mxu3 %v2722_v28 }
 0x7fb   : > { %3031 = vmatmul.bf16.gmra.mxu2 %v2725_v7  ;;  %v2299_v0 = vpop.f32.mrf.mxu0 }
 0x7fc   : > { %v5768_v31 = vadd.f32 %v2299_v0, %v5548_v12  ;;  %v2328_v58 = vpop.f32.mrf.mxu1 }
 0x7fd   : > { %v5771_v51 = vadd.f32 %v2328_v58, %v5556_v47 }
 0x7fe   : > { %v2387_v56 = vmul.f32 %v5768_v31, %v5768_v31 }
 0x7ff   : > { %v2388_v30 = vmul.f32 %v5771_v51, %v5771_v51 }
 0x800   : > { %v2419_v4 = vmul.f32 %v2387_v56, %v5768_v31 }
 0x801   : > { %v2420_v38 = vmul.f32 %v2388_v30, %v5771_v51  ;;  %v2270_v40 = vpop.f32.mrf.mxu3 }
 0x802   : > { %v2451_v48 = vmul.f32 0.044715, %v2419_v4  ;;  %v5780_v55 = vadd.f32 %v2270_v40, %v5578_v52  ;;  %v2357_v46 = vpop.f32.mrf.mxu2 }
 0x803   : > { %v2452_v61 = vmul.f32 0.044715, %v2420_v38  ;;  %v5783_v57 = vadd.f32 %v2357_v46, %v5588_v23  ;;  %v2301_v3 = vpop.f32.mrf.mxu0 }
 0x804   : > { %v2483_v8 = vadd.f32 %v2451_v48, %v5768_v31  ;;  %v2386_v14 = vmul.f32 %v5780_v55, %v5780_v55  ;;  %v5789_v35 = vadd.f32 %v2301_v3, %v5548_v12  ;;  %v2330_v39 = vpop.f32.mrf.mxu1 }
 0x805   : > { %v2484_v45 = vadd.f32 %v2452_v61, %v5771_v51  ;;  %v2389_v15 = vmul.f32 %v5783_v57, %v5783_v57  ;;  %v5795_v5 = vadd.f32 %v2330_v39, %v5556_v47 }
 0x806   : > { %v2515_v37 = vmul.f32 0.7978846, %v2483_v8  ;;  %v2418_v54 = vmul.f32 %v2386_v14, %v5780_v55  ;;  %v2391_v13 = vmul.f32 %v5789_v35, %v5789_v35 }
 0x807   : > { %v2516_v11 = vmul.f32 0.7978846, %v2484_v45  ;;  %v2421_v10 = vmul.f32 %v2389_v15, %v5783_v57  ;;  %v2392_v12 = vmul.f32 %v5795_v5, %v5795_v5 }
 0x808   : > { %v2450_v41 = vmul.f32 0.044715, %v2418_v54  ;;  %v2423_v2 = vmul.f32 %v2391_v13, %v5789_v35  ;;  %4130 = vtanh.f32 %v2515_v37 }
 0x809   : > { %v2453_v42 = vmul.f32 0.044715, %v2421_v10  ;;  %v2424_v9 = vmul.f32 %v2392_v12, %v5795_v5  ;;  %v2272_v47 = vpop.f32.mrf.mxu3  ;;  %4132 = vtanh.f32 %v2516_v11 }
 0x80a   : > { %v2482_v18 = vadd.f32 %v2450_v41, %v5780_v55  ;;  %v2455_v36 = vmul.f32 0.044715, %v2423_v2  ;;  %v2273_v16 = vadd.f32 %v2272_v47, %v5578_v52  ;;  %v2359_v21 = vpop.f32.mrf.mxu2 }
 0x80b   : > { %v2485_v50 = vadd.f32 %v2453_v42, %v5783_v57  ;;  %v2456_v25 = vmul.f32 0.044715, %v2424_v9  ;;  %v2360_v26 = vadd.f32 %v2359_v21, %v5588_v23 }
 0x80c   : > { %v2514_v33 = vmul.f32 0.7978846, %v2482_v18  ;;  %v2487_v62 = vadd.f32 %v2455_v36, %v5789_v35  ;;  %v2390_v32 = vmul.f32 %v2273_v16, %v2273_v16 }
 0x80d   : > { %v2517_v59 = vmul.f32 0.7978846, %v2485_v50  ;;  %v2488_v27 = vadd.f32 %v2456_v25, %v5795_v5  ;;  %v2393_v17 = vmul.f32 %v2360_v26, %v2360_v26 }
 0x80e   : > { %4134 = vtanh.f32 %v2514_v33  ;;  %v2519_v34 = vmul.f32 0.7978846, %v2487_v62  ;;  %v2422_v29 = vmul.f32 %v2390_v32, %v2273_v16  ;;  %v4131_v63 = vpop.eup %4130 }
 0x80f   : > { %4136 = vtanh.f32 %v2517_v59  ;;  %v2520_v52 = vmul.f32 0.7978846, %v2488_v27  ;;  %v2425_v49 = vmul.f32 %v2393_v17, %v2360_v26  ;;  %v4133_v28 = vpop.eup %4132  ;;  %v2579_v58 = vadd.f32 1.0, %v4131_v63 }
 0x810   : > { %4138 = vtanh.f32 %v2519_v34  ;;  %v2454_v1 = vmul.f32 0.044715, %v2422_v29  ;;  %v2580_v4 = vadd.f32 1.0, %v4133_v28 }
 0x811   : > { %4140 = vtanh.f32 %v2520_v52  ;;  %v2457_v23 = vmul.f32 0.044715, %v2425_v49  ;;  %v2611_v3 = vmul.f32 0.5, %v2579_v58 }
 0x812   : > { %v2486_v7 = vadd.f32 %v2454_v1, %v2273_v16  ;;  %v2612_v14 = vmul.f32 0.5, %v2580_v4 }
 0x813   : > { %v2489_v0 = vadd.f32 %v2457_v23, %v2360_v26  ;;  %v2643_v54 = vmul.f32 %v2611_v3, %v5768_v31 }
 0x814   : > { %v4135_v56 = vpop.eup %4134  ;;  %v2518_v30 = vmul.f32 0.7978846, %v2486_v7  ;;  %v2644_v10 = vmul.f32 %v2612_v14, %v5771_v51 }
 0x815   : > { %v4137_v38 = vpop.eup %4136  ;;  %v2521_v40 = vmul.f32 0.7978846, %v2489_v0  ;;  %v2578_v45 = vadd.f32 1.0, %v4135_v56 }
 0x816   : > { %v4139_v48 = vpop.eup %4138  ;;  %4142 = vtanh.f32 %v2518_v30  ;;  %v2581_v37 = vadd.f32 1.0, %v4137_v38 }
 0x817   : > { %v4141_v46 = vpop.eup %4140  ;;  %4144 = vtanh.f32 %v2521_v40  ;;  %v2583_v61 = vadd.f32 1.0, %v4139_v48  ;;  %v2610_v9 = vmul.f32 0.5, %v2578_v45 }
 0x818   : > { %v2584_v8 = vadd.f32 1.0, %v4141_v46  ;;  %v2613_v36 = vmul.f32 0.5, %v2581_v37 }
 0x819   : > { %v2615_v39 = vmul.f32 0.5, %v2583_v61  ;;  %v2642_v31 = vmul.f32 %v2610_v9, %v5780_v55 }
 0x81a   : > { %v2616_v15 = vmul.f32 0.5, %v2584_v8 }
 0x81b   : > { %v2647_v13 = vmul.f32 %v2615_v39, %v5789_v35  ;;  %v2645_v35 = vmul.f32 %v2613_v36, %v5783_v57 }
 0x81c   : > { %v4143_v11 = vpop.eup %4142  ;;  %v2648_v12 = vmul.f32 %v2616_v15, %v5795_v5  ;;  %v3933_v5 = vld [vmem:[%s6032_s10] ss:$0 sm:$0xff] }
 0x81d   : > { %v4145_v41 = vpop.eup %4144  ;;  %v2727_v2 = vpack.c.bf16 %v2647_v13, %v2643_v54  ;;  %v2582_v42 = vadd.f32 1.0, %v4143_v11 }
 0x81e   : > { %v2728_v47 = vpack.c.bf16 %v2648_v12, %v2644_v10  ;;  %v2585_v18 = vadd.f32 1.0, %v4145_v41 }
 0x81f   : > { %2978 = vmatmul.bf16.gmra.mxu0 %v2727_v2  ;;  %v2614_v21 = vmul.f32 0.5, %v2582_v42 }
 0x820   : > { %3007 = vmatmul.bf16.gmra.mxu1 %v2728_v47  ;;  %v2617_v50 = vmul.f32 0.5, %v2585_v18 }
 0x821   : > { %v2646_v25 = vmul.f32 %v2614_v21, %v2273_v16 }
 0x822   : > { %v2649_v33 = vmul.f32 %v2617_v50, %v2360_v26  ;;  %v2964_v32 = vpop.f32.mrf.mxu0 }
 0x823   : > { %v2726_v51 = vpack.c.bf16 %v2646_v25, %v2642_v31  ;;  %v2993_v17 = vpop.f32.mrf.mxu1 }
 0x824   : > { %v2729_v62 = vpack.c.bf16 %v2649_v33, %v2645_v35 }
 0x825   : > { %2949 = vmatmul.bf16.gmra.mxu3 %v2726_v51 }
 0x826   : > { %3036 = vmatmul.bf16.gmra.mxu2 %v2729_v62 }
 0x82a   : > { %v2966_v26 = vpop.f32.mrf.mxu0 }
 0x82b   : > { %v2995_v63 = vpop.f32.mrf.mxu1 }
 0x82e   : > { %v2935_v59 = vpop.f32.mrf.mxu3 }
 0x82f   : > { %v2936_v27 = vadd.f32 %v3933_v5, %v2935_v59  ;;  %v3022_v29 = vpop.f32.mrf.mxu2 }
 0x831   : > { %v2965_v34 = vadd.f32 %v2964_v32, %v2936_v27 }
 0x833   : > { %v2994_v52 = vadd.f32 %v2993_v17, %v2965_v34 }
 0x835   : > { %v5820_v55 = vadd.f32 %v3022_v29, %v2994_v52 }
 0x836   : > { %v2937_v16 = vpop.f32.mrf.mxu3 }
 0x837   : > { %v2938_v57 = vadd.f32 %v3933_v5, %v2937_v16  ;;  %v3024_v28 = vpop.f32.mrf.mxu2 }
 0x839   : > { %v2967_v49 = vadd.f32 %v2966_v26, %v2938_v57 }
 0x83b   : > { %v2996_v1 = vadd.f32 %v2995_v63, %v2967_v49 }
 0x83d   : > { %v5822_v23 = vadd.f32 %v3024_v28, %v2996_v1 }
 0x83f   : > { %v3043_v28 = vadd.f32 %v5822_v23, %v5433_v44 }
 0x85e   : > { %v2969_v7 = vpop.f32.mrf.mxu0 }
 0x862   : > { %v2998_v0 = vpop.f32.mrf.mxu1 }
 0x866   : > { %v2971_v30 = vpop.f32.mrf.mxu0 }
 0x86a   : > { %v3000_v4 = vpop.f32.mrf.mxu1 }
 0x86d   : > { %v2940_v58 = vpop.f32.mrf.mxu3 }
 0x86e   : > { %v3027_v56 = vpop.f32.mrf.mxu2  ;;  %v2974_v48 = vpop.f32.mrf.mxu0  ;;  %v2941_v14 = vadd.f32 %v3933_v5, %v2940_v58 }
 0x870   : > { %v2970_v54 = vadd.f32 %v2969_v7, %v2941_v14 }
 0x872   : > { %v3003_v61 = vpop.f32.mrf.mxu1  ;;  %v2999_v12 = vadd.f32 %v2998_v0, %v2970_v54 }
 0x874   : > { %v3028_v2 = vadd.f32 %v3027_v56, %v2999_v12 }
 0x875   : > { %v2942_v38 = vpop.f32.mrf.mxu3 }
 0x876   : > { %v3029_v40 = vpop.f32.mrf.mxu2  ;;  %v2976_v45 = vpop.f32.mrf.mxu0  ;;  %v3044_v42 = vadd.f32 %v3028_v2, %v5446_v43  ;;  %v2943_v18 = vadd.f32 %v3933_v5, %v2942_v38 }
 0x878   : > { %v2972_v25 = vadd.f32 %v2971_v30, %v2943_v18 }
 0x87a   : > { %v3005_v37 = vpop.f32.mrf.mxu1  ;;  %v3001_v62 = vadd.f32 %v3000_v4, %v2972_v25 }
 0x87c   : > { %v3030_v34 = vadd.f32 %v3029_v40, %v3001_v62 }
 0x87d   : > { %v2945_v46 = vpop.f32.mrf.mxu3 }
 0x87e   : > { %v3032_v3 = vpop.f32.mrf.mxu2  ;;  %v2946_v32 = vadd.f32 %v3933_v5, %v2945_v46  ;;  %v3045_v63 = vadd.f32 %v3030_v34, %v5449_v22 }
 0x880   : > { %v2975_v29 = vadd.f32 %v2974_v48, %v2946_v32 }
 0x882   : > { %v3004_v26 = vadd.f32 %v3003_v61, %v2975_v29 }
 0x884   : > { %v3033_v1 = vadd.f32 %v3032_v3, %v3004_v26 }
 0x885   : > { %v2947_v8 = vpop.f32.mrf.mxu3 }
 0x886   : > { %v2948_v39 = vadd.f32 %v3933_v5, %v2947_v8  ;;  %v3034_v11 = vpop.f32.mrf.mxu2 }
 0x888   : > { %v2977_v15 = vadd.f32 %v2976_v45, %v2948_v39 }
 0x88a   : > { %v3006_v13 = vadd.f32 %v3005_v37, %v2977_v15 }
 0x88c   : > { %v3035_v10 = vadd.f32 %v3034_v11, %v3006_v13 }
 0x88e   : > { %v3047_v41 = vadd.f32 %v3035_v10, %v5462_v19 }
 0x890   : > { %3062 = vadd.xlane.f32.xlu2 %v3047_v41 }
 0x898   : > { %3056 = vadd.xlane.f32.xlu2 %v3044_v42 }
 0x89c   : > { %v2979_v9 = vpop.f32.mrf.mxu0 }
 0x89d   : > { %v3008_v21 = vpop.f32.mrf.mxu1 }
 0x8a4   : > { %v2981_v27 = vpop.f32.mrf.mxu0 }
 0x8a5   : > { %v3010_v43 = vpop.f32.mrf.mxu1 }
 0x8a8   : > { %v2950_v47 = vpop.f32.mrf.mxu3 }
 0x8a9   : > { %v2951_v36 = vadd.f32 %v3933_v5, %v2950_v47  ;;  %v3037_v31 = vpop.f32.mrf.mxu2 }
 0x8ab   : > { %v2980_v50 = vadd.f32 %v2979_v9, %v2951_v36 }
 0x8ad   : > { %v3009_v35 = vadd.f32 %v3008_v21, %v2980_v50 }
 0x8af   : > { %v3038_v33 = vadd.f32 %v3037_v31, %v3009_v35 }
 0x8b0   : > { %v2952_v51 = vpop.f32.mrf.mxu3 }
 0x8b1   : > { %v2953_v59 = vadd.f32 %v3933_v5, %v2952_v51  ;;  %v3048_v19 = vadd.f32 %v3038_v33, %v5526_v24  ;;  %v3039_v16 = vpop.f32.mrf.mxu2  ;;  %v3046_v5 = vadd.f32 %v3033_v1, %v5459_v6  ;;  %v3042_v24 = vadd.f32 %v5820_v55, %v5430_v20 }
 0x8b3   : > { %v2982_v17 = vadd.f32 %v2981_v27, %v2953_v59  ;;  %3064 = vadd.xlane.f32.xlu0 %v3048_v19 }
 0x8b5   : > { %v3011_v52 = vadd.f32 %v3010_v43, %v2982_v17 }
 0x8b7   : > { %v3040_v57 = vadd.f32 %v3039_v16, %v3011_v52 }
 0x8b9   : > { %v3049_v49 = vadd.f32 %v3040_v57, %v5529_v60 }
 0x8bb   : > { %3066 = vadd.xlane.f32.xlu1 %v3049_v49  ;;  %3058 = vadd.xlane.f32.xlu0 %v3045_v63 }
 0x8c3   : > { %3060 = vadd.xlane.f32.xlu1 %v3046_v5  ;;  %3052 = vadd.xlane.f32.xlu0 %v3042_v24 }
 0x8cb   : > { %3054 = vadd.xlane.f32.xlu1 %v3043_v28 }
 0x903   : > { %v3063_v7 = vpop.xlane.xlu2 %3062 }
 0x904   : > { %v3073_v0 = vmul.f32 %v3063_v7, %v5168_v53 }
 0x906   : > { %v5835_v60 = vsub.f32 %v3047_v41, %v3073_v0 }
 0x908   : > { %v3089_v22 = vmul.f32 %v5835_v60, %v5835_v60 }
 0x90a   : > { %3102 = vadd.xlane.f32.xlu0 %v3089_v22 }
 0x90b   : > { %v3057_v58 = vpop.xlane.xlu2 %3056 }
 0x90c   : > { %v3070_v6 = vmul.f32 %v3057_v58, %v5168_v53 }
 0x90e   : > { %v5840_v56 = vsub.f32 %v3044_v42, %v3070_v6 }
 0x910   : > { %v3086_v20 = vmul.f32 %v5840_v56, %v5840_v56 }
 0x912   : > { %3096 = vadd.xlane.f32.xlu0 %v3086_v20 }
 0x926   : > { %v3065_v44 = vpop.xlane.xlu0 %3064 }
 0x927   : > { %v3074_v55 = vmul.f32 %v3065_v44, %v5168_v53 }
 0x929   : > { %v5845_v23 = vsub.f32 %v3048_v19, %v3074_v55 }
 0x92b   : > { %v3090_v30 = vmul.f32 %v5845_v23, %v5845_v23 }
 0x92d   : > { %3104 = vadd.xlane.f32.xlu1 %v3090_v30 }
 0x92e   : > { %v3067_v4 = vpop.xlane.xlu1 %3066  ;;  %v3059_v38 = vpop.xlane.xlu0 %3058 }
 0x92f   : > { %v3075_v40 = vmul.f32 %v3067_v4, %v5168_v53  ;;  %v3071_v48 = vmul.f32 %v3059_v38, %v5168_v53 }
 0x931   : > { %v5851_v46 = vsub.f32 %v3049_v49, %v3075_v40  ;;  %v5853_v61 = vsub.f32 %v3045_v63, %v3071_v48 }
 0x933   : > { %v3091_v3 = vmul.f32 %v5851_v46, %v5851_v46  ;;  %v3087_v8 = vmul.f32 %v5853_v61, %v5853_v61 }
 0x935   : > { %3106 = vadd.xlane.f32.xlu2 %v3091_v3  ;;  %3098 = vadd.xlane.f32.xlu1 %v3087_v8 }
 0x936   : > { %v3061_v14 = vpop.xlane.xlu1 %3060  ;;  %v3053_v39 = vpop.xlane.xlu0 %3052 }
 0x937   : > { %v3072_v45 = vmul.f32 %v3061_v14, %v5168_v53  ;;  %v3068_v15 = vmul.f32 %v3053_v39, %v5168_v53 }
 0x939   : > { %v5861_v37 = vsub.f32 %v3046_v5, %v3072_v45  ;;  %v5863_v54 = vsub.f32 %v3042_v24, %v3068_v15 }
 0x93b   : > { %v3088_v13 = vmul.f32 %v5861_v37, %v5861_v37  ;;  %v3084_v11 = vmul.f32 %v5863_v54, %v5863_v54 }
 0x93d   : > { %3100 = vadd.xlane.f32.xlu2 %v3088_v13  ;;  %3092 = vadd.xlane.f32.xlu1 %v3084_v11 }
 0x93e   : > { %v3055_v10 = vpop.xlane.xlu1 %3054 }
 0x93f   : > { %v3069_v12 = vmul.f32 %v3055_v10, %v5168_v53 }
 0x941   : > { %v5870_v41 = vsub.f32 %v3043_v28, %v3069_v12 }
 0x943   : > { %v3085_v2 = vmul.f32 %v5870_v41, %v5870_v41 }
 0x945   : > { %3094 = vadd.xlane.f32.xlu2 %v3085_v2 }
 0x97d   : > { %v3103_v42 = vpop.xlane.xlu0 %3102 }
 0x97e   : > { %v3113_v9 = vmul.f32 %v3103_v42, %v5168_v53 }
 0x980   : > { %v3121_v47 = vadd.f32 1e-05, %v3113_v9 }
 0x982   : > { %4146 = vrsqrt.f32 %v3121_v47  ;;  %vm3180_vm15 = vweird.f32 %v3121_v47 }
 0x985   : > { %v3097_v18 = vpop.xlane.xlu0 %3096 }
 0x986   : > { %v3110_v36 = vmul.f32 %v3097_v18, %v5168_v53 }
 0x988   : > { %v5877_v31 = vadd.f32 1e-05, %v3110_v36  ;;  %v5879_v35 = vpop.eup %4146 }
 0x989   : > { %v3175_v33 = vmul.f32 %v5879_v35, %v3121_v47  ;;  %vm3181_vm13 = vweird.f32 %v5879_v35 }
 0x98a   : > { %vm5914_vm2 = vmor %vm3180_vm15, %vm3181_vm13  ;;  %vm3150_vm10 = vweird.f32 %v5877_v31 }
 0x98b   : > { %v3176_v27 = vmul.f32 %v5879_v35, %v3175_v33 }
 0x98d   : > { %v3177_v16 = vmul.f32 0.5, %v3176_v27 }
 0x98f   : > { %v3178_v7 = vsub.f32 1.5, %v3177_v16 }
 0x991   : > { %v3179_v4 = vmul.f32 %v5879_v35, %v3178_v7 }
 0x993   : > { %v3183_v10 = vsel %vm5914_vm2, %v5879_v35, %v3179_v4 }
 0x9a0   : > { %v3105_v21 = vpop.xlane.xlu1 %3104 }
 0x9a1   : > { %v3114_v50 = vmul.f32 %v3105_v21, %v5168_v53 }
 0x9a3   : > { %v3122_v25 = vadd.f32 1e-05, %v3114_v50 }
 0x9a5   : > { %4148 = vrsqrt.f32 %v3122_v25  ;;  %vm3190_vm14 = vweird.f32 %v3122_v25 }
 0x9a6   : > { %4150 = vrsqrt.f32 %v5877_v31 }
 0x9a8   : > { %v3107_v51 = vpop.xlane.xlu2 %3106  ;;  %v3099_v62 = vpop.xlane.xlu1 %3098 }
 0x9a9   : > { %v3115_v32 = vmul.f32 %v3107_v51, %v5168_v53  ;;  %v3111_v59 = vmul.f32 %v3099_v62, %v5168_v53  ;;  %v5939_v51 = vld [vmem:[%s6033_s11] ss:$0 sm:$0xff]  ;;  %v3209_v62 = vmul.f32 %v3183_v10, %v5835_v60 }
 0x9ab   : > { %v4149_v19 = vpop.eup %4148  ;;  %v3123_v17 = vadd.f32 1e-05, %v3115_v32  ;;  %v5886_v43 = vadd.f32 1e-05, %v3111_v59  ;;  %v3234_v32 = vlaneseq }
 0x9ac   : > { %v3185_v34 = vmul.f32 %v4149_v19, %v3122_v25  ;;  %v5888_v29 = vpop.eup %4150  ;;  %vm3191_vm12 = vweird.f32 %v4149_v19 }
 0x9ad   : > { %4152 = vrsqrt.f32 %v3123_v17  ;;  %v3145_v57 = vmul.f32 %v5888_v29, %v5877_v31  ;;  %vm5909_vm0 = vmor %vm3190_vm14, %vm3191_vm12  ;;  %vm3200_vm4 = vweird.f32 %v3123_v17  ;;  %vm3151_vm7 = vweird.f32 %v5888_v29 }
 0x9ae   : > { %v3186_v52 = vmul.f32 %v4149_v19, %v3185_v34  ;;  %4154 = vrsqrt.f32 %v5886_v43  ;;  %vm3160_vm8 = vweird.f32 %v5886_v43  ;;  %vm5958_vm12 = vmor %vm3150_vm10, %vm3151_vm7 }
 0x9af   : > { %v3146_v6 = vmul.f32 %v5888_v29, %v3145_v57 }
 0x9b0   : > { %v3187_v26 = vmul.f32 0.5, %v3186_v52  ;;  %v3101_v49 = vpop.xlane.xlu2 %3100  ;;  %v3093_v63 = vpop.xlane.xlu1 %3092 }
 0x9b1   : > { %v3112_v1 = vmul.f32 %v3101_v49, %v5168_v53  ;;  %v3108_v5 = vmul.f32 %v3093_v63, %v5168_v53  ;;  %v3147_v40 = vmul.f32 0.5, %v3146_v6  ;;  %v3220_v49 = vmul.f32 %v5939_v51, %v3209_v62 }
 0x9b2   : > { %v3188_v24 = vsub.f32 1.5, %v3187_v26  ;;  %v3235_v63 = vshrl.u32 %v3234_v32, 7 }
 0x9b3   : > { %v4153_v28 = vpop.eup %4152  ;;  %v5895_v0 = vadd.f32 1e-05, %v3112_v1  ;;  %v5897_v22 = vadd.f32 1e-05, %v3108_v5 }
 0x9b4   : > { %v5899_v58 = vpop.eup %4154  ;;  %v3195_v20 = vmul.f32 %v4153_v28, %v3123_v17  ;;  %v3189_v55 = vmul.f32 %v4149_v19, %v3188_v24  ;;  %vm3201_vm3 = vweird.f32 %v4153_v28  ;;  %v3935_v17 = vld [vmem:[%s6034_s12] ss:$0 sm:$0xff] }
 0x9b5   : > { %v3155_v44 = vmul.f32 %v5899_v58, %v5886_v43  ;;  %4156 = vrsqrt.f32 %v5895_v0  ;;  %vm3202_vm5 = vmor %vm3200_vm4, %vm3201_vm3  ;;  %vm3161_vm6 = vweird.f32 %v5899_v58  ;;  %vm3170_vm13 = vweird.f32 %v5895_v0 }
 0x9b6   : > { %v3196_v30 = vmul.f32 %v4153_v28, %v3195_v20  ;;  %4158 = vrsqrt.f32 %v5897_v22  ;;  %v3193_v15 = vsel %vm5909_vm0, %v4149_v19, %v3189_v55  ;;  %vm5945_vm9 = vmor %vm3160_vm8, %vm3161_vm6  ;;  %v3231_v20 = vadd.f32 %v3935_v17, %v3220_v49 }
 0x9b7   : > { %v3156_v38 = vmul.f32 %v5899_v58, %v3155_v44  ;;  %v3210_v36 = vmul.f32 %v3193_v15, %v5845_v23  ;;  %vm3130_vm0 = vweird.f32 %v5897_v22 }
 0x9b8   : > { %v3197_v48 = vmul.f32 0.5, %v3196_v30  ;;  %v3095_v3 = vpop.xlane.xlu2 %3094 }
 0x9b9   : > { %v3157_v14 = vmul.f32 0.5, %v3156_v38  ;;  %v3109_v39 = vmul.f32 %v3095_v3, %v5168_v53  ;;  %v3148_v53 = vsub.f32 1.5, %v3147_v40  ;;  %v3221_v60 = vmul.f32 %v5939_v51, %v3210_v36 }
 0x9ba   : > { %v3198_v13 = vsub.f32 1.5, %v3197_v48 }
 0x9bb   : > { %v4157_v11 = vpop.eup %4156  ;;  %v3158_v12 = vsub.f32 1.5, %v3157_v14  ;;  %v5923_v2 = vadd.f32 1e-05, %v3109_v39  ;;  %v3149_v23 = vmul.f32 %v5888_v29, %v3148_v53  ;;  %v3232_v24 = vadd.f32 %v3935_v17, %v3221_v60 }
 0x9bc   : > { %v5925_v42 = vpop.eup %4158  ;;  %v3199_v9 = vmul.f32 %v4153_v28, %v3198_v13  ;;  %v3165_v47 = vmul.f32 %v4157_v11, %v5895_v0  ;;  %vm3171_vm11 = vweird.f32 %v4157_v11  ;;  %v3238_v0 = vmul.u32 8, %v3235_v63 }
 0x9bd   : > { %v3125_v18 = vmul.f32 %v5925_v42, %v5897_v22  ;;  %4160 = vrsqrt.f32 %v5923_v2  ;;  %v3159_v50 = vmul.f32 %v5899_v58, %v3158_v12  ;;  %v3153_v31 = vsel %vm5958_vm12, %v5888_v29, %v3149_v23  ;;  %vm3172_vm14 = vmor %vm3170_vm13, %vm3171_vm11 }
 0x9be   : > { %v3203_v21 = vsel %vm3202_vm5, %v4153_v28, %v3199_v9  ;;  %v3166_v25 = vmul.f32 %v4157_v11, %v3165_v47  ;;  %vm3131_vm15 = vweird.f32 %v5925_v42  ;;  %v3206_v44 = vmul.f32 %v3153_v31, %v5840_v56 }
 0x9bf   : > { %v3211_v35 = vmul.f32 %v3203_v21, %v5851_v46  ;;  %v3126_v33 = vmul.f32 %v5925_v42, %v3125_v18  ;;  %v3163_v43 = vsel %vm5945_vm9, %v5899_v58, %v3159_v50  ;;  %vm5974_vm2 = vmor %vm3130_vm0, %vm3131_vm15  ;;  %v3237_v22 = vand.u32 127, %v3234_v32 }
 0x9c0   : > { %v3167_v59 = vmul.f32 0.5, %v3166_v25  ;;  %v3207_v28 = vmul.f32 %v3163_v43, %v5853_v61  ;;  %v3217_v40 = vmul.f32 %v5939_v51, %v3206_v44  ;;  %v3240_v48 = vadd.s32 8, %v3238_v0 }
 0x9c1   : > { %v3127_v46 = vmul.f32 0.5, %v3126_v33  ;;  %v3222_v27 = vmul.f32 %v5939_v51, %v3211_v35  ;;  %vm3140_vm4 = vweird.f32 %v5923_v2  ;;  %vm3239_vm6 = vcmp.ge.s32.totalorder %v3237_v22, %v3238_v0 }
 0x9c2   : > { %v3168_v34 = vsub.f32 1.5, %v3167_v59  ;;  %v3218_v4 = vmul.f32 %v5939_v51, %v3207_v28  ;;  %v3228_v45 = vadd.f32 %v3935_v17, %v3217_v40  ;;  %vm3241_vm7 = vcmp.lt.s32.totalorder %v3237_v22, %v3240_v48 }
 0x9c3   : > { %v4161_v52 = vpop.eup %4160  ;;  %v3128_v57 = vsub.f32 1.5, %v3127_v46  ;;  %v3233_v26 = vadd.f32 %v3935_v17, %v3222_v27  ;;  %vm3242_vm8 = vmand %vm3239_vm6, %vm3241_vm7 }
 0x9c4   : > { %v3169_v1 = vmul.f32 %v4157_v11, %v3168_v34  ;;  %v3135_v5 = vmul.f32 %v4161_v52, %v5923_v2  ;;  %vm3141_vm3 = vweird.f32 %v4161_v52  ;;  %v3229_v8 = vadd.f32 %v3935_v17, %v3218_v4 }
 0x9c5   : > { %3255 = vmatpush.msra.mxu3 %v3233_v26  ;;  %v3129_v58 = vmul.f32 %v5925_v42, %v3128_v57  ;;  %vm3142_vm5 = vmor %vm3140_vm4, %vm3141_vm3  ;;  %v4238_v2 = vmov 0.0  }
 0x9c6   : > { %v3173_v7 = vsel %vm3172_vm14, %v4157_v11, %v3169_v1  ;;  %v3136_v6 = vmul.f32 %v4161_v52, %v3135_v5 }
 0x9c7   : > { %3256 = vmatpush.msra.mxu3 %v3232_v24  ;;  %v3208_v29 = vmul.f32 %v3173_v7, %v5861_v37  ;;  %v3133_v38 = vsel %vm5974_vm2, %v5925_v42, %v3129_v58 }
 0x9c8   : > { %v3137_v55 = vmul.f32 0.5, %v3136_v6  ;;  %v3204_v14 = vmul.f32 %v3133_v38, %v5863_v54  ;;  %v3243_v54 = vsel %vm3242_vm8, 0.125, %v4238_v2 }
 0x9c9   : > { %3257 = vmatpush.msra.mxu3 %v3231_v20  ;;  %v3219_v61 = vmul.f32 %v5939_v51, %v3208_v29 }
 0x9ca   : > { %v3138_v37 = vsub.f32 1.5, %v3137_v55  ;;  %v3215_v11 = vmul.f32 %v5939_v51, %v3204_v14 }
 0x9cb   : > { %v3230_v56 = vadd.f32 %v3935_v17, %v3219_v61 }
 0x9cc   : > { %v3139_v3 = vmul.f32 %v4161_v52, %v3138_v37  ;;  %v3226_v12 = vadd.f32 %v3935_v17, %v3215_v11 }
 0x9cd   : > { %3258 = vmatpush.msra.mxu3 %v3230_v56 }
 0x9ce   : > { %v3143_v39 = vsel %vm3142_vm5, %v4161_v52, %v3139_v3 }
 0x9cf   : > { %3259 = vmatpush.msra.mxu3 %v3229_v8  ;;  %v3205_v15 = vmul.f32 %v3143_v39, %v5870_v41 }
 0x9d1   : > { %3260 = vmatpush.msra.mxu3 %v3228_v45  ;;  %v3216_v13 = vmul.f32 %v5939_v51, %v3205_v15 }
 0x9d3   : > { %v3227_v10 = vadd.f32 %v3935_v17, %v3216_v13 }
 0x9d5   : > { %3261 = vmatpush.msra.mxu3 %v3227_v10 }
 0x9d7   : > { %3262 = vmatpush.msra.mxu3 %v3226_v12 }
 0x9d8   : > { %3782 = vmatmul.msk.f32.vlgmr.msra.gmra.mxu3 %vm793_vm1, %v3243_v54 }
 0xa5b   : > { %v3264_v41 = vpop.f32.mrf.mxu3 }
 0xa5c   : > { %3267 = vst [vmem:[%s433_s23] sm:$0xff] %v3264_v41 }
 0xa5d   : > { %4197 = shalt.err (!%p4194_p3)
}
 0xa5e   : > { %3886 = dma.vmem_to_hbm [thread:$0]  (%p4347_p5), %s3282_s15, 128, %s3284_s27, %s3269_s22  }
 0xa5f PF: > { %p3892_p4 = scmp.ge.s32.totalorder %s4232_s28, 2  ;;  %s3295_s17 = sand.u32 1, %s4220_s25  }
 0xa60   : > { %s3296_s1 = scalar_lea.sflag [#allocation3], %s3295_s17 }
 0xa61   : > { %p3889_p7 = pnand %p3892_p4, %p4351_p6 }
 0xa63   : > { %p3890_p8 = pneg %p3889_p7 }
 0xa65   : > { %4215 = dma.done.wait (%p3890_p8), %s3296_s1, 128  }
 0xa66   : > { %4217 = vsyncadd (%p3890_p8), %s3296_s1, 4294967168  ;;  %s6064_s28 = sld [smem:[#allocation6_spill]]  ;;  %s6067_s25 = smov %s4224_s26 }
 0xa67   : > { %s6065_s0 = sld [smem:[#allocation5_spill]] }
 0xa68   : > { %s6066_s27 = sld [smem:[#allocation7_spill]] }
 0xa6c   : > { %p23_p9 = scmp.ge.s32.totalorder %s6064_s28, 4  }
 0xa6d   : > { %s6068_s26 = smov %s6065_s0 }
 0xa6e   :  { %25 = sbr.rel (!%p23_p9) target bundleno = 6 (0x6), region = 107 }
 0xa73   :  { %3302 = vsyncpa [#allocation3], 1 }
 0xa74   :  { %3304 = vsyncpa [#allocation3 + $0x1], 1 }

// kernel: mae_ast_model_forward.4
= control target key start
LH: loop header
LB: loop body
LE: loop exit
PB: predicated region body
PF: predicated region fallthrough
CT: control target
= control target key end

     0   :  { %s4188_s25 = smov 0   ;;  %s5793_s0 = inlined_call_operand.vmem [shape: f32[2,64,128], index: 0, kind: input, shape index: {}]   ;;  %s5794_s1 = inlined_call_operand.vmem [shape: bf16[128,384], index: 1, kind: input, shape index: {}]   ;;  %s5795_s2 = inlined_call_operand.vmem [shape: f32[1,384], index: 2, kind: input, shape index: {}]   ;;  %s5796_s3 = inlined_call_operand.vmem [shape: bf16[128,128], index: 3, kind: input, shape index: {}]   ;;  %s5797_s4 = inlined_call_operand.vmem [shape: f32[1,128], index: 4, kind: input, shape index: {}]   ;;  %s5798_s5 = inlined_call_operand.vmem [shape: f32[1,128], index: 5, kind: input, shape index: {}]   ;;  %s5799_s6 = inlined_call_operand.vmem [shape: f32[1,128], index: 6, kind: input, shape index: {}]   ;;  %s5800_s7 = inlined_call_operand.vmem [shape: bf16[128,512], index: 7, kind: input, shape index: {}]   ;;  %s5801_s8 = inlined_call_operand.vmem [shape: f32[1,512], index: 8, kind: input, shape index: {}]   ;;  %s5802_s9 = inlined_call_operand.vmem [shape: bf16[512,128], index: 9, kind: input, shape index: {}]   ;;  %s5803_s10 = inlined_call_operand.vmem [shape: f32[1,128], index: 10, kind: input, shape index: {}]   ;;  %s5804_s11 = inlined_call_operand.vmem [shape: f32[1,128], index: 11, kind: input, shape index: {}]   ;;  %s5805_s12 = inlined_call_operand.vmem [shape: f32[1,128], index: 12, kind: input, shape index: {}]   ;;  %s5806_s13 = inlined_call_operand.vmem [shape: f32[2,64,128], index: 13, kind: output, shape index: {}]  }
   0x1 LB: > { %s3299_s26 = sadd.s32 4294967295, %s4112_s25   ;;  %p3303_p0 = scmp.ge.s32.totalorder %s4112_s25, 1  ;;  %s4112_s25 = sphi %s4188_s25, %s23_s25  }
   0x2   : > { %p387_p1 = scmp.lt.s32.totalorder %s4112_s25, 3 }
   0x4   : > { %p388_p2 = pnand %p3303_p0, %p387_p1 }
   0x5   : > { %p431_p3 = scmp.lt.s32.totalorder (!%p388_p2), %s3299_s26, 1  ;;  %s4114_s20 = smov (!%p388_p2), 96  }
   0x6   : > { %391 = sbr.rel (%p388_p2) target bundleno = 2481 (0x9b1), region = 72  ;;  %s4115_s22 = smov (!%p388_p2), 64  }
   0x7   : > { %s4116_s19 = smov (!%p388_p2), 32  }
   0xb   : > { %v3394_v0 = vld [vmem:[%s5794_s1 + $0xa8] sm:$0xf]  ;;  %v3766_v1 = vld [vmem:[%s5794_s1 + $0xb0] sm:$0xf0]  ;;  %v3765_v2 = vld [vmem:[%s5794_s1 + $0xac] sm:$0xf] }
   0xc   : > { %v3395_v3 = vor.u32 %v3766_v1, %v3394_v0  ;;  %v3396_v4 = vld [vmem:[%s5794_s1 + $0xb4] sm:$0xf0]  ;;  %v3382_v5 = vld [vmem:[%s5794_s1 + $0x90] sm:$0xf]  ;;  %v3763_v6 = vld [vmem:[%s5794_s1 + $0x98] sm:$0xf0] }
   0xd   : > { %v4214_v7 = vor.u32 %v3765_v2, %v3396_v4  ;;  %v3762_v8 = vld [vmem:[%s5794_s1 + $0x94] sm:$0xf]  ;;  %v3384_v9 = vld [vmem:[%s5794_s1 + $0x9c] sm:$0xf0]  ;;  %v3383_v10 = vor.u32 %v3763_v6, %v3382_v5  ;;  %v3370_v12 = vld [vmem:[%s5794_s1 + $0x78] sm:$0xf] }
   0xe   : > { %622 = vmatpush.bf16.msra.mxu0 %v3395_v3  ;;  %v4223_v11 = vor.u32 %v3762_v8, %v3384_v9  ;;  %v3760_v13 = vld [vmem:[%s5794_s1 + $0x80] sm:$0xf0]  ;;  %v3759_v14 = vld [vmem:[%s5794_s1 + $0x7c] sm:$0xf]  ;;  %v3372_v15 = vld [vmem:[%s5794_s1 + $0x84] sm:$0xf0] }
   0xf   : > { %3840 = vmatpush.bf16.msra.mxu1 %v4214_v7  ;;  %v3371_v16 = vor.u32 %v3760_v13, %v3370_v12  ;;  %v3375_v17 = vor.u32 %v3759_v14, %v3372_v15  ;;  %v3358_v18 = vld [vmem:[%s5794_s1 + $0x60] sm:$0xf]  ;;  %v3757_v19 = vld [vmem:[%s5794_s1 + $0x68] sm:$0xf0]  ;;  %v3756_v20 = vld [vmem:[%s5794_s1 + $0x64] sm:$0xf] }
  0x10   : > { %v3360_v21 = vld [vmem:[%s5794_s1 + $0x6c] sm:$0xf0]  ;;  %v3346_v22 = vld [vmem:[%s5794_s1 + $0x48] sm:$0xf]  ;;  %v3754_v23 = vld [vmem:[%s5794_s1 + $0x50] sm:$0xf0]  ;;  %v3359_v24 = vor.u32 %v3757_v19, %v3358_v18 }
  0x11   : > { %v3363_v25 = vor.u32 %v3756_v20, %v3360_v21  ;;  %v3753_v26 = vld [vmem:[%s5794_s1 + $0x4c] sm:$0xf]  ;;  %v3348_v27 = vld [vmem:[%s5794_s1 + $0x54] sm:$0xf0]  ;;  %v3347_v28 = vor.u32 %v3754_v23, %v3346_v22  ;;  %v3334_v30 = vld [vmem:[%s5794_s1 + $0x30] sm:$0xf] }
  0x12   : > { %623 = vmatpush.bf16.msra.mxu0 %v3383_v10  ;;  %v3351_v29 = vor.u32 %v3753_v26, %v3348_v27  ;;  %v3751_v31 = vld [vmem:[%s5794_s1 + $0x38] sm:$0xf0]  ;;  %v3750_v32 = vld [vmem:[%s5794_s1 + $0x34] sm:$0xf]  ;;  %v3336_v33 = vld [vmem:[%s5794_s1 + $0x3c] sm:$0xf0] }
  0x13   : > { %3841 = vmatpush.bf16.msra.mxu1 %v4223_v11  ;;  %s5808_s26 = smov (!%p431_p3, %s3299_s26), 1  ;;  %v3335_v34 = vor.u32 %v3751_v31, %v3334_v30  ;;  %v3339_v35 = vor.u32 %v3750_v32, %v3336_v33  ;;  %v3322_v36 = vld [vmem:[%s5794_s1 + $0x18] sm:$0xf]  ;;  %v3748_v37 = vld [vmem:[%s5794_s1 + $0x20] sm:$0xf0]  ;;  %vm741_vm0 = vcmask 261120  }
  0x14   : > { %v3747_v38 = vld [vmem:[%s5794_s1 + $0x1c] sm:$0xf]  ;;  %v3324_v39 = vld [vmem:[%s5794_s1 + $0x24] sm:$0xf0]  ;;  %s3742_s21 = sshll.u32 %s5808_s26, 6  ;;  %v3323_v40 = vor.u32 %v3748_v37, %v3322_v36  ;;  %vm795_vm1 = vcmask 523264  }
  0x15   : > { %v3327_v41 = vor.u32 %v3747_v38, %v3324_v39  ;;  %v3310_v42 = vld [vmem:[%s5794_s1] sm:$0xf]  ;;  %v3745_v43 = vld [vmem:[%s5794_s1 + $0x8] sm:$0xf0]  ;;  %s4304_s30 = scalar_lea.vmem %s5793_s0, %s3742_s21  ;;  %v3744_v44 = vld [vmem:[%s5794_s1 + $0x4] sm:$0xf]  ;;  %s5752_s24 = scalar_lea.vmem %s5806_s13, %s3742_s21 }
  0x16   : > { %624 = vmatpush.bf16.msra.mxu0 %v3371_v16  ;;  %v3312_v45 = vld [vmem:[%s5794_s1 + $0xc] sm:$0xf0]  ;;  %v3311_v46 = vor.u32 %v3745_v43, %v3310_v42  ;;  %v442_v47 = vld [vmem:[%s4304_s30] sm:$0xff]  ;;  %v443_v48 = vld [vmem:[%s4304_s30 + $0x8] sm:$0xff] }
  0x17   : > { %3842 = vmatpush.bf16.msra.mxu1 %v3375_v17  ;;  %v3315_v49 = vor.u32 %v3744_v44, %v3312_v45  ;;  %v444_v50 = vld [vmem:[%s4304_s30 + $0x10] sm:$0xff]  ;;  %v445_v51 = vld [vmem:[%s4304_s30 + $0x18] sm:$0xff]  ;;  %v4316_v52 = vpack.c.bf16 %v443_v48, %v442_v47  ;;  %v446_v54 = vld [vmem:[%s4304_s30 + $0x20] sm:$0xff] }
  0x18   : > { %v4318_v53 = vpack.c.bf16 %v445_v51, %v444_v50  ;;  %v447_v55 = vld [vmem:[%s4304_s30 + $0x28] sm:$0xff]  ;;  %v448_v57 = vld [vmem:[%s4304_s30 + $0x30] sm:$0xff]  ;;  %v449_v58 = vld [vmem:[%s4304_s30 + $0x38] sm:$0xff] }
  0x19   : > { %v4326_v56 = vpack.c.bf16 %v447_v55, %v446_v54  ;;  %v4332_v59 = vpack.c.bf16 %v449_v58, %v448_v57  ;;  %v4341_v62 = vld [vmem:[%s5795_s2] sm:$0x7]  ;;  %v3402_v51 = vld [vmem:[%s5794_s1 + $0xb0] sm:$0xf]  ;;  %v3767_v54 = vld [vmem:[%s5794_s1 + $0xb8] sm:$0xf0] }
  0x1a   : > { %625 = vmatpush.bf16.msra.mxu0 %v3359_v24  ;;  %v489_v63 = vperm.slane %v4341_v62, 1  ;;  %v488_v3 = vperm.slane %v4341_v62, 0  ;;  %v3403_v55 = vor.u32 %v3767_v54, %v3402_v51  ;;  %v3390_v57 = vld [vmem:[%s5794_s1 + $0x98] sm:$0xf]  ;;  %v3764_v58 = vld [vmem:[%s5794_s1 + $0xa0] sm:$0xf0] }
  0x1b   : > { %3843 = vmatpush.bf16.msra.mxu1 %v3363_v25 }
  0x1c   : > { %680 = vmatpush.bf16.msra.mxu2 %v3403_v55 }
  0x1e   : > { %626 = vmatpush.bf16.msra.mxu0 %v3347_v28 }
  0x1f   : > { %3844 = vmatpush.bf16.msra.mxu1 %v3351_v29 }
  0x22   : > { %627 = vmatpush.bf16.msra.mxu0 %v3335_v34 }
  0x23   : > { %3845 = vmatpush.bf16.msra.mxu1 %v3339_v35 }
  0x26   : > { %628 = vmatpush.bf16.msra.mxu0 %v3323_v40 }
  0x27   : > { %3846 = vmatpush.bf16.msra.mxu1 %v3327_v41 }
  0x2a   : > { %629 = vmatpush.bf16.msra.mxu0 %v3311_v46 }
  0x2b   : > { %3847 = vmatpush.bf16.msra.mxu1 %v3315_v49 }
  0x2d   : > { %630 = vmatmul.bf16.vlgmr.msra.gmra.mxu0 %v4316_v52 }
  0x2e   : > { %651 = vmatpush.bf16.msrb.mxu0 %v4214_v7  ;;  %664 = vmatmul.bf16.vlgmr.msra.gmra.mxu1 %v4318_v53 }
  0x32   : > { %652 = vmatpush.bf16.msrb.mxu0 %v4223_v11 }
  0x36   : > { %653 = vmatpush.bf16.msrb.mxu0 %v3375_v17 }
  0x3a   : > { %654 = vmatpush.bf16.msrb.mxu0 %v3363_v25 }
  0x3d   : > { %635 = vmatmul.bf16.gmra.mxu0 %v4318_v53 }
  0x3e   : > { %655 = vmatpush.bf16.msrb.mxu0 %v3351_v29  ;;  %669 = vmatmul.bf16.gmra.mxu1 %v4326_v56 }
  0x42   : > { %656 = vmatpush.bf16.msrb.mxu0 %v3339_v35 }
  0x46   : > { %657 = vmatpush.bf16.msrb.mxu0 %v3327_v41 }
  0x4a   : > { %658 = vmatpush.bf16.msrb.mxu0 %v3315_v49 }
  0x4d   : > { %640 = vmatmul.bf16.gmra.mxu0 %v4326_v56 }
  0x4e   : > { %674 = vmatmul.bf16.gmra.mxu1 %v4332_v59 }
  0x5d   : > { %645 = vmatmul.bf16.gmra.mxu0 %v4332_v59 }
  0x6d   : > { %659 = vmatmul.bf16.vlgmr.msrb.gmra.mxu0 %v4316_v52 }
  0xaa   : > { %v631_v60 = vpop.f32.mrf.mxu0 }
  0xab   : > { %v665_v61 = vpop.f32.mrf.mxu1  ;;  %v632_v7 = vadd.f32 %v631_v60, %v488_v3  ;;  %v3391_v60 = vor.u32 %v3764_v58, %v3390_v57 }
  0xac   : > { %v666_v0 = vadd.f32 %v665_v61, %v489_v63  ;;  %v3378_v61 = vld [vmem:[%s5794_s1 + $0x80] sm:$0xf] }
  0xad   : > { %v725_v12 = vmul.f32 0.17677669, %v632_v7  ;;  %681 = vmatpush.bf16.msra.mxu2 %v3391_v60  ;;  %v3354_v7 = vld [vmem:[%s5794_s1 + $0x50] sm:$0xf] }
  0xb2   : > { %v633_v1 = vpop.f32.mrf.mxu0 }
  0xb3   : > { %v667_v2 = vpop.f32.mrf.mxu1  ;;  %v634_v5 = vadd.f32 %v633_v1, %v488_v3 }
  0xb4   : > { %v668_v4 = vadd.f32 %v667_v2, %v489_v63 }
  0xb5   : > { %v726_v8 = vmul.f32 0.17677669, %v634_v5 }
  0xb6   : > { %v4345_v6 = vpack.c.bf16 %v668_v4, %v666_v0  ;;  %v3758_v4 = vld [vmem:[%s5794_s1 + $0x70] sm:$0xf0] }
  0xb7   : > { %v4349_v13 = vpack.c.bf16 %v726_v8, %v725_v12  ;;  %v3755_v8 = vld [vmem:[%s5794_s1 + $0x58] sm:$0xf0] }
  0xb8   : > { %955 = vrot.lane.b32.xlu1 %v4345_v6, %s4114_s20  ;;  %v758_v44 = vsel %vm741_vm0, %v4345_v6, 0 }
  0xba   : > { %v636_v9 = vpop.f32.mrf.mxu0 }
  0xbb   : > { %v637_v10 = vadd.f32 %v636_v9, %v488_v3  ;;  %v670_v11 = vpop.f32.mrf.mxu1 }
  0xbc   : > { %v671_v14 = vadd.f32 %v670_v11, %v489_v63 }
  0xbd   : > { %v727_v19 = vmul.f32 0.17677669, %v637_v10  ;;  %v3355_v10 = vor.u32 %v3755_v8, %v3354_v7 }
  0xc0   : > { %941 = vrot.lane.b32.xlu1 %v4349_v13, %s4114_s20 }
  0xc2   : > { %v638_v15 = vpop.f32.mrf.mxu0 }
  0xc3   : > { %v639_v16 = vadd.f32 %v638_v15, %v488_v3  ;;  %v672_v17 = vpop.f32.mrf.mxu1  ;;  %v3342_v15 = vld [vmem:[%s5794_s1 + $0x38] sm:$0xf] }
  0xc4   : > { %v673_v18 = vadd.f32 %v672_v17, %v489_v63 }
  0xc5   : > { %v728_v20 = vmul.f32 0.17677669, %v639_v16  ;;  %v3752_v16 = vld [vmem:[%s5794_s1 + $0x40] sm:$0xf0] }
  0xc6   : > { %v4353_v21 = vpack.c.bf16 %v673_v18, %v671_v14  ;;  %v3343_v17 = vor.u32 %v3752_v16, %v3342_v15  ;;  %v3330_v18 = vld [vmem:[%s5794_s1 + $0x20] sm:$0xf] }
  0xc7   : > { %v4355_v22 = vpack.c.bf16 %v728_v20, %v727_v19  ;;  %v3749_v19 = vld [vmem:[%s5794_s1 + $0x28] sm:$0xf0] }
  0xc8   : > { %957 = vrot.lane.b32.xlu0 %v4353_v21, %s4114_s20  ;;  %v761_v38 = vsel %vm741_vm0, %v4353_v21, 0  ;;  %v3331_v20 = vor.u32 %v3749_v19, %v3330_v18 }
  0xca   : > { %v641_v23 = vpop.f32.mrf.mxu0 }
  0xcb   : > { %v675_v24 = vpop.f32.mrf.mxu1  ;;  %v642_v31 = vadd.f32 %v641_v23, %v488_v3  ;;  %v3318_v23 = vld [vmem:[%s5794_s1 + $0x8] sm:$0xf] }
  0xcc   : > { %v676_v25 = vadd.f32 %v675_v24, %v489_v63  ;;  %v3746_v24 = vld [vmem:[%s5794_s1 + $0x10] sm:$0xf0] }
  0xcd   : > { %v729_v36 = vmul.f32 0.17677669, %v642_v31 }
  0xd2   : > { %v643_v26 = vpop.f32.mrf.mxu0 }
  0xd3   : > { %v677_v27 = vpop.f32.mrf.mxu1  ;;  %v644_v29 = vadd.f32 %v643_v26, %v488_v3 }
  0xd4   : > { %v678_v28 = vadd.f32 %v677_v27, %v489_v63 }
  0xd5   : > { %v730_v33 = vmul.f32 0.17677669, %v644_v29 }
  0xd6   : > { %v4359_v30 = vpack.c.bf16 %v678_v28, %v676_v25  ;;  %v3319_v25 = vor.u32 %v3746_v24, %v3318_v23 }
  0xd7   : > { %v4365_v37 = vpack.c.bf16 %v730_v33, %v729_v36 }
  0xd8   : > { %959 = vrot.lane.b32.xlu2 %v4359_v30, %s4114_s20  ;;  %v764_v32 = vsel %vm741_vm0, %v4359_v30, 0 }
  0xd9   : > { %770 = vmatpush.bf16.xpose.msra.mxu3 %v764_v32 }
  0xda   : > { %v646_v34 = vpop.f32.mrf.mxu0 }
  0xdb   : > { %v647_v35 = vadd.f32 %v646_v34, %v488_v3 }
  0xdd   : > { %v731_v41 = vmul.f32 0.17677669, %v647_v35 }
  0xe0   : > { %945 = vrot.lane.b32.xlu2 %v4365_v37, %s4114_s20 }
  0xe1   : > { %771 = vmatpush.bf16.xpose.msra.mxu3 %v761_v38 }
  0xe2   : > { %v648_v39 = vpop.f32.mrf.mxu0 }
  0xe3   : > { %v649_v40 = vadd.f32 %v648_v39, %v488_v3  ;;  %v3366_v3 = vld [vmem:[%s5794_s1 + $0x68] sm:$0xf] }
  0xe4   : > { %v3367_v5 = vor.u32 %v3758_v4, %v3366_v3 }
  0xe5   : > { %v732_v42 = vmul.f32 0.17677669, %v649_v40 }
  0xe7   : > { %v4371_v43 = vpack.c.bf16 %v732_v42, %v731_v41 }
  0xe8   : > { %1287 = vrot.lane.b32.xlu2 %v4359_v30, %s4115_s22 }
  0xe9   : > { %772 = vmatpush.bf16.xpose.msra.mxu3 %v758_v44 }
  0xea   : > { %v660_v45 = vpop.f32.mrf.mxu0 }
  0xeb   : > { %v661_v47 = vadd.f32 %v660_v45, %v489_v63 }
  0xf0   : > { %1285 = vrot.lane.b32.xlu2 %v4353_v21, %s4115_s22 }
  0xf2   : > { %v662_v46 = vpop.f32.mrf.mxu0 }
  0xf3   : > { %v663_v48 = vadd.f32 %v662_v46, %v489_v63  ;;  %v3761_v63 = vld [vmem:[%s5794_s1 + $0x88] sm:$0xf0] }
  0xf4   : > { %v3379_v1 = vor.u32 %v3761_v63, %v3378_v61 }
  0xf5   : > { %v4379_v49 = vpack.c.bf16 %v663_v48, %v661_v47 }
  0xf6   : > { %682 = vmatpush.bf16.msra.mxu2 %v3379_v1 }
  0xf7   : > { %953 = vrot.lane.b32.xlu1 %v4379_v49, %s4114_s20  ;;  %v755_v50 = vsel %vm741_vm0, %v4379_v49, 0 }
  0xf8   : > { %773 = vmatpush.bf16.xpose.msra.mxu3 %v755_v50 }
  0xfa   : > { %683 = vmatpush.bf16.msra.mxu2 %v3367_v5 }
  0xfe   : > { %684 = vmatpush.bf16.msra.mxu2 %v3355_v10 }
  0xff   : > { %3404 = vmatmul.msk.bf16.vlgmr.msra.gmra.mxu3 %vm741_vm0, %v4349_v13 }
 0x102   : > { %685 = vmatpush.bf16.msra.mxu2 %v3343_v17 }
 0x106   : > { %686 = vmatpush.bf16.msra.mxu2 %v3331_v20 }
 0x10a   : > { %687 = vmatpush.bf16.msra.mxu2 %v3319_v25 }
 0x10d   : > { %688 = vmatmul.bf16.vlgmr.msra.gmra.mxu2 %v4316_v52 }
 0x10f   : > { %3405 = vmatmul.msk.bf16.gmra.mxu3 %vm741_vm0, %v4355_v22 }
 0x11d   : > { %693 = vmatmul.bf16.gmra.mxu2 %v4318_v53 }
 0x11f   : > { %3406 = vmatmul.msk.bf16.gmra.mxu3 %vm741_vm0, %v4365_v37 }
 0x12a   : > { %v956_v12 = vpop.permute.xlu1 %955 }
 0x12b   : > { %v977_v14 = vsel %vm741_vm0, %v956_v12, 0  ;;  %v490_v12 = vperm.slane %v4341_v62, 2 }
 0x12d   : > { %698 = vmatmul.bf16.gmra.mxu2 %v4326_v56 }
 0x12f   : > { %3407 = vmatmul.msk.bf16.gmra.mxu3 %vm741_vm0, %v4371_v43 }
 0x132   : > { %v960_v0 = vpop.permute.xlu2 %959  ;;  %v942_v27 = vpop.permute.xlu1 %941 }
 0x133   : > { %v983_v2 = vsel %vm741_vm0, %v960_v0, 0 }
 0x134   : > { %989 = vmatpush.bf16.xpose.msrb.mxu1 %v983_v2 }
 0x13a   : > { %v958_v9 = vpop.permute.xlu0 %957  ;;  %v4445_v26 = vpop.permute.xlu2 %945 }
 0x13b   : > { %v980_v11 = vsel %vm741_vm0, %v958_v9, 0 }
 0x13c   : > { %990 = vmatpush.bf16.xpose.msrb.mxu1 %v980_v11 }
 0x13d   : > { %703 = vmatmul.bf16.gmra.mxu2 %v4332_v59 }
 0x142   : > { %v1288_v28 = vpop.permute.xlu2 %1287 }
 0x143   : > { %v1311_v32 = vsel %vm741_vm0, %v1288_v28, 0 }
 0x144   : > { %991 = vmatpush.bf16.xpose.msrb.mxu1 %v977_v14 }
 0x14a   : > { %v1286_v33 = vpop.permute.xlu2 %1285 }
 0x14b   : > { %v1308_v34 = vsel %vm741_vm0, %v1286_v33, 0 }
 0x169   : > { %v954_v29 = vpop.permute.xlu1 %953 }
 0x16a   : > { %v974_v31 = vsel %vm741_vm0, %v954_v29, 0 }
 0x16b   : > { %992 = vmatpush.bf16.xpose.msrb.mxu1 %v974_v31 }
 0x172   : > { %3412 = vmatmul.msk.bf16.vlgmr.msrb.gmra.mxu1 %vm741_vm0, %v942_v27 }
 0x173   : > { %1317 = vmatpush.bf16.xpose.msra.mxu1 %v1311_v32 }
 0x17b   : > { %1318 = vmatpush.bf16.xpose.msra.mxu1 %v1308_v34 }
 0x182   : > { %v775_v52 = vpop.f32.mrf.mxu3 }
 0x183   : > { %v796_v35 = vsel %vm795_vm1, %v775_v52, -inf }
 0x184   : > { %797 = vmax.xlane.f32.xlu0 %v796_v35 }
 0x18a   : > { %v777_v53 = vpop.f32.mrf.mxu3 }
 0x18b   : > { %v799_v36 = vsel %vm795_vm1, %v777_v53, -inf }
 0x18c   : > { %800 = vmax.xlane.f32.xlu0 %v799_v36 }
 0x190   : > { %v689_v48 = vpop.f32.mrf.mxu2 }
 0x191   : > { %v690_v33 = vadd.f32 %v689_v48, %v490_v12 }
 0x192   : > { %v780_v38 = vpop.f32.mrf.mxu3 }
 0x193   : > { %v802_v39 = vsel %vm795_vm1, %v780_v38, -inf }
 0x194   : > { %803 = vmax.xlane.f32.xlu1 %v802_v39 }
 0x198   : > { %v691_v51 = vpop.f32.mrf.mxu2 }
 0x199   : > { %v692_v34 = vadd.f32 %v691_v51, %v490_v12 }
 0x19a   : > { %v782_v40 = vpop.f32.mrf.mxu3 }
 0x19b   : > { %v805_v41 = vsel %vm795_vm1, %v782_v40, -inf  ;;  %v4503_v35 = vpack.c.bf16 %v692_v34, %v690_v33 }
 0x19c   : > { %806 = vmax.xlane.f32.xlu1 %v805_v41 }
 0x1a0   : > { %947 = vrot.lane.b32.xlu0 %v4371_v43, %s4114_s20  ;;  %v694_v54 = vpop.f32.mrf.mxu2 }
 0x1a1   : > { %v695_v28 = vadd.f32 %v694_v54, %v490_v12 }
 0x1a2   : > { %v4460_v56 = vpop.f32.mrf.mxu3 }
 0x1a3   : > { %v808_v45 = vsel %vm795_vm1, %v4460_v56, -inf }
 0x1a8   : > { %v696_v55 = vpop.f32.mrf.mxu2 }
 0x1a9   : > { %v697_v29 = vadd.f32 %v696_v55, %v490_v12 }
 0x1aa   : > { %v4462_v42 = vpop.f32.mrf.mxu3 }
 0x1ab   : > { %v811_v50 = vsel %vm795_vm1, %v4462_v42, -inf }
 0x1b0   : > { %v699_v61 = vpop.f32.mrf.mxu2 }
 0x1b1   : > { %v700_v23 = vadd.f32 %v699_v61, %v490_v12 }
 0x1b2   : > { %v4464_v59 = vpop.f32.mrf.mxu3 }
 0x1b3   : > { %v814_v44 = vsel %vm795_vm1, %v4464_v59, -inf }
 0x1b4   : > { %815 = vmax.xlane.f32.xlu2 %v814_v44 }
 0x1b5   : > { %943 = vrot.lane.b32.xlu1 %v4355_v22, %s4114_s20 }
 0x1b8   : > { %v701_v4 = vpop.f32.mrf.mxu2 }
 0x1b9   : > { %v702_v24 = vadd.f32 %v701_v4, %v490_v12 }
 0x1ba   : > { %v4472_v46 = vpop.f32.mrf.mxu3 }
 0x1bb   : > { %v817_v47 = vsel %vm795_vm1, %v4472_v46, -inf  ;;  %v4493_v62 = vpack.c.bf16 %v702_v24, %v700_v23 }
 0x1c0   : > { %v704_v11 = vpop.f32.mrf.mxu2 }
 0x1c1   : > { %v705_v19 = vadd.f32 %v704_v11, %v490_v12 }
 0x1c8   : > { %v706_v20 = vpop.f32.mrf.mxu2 }
 0x1c9   : > { %v707_v25 = vadd.f32 %v706_v20, %v490_v12 }
 0x1ca   : > { %809 = vmax.xlane.f32.xlu0 %v808_v45 }
 0x1cb   : > { %v4491_v27 = vpack.c.bf16 %v707_v25, %v705_v19 }
 0x1cd   : > { %908 = vmatpush.bf16.msra.mxu0 %v4491_v27 }
 0x1d1   : > { %909 = vmatpush.bf16.msra.mxu0 %v4493_v62 }
 0x1d2   : > { %818 = vmax.xlane.f32.xlu0 %v817_v47 }
 0x1df   : > { %812 = vmax.xlane.f32.xlu1 %v811_v50 }
 0x1ef   : > { %v4551_v50 = vpop.f32.mrf.mxu1 }
 0x1f0   : > { %v1014_v19 = vsel %vm795_vm1, %v4551_v50, -inf }
 0x1f7   : > { %v798_v57 = vpop.xlane.xlu0 %797  ;;  %v4559_v55 = vpop.f32.mrf.mxu1 }
 0x1f8   : > { %v820_v58 = vsub.f32 %v775_v52, %v798_v57  ;;  %v4500_v52 = vpack.c.bf16 %v697_v29, %v695_v28 }
 0x1fa   : > { %v828_v60 = vmul.f32 1.442695, %v820_v58  ;;  %910 = vmatpush.bf16.msra.mxu0 %v4500_v52  ;;  %v1017_v58 = vsel %vm795_vm1, %v4559_v55, -inf }
 0x1fc   : > { %3872 = vpow2.f32 %v828_v60  ;;  %v4566_v60 = vld [vmem:[%s5796_s3 + $0x8] sm:$0xff] }
 0x1fe   : > { %911 = vmatpush.bf16.msra.mxu0 %v4503_v35 }
 0x1ff   : > { %v801_v63 = vpop.xlane.xlu0 %800 }
 0x200   : > { %v821_v0 = vsub.f32 %v777_v53, %v801_v63 }
 0x202   : > { %v4478_v1 = vpop.eup %3872  ;;  %v830_v2 = vmul.f32 1.442695, %v821_v0  ;;  %1250 = vmatpush.bf16.msrb.mxu0 %v4566_v60 }
 0x203   : > { %v844_v3 = vsel %vm795_vm1, %v4478_v1, 0.0 }
 0x204   : > { %3874 = vpow2.f32 %v830_v2  ;;  %845 = vadd.xlane.f32.xlu2 %v844_v3  ;;  %v4574_v3 = vld [vmem:[%s5796_s3] sm:$0xff] }
 0x206   : > { %1251 = vmatpush.bf16.msrb.mxu0 %v4574_v3 }
 0x207   : > { %v804_v5 = vpop.xlane.xlu1 %803 }
 0x208   : > { %v822_v7 = vsub.f32 %v780_v38, %v804_v5 }
 0x20a   : > { %v4482_v8 = vpop.eup %3874  ;;  %v832_v9 = vmul.f32 1.442695, %v822_v7 }
 0x20b   : > { %v847_v10 = vsel %vm795_vm1, %v4482_v8, 0.0 }
 0x20c   : > { %3876 = vpow2.f32 %v832_v9  ;;  %848 = vadd.xlane.f32.xlu2 %v847_v10 }
 0x20f   : > { %v807_v14 = vpop.xlane.xlu1 %806 }
 0x210   : > { %v823_v15 = vsub.f32 %v782_v40, %v807_v14 }
 0x212   : > { %v4487_v16 = vpop.eup %3876  ;;  %v834_v17 = vmul.f32 1.442695, %v823_v15 }
 0x213   : > { %v850_v18 = vsel %vm795_vm1, %v4487_v16, 0.0 }
 0x214   : > { %3878 = vpow2.f32 %v834_v17  ;;  %851 = vadd.xlane.f32.xlu0 %v850_v18 }
 0x21a   : > { %v4496_v31 = vpop.eup %3878 }
 0x21b   : > { %v853_v32 = vsel %vm795_vm1, %v4496_v31, 0.0 }
 0x21c   : > { %854 = vadd.xlane.f32.xlu1 %v853_v32 }
 0x224   : > { %1283 = vrot.lane.b32.xlu2 %v4345_v6, %s4115_s22 }
 0x227   : > { %v944_v53 = vpop.permute.xlu1 %943  ;;  %v816_v36 = vpop.xlane.xlu2 %815 }
 0x228   : > { %3413 = vmatmul.msk.bf16.gmra.mxu1 %vm741_vm0, %v944_v53  ;;  %1564 = vrot.lane.b32.xlu0 %v4353_v21, %s4116_s19 }
 0x22c   : > { %1281 = vrot.lane.b32.xlu2 %v4379_v49, %s4115_s22 }
 0x230   : > { %1562 = vrot.lane.b32.xlu0 %v4345_v6, %s4116_s19  ;;  %v948_v6 = vpop.permute.xlu0 %947 }
 0x234   : > { %1273 = vrot.lane.b32.xlu2 %v4349_v13, %s4115_s22 }
 0x235   : > { %1566 = vrot.lane.b32.xlu1 %v4359_v30, %s4116_s19 }
 0x238   : > { %3414 = vmatmul.msk.bf16.gmra.mxu1 %vm741_vm0, %v4445_v26  ;;  %1560 = vrot.lane.b32.xlu0 %v4379_v49, %s4116_s19 }
 0x23c   : > { %1275 = vrot.lane.b32.xlu2 %v4355_v22, %s4115_s22 }
 0x23d   : > { %1552 = vrot.lane.b32.xlu1 %v4349_v13, %s4116_s19  ;;  %v810_v26 = vpop.xlane.xlu0 %809 }
 0x23e   : > { %v824_v13 = vsub.f32 %v4460_v56, %v810_v26 }
 0x240   : > { %1554 = vrot.lane.b32.xlu0 %v4355_v22, %s4116_s19  ;;  %v826_v22 = vsub.f32 %v4464_v59, %v816_v36  ;;  %v836_v39 = vmul.f32 1.442695, %v824_v13 }
 0x242   : > { %v840_v40 = vmul.f32 1.442695, %v826_v22 }
 0x245   : > { %1277 = vrot.lane.b32.xlu1 %v4365_v37, %s4115_s22  ;;  %v819_v44 = vpop.xlane.xlu0 %818 }
 0x248   : > { %3415 = vmatmul.msk.bf16.gmra.mxu1 %vm741_vm0, %v948_v6  ;;  %1279 = vrot.lane.b32.xlu0 %v4371_v43, %s4115_s22 }
 0x252   : > { %v813_v21 = vpop.xlane.xlu1 %812 }
 0x253   : > { %v825_v30 = vsub.f32 %v4462_v42, %v813_v21  ;;  %v827_v42 = vsub.f32 %v4472_v46, %v819_v44 }
 0x255   : > { %v838_v49 = vmul.f32 1.442695, %v825_v30  ;;  %v842_v47 = vmul.f32 1.442695, %v827_v42 }
 0x257   : > { %3880 = vpow2.f32 %v838_v49 }
 0x258   : > { %3882 = vpow2.f32 %v836_v39 }
 0x259   : > { %3884 = vpow2.f32 %v840_v40 }
 0x25a   : > { %3886 = vpow2.f32 %v842_v47 }
 0x25d   : > { %v4538_v38 = vpop.eup %3880 }
 0x25e   : > { %v859_v41 = vsel %vm795_vm1, %v4538_v38, 0.0  ;;  %v4543_v45 = vpop.eup %3882 }
 0x25f   : > { %v4545_v48 = vpop.eup %3884  ;;  %v856_v56 = vsel %vm795_vm1, %v4543_v45, 0.0 }
 0x260   : > { %v862_v59 = vsel %vm795_vm1, %v4545_v48, 0.0  ;;  %v4553_v51 = vpop.eup %3886 }
 0x261   : > { %v865_v46 = vsel %vm795_vm1, %v4553_v51, 0.0 }
 0x265   : > { %860 = vadd.xlane.f32.xlu2 %v859_v41 }
 0x26f   : > { %857 = vadd.xlane.f32.xlu1 %v856_v56 }
 0x272   : > { %863 = vadd.xlane.f32.xlu0 %v862_v59 }
 0x277   : > { %v846_v54 = vpop.xlane.xlu2 %845 }
 0x278   : > { %3888 = vrcp.f32 %v846_v54 }
 0x27a   : > { %866 = vadd.xlane.f32.xlu0 %v865_v46 }
 0x27d   : > { %1556 = vrot.lane.b32.xlu2 %v4365_v37, %s4116_s19 }
 0x27e   : > { %v3889_v61 = vpop.eup %3888 }
 0x27f   : > { %v849_v57 = vpop.xlane.xlu2 %848  ;;  %v876_v37 = vmul.f32 %v3889_v61, %v4478_v1 }
 0x280   : > { %3890 = vrcp.f32 %v849_v57 }
 0x282   : > { %1018 = vmax.xlane.f32.xlu0 %v1017_v58 }
 0x286   : > { %v3891_v63 = vpop.eup %3890 }
 0x287   : > { %v877_v0 = vmul.f32 %v3891_v63, %v4482_v8  ;;  %v1284_v2 = vpop.permute.xlu2 %1283  ;;  %v852_v7 = vpop.xlane.xlu0 %851 }
 0x288   : > { %v1305_v4 = vsel %vm741_vm0, %v1284_v2, 0  ;;  %1558 = vrot.lane.b32.xlu1 %v4371_v43, %s4116_s19  ;;  %3892 = vrcp.f32 %v852_v7 }
 0x289   : > { %v884_v5 = vpack.c.bf16 %v877_v0, %v876_v37  ;;  %1319 = vmatpush.bf16.xpose.msra.mxu1 %v1305_v4 }
 0x28b   : > { %3408 = vmatmul.msk.bf16.vlgmr.msra.gmra.mxu0 %vm795_vm1, %v884_v5 }
 0x28e   : > { %v3893_v10 = vpop.eup %3892 }
 0x28f   : > { %v855_v1 = vpop.xlane.xlu1 %854  ;;  %v1282_v8 = vpop.permute.xlu2 %1281  ;;  %v878_v14 = vmul.f32 %v3893_v10, %v4487_v16 }
 0x290   : > { %3894 = vrcp.f32 %v855_v1  ;;  %v1302_v9 = vsel %vm741_vm0, %v1282_v8, 0 }
 0x291   : > { %1320 = vmatpush.bf16.xpose.msra.mxu1 %v1302_v9 }
 0x296   : > { %v3895_v11 = vpop.eup %3894 }
 0x297   : > { %v1274_v12 = vpop.permute.xlu2 %1273  ;;  %v879_v43 = vmul.f32 %v3895_v11, %v4496_v31 }
 0x298   : > { %3444 = vmatmul.msk.bf16.vlgmr.msra.gmra.mxu1 %vm741_vm0, %v1274_v12 }
 0x299   : > { %v885_v15 = vpack.c.bf16 %v879_v43, %v878_v14 }
 0x29a   : > { %v1565_v17 = vpop.permute.xlu0 %1564 }
 0x29b   : > { %3409 = vmatmul.msk.bf16.gmra.mxu0 %vm795_vm1, %v885_v15  ;;  %v1587_v31 = vsel %vm741_vm0, %v1565_v17, 0 }
 0x29f   : > { %v1276_v20 = vpop.permute.xlu2 %1275 }
 0x2a2   : > { %v1563_v16 = vpop.permute.xlu0 %1562 }
 0x2a3   : > { %v1584_v21 = vsel %vm741_vm0, %v1563_v16, 0 }
 0x2a5   : > { %v4586_v18 = vpop.f32.mrf.mxu1 }
 0x2a6   : > { %1015 = vmax.xlane.f32.xlu2 %v1014_v19  ;;  %v1020_v32 = vsel %vm795_vm1, %v4586_v18, -inf }
 0x2a7   : > { %v1567_v23 = vpop.permute.xlu1 %1566 }
 0x2a8   : > { %v1590_v24 = vsel %vm741_vm0, %v1567_v23, 0  ;;  %3445 = vmatmul.msk.bf16.gmra.mxu1 %vm741_vm0, %v1276_v20 }
 0x2a9   : > { %1596 = vmatpush.bf16.xpose.msra.mxu0 %v1590_v24 }
 0x2aa   : > { %v1561_v33 = vpop.permute.xlu0 %1560 }
 0x2ab   : > { %v1581_v36 = vsel %vm741_vm0, %v1561_v33, 0 }
 0x2ad   : > { %v4592_v25 = vpop.f32.mrf.mxu1 }
 0x2ae   : > { %v1023_v28 = vsel %vm795_vm1, %v4592_v25, -inf }
 0x2af   : > { %v4596_v29 = vpop.permute.xlu1 %1552  ;;  %1024 = vmax.xlane.f32.xlu2 %v1023_v28 }
 0x2b1   : > { %1597 = vmatpush.bf16.xpose.msra.mxu0 %v1587_v31 }
 0x2b2   : > { %1021 = vmax.xlane.f32.xlu1 %v1020_v32  ;;  %v4607_v30 = vpop.permute.xlu0 %1554 }
 0x2b5   : > { %v4601_v34 = vpop.f32.mrf.mxu1 }
 0x2b6   : > { %v1026_v53 = vsel %vm795_vm1, %v4601_v34, -inf }
 0x2b7   : > { %v1278_v6 = vpop.permute.xlu1 %1277  ;;  %1027 = vmax.xlane.f32.xlu0 %v1026_v53 }
 0x2b8   : > { %3446 = vmatmul.msk.bf16.gmra.mxu1 %vm741_vm0, %v1278_v6 }
 0x2b9   : > { %1598 = vmatpush.bf16.xpose.msra.mxu0 %v1584_v21 }
 0x2ba   : > { %v1280_v39 = vpop.permute.xlu0 %1279 }
 0x2bd   : > { %v4609_v49 = vpop.f32.mrf.mxu1 }
 0x2be   : > { %v1029_v26 = vsel %vm795_vm1, %v4609_v49, -inf }
 0x2bf   : > { %1030 = vmax.xlane.f32.xlu1 %v1029_v26 }
 0x2c1   : > { %1599 = vmatpush.bf16.xpose.msra.mxu0 %v1581_v36 }
 0x2c5   : > { %v4614_v13 = vpop.f32.mrf.mxu1 }
 0x2c6   : > { %v1032_v22 = vsel %vm795_vm1, %v4614_v13, -inf }
 0x2c7   : > { %1033 = vmax.xlane.f32.xlu2 %v1032_v22 }
 0x2c8   : > { %3447 = vmatmul.msk.bf16.gmra.mxu1 %vm741_vm0, %v1280_v39 }
 0x2cd   : > { %v4619_v40 = vpop.f32.mrf.mxu1 }
 0x2ce   : > { %v1035_v41 = vsel %vm795_vm1, %v4619_v40, -inf }
 0x2cf   : > { %1036 = vmax.xlane.f32.xlu0 %v1035_v41 }
 0x2d8   : > { %1116 = vrot.lane.b32.xlu1 %v4491_v27, %s4114_s20  ;;  %v861_v44 = vpop.xlane.xlu2 %860 }
 0x2d9   : > { %3896 = vrcp.f32 %v861_v44 }
 0x2df   : > { %1114 = vrot.lane.b32.xlu2 %v4493_v62, %s4114_s20  ;;  %v3897_v56 = vpop.eup %3896 }
 0x2e0   : > { %1110 = vrot.lane.b32.xlu1 %v4503_v35, %s4114_s20  ;;  %v881_v46 = vmul.f32 %v3897_v56, %v4538_v38  ;;  %v1557_v12 = vpop.permute.xlu2 %1556 }
 0x2e2   : > { %v858_v42 = vpop.xlane.xlu1 %857 }
 0x2e3   : > { %3898 = vrcp.f32 %v858_v42  ;;  %1112 = vrot.lane.b32.xlu0 %v4500_v52, %s4114_s20 }
 0x2e5   : > { %v864_v47 = vpop.xlane.xlu0 %863 }
 0x2e9   : > { %v3899_v59 = vpop.eup %3898 }
 0x2ea   : > { %v880_v54 = vmul.f32 %v3899_v59, %v4543_v45 }
 0x2ec   : > { %v886_v57 = vpack.c.bf16 %v881_v46, %v880_v54 }
 0x2ed   : > { %v867_v58 = vpop.xlane.xlu0 %866 }
 0x2ee   : > { %3410 = vmatmul.msk.bf16.gmra.mxu0 %vm795_vm1, %v886_v57  ;;  %3900 = vrcp.f32 %v867_v58 }
 0x2ef   : > { %3902 = vrcp.f32 %v864_v47 }
 0x2f4   : > { %v3901_v61 = vpop.eup %3900 }
 0x2f5   : > { %v3903_v63 = vpop.eup %3902  ;;  %v883_v37 = vmul.f32 %v3901_v61, %v4553_v51  ;;  %v1019_v23 = vpop.xlane.xlu0 %1018 }
 0x2f6   : > { %v882_v0 = vmul.f32 %v3903_v63, %v4545_v48  ;;  %v1039_v33 = vsub.f32 %v4559_v55, %v1019_v23 }
 0x2f8   : > { %v887_v2 = vpack.c.bf16 %v883_v37, %v882_v0  ;;  %v1048_v26 = vmul.f32 1.442695, %v1039_v33 }
 0x2fa   : > { %v4653_v43 = vpop.permute.xlu1 %1558 }
 0x2fe   : > { %3411 = vmatmul.msk.bf16.gmra.mxu0 %vm795_vm1, %v887_v2 }
 0x308   : > { %v913_v4 = vpop.f32.mrf.mxu0 }
 0x310   : > { %v915_v5 = vpop.f32.mrf.mxu0 }
 0x311   : > { %v933_v45 = vpack.c.bf16 %v915_v5, %v913_v4 }
 0x313   : > { %3440 = vmatmul.msk.bf16.vlgmr.msrb.gmra.mxu0 %vm741_vm0, %v933_v45 }
 0x315   : > { %v4638_v38 = vpop.f32.mrf.mxu1 }
 0x316   : > { %v1342_v7 = vsel %vm795_vm1, %v4638_v38, -inf }
 0x317   : > { %1343 = vmax.xlane.f32.xlu0 %v1342_v7 }
 0x318   : > { %v918_v1 = vpop.f32.mrf.mxu0 }
 0x319   : > { %v4655_v15 = vpop.xlane.xlu2 %1015 }
 0x31d   : > { %v4642_v8 = vpop.f32.mrf.mxu1 }
 0x31e   : > { %v1345_v48 = vsel %vm795_vm1, %v4642_v8, -inf }
 0x31f   : > { %1346 = vmax.xlane.f32.xlu2 %v1345_v48 }
 0x320   : > { %v920_v51 = vpop.f32.mrf.mxu0 }
 0x321   : > { %v934_v9 = vpack.c.bf16 %v920_v51, %v918_v1 }
 0x322   : > { %v1025_v20 = vpop.xlane.xlu2 %1024 }
 0x323   : > { %3441 = vmatmul.msk.bf16.gmra.mxu0 %vm741_vm0, %v934_v9  ;;  %v1041_v55 = vsub.f32 %v4592_v25, %v1025_v20 }
 0x325   : > { %v4647_v10 = vpop.f32.mrf.mxu1  ;;  %v1022_v19 = vpop.xlane.xlu1 %1021  ;;  %v1052_v56 = vmul.f32 1.442695, %v1041_v55 }
 0x326   : > { %v1348_v11 = vsel %vm795_vm1, %v4647_v10, -inf  ;;  %v1040_v16 = vsub.f32 %v4586_v18, %v1022_v19 }
 0x327   : > { %1349 = vmax.xlane.f32.xlu0 %v1348_v11 }
 0x328   : > { %v1050_v31 = vmul.f32 1.442695, %v1040_v16 }
 0x32a   : > { %v4671_v53 = vpop.xlane.xlu0 %1027  ;;  %3904 = vpow2.f32 %v1050_v31 }
 0x32b   : > { %3906 = vpow2.f32 %v1048_v26 }
 0x32d   : > { %v4651_v14 = vpop.f32.mrf.mxu1 }
 0x32e   : > { %v1351_v5 = vsel %vm795_vm1, %v4651_v14, -inf }
 0x332   : > { %v1031_v32 = vpop.xlane.xlu1 %1030 }
 0x333   : > { %3464 = vmatmul.msk.bf16.vlgmr.msra.gmra.mxu0 %vm741_vm0, %v4596_v29  ;;  %v1043_v21 = vsub.f32 %v4609_v49, %v1031_v32 }
 0x335   : > { %v4659_v17 = vpop.f32.mrf.mxu1  ;;  %v1056_v36 = vmul.f32 1.442695, %v1043_v21 }
 0x336   : > { %v1354_v48 = vsel %vm795_vm1, %v4659_v17, -inf }
 0x337   : > { %1440 = vrot.lane.b32.xlu2 %v4491_v27, %s4115_s22  ;;  %3908 = vpow2.f32 %v1056_v36 }
 0x338   : > { %3910 = vpow2.f32 %v1052_v56 }
 0x33a   : > { %v1034_v29 = vpop.xlane.xlu2 %1033 }
 0x33b   : > { %v1044_v49 = vsub.f32 %v4614_v13, %v1034_v29 }
 0x33d   : > { %v4663_v24 = vpop.f32.mrf.mxu1  ;;  %v1058_v59 = vmul.f32 1.442695, %v1044_v49 }
 0x33e   : > { %v1357_v28 = vsel %vm795_vm1, %v4663_v24, -inf }
 0x33f   : > { %1358 = vmax.xlane.f32.xlu1 %v1357_v28  ;;  %3912 = vpow2.f32 %v1058_v59 }
 0x342   : > { %v1037_v39 = vpop.xlane.xlu0 %1036  ;;  %v1115_v44 = vpop.permute.xlu2 %1114 }
 0x343   : > { %3465 = vmatmul.msk.bf16.gmra.mxu0 %vm741_vm0, %v4607_v30  ;;  %v4678_v30 = vpop.eup %3904  ;;  %v1045_v46 = vsub.f32 %v4619_v40, %v1037_v39  ;;  %v1038_v40 = vsub.f32 %v4551_v50, %v4655_v15  ;;  %v1042_v50 = vsub.f32 %v4601_v34, %v4671_v53 }
 0x344   : > { %v1068_v47 = vsel %vm795_vm1, %v4678_v30, 0.0  ;;  %v4688_v25 = vpop.eup %3906 }
 0x345   : > { %v4673_v6 = vpop.f32.mrf.mxu1  ;;  %v4691_v54 = vpop.eup %3908  ;;  %v1065_v58 = vsel %vm795_vm1, %v4688_v25, 0.0  ;;  %v1060_v63 = vmul.f32 1.442695, %v1045_v46  ;;  %v1046_v45 = vmul.f32 1.442695, %v1038_v40 }
 0x346   : > { %v1360_v18 = vsel %vm795_vm1, %v4673_v6, -inf  ;;  %v1077_v57 = vsel %vm795_vm1, %v4691_v54, 0.0  ;;  %v4698_v37 = vpop.eup %3910  ;;  %v1054_v51 = vmul.f32 1.442695, %v1042_v50 }
 0x347   : > { %1361 = vmax.xlane.f32.xlu1 %v1360_v18  ;;  %v4700_v0 = vpop.eup %3912  ;;  %3914 = vpow2.f32 %v1060_v63  ;;  %v1071_v4 = vsel %vm795_vm1, %v4698_v37, 0.0 }
 0x348   : > { %v1080_v2 = vsel %vm795_vm1, %v4700_v0, 0.0  ;;  %3916 = vpow2.f32 %v1046_v45 }
 0x349   : > { %3918 = vpow2.f32 %v1054_v51 }
 0x34a   : > { %v1117_v22 = vpop.permute.xlu1 %1116 }
 0x34b   : > { %1138 = vmatpush.bf16.msrb.mxu2 %v1117_v22  ;;  %3848 = vmatpush.bf16.msrb.mxu3 %v1117_v22 }
 0x34d   : > { %v4681_v41 = vpop.f32.mrf.mxu1  ;;  %v4712_v7 = vpop.eup %3914 }
 0x34e   : > { %v1363_v42 = vsel %vm795_vm1, %v4681_v41, -inf  ;;  %v1083_v1 = vsel %vm795_vm1, %v4712_v7, 0.0  ;;  %v4722_v11 = vpop.eup %3916 }
 0x34f   : > { %1139 = vmatpush.bf16.msrb.mxu2 %v1115_v44  ;;  %3849 = vmatpush.bf16.msrb.mxu3 %v1115_v44  ;;  %v4728_v34 = vpop.eup %3918 }
 0x350   : > { %1069 = vadd.xlane.f32.xlu1 %v1068_v47  ;;  %1364 = vmax.xlane.f32.xlu0 %v1363_v42  ;;  %v1074_v15 = vsel %vm795_vm1, %v4728_v34, 0.0 }
 0x352   : > { %v1111_v61 = vpop.permute.xlu1 %1110 }
 0x353   : > { %3466 = vmatmul.msk.bf16.gmra.mxu0 %vm741_vm0, %v1557_v12  ;;  %v1062_v12 = vsel %vm795_vm1, %v4722_v11, 0.0 }
 0x355   : > { %v1113_v13 = vpop.permute.xlu0 %1112 }
 0x356   : > { %1140 = vmatpush.bf16.msrb.mxu2 %v1113_v13  ;;  %3850 = vmatpush.bf16.msrb.mxu3 %v1113_v13 }
 0x358   : > { %1078 = vadd.xlane.f32.xlu1 %v1077_v57  ;;  %1066 = vadd.xlane.f32.xlu0 %v1065_v58 }
 0x35a   : > { %1141 = vmatpush.bf16.msrb.mxu2 %v1111_v61  ;;  %3851 = vmatpush.bf16.msrb.mxu3 %v1111_v61 }
 0x360   : > { %1081 = vadd.xlane.f32.xlu1 %v1080_v2  ;;  %1072 = vadd.xlane.f32.xlu0 %v1071_v4 }
 0x361   : > { %1352 = vmax.xlane.f32.xlu2 %v1351_v5 }
 0x363   : > { %3467 = vmatmul.msk.bf16.gmra.mxu0 %vm741_vm0, %v4653_v43 }
 0x368   : > { %1084 = vadd.xlane.f32.xlu0 %v1083_v1 }
 0x369   : > { %1355 = vmax.xlane.f32.xlu2 %v1354_v48 }
 0x36b   : > { %v4720_v9 = vpop.f32.mrf.mxu0 }
 0x371   : > { %1063 = vadd.xlane.f32.xlu2 %v1062_v12 }
 0x373   : > { %v4726_v43 = vpop.f32.mrf.mxu0 }
 0x379   : > { %1075 = vadd.xlane.f32.xlu2 %v1074_v15 }
 0x37b   : > { %v4732_v19 = vpop.f32.mrf.mxu0 }
 0x383   : > { %v4734_v20 = vpop.f32.mrf.mxu0 }
 0x38a   : > { %v1344_v23 = vpop.xlane.xlu0 %1343 }
 0x38b   : > { %v1366_v16 = vsub.f32 %v4638_v38, %v1344_v23 }
 0x38d   : > { %v1374_v28 = vmul.f32 1.442695, %v1366_v16 }
 0x38f   : > { %3920 = vpow2.f32 %v1374_v28 }
 0x390   : > { %v4737_v31 = vpop.f32.mrf.mxu0 }
 0x392   : > { %v1347_v32 = vpop.xlane.xlu2 %1346 }
 0x393   : > { %v1367_v29 = vsub.f32 %v4642_v8, %v1347_v32 }
 0x395   : > { %v4740_v33 = vpop.eup %3920  ;;  %v1376_v53 = vmul.f32 1.442695, %v1367_v29 }
 0x396   : > { %v1390_v21 = vsel %vm795_vm1, %v4740_v33, 0.0 }
 0x397   : > { %3922 = vpow2.f32 %v1376_v53  ;;  %1391 = vadd.xlane.f32.xlu1 %v1390_v21 }
 0x398   : > { %v4744_v18 = vpop.f32.mrf.mxu0 }
 0x39a   : > { %v1441_v26 = vpop.permute.xlu2 %1440  ;;  %v1350_v56 = vpop.xlane.xlu0 %1349 }
 0x39b   : > { %1462 = vmatpush.bf16.msra.mxu2 %v1441_v26  ;;  %v1368_v12 = vsub.f32 %v4647_v10, %v1350_v56 }
 0x39d   : > { %v4746_v38 = vpop.eup %3922  ;;  %v1378_v16 = vmul.f32 1.442695, %v1368_v12 }
 0x39e   : > { %v1393_v36 = vsel %vm795_vm1, %v4746_v38, 0.0 }
 0x39f   : > { %1394 = vadd.xlane.f32.xlu0 %v1393_v36 }
 0x3a0   : > { %v4750_v22 = vpop.f32.mrf.mxu0 }
 0x3a8   : > { %v4752_v8 = vpop.f32.mrf.mxu0 }
 0x3b0   : > { %v4754_v55 = vpop.f32.mrf.mxu0 }
 0x3b1   : > { %v1621_v39 = vsel %vm795_vm1, %v4754_v55, -inf }
 0x3b2   : > { %v4758_v49 = vpop.xlane.xlu1 %1358  ;;  %1622 = vmax.xlane.f32.xlu2 %v1621_v39 }
 0x3b3   : > { %1719 = vrot.lane.b32.xlu0 %v4491_v27, %s4116_s19 }
 0x3b8   : > { %v4762_v44 = vpop.f32.mrf.mxu0 }
 0x3b9   : > { %v1624_v42 = vsel %vm795_vm1, %v4762_v44, -inf }
 0x3ba   : > { %v4766_v47 = vpop.xlane.xlu1 %1361  ;;  %1625 = vmax.xlane.f32.xlu1 %v1624_v42 }
 0x3bb   : > { %1434 = vrot.lane.b32.xlu0 %v4503_v35, %s4115_s22 }
 0x3c0   : > { %v4776_v57 = vpop.f32.mrf.mxu0 }
 0x3c1   : > { %v1627_v56 = vsel %vm795_vm1, %v4776_v57, -inf }
 0x3c3   : > { %v1070_v59 = vpop.xlane.xlu1 %1069  ;;  %v4770_v13 = vpop.xlane.xlu0 %1364  ;;  %1717 = vrot.lane.b32.xlu0 %v4493_v62, %s4116_s19 }
 0x3c8   : > { %v4782_v40 = vpop.f32.mrf.mxu0 }
 0x3c9   : > { %v1630_v29 = vsel %vm795_vm1, %v4782_v40, -inf }
 0x3ca   : > { %1436 = vrot.lane.b32.xlu2 %v4500_v52, %s4115_s22 }
 0x3cb   : > { %v1067_v27 = vpop.xlane.xlu0 %1066  ;;  %v1079_v46 = vpop.xlane.xlu1 %1078 }
 0x3d0   : > { %v4786_v50 = vpop.f32.mrf.mxu0 }
 0x3d3   : > { %v1073_v58 = vpop.xlane.xlu0 %1072  ;;  %1438 = vrot.lane.b32.xlu1 %v4493_v62, %s4115_s22  ;;  %v1082_v63 = vpop.xlane.xlu1 %1081 }
 0x3d4   : > { %v4780_v61 = vpop.xlane.xlu2 %1352  ;;  %3924 = vrcp.f32 %v1082_v63 }
 0x3da   : > { %v3925_v5 = vpop.eup %3924 }
 0x3db   : > { %v1085_v2 = vpop.xlane.xlu0 %1084  ;;  %v1100_v1 = vmul.f32 %v3925_v5, %v4700_v0  ;;  %v4796_v0 = vpop.f32.mrf.mxu0 }
 0x3dc   : > { %3926 = vrcp.f32 %v1085_v2  ;;  %v4784_v4 = vpop.xlane.xlu2 %1355  ;;  %v1636_v10 = vsel %vm795_vm1, %v4796_v0, -inf }
 0x3dd   : > { %3928 = vrcp.f32 %v1067_v27 }
 0x3e2   : > { %v3927_v45 = vpop.eup %3926 }
 0x3e3   : > { %v1101_v48 = vmul.f32 %v3927_v45, %v4712_v7  ;;  %v3929_v15 = vpop.eup %3928  ;;  %v4805_v21 = vpop.f32.mrf.mxu0 }
 0x3e4   : > { %v1064_v62 = vpop.xlane.xlu2 %1063  ;;  %v1095_v28 = vmul.f32 %v3929_v15, %v4688_v25  ;;  %v1633_v25 = vsel %vm795_vm1, %v4786_v50, -inf  ;;  %v1639_v42 = vsel %vm795_vm1, %v4805_v21, -inf  ;;  %v1370_v15 = vsub.f32 %v4659_v17, %v4784_v4 }
 0x3e5   : > { %3930 = vrcp.f32 %v1064_v62  ;;  %v1105_v51 = vpack.c.bf16 %v1101_v48, %v1100_v1 }
 0x3e6   : > { %3932 = vpow2.f32 %v1378_v16 }
 0x3e7   : > { %3419 = vmatmul.msk.bf16.vlgmr.msrb.gmra.mxu3 %vm795_vm1, %v1105_v51  ;;  %3934 = vrcp.f32 %v1073_v58 }
 0x3e8   : > { %3936 = vrcp.f32 %v1070_v59 }
 0x3eb   : > { %v3931_v23 = vpop.eup %3930  ;;  %v4816_v63 = vpop.f32.mrf.mxu0 }
 0x3ec   : > { %v1094_v32 = vmul.f32 %v3931_v23, %v4722_v11  ;;  %v4803_v11 = vpop.eup %3932  ;;  %v1076_v27 = vpop.xlane.xlu2 %1075 }
 0x3ed   : > { %1631 = vmax.xlane.f32.xlu0 %v1630_v29  ;;  %v3935_v53 = vpop.eup %3934  ;;  %v1396_v36 = vsel %vm795_vm1, %v4803_v11, 0.0  ;;  %3938 = vrcp.f32 %v1076_v27  ;;  %v1369_v29 = vsub.f32 %v4651_v14, %v4780_v61 }
 0x3ee   : > { %v1102_v7 = vpack.c.bf16 %v1095_v28, %v1094_v32  ;;  %v3937_v26 = vpop.eup %3936  ;;  %v1097_v39 = vmul.f32 %v3935_v53, %v4698_v37  ;;  %3940 = vrcp.f32 %v1079_v46  ;;  %v1642_v37 = vsel %vm795_vm1, %v4816_v63, -inf }
 0x3ef   : > { %v1096_v59 = vmul.f32 %v3937_v26, %v4678_v30  ;;  %v1380_v17 = vmul.f32 1.442695, %v1369_v29 }
 0x3f0   : > { %3416 = vmatmul.msk.bf16.vlgmr.msrb.gmra.mxu2 %vm795_vm1, %v1102_v7 }
 0x3f1   : > { %v1103_v58 = vpack.c.bf16 %v1097_v39, %v1096_v59 }
 0x3f3   : > { %1637 = vmax.xlane.f32.xlu2 %v1636_v10  ;;  %v3939_v2 = vpop.eup %3938 }
 0x3f4   : > { %v3941_v5 = vpop.eup %3940  ;;  %v1098_v45 = vmul.f32 %v3939_v2, %v4728_v34  ;;  %v1382_v34 = vmul.f32 1.442695, %v1370_v15  ;;  %v3770_v2 = vld [vmem:[%s5796_s3 + $0x10] sm:$0xff] }
 0x3f5   : > { %1634 = vmax.xlane.f32.xlu0 %v1633_v25  ;;  %v1099_v30 = vmul.f32 %v3941_v5, %v4691_v54 }
 0x3f7   : > { %v1104_v1 = vpack.c.bf16 %v1099_v30, %v1098_v45 }
 0x3fb   : > { %1397 = vadd.xlane.f32.xlu2 %v1396_v36 }
 0x3fd   : > { %1640 = vmax.xlane.f32.xlu0 %v1639_v42  ;;  %1628 = vmax.xlane.f32.xlu1 %v1627_v56 }
 0x400   : > { %3417 = vmatmul.msk.bf16.gmra.mxu2 %vm795_vm1, %v1103_v58 }
 0x405   : > { %1643 = vmax.xlane.f32.xlu0 %v1642_v37  ;;  %v3771_v37 = vld [vmem:[%s5796_s3 + $0x18] sm:$0xff] }
 0x406   : > { %1197 = vmatpush.bf16.msra.mxu3 %v3771_v37 }
 0x40a   : > { %v1392_v62 = vpop.xlane.xlu1 %1391  ;;  %1198 = vmatpush.bf16.msra.mxu3 %v3770_v2 }
 0x40e   : > { %3852 = vmatpush.bf16.msrb.mxu3 %v4566_v60 }
 0x410   : > { %3418 = vmatmul.msk.bf16.gmra.mxu2 %vm795_vm1, %v1104_v1 }
 0x412   : > { %v1395_v48 = vpop.xlane.xlu0 %1394  ;;  %3853 = vmatpush.bf16.msrb.mxu3 %v4574_v3 }
 0x419   : > { %1715 = vrot.lane.b32.xlu0 %v4500_v52, %s4116_s19 }
 0x425   : > { %v1623_v51 = vpop.xlane.xlu2 %1622  ;;  %v1720_v46 = vpop.permute.xlu0 %1719 }
 0x426   : > { %v1645_v12 = vsub.f32 %v4754_v55, %v1623_v51  ;;  %1741 = vmatpush.bf16.msrb.mxu1 %v1720_v46 }
 0x428   : > { %v1653_v23 = vmul.f32 1.442695, %v1645_v12 }
 0x42a   : > { %3942 = vpow2.f32 %v1653_v23 }
 0x42b   : > { %3944 = vpow2.f32 %v1382_v34 }
 0x42d   : > { %v1626_v54 = vpop.xlane.xlu1 %1625  ;;  %v1435_v28 = vpop.permute.xlu0 %1434 }
 0x42e   : > { %v1646_v16 = vsub.f32 %v4762_v44, %v1626_v54  ;;  %v1372_v44 = vsub.f32 %v4673_v6, %v4766_v47  ;;  %v1437_v39 = vpop.permute.xlu2 %1436 }
 0x430   : > { %v4829_v32 = vpop.eup %3942  ;;  %v1655_v52 = vmul.f32 1.442695, %v1646_v16  ;;  %v1386_v61 = vmul.f32 1.442695, %v1372_v44  ;;  %v1373_v44 = vsub.f32 %v4681_v41, %v4770_v13 }
 0x431   : > { %v1669_v55 = vsel %vm795_vm1, %v4829_v32, 0.0  ;;  %v4835_v4 = vpop.eup %3944 }
 0x432   : > { %3946 = vpow2.f32 %v1655_v52  ;;  %1670 = vadd.xlane.f32.xlu2 %v1669_v55  ;;  %v1402_v14 = vsel %vm795_vm1, %v4835_v4, 0.0 }
 0x433   : > { %3948 = vpow2.f32 %v1380_v17 }
 0x434   : > { %3950 = vpow2.f32 %v1386_v61 }
 0x435   : > { %v1718_v7 = vpop.permute.xlu0 %1717  ;;  %3952 = vrcp.f32 %v1395_v48 }
 0x436   : > { %1742 = vmatpush.bf16.msrb.mxu1 %v1718_v7  ;;  %3954 = vrcp.f32 %v1392_v62 }
 0x438   : > { %v4837_v10 = vpop.eup %3946 }
 0x439   : > { %v1672_v25 = vsel %vm795_vm1, %v4837_v10, 0.0  ;;  %v4845_v53 = vpop.eup %3948 }
 0x43a   : > { %1673 = vadd.xlane.f32.xlu1 %v1672_v25  ;;  %1403 = vadd.xlane.f32.xlu2 %v1402_v14  ;;  %v1399_v26 = vsel %vm795_vm1, %v4845_v53, 0.0  ;;  %v4849_v47 = vpop.eup %3950 }
 0x43b   : > { %v3953_v36 = vpop.eup %3952  ;;  %v1408_v56 = vsel %vm795_vm1, %v4849_v47, 0.0 }
 0x43c   : > { %v3955_v42 = vpop.eup %3954  ;;  %v1423_v59 = vmul.f32 %v3953_v36, %v4746_v38 }
 0x43d   : > { %v1422_v27 = vmul.f32 %v3955_v42, %v4740_v33 }
 0x43f   : > { %v1430_v58 = vpack.c.bf16 %v1423_v59, %v1422_v27 }
 0x443   : > { %1400 = vadd.xlane.f32.xlu0 %v1399_v26  ;;  %v1388_v26 = vmul.f32 1.442695, %v1373_v44 }
 0x445   : > { %v1439_v6 = vpop.permute.xlu1 %1438 }
 0x446   : > { %1463 = vmatpush.bf16.msra.mxu2 %v1439_v6 }
 0x44a   : > { %1464 = vmatpush.bf16.msra.mxu2 %v1437_v39 }
 0x44b   : > { %1409 = vadd.xlane.f32.xlu0 %v1408_v56 }
 0x44e   : > { %1465 = vmatpush.bf16.msra.mxu2 %v1435_v28 }
 0x451   : > { %3448 = vmatmul.msk.bf16.vlgmr.msra.gmra.mxu2 %vm795_vm1, %v1430_v58 }
 0x453   : > { %1713 = vrot.lane.b32.xlu1 %v4503_v35, %s4116_s19 }
 0x460   : > { %v1632_v33 = vpop.xlane.xlu0 %1631 }
 0x461   : > { %v1648_v62 = vsub.f32 %v4782_v40, %v1632_v33 }
 0x463   : > { %v1659_v60 = vmul.f32 1.442695, %v1648_v62  ;;  %v3772_v62 = vld [vmem:[%s5796_s3 + $0x20] sm:$0xff] }
 0x468   : > { %v1635_v38 = vpop.xlane.xlu0 %1634 }
 0x469   : > { %v1649_v5 = vsub.f32 %v4786_v50, %v1635_v38  ;;  %v1371_v50 = vsub.f32 %v4663_v24, %v4758_v49  ;;  %v1638_v49 = vpop.xlane.xlu2 %1637 }
 0x46a   : > { %v1650_v28 = vsub.f32 %v4796_v0, %v1638_v49  ;;  %v1158_v58 = vpop.f32.mrf.mxu3 }
 0x46b   : > { %v1661_v45 = vmul.f32 1.442695, %v1649_v5  ;;  %v1384_v24 = vmul.f32 1.442695, %v1371_v50  ;;  %v3773_v5 = vld [vmem:[%s5796_s3 + $0x28] sm:$0xff] }
 0x46c   : > { %v1663_v17 = vmul.f32 1.442695, %v1650_v28 }
 0x46d   : > { %3956 = vpow2.f32 %v1661_v45 }
 0x470   : > { %v1629_v35 = vpop.xlane.xlu1 %1628  ;;  %v1641_v30 = vpop.xlane.xlu0 %1640 }
 0x471   : > { %v1647_v1 = vsub.f32 %v4776_v57, %v1629_v35  ;;  %v1651_v48 = vsub.f32 %v4805_v21, %v1641_v30  ;;  %v1398_v38 = vpop.xlane.xlu2 %1397 }
 0x472   : > { %v1160_v2 = vpop.f32.mrf.mxu3 }
 0x473   : > { %v1657_v51 = vmul.f32 1.442695, %v1647_v1  ;;  %v1665_v46 = vmul.f32 1.442695, %v1651_v48  ;;  %v1143_v12 = vpop.f32.mrf.mxu2  ;;  %v4870_v3 = vpop.eup %3956  ;;  %v1166_v33 = vpack.c.bf16 %v1160_v2, %v1158_v58  ;;  %v935_v48 = vpack.c.bf16 %v4726_v43, %v4720_v9 }
 0x474   : > { %v1681_v34 = vsel %vm795_vm1, %v4870_v3, 0.0 }
 0x475   : > { %3958 = vpow2.f32 %v1657_v51 }
 0x476   : > { %3960 = vpow2.f32 %v1665_v46 }
 0x477   : > { %3962 = vpow2.f32 %v1659_v60 }
 0x478   : > { %3964 = vpow2.f32 %v1384_v24  ;;  %v1644_v52 = vpop.xlane.xlu0 %1643 }
 0x479   : > { %3966 = vpow2.f32 %v1663_v17  ;;  %v1652_v36 = vsub.f32 %v4816_v63, %v1644_v52 }
 0x47a   : > { %3968 = vpow2.f32 %v1388_v26 }
 0x47b   : > { %v4872_v15 = vpop.eup %3958  ;;  %v1145_v57 = vpop.f32.mrf.mxu2  ;;  %v1667_v13 = vmul.f32 1.442695, %v1652_v36 }
 0x47c   : > { %v4876_v23 = vpop.eup %3960  ;;  %v1163_v21 = vpack.c.bf16 %v1145_v57, %v1143_v12  ;;  %v1675_v40 = vsel %vm795_vm1, %v4872_v15, 0.0 }
 0x47d   : > { %1676 = vadd.xlane.f32.xlu2 %v1675_v40  ;;  %1682 = vadd.xlane.f32.xlu1 %v1681_v34  ;;  %v1687_v54 = vsel %vm795_vm1, %v4876_v23, 0.0  ;;  %v4885_v16 = vpop.eup %3962  ;;  %3970 = vpow2.f32 %v1667_v13 }
 0x47e   : > { %3428 = vmatmul.msk.bf16.vlgmr.msra.gmra.mxu3 %vm741_vm0, %v1163_v21  ;;  %1688 = vadd.xlane.f32.xlu0 %v1687_v54  ;;  %v1678_v55 = vsel %vm795_vm1, %v4885_v16, 0.0  ;;  %v4890_v7 = vpop.eup %3964  ;;  %3972 = vrcp.f32 %v1398_v38 }
 0x47f   : > { %v1405_v0 = vsel %vm795_vm1, %v4890_v7, 0.0  ;;  %v4897_v6 = vpop.eup %3966  ;;  %1521 = vmatpush.bf16.msra.mxu3 %v3773_v5 }
 0x480   : > { %v1684_v41 = vsel %vm795_vm1, %v4897_v6, 0.0  ;;  %v4902_v42 = vpop.eup %3968 }
 0x481   : > { %v1411_v27 = vsel %vm795_vm1, %v4902_v42, 0.0 }
 0x483   : > { %v1148_v29 = vpop.f32.mrf.mxu2  ;;  %v4907_v37 = vpop.eup %3970  ;;  %1522 = vmatpush.bf16.msra.mxu3 %v3772_v62 }
 0x484   : > { %v1690_v63 = vsel %vm795_vm1, %v4907_v37, 0.0  ;;  %v3973_v1 = vpop.eup %3972 }
 0x485   : > { %1679 = vadd.xlane.f32.xlu2 %v1678_v55  ;;  %v1424_v46 = vmul.f32 %v3973_v1, %v4803_v11  ;;  %v936_v11 = vpack.c.bf16 %v4734_v20, %v4732_v19  ;;  %v3775_v20 = vld [vmem:[%s5796_s3 + $0x38] sm:$0xff] }
 0x486   : > { %1800 = vmatpush.bf16.msrb.mxu2 %v3775_v20 }
 0x48b   : > { %v1150_v25 = vpop.f32.mrf.mxu2  ;;  %v1716_v14 = vpop.permute.xlu0 %1715 }
 0x48c   : > { %v1164_v61 = vpack.c.bf16 %v1150_v25, %v1148_v29  ;;  %1743 = vmatpush.bf16.msrb.mxu1 %v1716_v14 }
 0x48d   : > { %1406 = vadd.xlane.f32.xlu2 %v1405_v0 }
 0x48e   : > { %3429 = vmatmul.msk.bf16.gmra.mxu3 %vm741_vm0, %v1164_v61 }
 0x493   : > { %v1153_v39 = vpop.f32.mrf.mxu2 }
 0x495   : > { %1685 = vadd.xlane.f32.xlu2 %v1684_v41 }
 0x49b   : > { %v1155_v56 = vpop.f32.mrf.mxu2 }
 0x49c   : > { %v1165_v59 = vpack.c.bf16 %v1155_v56, %v1153_v39 }
 0x49d   : > { %1412 = vadd.xlane.f32.xlu2 %v1411_v27 }
 0x49e   : > { %3430 = vmatmul.msk.bf16.gmra.mxu3 %vm741_vm0, %v1165_v59 }
 0x4a5   : > { %1691 = vadd.xlane.f32.xlu2 %v1690_v63  ;;  %v1671_v30 = vpop.xlane.xlu2 %1670 }
 0x4ad   : > { %v1674_v35 = vpop.xlane.xlu1 %1673  ;;  %v1404_v24 = vpop.xlane.xlu2 %1403 }
 0x4ae   : > { %3431 = vmatmul.msk.bf16.gmra.mxu3 %vm741_vm0, %v1166_v33 }
 0x4b6   : > { %v1401_v45 = vpop.xlane.xlu0 %1400 }
 0x4b7   : > { %3974 = vrcp.f32 %v1401_v45 }
 0x4b8   : > { %3976 = vrcp.f32 %v1674_v35 }
 0x4b9   : > { %3978 = vrcp.f32 %v1671_v30 }
 0x4bd   : > { %v3975_v51 = vpop.eup %3974 }
 0x4be   : > { %3442 = vmatmul.msk.bf16.vlgmr.msrb.gmra.mxu3 %vm741_vm0, %v935_v48  ;;  %v1425_v12 = vmul.f32 %v3975_v51, %v4845_v53  ;;  %v3977_v60 = vpop.eup %3976  ;;  %v1410_v36 = vpop.xlane.xlu0 %1409 }
 0x4bf   : > { %v3979_v57 = vpop.eup %3978  ;;  %v1702_v9 = vmul.f32 %v3977_v60, %v4837_v10 }
 0x4c0   : > { %v1431_v50 = vpack.c.bf16 %v1425_v12, %v1424_v46  ;;  %v1701_v43 = vmul.f32 %v3979_v57, %v4829_v32 }
 0x4c2   : > { %3449 = vmatmul.msk.bf16.gmra.mxu2 %vm795_vm1, %v1431_v50  ;;  %v1709_v40 = vpack.c.bf16 %v1702_v9, %v1701_v43 }
 0x4c5   : > { %v1714_v21 = vpop.permute.xlu1 %1713 }
 0x4c6   : > { %1744 = vmatpush.bf16.msrb.mxu1 %v1714_v21 }
 0x4c9   : > { %3468 = vmatmul.msk.bf16.vlgmr.msrb.gmra.mxu1 %vm795_vm1, %v1709_v40 }
 0x4ce   : > { %3443 = vmatmul.msk.bf16.gmra.mxu3 %vm741_vm0, %v936_v11 }
 0x4d4   : > { %v1467_v53 = vpop.f32.mrf.mxu2 }
 0x4dc   : > { %v1469_v34 = vpop.f32.mrf.mxu2 }
 0x4dd   : > { %v1487_v54 = vpack.c.bf16 %v1469_v34, %v1467_v53 }
 0x4df   : > { %3460 = vmatmul.msk.bf16.vlgmr.msra.gmra.mxu3 %vm741_vm0, %v1487_v54 }
 0x4f0   : > { %v1677_v49 = vpop.xlane.xlu2 %1676  ;;  %v1683_v44 = vpop.xlane.xlu1 %1682 }
 0x4f1   : > { %3980 = vrcp.f32 %v1677_v49 }
 0x4f7   : > { %v3981_v32 = vpop.eup %3980 }
 0x4f8   : > { %v1680_v10 = vpop.xlane.xlu2 %1679  ;;  %v1703_v52 = vmul.f32 %v3981_v32, %v4872_v15 }
 0x4f9   : > { %3982 = vrcp.f32 %v1680_v10 }
 0x4fa   : > { %3984 = vrcp.f32 %v1404_v24 }
 0x4ff   : > { %v3983_v28 = vpop.eup %3982 }
 0x500   : > { %v1704_v29 = vmul.f32 %v3983_v28, %v4885_v16  ;;  %v1407_v19 = vpop.xlane.xlu2 %1406  ;;  %v3985_v25 = vpop.eup %3984 }
 0x501   : > { %v4936_v55 = vpop.f32.mrf.mxu3  ;;  %3986 = vrcp.f32 %v1407_v19  ;;  %v1426_v15 = vmul.f32 %v3985_v25, %v4835_v4 }
 0x502   : > { %v1710_v17 = vpack.c.bf16 %v1704_v29, %v1703_v52  ;;  %3988 = vrcp.f32 %v1683_v44 }
 0x504   : > { %3469 = vmatmul.msk.bf16.gmra.mxu1 %vm795_vm1, %v1710_v17 }
 0x507   : > { %v3987_v14 = vpop.eup %3986 }
 0x508   : > { %v1686_v61 = vpop.xlane.xlu2 %1685  ;;  %v1427_v16 = vmul.f32 %v3987_v14, %v4890_v7  ;;  %v3989_v39 = vpop.eup %3988 }
 0x509   : > { %v4941_v0 = vpop.f32.mrf.mxu3  ;;  %3990 = vrcp.f32 %v1686_v61  ;;  %v1705_v13 = vmul.f32 %v3989_v39, %v4870_v3  ;;  %v1689_v7 = vpop.xlane.xlu0 %1688  ;;  %v3774_v3 = vld [vmem:[%s5796_s3 + $0x30] sm:$0xff]  ;;  %v1254_v61 = vadd.f32 %v4737_v31, %v4936_v55  ;;  %v4098_v39 = vld [vmem:[%s4304_s30] sm:$0xff] }
 0x50a   : > { %v1432_v26 = vpack.c.bf16 %v1427_v16, %v1426_v15  ;;  %3992 = vrcp.f32 %v1410_v36  ;;  %1801 = vmatpush.bf16.msrb.mxu2 %v3774_v3  ;;  %v4984_v36 = vld [vmem:[%s5797_s4] ss:$0 sm:$0xff]  ;;  %v4100_v3 = vld [vmem:[%s4304_s30 + $0x10] sm:$0xff] }
 0x50c   : > { %3450 = vmatmul.msk.bf16.gmra.mxu2 %vm795_vm1, %v1432_v26 }
 0x50f   : > { %v3991_v41 = vpop.eup %3990 }
 0x510   : > { %v1706_v56 = vmul.f32 %v3991_v41, %v4897_v6  ;;  %v1413_v59 = vpop.xlane.xlu2 %1412  ;;  %v3993_v58 = vpop.eup %3992 }
 0x511   : > { %v4946_v27 = vpop.f32.mrf.mxu3  ;;  %3994 = vrcp.f32 %v1413_v59  ;;  %v1428_v33 = vmul.f32 %v3993_v58, %v4849_v47 }
 0x512   : > { %v1711_v4 = vpack.c.bf16 %v1706_v56, %v1705_v13  ;;  %3996 = vrcp.f32 %v1689_v7  ;;  %v1256_v56 = vadd.f32 %v4744_v18, %v4941_v0  ;;  %v4099_v7 = vld [vmem:[%s4304_s30 + $0x8] sm:$0xff]  ;;  %v1259_v18 = vadd.f32 %v4750_v22, %v4946_v27 }
 0x514   : > { %3470 = vmatmul.msk.bf16.gmra.mxu1 %vm795_vm1, %v1711_v4 }
 0x517   : > { %v3995_v63 = vpop.eup %3994 }
 0x518   : > { %v1692_v2 = vpop.xlane.xlu2 %1691  ;;  %v1429_v38 = vmul.f32 %v3995_v63, %v4902_v42  ;;  %v3997_v45 = vpop.eup %3996 }
 0x519   : > { %v4951_v5 = vpop.f32.mrf.mxu3  ;;  %3998 = vrcp.f32 %v1692_v2  ;;  %v1707_v30 = vmul.f32 %v3997_v45, %v4876_v23 }
 0x51a   : > { %v1433_v6 = vpack.c.bf16 %v1429_v38, %v1428_v33 }
 0x51c   : > { %3451 = vmatmul.msk.bf16.gmra.mxu2 %vm795_vm1, %v1433_v6 }
 0x51f   : > { %v3999_v35 = vpop.eup %3998 }
 0x520   : > { %v1708_v1 = vmul.f32 %v3999_v35, %v4907_v37  ;;  %v1261_v35 = vadd.f32 %v4752_v8, %v4951_v5  ;;  %v4102_v8 = vld [vmem:[%s4304_s30 + $0x20] sm:$0xff] }
 0x521   : > { %v1210_v47 = vpop.f32.mrf.mxu3 }
 0x522   : > { %v1712_v48 = vpack.c.bf16 %v1708_v1, %v1707_v30 }
 0x524   : > { %3471 = vmatmul.msk.bf16.gmra.mxu1 %vm795_vm1, %v1712_v48 }
 0x529   : > { %v4960_v42 = vpop.f32.mrf.mxu3 }
 0x531   : > { %v1215_v62 = vpop.f32.mrf.mxu3 }
 0x539   : > { %v4962_v51 = vpop.f32.mrf.mxu3 }
 0x541   : > { %v1263_v46 = vpop.f32.mrf.mxu3 }
 0x542   : > { %v4964_v12 = vadd.f32 %v1263_v46, %v1210_v47 }
 0x545   : > { %v1472_v60 = vpop.f32.mrf.mxu2 }
 0x546   : > { %v1746_v50 = vpop.f32.mrf.mxu1 }
 0x549   : > { %v4966_v57 = vpop.f32.mrf.mxu3 }
 0x54d   : > { %v1474_v9 = vpop.f32.mrf.mxu2 }
 0x54e   : > { %v1488_v23 = vpack.c.bf16 %v1474_v9, %v1472_v60  ;;  %v1748_v43 = vpop.f32.mrf.mxu1 }
 0x54f   : > { %v1766_v37 = vpack.c.bf16 %v1748_v43, %v1746_v50 }
 0x550   : > { %3461 = vmatmul.msk.bf16.gmra.mxu3 %vm741_vm0, %v1488_v23  ;;  %v1266_v23 = vadd.f32 %v4966_v57, %v4960_v42  ;;  %v4117_v42 = vmov 128.0  }
 0x551   : > { %v1268_v21 = vpop.f32.mrf.mxu3  ;;  %3480 = vmatmul.msk.bf16.vlgmr.msrb.gmra.mxu2 %vm741_vm0, %v1766_v37  ;;  %4000 = vrcp.f32 %v4117_v42 }
 0x552   : > { %v4970_v40 = vadd.f32 %v1268_v21, %v1215_v62  ;;  %v4101_v62 = vld [vmem:[%s4304_s30 + $0x18] sm:$0xff] }
 0x559   : > { %v4977_v25 = vpop.f32.mrf.mxu3 }
 0x562   : > { %v1524_v14 = vpop.f32.mrf.mxu3 }
 0x563   : > { %v1544_v15 = vadd.f32 %v1524_v14, %v1254_v61 }
 0x56a   : > { %v1526_v13 = vpop.f32.mrf.mxu3 }
 0x56b   : > { %v1545_v4 = vadd.f32 %v1526_v13, %v1256_v56 }
 0x581   : > { %v1751_v11 = vpop.f32.mrf.mxu1 }
 0x589   : > { %v1753_v53 = vpop.f32.mrf.mxu1 }
 0x58a   : > { %v1767_v34 = vpack.c.bf16 %v1753_v53, %v1751_v11 }
 0x58c   : > { %3481 = vmatmul.msk.bf16.gmra.mxu2 %vm741_vm0, %v1767_v34  ;;  %v4103_v34 = vld [vmem:[%s4304_s30 + $0x28] sm:$0xff] }
 0x58f   : > { %v1477_v54 = vpop.f32.mrf.mxu2 }
 0x591   : > { %v1756_v24 = vpop.f32.mrf.mxu1 }
 0x597   : > { %v1479_v49 = vpop.f32.mrf.mxu2 }
 0x598   : > { %v1489_v10 = vpack.c.bf16 %v1479_v49, %v1477_v54 }
 0x599   : > { %v1758_v32 = vpop.f32.mrf.mxu1 }
 0x59a   : > { %v1768_v28 = vpack.c.bf16 %v1758_v32, %v1756_v24  ;;  %3462 = vmatmul.msk.bf16.gmra.mxu3 %vm741_vm0, %v1489_v10 }
 0x59c   : > { %3482 = vmatmul.msk.bf16.gmra.mxu2 %vm741_vm0, %v1768_v28  ;;  %v4104_v28 = vld [vmem:[%s4304_s30 + $0x30] sm:$0xff] }
 0x59f   : > { %v1482_v52 = vpop.f32.mrf.mxu2 }
 0x5a1   : > { %v1761_v29 = vpop.f32.mrf.mxu1 }
 0x5a7   : > { %v1484_v19 = vpop.f32.mrf.mxu2 }
 0x5a8   : > { %v1490_v20 = vpack.c.bf16 %v1484_v19, %v1482_v52 }
 0x5a9   : > { %v1763_v17 = vpop.f32.mrf.mxu1 }
 0x5aa   : > { %v1769_v44 = vpack.c.bf16 %v1763_v17, %v1761_v29  ;;  %3463 = vmatmul.msk.bf16.gmra.mxu3 %vm741_vm0, %v1490_v20  ;;  %v4001_v29 = vpop.eup %4000 }
 0x5ab   : > { %v1870_v19 = vmul.f32 128.0, %v4001_v29  ;;  %vm1874_vm2 = vweird.f32 %v4001_v29 }
 0x5ac   : > { %3483 = vmatmul.msk.bf16.gmra.mxu2 %vm741_vm0, %v1769_v44 }
 0x5ad   : > { %v1871_v20 = vsub.f32 1.0, %v1870_v19 }
 0x5af   : > { %v1872_v17 = vmul.f32 %v4001_v29, %v1871_v20  ;;  %v3566_v20 = vld [vmem:[%s5800_s7 + $0xa0] sm:$0xf] }
 0x5b1   : > { %v1873_v44 = vadd.f32 %v4001_v29, %v1872_v17  ;;  %v3798_v17 = vld [vmem:[%s5800_s7 + $0xac] sm:$0xf0] }
 0x5b3   : > { %v5019_v61 = vsel %vm1874_vm2, %v4001_v29, %v1873_v44  ;;  %v3592_v29 = vld [vmem:[%s5800_s7 + $0xd8] sm:$0xf0]  ;;  %v3796_v44 = vld [vmem:[%s5800_s7 + $0xa4] sm:$0xf] }
 0x5d3   : > { %v1529_v2 = vpop.f32.mrf.mxu3 }
 0x5d4   : > { %v1803_v16 = vpop.f32.mrf.mxu2  ;;  %v1546_v0 = vadd.f32 %v1529_v2, %v1259_v18 }
 0x5d5   : > { %v1823_v26 = vadd.f32 %v1803_v16, %v1544_v15 }
 0x5d7   : > { %v1831_v41 = vadd.f32 %v4098_v39, %v1823_v26 }
 0x5d9   : > { %v4990_v59 = vadd.f32 %v4984_v36, %v1831_v41 }
 0x5db   : > { %1853 = vadd.xlane.f32.xlu0 %v4990_v59  ;;  %v1531_v45 = vpop.f32.mrf.mxu3 }
 0x5dc   : > { %v1805_v31 = vpop.f32.mrf.mxu2  ;;  %v1547_v1 = vadd.f32 %v1531_v45, %v1261_v35 }
 0x5dd   : > { %v1824_v55 = vadd.f32 %v1805_v31, %v1545_v4  ;;  %v4105_v31 = vld [vmem:[%s4304_s30 + $0x38] sm:$0xff] }
 0x5df   : > { %v1832_v58 = vadd.f32 %v4099_v7, %v1824_v55 }
 0x5e1   : > { %v4995_v63 = vadd.f32 %v4984_v36, %v1832_v58 }
 0x5e3   : > { %1855 = vadd.xlane.f32.xlu2 %v4995_v63 }
 0x60f   : > { %v1808_v33 = vpop.f32.mrf.mxu2 }
 0x610   : > { %v1825_v38 = vadd.f32 %v1808_v33, %v1546_v0 }
 0x612   : > { %v1833_v6 = vadd.f32 %v4100_v3, %v1825_v38 }
 0x614   : > { %v5004_v30 = vadd.f32 %v4984_v36, %v1833_v6 }
 0x616   : > { %1857 = vadd.xlane.f32.xlu0 %v5004_v30 }
 0x617   : > { %v1810_v47 = vpop.f32.mrf.mxu2 }
 0x618   : > { %v1826_v48 = vadd.f32 %v1810_v47, %v1547_v1 }
 0x61a   : > { %v1834_v22 = vadd.f32 %v4101_v62, %v1826_v48 }
 0x61c   : > { %v1846_v27 = vadd.f32 %v4984_v36, %v1834_v22 }
 0x61d   : > { %v1534_v46 = vpop.f32.mrf.mxu3 }
 0x61e   : > { %v1548_v60 = vadd.f32 %v1534_v46, %v4964_v12  ;;  %1859 = vadd.xlane.f32.xlu2 %v1846_v27 }
 0x61f   : > { %v1813_v50 = vpop.f32.mrf.mxu2 }
 0x620   : > { %v1827_v9 = vadd.f32 %v1813_v50, %v1548_v60  ;;  %v3598_v60 = vld [vmem:[%s5800_s7 + $0xe0] sm:$0xf]  ;;  %v3806_v50 = vld [vmem:[%s5800_s7 + $0xec] sm:$0xf0] }
 0x622   : > { %v1835_v5 = vadd.f32 %v4102_v8, %v1827_v9  ;;  %v3804_v9 = vld [vmem:[%s5800_s7 + $0xe4] sm:$0xf]  ;;  %v3599_v8 = vor.u32 %v3806_v50, %v3598_v60 }
 0x624   : > { %v1847_v43 = vadd.f32 %v4984_v36, %v1835_v5  ;;  %v3600_v5 = vld [vmem:[%s5800_s7 + $0xf0] sm:$0xf0]  ;;  %2248 = vmatpush.bf16.msrb.mxu3 %v3599_v8  ;;  %v3544_v8 = vld [vmem:[%s5800_s7 + $0x78] sm:$0xf0] }
 0x625   : > { %v1536_v37 = vpop.f32.mrf.mxu3 }
 0x626   : > { %v1549_v21 = vadd.f32 %v1536_v37, %v1266_v23  ;;  %1861 = vadd.xlane.f32.xlu1 %v1847_v43  ;;  %v3606_v23 = vld [vmem:[%s5800_s7 + $0xe8] sm:$0xf]  ;;  %v3603_v37 = vor.u32 %v3804_v9, %v3600_v5  ;;  %v3789_v9 = vld [vmem:[%s5800_s7 + $0x6c] sm:$0xf] }
 0x627   : > { %v1815_v11 = vpop.f32.mrf.mxu2  ;;  %v3547_v5 = vor.u32 %v3789_v9, %v3544_v8 }
 0x628   : > { %v1828_v53 = vadd.f32 %v1815_v11, %v1549_v21  ;;  %v3805_v11 = vld [vmem:[%s5800_s7 + $0xec] sm:$0xf]  ;;  %2277 = vmatpush.bf16.msrb.mxu0 %v3603_v37  ;;  %v3784_v37 = vld [vmem:[%s5800_s7 + $0x44] sm:$0xf] }
 0x62a   : > { %v1836_v54 = vadd.f32 %v4103_v34, %v1828_v53  ;;  %v3608_v53 = vld [vmem:[%s5800_s7 + $0xf8] sm:$0xf0] }
 0x62b   : > { %v3611_v34 = vor.u32 %v3805_v11, %v3608_v53  ;;  %v3520_v11 = vld [vmem:[%s5800_s7 + $0x50] sm:$0xf0]  ;;  %v3526_v53 = vld [vmem:[%s5800_s7 + $0x48] sm:$0xf] }
 0x62c   : > { %v1848_v12 = vadd.f32 %v4984_v36, %v1836_v54  ;;  %v3582_v54 = vld [vmem:[%s5800_s7 + $0xc0] sm:$0xf] }
 0x62d   : > { %v1539_v24 = vpop.f32.mrf.mxu3  ;;  %2335 = vmatpush.bf16.msra.mxu2 %v3611_v34  ;;  %v3787_v34 = vld [vmem:[%s5800_s7 + $0x54] sm:$0xf0] }
 0x62e   : > { %v1550_v49 = vadd.f32 %v1539_v24, %v4970_v40  ;;  %1863 = vadd.xlane.f32.xlu0 %v1848_v12  ;;  %v1271_v40 = vadd.f32 %v4977_v25, %v4962_v51  ;;  %v3800_v24 = vld [vmem:[%s5800_s7 + $0xc4] sm:$0xf] }
 0x62f   : > { %v1818_v10 = vpop.f32.mrf.mxu2 }
 0x630   : > { %v1829_v32 = vadd.f32 %v1818_v10, %v1550_v49  ;;  %v3584_v10 = vld [vmem:[%s5800_s7 + $0xd0] sm:$0xf0] }
 0x632   : > { %v1837_v52 = vadd.f32 %v4104_v28, %v1829_v32  ;;  %v3590_v32 = vld [vmem:[%s5800_s7 + $0xc8] sm:$0xf]  ;;  %v3803_v28 = vld [vmem:[%s5800_s7 + $0xd4] sm:$0xf0] }
 0x633   : > { %v3591_v42 = vor.u32 %v3803_v28, %v3590_v32  ;;  %v3502_v32 = vld [vmem:[%s5800_s7 + $0x20] sm:$0xf]  ;;  %v3782_v28 = vld [vmem:[%s5800_s7 + $0x2c] sm:$0xf0] }
 0x634   : > { %v1849_v57 = vadd.f32 %v4984_v36, %v1837_v52  ;;  %v3587_v52 = vor.u32 %v3800_v24, %v3584_v10  ;;  %v3785_v24 = vld [vmem:[%s5800_s7 + $0x4c] sm:$0xf] }
 0x635   : > { %v1541_v14 = vpop.f32.mrf.mxu3 }
 0x636   : > { %1865 = vadd.xlane.f32.xlu0 %v1849_v57  ;;  %v1551_v16 = vadd.f32 %v1541_v14, %v1271_v40  ;;  %2278 = vmatpush.bf16.msrb.mxu0 %v3587_v52  ;;  %v3567_v14 = vor.u32 %v3798_v17, %v3566_v20  ;;  %v3568_v40 = vld [vmem:[%s5800_s7 + $0xb0] sm:$0xf0]  ;;  %v3780_v52 = vld [vmem:[%s5800_s7 + $0x24] sm:$0xf]  ;;  %v3783_v20 = vld [vmem:[%s5800_s7 + $0x34] sm:$0xf0] }
 0x637   : > { %v1820_v39 = vpop.f32.mrf.mxu2 }
 0x638   : > { %v1830_v13 = vadd.f32 %v1820_v39, %v1551_v16  ;;  %v3799_v16 = vld [vmem:[%s5800_s7 + $0xb4] sm:$0xf0] }
 0x63a   : > { %v1838_v55 = vadd.f32 %v4105_v31, %v1830_v13  ;;  %v3797_v13 = vld [vmem:[%s5800_s7 + $0xac] sm:$0xf]  ;;  %v3550_v31 = vld [vmem:[%s5800_s7 + $0x80] sm:$0xf] }
 0x63c   : > { %v5037_v58 = vadd.f32 %v4984_v36, %v1838_v55  ;;  %v3794_v55 = vld [vmem:[%s5800_s7 + $0x8c] sm:$0xf0] }
 0x64e   : > { %v1854_v15 = vpop.xlane.xlu0 %1853 }
 0x64f   : > { %v1876_v26 = vmul.f32 %v5019_v61, %v1854_v15  ;;  %v3574_v15 = vld [vmem:[%s5800_s7 + $0xa8] sm:$0xf] }
 0x650   : > { %v3575_v39 = vor.u32 %v3799_v16, %v3574_v15  ;;  %v3512_v15 = vld [vmem:[%s5800_s7 + $0x38] sm:$0xf0] }
 0x651   : > { %v5025_v41 = vsub.f32 %v4990_v59, %v1876_v26  ;;  %v3571_v26 = vor.u32 %v3796_v44, %v3568_v40  ;;  %v3781_v40 = vld [vmem:[%s5800_s7 + $0x2c] sm:$0xf] }
 0x652   : > { %v3515_v16 = vor.u32 %v3781_v40, %v3512_v15 }
 0x653   : > { %v1892_v56 = vmul.f32 %v5025_v41, %v5025_v41  ;;  %2279 = vmatpush.bf16.msrb.mxu0 %v3571_v26 }
 0x655   : > { %1900 = vadd.xlane.f32.xlu2 %v1892_v56  ;;  %v3576_v56 = vld [vmem:[%s5800_s7 + $0xb8] sm:$0xf0] }
 0x656   : > { %v1856_v4 = vpop.xlane.xlu2 %1855 }
 0x657   : > { %v1877_v7 = vmul.f32 %v5019_v61, %v1856_v4  ;;  %v3579_v4 = vor.u32 %v3797_v13, %v3576_v56  ;;  %v3778_v13 = vld [vmem:[%s5800_s7 + $0xc] sm:$0xf0] }
 0x659   : > { %v5032_v51 = vsub.f32 %v4995_v63, %v1877_v7  ;;  %v3792_v7 = vld [vmem:[%s5800_s7 + $0x84] sm:$0xf] }
 0x65b   : > { %v1893_v25 = vmul.f32 %v5032_v51, %v5032_v51 }
 0x65d   : > { %1902 = vadd.xlane.f32.xlu1 %v1893_v25  ;;  %1867 = vadd.xlane.f32.xlu2 %v5037_v58  ;;  %v3551_v25 = vor.u32 %v3794_v55, %v3550_v31  ;;  %v3488_v31 = vld [vmem:[%s5800_s7 + $0x10] sm:$0xf0]  ;;  %v3494_v55 = vld [vmem:[%s5800_s7 + $0x8] sm:$0xf] }
 0x689   : > { %v1858_v59 = vpop.xlane.xlu0 %1857 }
 0x68a   : > { %v1878_v2 = vmul.f32 %v5019_v61, %v1858_v59  ;;  %v3552_v59 = vld [vmem:[%s5800_s7 + $0x90] sm:$0xf0] }
 0x68c   : > { %v5042_v18 = vsub.f32 %v5004_v30, %v1878_v2  ;;  %v3558_v2 = vld [vmem:[%s5800_s7 + $0x88] sm:$0xf] }
 0x68e   : > { %v1894_v0 = vmul.f32 %v5042_v18, %v5042_v18 }
 0x690   : > { %1904 = vadd.xlane.f32.xlu1 %v1894_v0  ;;  %v3795_v0 = vld [vmem:[%s5800_s7 + $0x94] sm:$0xf0] }
 0x691   : > { %v1860_v63 = vpop.xlane.xlu2 %1859 }
 0x692   : > { %v1879_v33 = vmul.f32 %v5019_v61, %v1860_v63  ;;  %v3555_v63 = vor.u32 %v3792_v7, %v3552_v59  ;;  %v3777_v59 = vld [vmem:[%s5800_s7 + $0xc] sm:$0xf] }
 0x694   : > { %v5047_v38 = vsub.f32 %v1846_v27, %v1879_v33  ;;  %v3559_v33 = vor.u32 %v3795_v0, %v3558_v2  ;;  %2280 = vmatpush.bf16.msrb.mxu0 %v3555_v63  ;;  %v3496_v2 = vld [vmem:[%s5800_s7 + $0x18] sm:$0xf0] }
 0x695   : > { %v3499_v63 = vor.u32 %v3777_v59, %v3496_v2 }
 0x696   : > { %v1895_v36 = vmul.f32 %v5047_v38, %v5047_v38 }
 0x698   : > { %1906 = vadd.xlane.f32.xlu0 %v1895_v36  ;;  %v3793_v36 = vld [vmem:[%s5800_s7 + $0x8c] sm:$0xf] }
 0x699   : > { %v1862_v3 = vpop.xlane.xlu1 %1861 }
 0x69a   : > { %v1880_v6 = vmul.f32 %v5019_v61, %v1862_v3  ;;  %v3560_v3 = vld [vmem:[%s5800_s7 + $0x98] sm:$0xf0] }
 0x69c   : > { %v5052_v45 = vsub.f32 %v1847_v43, %v1880_v6  ;;  %v3807_v43 = vld [vmem:[%s5800_s7 + $0xf4] sm:$0xf0]  ;;  %v3563_v6 = vor.u32 %v3793_v36, %v3560_v3 }
 0x69d   : > { %v3607_v21 = vor.u32 %v3807_v43, %v3606_v23  ;;  %v3518_v23 = vld [vmem:[%s5800_s7 + $0x40] sm:$0xf]  ;;  %v3786_v43 = vld [vmem:[%s5800_s7 + $0x4c] sm:$0xf0] }
 0x69e   : > { %v1896_v35 = vmul.f32 %v5052_v45, %v5052_v45 }
 0x69f   : > { %2306 = vmatpush.bf16.msra.mxu1 %v3607_v21  ;;  %v3519_v21 = vor.u32 %v3786_v43, %v3518_v23 }
 0x6a0   : > { %1908 = vadd.xlane.f32.xlu2 %v1896_v35  ;;  %v3534_v35 = vld [vmem:[%s5800_s7 + $0x60] sm:$0xf] }
 0x6a1   : > { %v1864_v30 = vpop.xlane.xlu0 %1863 }
 0x6a2   : > { %v1881_v1 = vmul.f32 %v5019_v61, %v1864_v30  ;;  %v3790_v30 = vld [vmem:[%s5800_s7 + $0x6c] sm:$0xf0] }
 0x6a3   : > { %2307 = vmatpush.bf16.msra.mxu1 %v3591_v42 }
 0x6a4   : > { %v5057_v47 = vsub.f32 %v1848_v12, %v1881_v1  ;;  %v3802_v12 = vld [vmem:[%s5800_s7 + $0xcc] sm:$0xf0]  ;;  %v3788_v1 = vld [vmem:[%s5800_s7 + $0x64] sm:$0xf] }
 0x6a5   : > { %v3583_v49 = vor.u32 %v3802_v12, %v3582_v54  ;;  %v3523_v54 = vor.u32 %v3784_v37, %v3520_v11  ;;  %v3527_v12 = vor.u32 %v3787_v34, %v3526_v53  ;;  %v5269_v37 = vld [vmem:[%s5798_s5] ss:$0 sm:$0xff] }
 0x6a6   : > { %v1897_v48 = vmul.f32 %v5057_v47, %v5057_v47  ;;  %v5275_v34 = vld [vmem:[%s5799_s6] ss:$0 sm:$0xff] }
 0x6a7   : > { %2249 = vmatpush.bf16.msrb.mxu3 %v3583_v49  ;;  %2308 = vmatpush.bf16.msra.mxu1 %v3575_v39  ;;  %v3528_v49 = vld [vmem:[%s5800_s7 + $0x58] sm:$0xf0]  ;;  %v3486_v39 = vld [vmem:[%s5800_s7] sm:$0xf] }
 0x6a8   : > { %1910 = vadd.xlane.f32.xlu1 %v1897_v48  ;;  %v3535_v48 = vor.u32 %v3790_v30, %v3534_v35  ;;  %v3531_v10 = vor.u32 %v3785_v24, %v3528_v49  ;;  %v3487_v56 = vor.u32 %v3778_v13, %v3486_v39 }
 0x6a9   : > { %v1866_v62 = vpop.xlane.xlu0 %1865 }
 0x6aa   : > { %v1882_v22 = vmul.f32 %v5019_v61, %v1866_v62  ;;  %v3536_v62 = vld [vmem:[%s5800_s7 + $0x70] sm:$0xf0] }
 0x6ab   : > { %2250 = vmatpush.bf16.msrb.mxu3 %v3567_v14  ;;  %2309 = vmatpush.bf16.msra.mxu1 %v3559_v33  ;;  %v3539_v60 = vor.u32 %v3788_v1, %v3536_v62 }
 0x6ac   : > { %v5062_v27 = vsub.f32 %v1849_v57, %v1882_v22  ;;  %v3801_v57 = vld [vmem:[%s5800_s7 + $0xcc] sm:$0xf]  ;;  %v3542_v22 = vld [vmem:[%s5800_s7 + $0x68] sm:$0xf] }
 0x6ad   : > { %v3595_v19 = vor.u32 %v3801_v57, %v3592_v29  ;;  %2281 = vmatpush.bf16.msrb.mxu0 %v3539_v60  ;;  %v3503_v57 = vor.u32 %v3782_v28, %v3502_v32  ;;  %v3504_v29 = vld [vmem:[%s5800_s7 + $0x30] sm:$0xf0] }
 0x6ae   : > { %v1898_v46 = vmul.f32 %v5062_v27, %v5062_v27  ;;  %v3507_v44 = vor.u32 %v3780_v52, %v3504_v29 }
 0x6af   : > { %2336 = vmatpush.bf16.msra.mxu2 %v3595_v19  ;;  %2251 = vmatpush.bf16.msrb.mxu3 %v3551_v25  ;;  %v3510_v19 = vld [vmem:[%s5800_s7 + $0x28] sm:$0xf]  ;;  %v3779_v25 = vld [vmem:[%s5800_s7 + $0x14] sm:$0xf0] }
 0x6b0   : > { %1912 = vadd.xlane.f32.xlu0 %v1898_v46  ;;  %v3791_v46 = vld [vmem:[%s5800_s7 + $0x74] sm:$0xf0]  ;;  %v3511_v14 = vor.u32 %v3783_v20, %v3510_v19  ;;  %v3495_v0 = vor.u32 %v3779_v25, %v3494_v55 }
 0x6b1   : > { %v3543_v50 = vor.u32 %v3791_v46, %v3542_v22  ;;  %2282 = vmatpush.bf16.msrb.mxu0 %v3523_v54 }
 0x6b3   : > { %2337 = vmatpush.bf16.msra.mxu2 %v3579_v4  ;;  %2252 = vmatpush.bf16.msrb.mxu3 %v3535_v48  ;;  %v3776_v4 = vld [vmem:[%s5800_s7 + $0x4] sm:$0xf] }
 0x6b4   : > { %2310 = vmatpush.bf16.msra.mxu1 %v3543_v50  ;;  %v3491_v7 = vor.u32 %v3776_v4, %v3488_v31 }
 0x6b5   : > { %2283 = vmatpush.bf16.msrb.mxu0 %v3507_v44 }
 0x6b7   : > { %2338 = vmatpush.bf16.msra.mxu2 %v3563_v6  ;;  %2253 = vmatpush.bf16.msrb.mxu3 %v3519_v21 }
 0x6b8   : > { %2311 = vmatpush.bf16.msra.mxu1 %v3527_v12 }
 0x6b9   : > { %2284 = vmatpush.bf16.msrb.mxu0 %v3491_v7 }
 0x6bb   : > { %2339 = vmatpush.bf16.msra.mxu2 %v3547_v5  ;;  %2254 = vmatpush.bf16.msrb.mxu3 %v3503_v57 }
 0x6bc   : > { %2312 = vmatpush.bf16.msra.mxu1 %v3511_v14 }
 0x6bf   : > { %2340 = vmatpush.bf16.msra.mxu2 %v3531_v10  ;;  %2255 = vmatpush.bf16.msrb.mxu3 %v3487_v56 }
 0x6c0   : > { %2313 = vmatpush.bf16.msra.mxu1 %v3495_v0 }
 0x6c3   : > { %2341 = vmatpush.bf16.msra.mxu2 %v3515_v16 }
 0x6c7   : > { %2342 = vmatpush.bf16.msra.mxu2 %v3499_v63 }
 0x6c8   : > { %v1901_v42 = vpop.xlane.xlu2 %1900 }
 0x6c9   : > { %v1916_v17 = vmul.f32 %v1901_v42, %v5019_v61 }
 0x6cb   : > { %v1924_v26 = vadd.f32 1e-05, %v1916_v17 }
 0x6cd   : > { %4002 = vrsqrt.f32 %v1924_v26  ;;  %vm1938_vm4 = vweird.f32 %v1924_v26 }
 0x6d0   : > { %v1903_v33 = vpop.xlane.xlu1 %1902  ;;  %v1868_v36 = vpop.xlane.xlu2 %1867 }
 0x6d1   : > { %v1917_v3 = vmul.f32 %v1903_v33, %v5019_v61  ;;  %v1883_v6 = vmul.f32 %v5019_v61, %v1868_v36 }
 0x6d3   : > { %v4003_v35 = vpop.eup %4002  ;;  %v1925_v30 = vadd.f32 1e-05, %v1917_v3  ;;  %v5262_v1 = vsub.f32 %v5037_v58, %v1883_v6 }
 0x6d4   : > { %v1933_v48 = vmul.f32 %v4003_v35, %v1924_v26  ;;  %vm1939_vm3 = vweird.f32 %v4003_v35 }
 0x6d5   : > { %4004 = vrsqrt.f32 %v1925_v30  ;;  %v1899_v62 = vmul.f32 %v5262_v1, %v5262_v1  ;;  %vm1940_vm5 = vmor %vm1938_vm4, %vm1939_vm3  ;;  %vm1948_vm7 = vweird.f32 %v1925_v30 }
 0x6d6   : > { %v1934_v22 = vmul.f32 %v4003_v35, %v1933_v48 }
 0x6d7   : > { %1914 = vadd.xlane.f32.xlu2 %v1899_v62 }
 0x6d8   : > { %v1935_v46 = vmul.f32 0.5, %v1934_v22 }
 0x6da   : > { %v1936_v60 = vsub.f32 1.5, %v1935_v46 }
 0x6db   : > { %v4005_v50 = vpop.eup %4004 }
 0x6dc   : > { %v1937_v9 = vmul.f32 %v4003_v35, %v1936_v60  ;;  %v1943_v8 = vmul.f32 %v4005_v50, %v1925_v30  ;;  %vm1949_vm6 = vweird.f32 %v4005_v50 }
 0x6dd   : > { %vm1950_vm8 = vmor %vm1948_vm7, %vm1949_vm6 }
 0x6de   : > { %v1944_v5 = vmul.f32 %v4005_v50, %v1943_v8  ;;  %v1941_v23 = vsel %vm1940_vm5, %v4003_v35, %v1937_v9 }
 0x6df   : > { %v2012_v21 = vmul.f32 %v1941_v23, %v5025_v41 }
 0x6e0   : > { %v1945_v43 = vmul.f32 0.5, %v1944_v5 }
 0x6e1   : > { %v2023_v54 = vmul.f32 %v5269_v37, %v2012_v21 }
 0x6e2   : > { %v1946_v58 = vsub.f32 1.5, %v1945_v43 }
 0x6e3   : > { %v5281_v49 = vadd.f32 %v5275_v34, %v2023_v54 }
 0x6e4   : > { %v1947_v11 = vmul.f32 %v4005_v50, %v1946_v58 }
 0x6e6   : > { %v1951_v53 = vsel %vm1950_vm8, %v4005_v50, %v1947_v11 }
 0x6e7   : > { %v2013_v12 = vmul.f32 %v1951_v53, %v5032_v51 }
 0x6e9   : > { %v2024_v24 = vmul.f32 %v5269_v37, %v2013_v12 }
 0x6eb   : > { %v5284_v41 = vadd.f32 %v5275_v34, %v2024_v24 }
 0x6ed   : > { %v2074_v10 = vpack.c.bf16 %v5284_v41, %v5281_v49 }
 0x6ef   : > { %2256 = vmatmul.bf16.vlgmr.msrb.gmra.mxu3 %v2074_v10  ;;  %2285 = vmatmul.bf16.vlgmr.msrb.gmra.mxu0 %v2074_v10 }
 0x6f0   : > { %2314 = vmatmul.bf16.vlgmr.msra.gmra.mxu1 %v2074_v10  ;;  %2343 = vmatmul.bf16.vlgmr.msra.gmra.mxu2 %v2074_v10 }
 0x703   : > { %v1905_v32 = vpop.xlane.xlu1 %1904 }
 0x704   : > { %v1918_v28 = vmul.f32 %v1905_v32, %v5019_v61 }
 0x706   : > { %v1926_v52 = vadd.f32 1e-05, %v1918_v28 }
 0x708   : > { %4006 = vrsqrt.f32 %v1926_v52  ;;  %vm1958_vm10 = vweird.f32 %v1926_v52 }
 0x70b   : > { %v1907_v51 = vpop.xlane.xlu0 %1906 }
 0x70c   : > { %v1919_v42 = vmul.f32 %v1907_v51, %v5019_v61 }
 0x70e   : > { %v4007_v57 = vpop.eup %4006  ;;  %v1927_v29 = vadd.f32 1e-05, %v1919_v42 }
 0x70f   : > { %v1953_v19 = vmul.f32 %v4007_v57, %v1926_v52  ;;  %vm1959_vm9 = vweird.f32 %v4007_v57 }
 0x710   : > { %4008 = vrsqrt.f32 %v1927_v29  ;;  %vm1960_vm11 = vmor %vm1958_vm10, %vm1959_vm9  ;;  %vm1968_vm13 = vweird.f32 %v1927_v29 }
 0x711   : > { %v1954_v20 = vmul.f32 %v4007_v57, %v1953_v19  ;;  %v3823_v19 = vld [vmem:[%s5802_s9 + $0x78] sm:$0xff] }
 0x712   : > { %2957 = vmatpush.bf16.msra.mxu0 %v3823_v19 }
 0x713   : > { %v1955_v17 = vmul.f32 0.5, %v1954_v20  ;;  %v1909_v44 = vpop.xlane.xlu2 %1908  ;;  %v3831_v20 = vld [vmem:[%s5802_s9 + $0xb8] sm:$0xff] }
 0x714   : > { %v1920_v14 = vmul.f32 %v1909_v44, %v5019_v61  ;;  %2986 = vmatpush.bf16.msrb.mxu1 %v3831_v20 }
 0x715   : > { %v1956_v40 = vsub.f32 1.5, %v1955_v17 }
 0x716   : > { %v4009_v15 = vpop.eup %4008  ;;  %v1928_v16 = vadd.f32 1e-05, %v1920_v14  ;;  %v3822_v14 = vld [vmem:[%s5802_s9 + $0x70] sm:$0xff] }
 0x717   : > { %v1957_v26 = vmul.f32 %v4007_v57, %v1956_v40  ;;  %v1963_v39 = vmul.f32 %v4009_v15, %v1927_v29  ;;  %vm1969_vm12 = vweird.f32 %v4009_v15  ;;  %v3830_v40 = vld [vmem:[%s5802_s9 + $0xb0] sm:$0xff]  ;;  %2958 = vmatpush.bf16.msra.mxu0 %v3822_v14 }
 0x718   : > { %4010 = vrsqrt.f32 %v1928_v16  ;;  %vm1970_vm14 = vmor %vm1968_vm13, %vm1969_vm12  ;;  %vm1978_vm0 = vweird.f32 %v1928_v16  ;;  %2987 = vmatpush.bf16.msrb.mxu1 %v3830_v40 }
 0x719   : > { %v1964_v13 = vmul.f32 %v4009_v15, %v1963_v39  ;;  %v1961_v56 = vsel %vm1960_vm11, %v4007_v57, %v1957_v26  ;;  %v3815_v26 = vld [vmem:[%s5802_s9 + $0x38] sm:$0xff] }
 0x71a   : > { %v2014_v59 = vmul.f32 %v1961_v56, %v5042_v18  ;;  %v3839_v39 = vld [vmem:[%s5802_s9 + $0xf8] sm:$0xff]  ;;  %2928 = vmatpush.bf16.msra.mxu3 %v3815_v26  ;;  %v3821_v56 = vld [vmem:[%s5802_s9 + $0x68] sm:$0xff]  ;;  %v3832_v26 = vld [vmem:[%s5802_s9 + $0xc0] sm:$0xff] }
 0x71b   : > { %v1965_v4 = vmul.f32 0.5, %v1964_v13  ;;  %v1911_v31 = vpop.xlane.xlu1 %1910  ;;  %3015 = vmatpush.bf16.msrb.mxu2 %v3839_v39  ;;  %2959 = vmatpush.bf16.msra.mxu0 %v3821_v56 }
 0x71c   : > { %v1921_v55 = vmul.f32 %v1911_v31, %v5019_v61  ;;  %v2025_v6 = vmul.f32 %v5269_v37, %v2014_v59 }
 0x71d   : > { %v1966_v7 = vsub.f32 1.5, %v1965_v4  ;;  %v3829_v4 = vld [vmem:[%s5802_s9 + $0xa8] sm:$0xff] }
 0x71e   : > { %v4011_v25 = vpop.eup %4010  ;;  %v1929_v2 = vadd.f32 1e-05, %v1921_v55  ;;  %v5297_v22 = vadd.f32 %v5275_v34, %v2025_v6  ;;  %2988 = vmatpush.bf16.msrb.mxu1 %v3829_v4 }
 0x71f   : > { %v1967_v0 = vmul.f32 %v4009_v15, %v1966_v7  ;;  %v1973_v63 = vmul.f32 %v4011_v25, %v1928_v16  ;;  %vm1979_vm15 = vweird.f32 %v4011_v25  ;;  %v3814_v7 = vld [vmem:[%s5802_s9 + $0x30] sm:$0xff] }
 0x720   : > { %4012 = vrsqrt.f32 %v1929_v2  ;;  %vm1980_vm1 = vmor %vm1978_vm0, %vm1979_vm15  ;;  %vm1988_vm3 = vweird.f32 %v1929_v2  ;;  %2929 = vmatpush.bf16.msra.mxu3 %v3814_v7 }
 0x721   : > { %v1971_v33 = vsel %vm1970_vm14, %v4009_v15, %v1967_v0  ;;  %v1974_v36 = vmul.f32 %v4011_v25, %v1973_v63  ;;  %v3820_v0 = vld [vmem:[%s5802_s9 + $0x60] sm:$0xff] }
 0x722   : > { %v2015_v3 = vmul.f32 %v1971_v33, %v5047_v38  ;;  %v3828_v63 = vld [vmem:[%s5802_s9 + $0xa0] sm:$0xff]  ;;  %2960 = vmatpush.bf16.msra.mxu0 %v3820_v0 }
 0x723   : > { %v1975_v35 = vmul.f32 0.5, %v1974_v36  ;;  %v1913_v11 = vpop.xlane.xlu0 %1912  ;;  %2989 = vmatpush.bf16.msrb.mxu1 %v3828_v63  ;;  %v3813_v36 = vld [vmem:[%s5802_s9 + $0x28] sm:$0xff] }
 0x724   : > { %v2026_v30 = vmul.f32 %v5269_v37, %v2015_v3  ;;  %v1922_v12 = vmul.f32 %v1913_v11, %v5019_v61  ;;  %2930 = vmatpush.bf16.msra.mxu3 %v3813_v36  ;;  %v3810_v11 = vld [vmem:[%s5802_s9 + $0x10] sm:$0xff] }
 0x725   : > { %v1976_v48 = vsub.f32 1.5, %v1975_v35 }
 0x726   : > { %v4013_v62 = vpop.eup %4012  ;;  %v5300_v18 = vadd.f32 %v5275_v34, %v2026_v30  ;;  %v1930_v32 = vadd.f32 1e-05, %v1922_v12  ;;  %v3819_v30 = vld [vmem:[%s5802_s9 + $0x58] sm:$0xff] }
 0x727   : > { %v1977_v46 = vmul.f32 %v4011_v25, %v1976_v48  ;;  %v1983_v60 = vmul.f32 %v4013_v62, %v1929_v2  ;;  %vm1989_vm2 = vweird.f32 %v4013_v62  ;;  %v3827_v48 = vld [vmem:[%s5802_s9 + $0x98] sm:$0xff]  ;;  %2961 = vmatpush.bf16.msra.mxu0 %v3819_v30 }
 0x728   : > { %v2075_v50 = vpack.c.bf16 %v5300_v18, %v5297_v22  ;;  %vm1990_vm4 = vmor %vm1988_vm3, %vm1989_vm2  ;;  %4014 = vrsqrt.f32 %v1930_v32  ;;  %vm1998_vm6 = vweird.f32 %v1930_v32  ;;  %2990 = vmatpush.bf16.msrb.mxu1 %v3827_v48 }
 0x729   : > { %v1984_v38 = vmul.f32 %v4013_v62, %v1983_v60  ;;  %v1981_v9 = vsel %vm1980_vm1, %v4011_v25, %v1977_v46  ;;  %v3838_v25 = vld [vmem:[%s5802_s9 + $0xf0] sm:$0xff]  ;;  %v3836_v46 = vld [vmem:[%s5802_s9 + $0xe0] sm:$0xff] }
 0x72a   : > { %2261 = vmatmul.bf16.gmra.mxu3 %v2075_v50  ;;  %2290 = vmatmul.bf16.gmra.mxu0 %v2075_v50  ;;  %v2016_v23 = vmul.f32 %v1981_v9, %v5052_v45  ;;  %v2078_v9 = vld [vmem:[%s5801_s8] sm:$0xf] }
 0x72b   : > { %v1985_v8 = vmul.f32 0.5, %v1984_v38  ;;  %2319 = vmatmul.bf16.gmra.mxu1 %v2075_v50  ;;  %2348 = vmatmul.bf16.gmra.mxu2 %v2075_v50  ;;  %v3826_v38 = vld [vmem:[%s5802_s9 + $0x90] sm:$0xff]  ;;  %v5439_v19 = vperm.slane %v2078_v9, 3 }
 0x72c   : > { %v2027_v53 = vmul.f32 %v5269_v37, %v2016_v23  ;;  %3016 = vmatpush.bf16.msrb.mxu2 %v3838_v25  ;;  %2991 = vmatpush.bf16.msrb.mxu1 %v3826_v38  ;;  %v5399_v23 = vperm.slane %v2078_v9, 1 }
 0x72d   : > { %v1986_v5 = vsub.f32 1.5, %v1985_v8 }
 0x72e   : > { %v5310_v24 = vadd.f32 %v5275_v34, %v2027_v53  ;;  %v3834_v53 = vld [vmem:[%s5802_s9 + $0xd0] sm:$0xff] }
 0x72f   : > { %v1987_v43 = vmul.f32 %v4013_v62, %v1986_v5  ;;  %v3835_v5 = vld [vmem:[%s5802_s9 + $0xd8] sm:$0xff] }
 0x731   : > { %v1991_v58 = vsel %vm1990_vm4, %v4013_v62, %v1987_v43  ;;  %v3817_v43 = vld [vmem:[%s5802_s9 + $0x48] sm:$0xff] }
 0x732   : > { %v2017_v21 = vmul.f32 %v1991_v58, %v5057_v47  ;;  %v4015_v47 = vpop.eup %4014  ;;  %v3825_v58 = vld [vmem:[%s5802_s9 + $0x88] sm:$0xff] }
 0x733   : > { %v1993_v28 = vmul.f32 %v4015_v47, %v1930_v32  ;;  %vm1999_vm5 = vweird.f32 %v4015_v47  ;;  %2992 = vmatpush.bf16.msrb.mxu1 %v3825_v58  ;;  %v3816_v32 = vld [vmem:[%s5802_s9 + $0x40] sm:$0xff] }
 0x734   : > { %v2028_v54 = vmul.f32 %v5269_v37, %v2017_v21  ;;  %vm2000_vm7 = vmor %vm1998_vm6, %vm1999_vm5  ;;  %v5407_v21 = vperm.slane %v2078_v9, 2 }
 0x735   : > { %v1994_v52 = vmul.f32 %v4015_v47, %v1993_v28 }
 0x736   : > { %v5313_v10 = vadd.f32 %v5275_v34, %v2028_v54 }
 0x737   : > { %v1995_v29 = vmul.f32 0.5, %v1994_v52 }
 0x738   : > { %v2076_v45 = vpack.c.bf16 %v5313_v10, %v5310_v24 }
 0x739   : > { %v1996_v17 = vsub.f32 1.5, %v1995_v29 }
 0x73a   : > { %2266 = vmatmul.bf16.gmra.mxu3 %v2076_v45  ;;  %2295 = vmatmul.bf16.gmra.mxu0 %v2076_v45 }
 0x73b   : > { %2324 = vmatmul.bf16.gmra.mxu1 %v2076_v45  ;;  %2353 = vmatmul.bf16.gmra.mxu2 %v2076_v45  ;;  %v1997_v15 = vmul.f32 %v4015_v47, %v1996_v17 }
 0x73d   : > { %v2001_v31 = vsel %vm2000_vm7, %v4015_v47, %v1997_v15  ;;  %v3824_v47 = vld [vmem:[%s5802_s9 + $0x80] sm:$0xff] }
 0x73e   : > { %v2018_v2 = vmul.f32 %v2001_v31, %v5062_v27  ;;  %v3837_v27 = vld [vmem:[%s5802_s9 + $0xe8] sm:$0xff]  ;;  %2993 = vmatpush.bf16.msrb.mxu1 %v3824_v47 }
 0x73f   : > { %3017 = vmatpush.bf16.msrb.mxu2 %v3837_v27 }
 0x740   : > { %v2029_v35 = vmul.f32 %v5269_v37, %v2018_v2 }
 0x742   : > { %v5377_v60 = vadd.f32 %v5275_v34, %v2029_v35 }
 0x743   : > { %3018 = vmatpush.bf16.msrb.mxu2 %v3836_v46 }
 0x747   : > { %3019 = vmatpush.bf16.msrb.mxu2 %v3835_v5 }
 0x74a   : > { %v1915_v51 = vpop.xlane.xlu2 %1914 }
 0x74b   : > { %v1923_v42 = vmul.f32 %v1915_v51, %v5019_v61  ;;  %v5429_v51 = vperm.slane %v2078_v9, 0  ;;  %3020 = vmatpush.bf16.msrb.mxu2 %v3834_v53 }
 0x74d   : > { %v1931_v57 = vadd.f32 1e-05, %v1923_v42  ;;  %v3809_v42 = vld [vmem:[%s5802_s9 + $0x8] sm:$0xff] }
 0x74f   : > { %4016 = vrsqrt.f32 %v1931_v57  ;;  %vm2008_vm9 = vweird.f32 %v1931_v57 }
 0x755   : > { %v4017_v44 = vpop.eup %4016 }
 0x756   : > { %v2003_v16 = vmul.f32 %v4017_v44, %v1931_v57  ;;  %vm2009_vm8 = vweird.f32 %v4017_v44  ;;  %v3833_v57 = vld [vmem:[%s5802_s9 + $0xc8] sm:$0xff] }
 0x757   : > { %vm2010_vm10 = vmor %vm2008_vm9, %vm2009_vm8  ;;  %3021 = vmatpush.bf16.msrb.mxu2 %v3833_v57 }
 0x758   : > { %v2004_v13 = vmul.f32 %v4017_v44, %v2003_v16  ;;  %v3808_v16 = vld [vmem:[%s5802_s9] sm:$0xff] }
 0x75a   : > { %v2005_v55 = vmul.f32 0.5, %v2004_v13 }
 0x75b   : > { %3022 = vmatpush.bf16.msrb.mxu2 %v3832_v26 }
 0x75c   : > { %v2006_v59 = vsub.f32 1.5, %v2005_v55 }
 0x75e   : > { %v2007_v33 = vmul.f32 %v4017_v44, %v2006_v59 }
 0x760   : > { %v2011_v3 = vsel %vm2010_vm10, %v4017_v44, %v2007_v33 }
 0x761   : > { %v2019_v6 = vmul.f32 %v2011_v3, %v5262_v1  ;;  %v3812_v1 = vld [vmem:[%s5802_s9 + $0x20] sm:$0xff] }
 0x762   : > { %2931 = vmatpush.bf16.msra.mxu3 %v3812_v1 }
 0x763   : > { %v2030_v62 = vmul.f32 %v5269_v37, %v2019_v6  ;;  %v3818_v37 = vld [vmem:[%s5802_s9 + $0x50] sm:$0xff] }
 0x764   : > { %2962 = vmatpush.bf16.msra.mxu0 %v3818_v37 }
 0x765   : > { %v5380_v50 = vadd.f32 %v5275_v34, %v2030_v62  ;;  %v3811_v34 = vld [vmem:[%s5802_s9 + $0x18] sm:$0xff] }
 0x766   : > { %2932 = vmatpush.bf16.msra.mxu3 %v3811_v34 }
 0x767   : > { %v2077_v8 = vpack.c.bf16 %v5380_v50, %v5377_v60 }
 0x768   : > { %2963 = vmatpush.bf16.msra.mxu0 %v3817_v43 }
 0x769   : > { %2271 = vmatmul.bf16.gmra.mxu3 %v2077_v8  ;;  %2300 = vmatmul.bf16.gmra.mxu0 %v2077_v8 }
 0x76a   : > { %2329 = vmatmul.bf16.gmra.mxu1 %v2077_v8  ;;  %2358 = vmatmul.bf16.gmra.mxu2 %v2077_v8 }
 0x76b   : > { %2933 = vmatpush.bf16.msra.mxu3 %v3810_v11 }
 0x76c   : > { %v2286_v54 = vpop.f32.mrf.mxu0  ;;  %2964 = vmatpush.bf16.msra.mxu0 %v3816_v32 }
 0x76d   : > { %v5416_v12 = vadd.f32 %v2286_v54, %v5399_v23  ;;  %v2315_v45 = vpop.f32.mrf.mxu1 }
 0x76e   : > { %v5425_v28 = vadd.f32 %v2315_v45, %v5407_v21 }
 0x76f   : > { %v2365_v52 = vmul.f32 %v5416_v12, %v5416_v12  ;;  %2934 = vmatpush.bf16.msra.mxu3 %v3809_v42 }
 0x770   : > { %v2366_v29 = vmul.f32 %v5425_v28, %v5425_v28 }
 0x771   : > { %v2397_v20 = vmul.f32 %v2365_v52, %v5416_v12 }
 0x772   : > { %v2398_v17 = vmul.f32 %v2366_v29, %v5425_v28  ;;  %v2257_v44 = vpop.f32.mrf.mxu3 }
 0x773   : > { %v2429_v14 = vmul.f32 0.044715, %v2397_v20  ;;  %v5444_v40 = vadd.f32 %v2257_v44, %v5429_v51  ;;  %v2344_v15 = vpop.f32.mrf.mxu2  ;;  %2935 = vmatpush.bf16.msra.mxu3 %v3808_v16 }
 0x774   : > { %v2430_v39 = vmul.f32 0.044715, %v2398_v17  ;;  %v5453_v13 = vadd.f32 %v2344_v15, %v5439_v19  ;;  %v2288_v56 = vpop.f32.mrf.mxu0 }
 0x775   : > { %v2461_v4 = vadd.f32 %v2429_v14, %v5416_v12  ;;  %v2364_v31 = vmul.f32 %v5444_v40, %v5444_v40  ;;  %v5459_v55 = vadd.f32 %v2288_v56, %v5399_v23  ;;  %v2317_v7 = vpop.f32.mrf.mxu1 }
 0x776   : > { %v2462_v25 = vadd.f32 %v2430_v39, %v5425_v28  ;;  %v2367_v59 = vmul.f32 %v5453_v13, %v5453_v13  ;;  %v5465_v2 = vadd.f32 %v2317_v7, %v5407_v21 }
 0x777   : > { %v2493_v0 = vmul.f32 0.7978846, %v2461_v4  ;;  %v2396_v63 = vmul.f32 %v2364_v31, %v5444_v40  ;;  %v2369_v33 = vmul.f32 %v5459_v55, %v5459_v55 }
 0x778   : > { %v2494_v36 = vmul.f32 0.7978846, %v2462_v25  ;;  %v2399_v27 = vmul.f32 %v2367_v59, %v5453_v13  ;;  %v2370_v3 = vmul.f32 %v5465_v2, %v5465_v2 }
 0x779   : > { %v2428_v6 = vmul.f32 0.044715, %v2396_v63  ;;  %v2401_v35 = vmul.f32 %v2369_v33, %v5459_v55  ;;  %4018 = vtanh.f32 %v2493_v0 }
 0x77a   : > { %v2431_v30 = vmul.f32 0.044715, %v2399_v27  ;;  %v2402_v48 = vmul.f32 %v2370_v3, %v5465_v2  ;;  %v2259_v62 = vpop.f32.mrf.mxu3  ;;  %4020 = vtanh.f32 %v2494_v36 }
 0x77b   : > { %v2460_v1 = vadd.f32 %v2428_v6, %v5444_v40  ;;  %v2433_v46 = vmul.f32 0.044715, %v2401_v35  ;;  %v2260_v37 = vadd.f32 %v2259_v62, %v5429_v51  ;;  %v2346_v38 = vpop.f32.mrf.mxu2 }
 0x77c   : > { %v2463_v9 = vadd.f32 %v2431_v30, %v5453_v13  ;;  %v2434_v8 = vmul.f32 0.044715, %v2402_v48  ;;  %v2347_v34 = vadd.f32 %v2346_v38, %v5439_v19 }
 0x77d   : > { %v2492_v5 = vmul.f32 0.7978846, %v2460_v1  ;;  %v2465_v43 = vadd.f32 %v2433_v46, %v5459_v55  ;;  %v2368_v58 = vmul.f32 %v2260_v37, %v2260_v37 }
 0x77e   : > { %v2495_v11 = vmul.f32 0.7978846, %v2463_v9  ;;  %v2466_v53 = vadd.f32 %v2434_v8, %v5465_v2  ;;  %v2371_v54 = vmul.f32 %v2347_v34, %v2347_v34 }
 0x77f   : > { %4022 = vtanh.f32 %v2492_v5  ;;  %v2497_v45 = vmul.f32 0.7978846, %v2465_v43  ;;  %v2400_v32 = vmul.f32 %v2368_v58, %v2260_v37  ;;  %v4019_v42 = vpop.eup %4018 }
 0x780   : > { %4024 = vtanh.f32 %v2495_v11  ;;  %v2498_v47 = vmul.f32 0.7978846, %v2466_v53  ;;  %v2403_v52 = vmul.f32 %v2371_v54, %v2347_v34  ;;  %v4021_v29 = vpop.eup %4020  ;;  %v2557_v44 = vadd.f32 1.0, %v4019_v42 }
 0x781   : > { %4026 = vtanh.f32 %v2497_v45  ;;  %v2432_v57 = vmul.f32 0.044715, %v2400_v32  ;;  %v2558_v16 = vadd.f32 1.0, %v4021_v29 }
 0x782   : > { %4028 = vtanh.f32 %v2498_v47  ;;  %v2435_v20 = vmul.f32 0.044715, %v2403_v52  ;;  %v2589_v7 = vmul.f32 0.5, %v2557_v44 }
 0x783   : > { %v2464_v17 = vadd.f32 %v2432_v57, %v2260_v37  ;;  %v2590_v59 = vmul.f32 0.5, %v2558_v16 }
 0x784   : > { %v2467_v14 = vadd.f32 %v2435_v20, %v2347_v34  ;;  %v2621_v3 = vmul.f32 %v2589_v7, %v5416_v12 }
 0x785   : > { %v4023_v15 = vpop.eup %4022  ;;  %v2496_v26 = vmul.f32 0.7978846, %v2464_v17  ;;  %v2622_v30 = vmul.f32 %v2590_v59, %v5425_v28 }
 0x786   : > { %v4025_v39 = vpop.eup %4024  ;;  %v2499_v56 = vmul.f32 0.7978846, %v2467_v14  ;;  %v2556_v63 = vadd.f32 1.0, %v4023_v15 }
 0x787   : > { %v4027_v4 = vpop.eup %4026  ;;  %4030 = vtanh.f32 %v2496_v26  ;;  %v2559_v36 = vadd.f32 1.0, %v4025_v39 }
 0x788   : > { %v4029_v31 = vpop.eup %4028  ;;  %v2561_v25 = vadd.f32 1.0, %v4027_v4  ;;  %4032 = vtanh.f32 %v2499_v56  ;;  %v2588_v1 = vmul.f32 0.5, %v2556_v63 }
 0x789   : > { %v2562_v0 = vadd.f32 1.0, %v4029_v31  ;;  %v2591_v9 = vmul.f32 0.5, %v2559_v36 }
 0x78a   : > { %v2593_v33 = vmul.f32 0.5, %v2561_v25  ;;  %v2620_v12 = vmul.f32 %v2588_v1, %v5444_v40 }
 0x78b   : > { %v2594_v27 = vmul.f32 0.5, %v2562_v0 }
 0x78c   : > { %v2625_v6 = vmul.f32 %v2593_v33, %v5459_v55  ;;  %v2623_v55 = vmul.f32 %v2591_v9, %v5453_v13 }
 0x78d   : > { %v4031_v35 = vpop.eup %4030  ;;  %v2626_v48 = vmul.f32 %v2594_v27, %v5465_v2 }
 0x78e   : > { %v4033_v62 = vpop.eup %4032  ;;  %v2717_v46 = vpack.c.bf16 %v2625_v6, %v2621_v3  ;;  %v2560_v38 = vadd.f32 1.0, %v4031_v35 }
 0x78f   : > { %v2718_v8 = vpack.c.bf16 %v2626_v48, %v2622_v30  ;;  %v2563_v5 = vadd.f32 1.0, %v4033_v62 }
 0x790   : > { %v2592_v43 = vmul.f32 0.5, %v2560_v38  ;;  %2965 = vmatmul.bf16.vlgmr.msra.gmra.mxu0 %v2717_v46 }
 0x791   : > { %v2595_v58 = vmul.f32 0.5, %v2563_v5  ;;  %2994 = vmatmul.bf16.vlgmr.msrb.gmra.mxu1 %v2718_v8 }
 0x792   : > { %v2624_v11 = vmul.f32 %v2592_v43, %v2260_v37 }
 0x793   : > { %v2627_v53 = vmul.f32 %v2595_v58, %v2347_v34 }
 0x794   : > { %v2716_v28 = vpack.c.bf16 %v2624_v11, %v2620_v12 }
 0x795   : > { %v2719_v54 = vpack.c.bf16 %v2627_v53, %v2623_v55 }
 0x796   : > { %2936 = vmatmul.bf16.vlgmr.msra.gmra.mxu3 %v2716_v28 }
 0x797   : > { %3023 = vmatmul.bf16.vlgmr.msrb.gmra.mxu2 %v2719_v54 }
 0x7a7   : > { %v2291_v2 = vpop.f32.mrf.mxu0 }
 0x7a8   : > { %v5488_v45 = vadd.f32 %v2291_v2, %v5399_v23  ;;  %v2320_v32 = vpop.f32.mrf.mxu1 }
 0x7a9   : > { %v5491_v47 = vadd.f32 %v2320_v32, %v5407_v21 }
 0x7aa   : > { %v2373_v52 = vmul.f32 %v5488_v45, %v5488_v45 }
 0x7ab   : > { %v2374_v40 = vmul.f32 %v5491_v47, %v5491_v47 }
 0x7ac   : > { %v2405_v13 = vmul.f32 %v2373_v52, %v5488_v45 }
 0x7ad   : > { %v2406_v37 = vmul.f32 %v2374_v40, %v5491_v47  ;;  %v2262_v34 = vpop.f32.mrf.mxu3 }
 0x7ae   : > { %v2437_v42 = vmul.f32 0.044715, %v2405_v13  ;;  %v5500_v57 = vadd.f32 %v2262_v34, %v5429_v51  ;;  %v2349_v29 = vpop.f32.mrf.mxu2 }
 0x7af   : > { %v2438_v20 = vmul.f32 0.044715, %v2406_v37  ;;  %v5503_v17 = vadd.f32 %v2349_v29, %v5439_v19  ;;  %v2293_v44 = vpop.f32.mrf.mxu0 }
 0x7b0   : > { %v2469_v14 = vadd.f32 %v2437_v42, %v5488_v45  ;;  %v2372_v15 = vmul.f32 %v5500_v57, %v5500_v57  ;;  %v5509_v16 = vadd.f32 %v2293_v44, %v5399_v23  ;;  %v2322_v26 = vpop.f32.mrf.mxu1 }
 0x7b1   : > { %v2470_v39 = vadd.f32 %v2438_v20, %v5491_v47  ;;  %v2375_v56 = vmul.f32 %v5503_v17, %v5503_v17  ;;  %v5515_v4 = vadd.f32 %v2322_v26, %v5407_v21 }
 0x7b2   : > { %v2501_v31 = vmul.f32 0.7978846, %v2469_v14  ;;  %v2404_v7 = vmul.f32 %v2372_v15, %v5500_v57  ;;  %v2377_v25 = vmul.f32 %v5509_v16, %v5509_v16 }
 0x7b3   : > { %v2502_v59 = vmul.f32 0.7978846, %v2470_v39  ;;  %v2407_v0 = vmul.f32 %v2375_v56, %v5503_v17  ;;  %v2378_v63 = vmul.f32 %v5515_v4, %v5515_v4 }
 0x7b4   : > { %4034 = vtanh.f32 %v2501_v31  ;;  %v2436_v33 = vmul.f32 0.044715, %v2404_v7  ;;  %v2409_v36 = vmul.f32 %v2377_v25, %v5509_v16 }
 0x7b5   : > { %4036 = vtanh.f32 %v2502_v59  ;;  %v2439_v27 = vmul.f32 0.044715, %v2407_v0  ;;  %v2410_v3 = vmul.f32 %v2378_v63, %v5515_v4  ;;  %v2264_v6 = vpop.f32.mrf.mxu3 }
 0x7b6   : > { %v2468_v35 = vadd.f32 %v2436_v33, %v5500_v57  ;;  %v2441_v30 = vmul.f32 0.044715, %v2409_v36  ;;  %v5527_v48 = vadd.f32 %v2264_v6, %v5429_v51  ;;  %v2351_v62 = vpop.f32.mrf.mxu2 }
 0x7b7   : > { %v2471_v1 = vadd.f32 %v2439_v27, %v5503_v17  ;;  %v2442_v46 = vmul.f32 0.044715, %v2410_v3  ;;  %v5531_v38 = vadd.f32 %v2351_v62, %v5439_v19  ;;  %v2296_v9 = vpop.f32.mrf.mxu0 }
 0x7b8   : > { %v2500_v8 = vmul.f32 0.7978846, %v2468_v35  ;;  %v2473_v5 = vadd.f32 %v2441_v30, %v5509_v16  ;;  %v2376_v43 = vmul.f32 %v5527_v48, %v5527_v48  ;;  %v5537_v58 = vadd.f32 %v2296_v9, %v5399_v23  ;;  %v2325_v12 = vpop.f32.mrf.mxu1 }
 0x7b9   : > { %v2503_v11 = vmul.f32 0.7978846, %v2471_v1  ;;  %v2474_v55 = vadd.f32 %v2442_v46, %v5515_v4  ;;  %v2379_v53 = vmul.f32 %v5531_v38, %v5531_v38  ;;  %v5543_v28 = vadd.f32 %v2325_v12, %v5407_v21 }
 0x7ba   : > { %v4035_v54 = vpop.eup %4034  ;;  %4038 = vtanh.f32 %v2500_v8  ;;  %v2505_v2 = vmul.f32 0.7978846, %v2473_v5  ;;  %v2408_v32 = vmul.f32 %v2376_v43, %v5527_v48  ;;  %v2381_v52 = vmul.f32 %v5537_v58, %v5537_v58 }
 0x7bb   : > { %v4037_v40 = vpop.eup %4036  ;;  %4040 = vtanh.f32 %v2503_v11  ;;  %v2506_v13 = vmul.f32 0.7978846, %v2474_v55  ;;  %v2411_v37 = vmul.f32 %v2379_v53, %v5531_v38  ;;  %v2382_v34 = vmul.f32 %v5543_v28, %v5543_v28 }
 0x7bc   : > { %4042 = vtanh.f32 %v2505_v2  ;;  %v2440_v42 = vmul.f32 0.044715, %v2408_v32  ;;  %v2413_v29 = vmul.f32 %v2381_v52, %v5537_v58  ;;  %v2565_v20 = vadd.f32 1.0, %v4035_v54 }
 0x7bd   : > { %4044 = vtanh.f32 %v2506_v13  ;;  %v2443_v44 = vmul.f32 0.044715, %v2411_v37  ;;  %v2414_v14 = vmul.f32 %v2382_v34, %v5543_v28  ;;  %v2267_v15 = vpop.f32.mrf.mxu3  ;;  %v2566_v26 = vadd.f32 1.0, %v4037_v40 }
 0x7be   : > { %v2472_v39 = vadd.f32 %v2440_v42, %v5527_v48  ;;  %v2445_v56 = vmul.f32 0.044715, %v2413_v29  ;;  %v5555_v31 = vadd.f32 %v2267_v15, %v5429_v51  ;;  %v2354_v7 = vpop.f32.mrf.mxu2  ;;  %v2597_v25 = vmul.f32 0.5, %v2565_v20 }
 0x7bf   : > { %v2475_v59 = vadd.f32 %v2443_v44, %v5531_v38  ;;  %v2446_v0 = vmul.f32 0.044715, %v2414_v14  ;;  %v5559_v63 = vadd.f32 %v2354_v7, %v5439_v19  ;;  %v2298_v33 = vpop.f32.mrf.mxu0  ;;  %v2598_v36 = vmul.f32 0.5, %v2566_v26 }
 0x7c0   : > { %v5561_v27 = vpop.eup %4038  ;;  %v2504_v3 = vmul.f32 0.7978846, %v2472_v39  ;;  %v2477_v6 = vadd.f32 %v2445_v56, %v5537_v58  ;;  %v2380_v35 = vmul.f32 %v5555_v31, %v5555_v31  ;;  %v5567_v30 = vadd.f32 %v2298_v33, %v5399_v23  ;;  %v2327_v62 = vpop.f32.mrf.mxu1 }
 0x7c1   : > { %v4041_v1 = vpop.eup %4040  ;;  %v2507_v46 = vmul.f32 0.7978846, %v2475_v59  ;;  %v2478_v9 = vadd.f32 %v2446_v0, %v5543_v28  ;;  %v2383_v8 = vmul.f32 %v5559_v63, %v5559_v63  ;;  %v5573_v5 = vadd.f32 %v2327_v62, %v5407_v21 }
 0x7c2   : > { %v4043_v43 = vpop.eup %4042  ;;  %4046 = vtanh.f32 %v2504_v3  ;;  %v2509_v12 = vmul.f32 0.7978846, %v2477_v6  ;;  %v2412_v11 = vmul.f32 %v2380_v35, %v5555_v31  ;;  %v2385_v55 = vmul.f32 %v5567_v30, %v5567_v30 }
 0x7c3   : > { %v4045_v53 = vpop.eup %4044  ;;  %4048 = vtanh.f32 %v2507_v46  ;;  %v2510_v54 = vmul.f32 0.7978846, %v2478_v9  ;;  %v2415_v2 = vmul.f32 %v2383_v8, %v5559_v63  ;;  %v2386_v32 = vmul.f32 %v5573_v5, %v5573_v5 }
 0x7c4   : > { %4050 = vtanh.f32 %v2509_v12  ;;  %v2444_v52 = vmul.f32 0.044715, %v2412_v11  ;;  %v2417_v40 = vmul.f32 %v2385_v55, %v5567_v30  ;;  %v2569_v13 = vadd.f32 1.0, %v4043_v43 }
 0x7c5   : > { %4052 = vtanh.f32 %v2510_v54  ;;  %v2447_v37 = vmul.f32 0.044715, %v2415_v2  ;;  %v2418_v34 = vmul.f32 %v2386_v32, %v5573_v5  ;;  %v2269_v42 = vpop.f32.mrf.mxu3  ;;  %v2629_v29 = vmul.f32 %v2597_v25, %v5488_v45 }
 0x7c6   : > { %v2476_v20 = vadd.f32 %v2444_v52, %v5555_v31  ;;  %v2449_v44 = vmul.f32 0.044715, %v2417_v40  ;;  %v5586_v14 = vadd.f32 %v2269_v42, %v5429_v51  ;;  %v2356_v15 = vpop.f32.mrf.mxu2  ;;  %v2601_v26 = vmul.f32 0.5, %v2569_v13 }
 0x7c7   : > { %v2479_v39 = vadd.f32 %v2447_v37, %v5559_v63  ;;  %v2450_v56 = vmul.f32 0.044715, %v2418_v34  ;;  %v5590_v7 = vadd.f32 %v2356_v15, %v5439_v19  ;;  %v2570_v59 = vadd.f32 1.0, %v4045_v53 }
 0x7c8   : > { %v4047_v0 = vpop.eup %4046  ;;  %v2508_v33 = vmul.f32 0.7978846, %v2476_v20  ;;  %v2481_v3 = vadd.f32 %v2449_v44, %v5567_v30  ;;  %v2384_v45 = vmul.f32 %v5586_v14, %v5586_v14  ;;  %v2633_v25 = vmul.f32 %v2601_v26, %v5509_v16 }
 0x7c9   : > { %v4049_v6 = vpop.eup %4048  ;;  %v2511_v35 = vmul.f32 0.7978846, %v2479_v39  ;;  %v2482_v62 = vadd.f32 %v2450_v56, %v5573_v5  ;;  %v2387_v46 = vmul.f32 %v5590_v7, %v5590_v7  ;;  %v2602_v9 = vmul.f32 0.5, %v2570_v59 }
 0x7ca   : > { %v4051_v8 = vpop.eup %4050  ;;  %4054 = vtanh.f32 %v2508_v33  ;;  %v2513_v43 = vmul.f32 0.7978846, %v2481_v3  ;;  %v2416_v12 = vmul.f32 %v2384_v45, %v5586_v14  ;;  %v2721_v11 = vpack.c.bf16 %v2633_v25, %v2629_v29 }
 0x7cb   : > { %v4053_v55 = vpop.eup %4052  ;;  %4056 = vtanh.f32 %v2511_v35  ;;  %v2514_v53 = vmul.f32 0.7978846, %v2482_v62  ;;  %v2419_v54 = vmul.f32 %v2387_v46, %v5590_v7  ;;  %v2630_v16 = vmul.f32 %v2598_v36, %v5491_v47 }
 0x7cc   : > { %4058 = vtanh.f32 %v2513_v43  ;;  %v2448_v2 = vmul.f32 0.044715, %v2416_v12  ;;  %2970 = vmatmul.bf16.gmra.mxu0 %v2721_v11  ;;  %v2634_v32 = vmul.f32 %v2602_v9, %v5515_v4  ;;  %v2564_v52 = vadd.f32 1.0, %v5561_v27 }
 0x7cd   : > { %4060 = vtanh.f32 %v2514_v53  ;;  %v2451_v40 = vmul.f32 0.044715, %v2419_v54  ;;  %v2568_v13 = vadd.f32 1.0, %v4047_v0  ;;  %v2567_v37 = vadd.f32 1.0, %v4041_v1 }
 0x7ce   : > { %v2480_v34 = vadd.f32 %v2448_v2, %v5586_v14  ;;  %v2722_v42 = vpack.c.bf16 %v2634_v32, %v2630_v16  ;;  %v2596_v29 = vmul.f32 0.5, %v2564_v52  ;;  %v2571_v20 = vadd.f32 1.0, %v4049_v6 }
 0x7cf   : > { %v2483_v44 = vadd.f32 %v2451_v40, %v5590_v7  ;;  %v2600_v15 = vmul.f32 0.5, %v2568_v13  ;;  %v2599_v47 = vmul.f32 0.5, %v2567_v37  ;;  %v2573_v36 = vadd.f32 1.0, %v4051_v8 }
 0x7d0   : > { %v4055_v26 = vpop.eup %4054  ;;  %v2512_v39 = vmul.f32 0.7978846, %v2480_v34  ;;  %2999 = vmatmul.bf16.gmra.mxu1 %v2722_v42  ;;  %v2603_v4 = vmul.f32 0.5, %v2571_v20  ;;  %v2628_v59 = vmul.f32 %v2596_v29, %v5500_v57  ;;  %v2574_v45 = vadd.f32 1.0, %v4053_v55 }
 0x7d1   : > { %v4057_v56 = vpop.eup %4056  ;;  %v2515_v27 = vmul.f32 0.7978846, %v2483_v44  ;;  %v2632_v1 = vmul.f32 %v2600_v15, %v5527_v48  ;;  %v2631_v33 = vmul.f32 %v2599_v47, %v5503_v17  ;;  %v2605_v62 = vmul.f32 0.5, %v2573_v36 }
 0x7d2   : > { %v4059_v0 = vpop.eup %4058  ;;  %4062 = vtanh.f32 %v2512_v39  ;;  %v2635_v3 = vmul.f32 %v2603_v4, %v5531_v38  ;;  %v2606_v57 = vmul.f32 0.5, %v2574_v45  ;;  %v2572_v17 = vadd.f32 1.0, %v4055_v26 }
 0x7d3   : > { %v4061_v25 = vpop.eup %4060  ;;  %4064 = vtanh.f32 %v2515_v27  ;;  %v2720_v6 = vpack.c.bf16 %v2632_v1, %v2628_v59  ;;  %v2577_v35 = vadd.f32 1.0, %v4059_v0  ;;  %v2637_v48 = vmul.f32 %v2605_v62, %v5537_v58 }
 0x7d4   : > { %v2723_v46 = vpack.c.bf16 %v2635_v3, %v2631_v33  ;;  %v2578_v9 = vadd.f32 1.0, %v4061_v25  ;;  %v2575_v55 = vadd.f32 1.0, %v4057_v56  ;;  %v2638_v2 = vmul.f32 %v2606_v57, %v5543_v28 }
 0x7d5   : > { %2941 = vmatmul.bf16.gmra.mxu3 %v2720_v6  ;;  %v2609_v8 = vmul.f32 0.5, %v2577_v35  ;;  %v2604_v52 = vmul.f32 0.5, %v2572_v17 }
 0x7d6   : > { %3028 = vmatmul.bf16.gmra.mxu2 %v2723_v46  ;;  %v2610_v43 = vmul.f32 0.5, %v2578_v9  ;;  %v2607_v37 = vmul.f32 0.5, %v2575_v55 }
 0x7d7   : > { %v2641_v12 = vmul.f32 %v2609_v8, %v5567_v30  ;;  %v2636_v42 = vmul.f32 %v2604_v52, %v5555_v31 }
 0x7d8   : > { %v4063_v11 = vpop.eup %4062  ;;  %v2642_v38 = vmul.f32 %v2610_v43, %v5573_v5  ;;  %v2639_v5 = vmul.f32 %v2607_v37, %v5559_v63 }
 0x7d9   : > { %v4065_v53 = vpop.eup %4064  ;;  %v2725_v54 = vpack.c.bf16 %v2641_v12, %v2637_v48  ;;  %v2576_v16 = vadd.f32 1.0, %v4063_v11 }
 0x7da   : > { %v2579_v32 = vadd.f32 1.0, %v4065_v53  ;;  %v2726_v13 = vpack.c.bf16 %v2642_v38, %v2638_v2 }
 0x7db   : > { %v2608_v40 = vmul.f32 0.5, %v2576_v16 }
 0x7dc   : > { %2975 = vmatmul.bf16.gmra.mxu0 %v2725_v54  ;;  %v2611_v34 = vmul.f32 0.5, %v2579_v32 }
 0x7dd   : > { %v2640_v58 = vmul.f32 %v2608_v40, %v5586_v14 }
 0x7de   : > { %v2643_v30 = vmul.f32 %v2611_v34, %v5590_v7 }
 0x7df   : > { %v2724_v29 = vpack.c.bf16 %v2640_v58, %v2636_v42 }
 0x7e0   : > { %3004 = vmatmul.bf16.gmra.mxu1 %v2726_v13  ;;  %v2727_v20 = vpack.c.bf16 %v2643_v30, %v2639_v5 }
 0x7e5   : > { %2946 = vmatmul.bf16.gmra.mxu3 %v2724_v29 }
 0x7e6   : > { %3033 = vmatmul.bf16.gmra.mxu2 %v2727_v20  ;;  %v2301_v28 = vpop.f32.mrf.mxu0 }
 0x7e7   : > { %v5619_v44 = vadd.f32 %v2301_v28, %v5399_v23  ;;  %v2330_v15 = vpop.f32.mrf.mxu1 }
 0x7e8   : > { %v5622_v47 = vadd.f32 %v2330_v15, %v5407_v21 }
 0x7e9   : > { %v2389_v14 = vmul.f32 %v5619_v44, %v5619_v44 }
 0x7ea   : > { %v2390_v31 = vmul.f32 %v5622_v47, %v5622_v47 }
 0x7eb   : > { %v2421_v63 = vmul.f32 %v2389_v14, %v5619_v44 }
 0x7ec   : > { %v2422_v7 = vmul.f32 %v2390_v31, %v5622_v47  ;;  %v2272_v36 = vpop.f32.mrf.mxu3 }
 0x7ed   : > { %v2453_v26 = vmul.f32 0.044715, %v2421_v63  ;;  %v5631_v39 = vadd.f32 %v2272_v36, %v5429_v51  ;;  %v2359_v4 = vpop.f32.mrf.mxu2 }
 0x7ee   : > { %v2454_v56 = vmul.f32 0.044715, %v2422_v7  ;;  %v5634_v27 = vadd.f32 %v2359_v4, %v5439_v19  ;;  %v2303_v59 = vpop.f32.mrf.mxu0 }
 0x7ef   : > { %v2485_v1 = vadd.f32 %v2453_v26, %v5619_v44  ;;  %v2388_v0 = vmul.f32 %v5631_v39, %v5631_v39  ;;  %v5640_v33 = vadd.f32 %v2303_v59, %v5399_v23  ;;  %v2332_v3 = vpop.f32.mrf.mxu1 }
 0x7f0   : > { %v2486_v45 = vadd.f32 %v2454_v56, %v5622_v47  ;;  %v2391_v25 = vmul.f32 %v5634_v27, %v5634_v27  ;;  %v5646_v6 = vadd.f32 %v2332_v3, %v5407_v21 }
 0x7f1   : > { %v2517_v35 = vmul.f32 0.7978846, %v2485_v1  ;;  %v2420_v62 = vmul.f32 %v2388_v0, %v5631_v39  ;;  %v2393_v46 = vmul.f32 %v5640_v33, %v5640_v33 }
 0x7f2   : > { %v2518_v9 = vmul.f32 0.7978846, %v2486_v45  ;;  %v2423_v8 = vmul.f32 %v2391_v25, %v5634_v27  ;;  %v2394_v23 = vmul.f32 %v5646_v6, %v5646_v6 }
 0x7f3   : > { %v2452_v57 = vmul.f32 0.044715, %v2420_v62  ;;  %v2425_v43 = vmul.f32 %v2393_v46, %v5640_v33  ;;  %4066 = vtanh.f32 %v2517_v35 }
 0x7f4   : > { %v2455_v48 = vmul.f32 0.044715, %v2423_v8  ;;  %v2426_v12 = vmul.f32 %v2394_v23, %v5646_v6  ;;  %v2274_v21 = vpop.f32.mrf.mxu3  ;;  %4068 = vtanh.f32 %v2518_v9 }
 0x7f5   : > { %v2484_v17 = vadd.f32 %v2452_v57, %v5631_v39  ;;  %v2457_v11 = vmul.f32 0.044715, %v2425_v43  ;;  %v2275_v38 = vadd.f32 %v2274_v21, %v5429_v51  ;;  %v2361_v55 = vpop.f32.mrf.mxu2 }
 0x7f6   : > { %v2487_v53 = vadd.f32 %v2455_v48, %v5634_v27  ;;  %v2458_v54 = vmul.f32 0.044715, %v2426_v12  ;;  %v2362_v16 = vadd.f32 %v2361_v55, %v5439_v19 }
 0x7f7   : > { %v2516_v2 = vmul.f32 0.7978846, %v2484_v17  ;;  %v2489_v32 = vadd.f32 %v2457_v11, %v5640_v33  ;;  %v2392_v52 = vmul.f32 %v2275_v38, %v2275_v38 }
 0x7f8   : > { %v2519_v40 = vmul.f32 0.7978846, %v2487_v53  ;;  %v2490_v13 = vadd.f32 %v2458_v54, %v5646_v6  ;;  %v2395_v37 = vmul.f32 %v2362_v16, %v2362_v16 }
 0x7f9   : > { %4070 = vtanh.f32 %v2516_v2  ;;  %v2521_v34 = vmul.f32 0.7978846, %v2489_v32  ;;  %v2424_v58 = vmul.f32 %v2392_v52, %v2275_v38  ;;  %v4067_v42 = vpop.eup %4066 }
 0x7fa   : > { %4072 = vtanh.f32 %v2519_v40  ;;  %v2522_v51 = vmul.f32 0.7978846, %v2490_v13  ;;  %v2427_v30 = vmul.f32 %v2395_v37, %v2362_v16  ;;  %v4069_v29 = vpop.eup %4068  ;;  %v2581_v15 = vadd.f32 1.0, %v4067_v42 }
 0x7fb   : > { %4074 = vtanh.f32 %v2521_v34  ;;  %v2456_v5 = vmul.f32 0.044715, %v2424_v58  ;;  %v2582_v63 = vadd.f32 1.0, %v4069_v29 }
 0x7fc   : > { %4076 = vtanh.f32 %v2522_v51  ;;  %v2459_v19 = vmul.f32 0.044715, %v2427_v30  ;;  %v2613_v59 = vmul.f32 0.5, %v2581_v15 }
 0x7fd   : > { %v2488_v20 = vadd.f32 %v2456_v5, %v2275_v38  ;;  %v2614_v0 = vmul.f32 0.5, %v2582_v63 }
 0x7fe   : > { %v2491_v28 = vadd.f32 %v2459_v19, %v2362_v16  ;;  %v2645_v62 = vmul.f32 %v2613_v59, %v5619_v44 }
 0x7ff   : > { %v4071_v14 = vpop.eup %4070  ;;  %v2520_v31 = vmul.f32 0.7978846, %v2488_v20  ;;  %v2646_v8 = vmul.f32 %v2614_v0, %v5622_v47 }
 0x800   : > { %v4073_v7 = vpop.eup %4072  ;;  %v2523_v36 = vmul.f32 0.7978846, %v2491_v28  ;;  %v2580_v45 = vadd.f32 1.0, %v4071_v14 }
 0x801   : > { %v4075_v26 = vpop.eup %4074  ;;  %4078 = vtanh.f32 %v2520_v31  ;;  %v2583_v35 = vadd.f32 1.0, %v4073_v7 }
 0x802   : > { %v4077_v4 = vpop.eup %4076  ;;  %4080 = vtanh.f32 %v2523_v36  ;;  %v2585_v56 = vadd.f32 1.0, %v4075_v26  ;;  %v2612_v12 = vmul.f32 0.5, %v2580_v45 }
 0x803   : > { %v2586_v1 = vadd.f32 1.0, %v4077_v4  ;;  %v2615_v11 = vmul.f32 0.5, %v2583_v35 }
 0x804   : > { %v2617_v3 = vmul.f32 0.5, %v2585_v56  ;;  %v2644_v44 = vmul.f32 %v2612_v12, %v5631_v39 }
 0x805   : > { %v2618_v25 = vmul.f32 0.5, %v2586_v1 }
 0x806   : > { %v2649_v46 = vmul.f32 %v2617_v3, %v5640_v33  ;;  %v2647_v33 = vmul.f32 %v2615_v11, %v5634_v27 }
 0x807   : > { %v4079_v9 = vpop.eup %4078  ;;  %v2650_v23 = vmul.f32 %v2618_v25, %v5646_v6  ;;  %v5671_v6 = vld [vmem:[%s5803_s10] ss:$0 sm:$0xff] }
 0x808   : > { %v4081_v57 = vpop.eup %4080  ;;  %v2729_v43 = vpack.c.bf16 %v2649_v46, %v2645_v62  ;;  %v2584_v48 = vadd.f32 1.0, %v4079_v9 }
 0x809   : > { %v2730_v21 = vpack.c.bf16 %v2650_v23, %v2646_v8  ;;  %v2587_v17 = vadd.f32 1.0, %v4081_v57 }
 0x80a   : > { %2980 = vmatmul.bf16.gmra.mxu0 %v2729_v43  ;;  %v2616_v55 = vmul.f32 0.5, %v2584_v48 }
 0x80b   : > { %3009 = vmatmul.bf16.gmra.mxu1 %v2730_v21  ;;  %v2619_v53 = vmul.f32 0.5, %v2587_v17 }
 0x80c   : > { %v2648_v54 = vmul.f32 %v2616_v55, %v2275_v38 }
 0x80d   : > { %v2651_v2 = vmul.f32 %v2619_v53, %v2362_v16  ;;  %v2966_v52 = vpop.f32.mrf.mxu0 }
 0x80e   : > { %v2728_v47 = vpack.c.bf16 %v2648_v54, %v2644_v44  ;;  %v2995_v37 = vpop.f32.mrf.mxu1 }
 0x80f   : > { %v2731_v32 = vpack.c.bf16 %v2651_v2, %v2647_v33 }
 0x810   : > { %2951 = vmatmul.bf16.gmra.mxu3 %v2728_v47 }
 0x811   : > { %3038 = vmatmul.bf16.gmra.mxu2 %v2731_v32 }
 0x815   : > { %v2968_v30 = vpop.f32.mrf.mxu0 }
 0x816   : > { %v2997_v5 = vpop.f32.mrf.mxu1 }
 0x819   : > { %v2937_v40 = vpop.f32.mrf.mxu3 }
 0x81a   : > { %v2938_v13 = vadd.f32 %v5671_v6, %v2937_v40  ;;  %v3024_v39 = vpop.f32.mrf.mxu2 }
 0x81c   : > { %v2967_v34 = vadd.f32 %v2966_v52, %v2938_v13 }
 0x81e   : > { %v2996_v38 = vadd.f32 %v2995_v37, %v2967_v34 }
 0x820   : > { %v3025_v58 = vadd.f32 %v3024_v39, %v2996_v38 }
 0x821   : > { %v2939_v27 = vpop.f32.mrf.mxu3 }
 0x822   : > { %v2940_v16 = vadd.f32 %v5671_v6, %v2939_v27  ;;  %v3044_v51 = vadd.f32 %v3025_v58, %v5281_v49  ;;  %v3026_v19 = vpop.f32.mrf.mxu2 }
 0x824   : > { %v2969_v42 = vadd.f32 %v2968_v30, %v2940_v16  ;;  %3054 = vadd.xlane.f32.xlu1 %v3044_v51 }
 0x826   : > { %v2998_v29 = vadd.f32 %v2997_v5, %v2969_v42 }
 0x828   : > { %v3027_v20 = vadd.f32 %v3026_v19, %v2998_v29 }
 0x82a   : > { %v5677_v28 = vadd.f32 %v3027_v20, %v5284_v41 }
 0x82c   : > { %3056 = vadd.xlane.f32.xlu0 %v5677_v28 }
 0x849   : > { %v2971_v15 = vpop.f32.mrf.mxu0 }
 0x84d   : > { %v3000_v14 = vpop.f32.mrf.mxu1 }
 0x851   : > { %v2973_v26 = vpop.f32.mrf.mxu0 }
 0x855   : > { %v3002_v56 = vpop.f32.mrf.mxu1 }
 0x858   : > { %v2942_v31 = vpop.f32.mrf.mxu3 }
 0x859   : > { %v2943_v63 = vadd.f32 %v5671_v6, %v2942_v31  ;;  %v3029_v7 = vpop.f32.mrf.mxu2  ;;  %v2976_v35 = vpop.f32.mrf.mxu0 }
 0x85b   : > { %v2972_v36 = vadd.f32 %v2971_v15, %v2943_v63 }
 0x85d   : > { %v3001_v49 = vadd.f32 %v3000_v14, %v2972_v36  ;;  %v3005_v8 = vpop.f32.mrf.mxu1 }
 0x85f   : > { %v3030_v4 = vadd.f32 %v3029_v7, %v3001_v49 }
 0x860   : > { %v2944_v59 = vpop.f32.mrf.mxu3 }
 0x861   : > { %v2945_v1 = vadd.f32 %v5671_v6, %v2944_v59  ;;  %v3046_v0 = vadd.f32 %v3030_v4, %v5297_v22  ;;  %v3031_v41 = vpop.f32.mrf.mxu2  ;;  %v2978_v17 = vpop.f32.mrf.mxu0 }
 0x863   : > { %v2974_v3 = vadd.f32 %v2973_v26, %v2945_v1  ;;  %3058 = vadd.xlane.f32.xlu2 %v3046_v0 }
 0x865   : > { %v3003_v45 = vadd.f32 %v3002_v56, %v2974_v3  ;;  %v3007_v55 = vpop.f32.mrf.mxu1 }
 0x867   : > { %v3032_v25 = vadd.f32 %v3031_v41, %v3003_v45 }
 0x868   : > { %v2947_v62 = vpop.f32.mrf.mxu3 }
 0x869   : > { %v2948_v46 = vadd.f32 %v5671_v6, %v2947_v62  ;;  %v3047_v9 = vadd.f32 %v3032_v25, %v5300_v18  ;;  %v3034_v57 = vpop.f32.mrf.mxu2 }
 0x86b   : > { %v2977_v23 = vadd.f32 %v2976_v35, %v2948_v46  ;;  %3060 = vadd.xlane.f32.xlu1 %v3047_v9 }
 0x86d   : > { %v3006_v43 = vadd.f32 %v3005_v8, %v2977_v23 }
 0x86f   : > { %v3035_v48 = vadd.f32 %v3034_v57, %v3006_v43 }
 0x870   : > { %v2949_v12 = vpop.f32.mrf.mxu3 }
 0x871   : > { %v2950_v22 = vadd.f32 %v5671_v6, %v2949_v12  ;;  %v3048_v21 = vadd.f32 %v3035_v48, %v5310_v24  ;;  %v3036_v44 = vpop.f32.mrf.mxu2 }
 0x873   : > { %v2979_v11 = vadd.f32 %v2978_v17, %v2950_v22  ;;  %3062 = vadd.xlane.f32.xlu0 %v3048_v21 }
 0x875   : > { %v3008_v53 = vadd.f32 %v3007_v55, %v2979_v11 }
 0x877   : > { %v3037_v54 = vadd.f32 %v3036_v44, %v3008_v53 }
 0x879   : > { %v3049_v18 = vadd.f32 %v3037_v54, %v5313_v10 }
 0x87b   : > { %3064 = vadd.xlane.f32.xlu2 %v3049_v18 }
 0x887   : > { %v2981_v33 = vpop.f32.mrf.mxu0 }
 0x888   : > { %v3010_v32 = vpop.f32.mrf.mxu1 }
 0x88f   : > { %v2983_v16 = vpop.f32.mrf.mxu0 }
 0x890   : > { %v3012_v42 = vpop.f32.mrf.mxu1 }
 0x893   : > { %v2952_v2 = vpop.f32.mrf.mxu3 }
 0x894   : > { %v2953_v47 = vadd.f32 %v5671_v6, %v2952_v2  ;;  %v3039_v40 = vpop.f32.mrf.mxu2  ;;  %v5738_v2 = vld [vmem:[%s5804_s11] ss:$0 sm:$0xff] }
 0x896   : > { %v2982_v52 = vadd.f32 %v2981_v33, %v2953_v47 }
 0x897   : > { %v3055_v13 = vpop.xlane.xlu1 %3054 }
 0x898   : > { %v3011_v37 = vadd.f32 %v3010_v32, %v2982_v52  ;;  %v3070_v24 = vmul.f32 %v3055_v13, %v5019_v61  ;;  %v5743_v52 = vld [vmem:[%s5805_s12] ss:$0 sm:$0xff] }
 0x89a   : > { %v3040_v34 = vadd.f32 %v3039_v40, %v3011_v37  ;;  %v5690_v39 = vsub.f32 %v3044_v51, %v3070_v24 }
 0x89b   : > { %v2954_v38 = vpop.f32.mrf.mxu3 }
 0x89c   : > { %v2955_v58 = vadd.f32 %v5671_v6, %v2954_v38  ;;  %v3086_v10 = vmul.f32 %v5690_v39, %v5690_v39  ;;  %v3050_v27 = vadd.f32 %v3040_v34, %v5377_v60  ;;  %v3041_v20 = vpop.f32.mrf.mxu2 }
 0x89e   : > { %v2984_v30 = vadd.f32 %v2983_v16, %v2955_v58  ;;  %3094 = vadd.xlane.f32.xlu2 %v3086_v10  ;;  %3066 = vadd.xlane.f32.xlu1 %v3050_v27 }
 0x89f   : > { %v3057_v5 = vpop.xlane.xlu0 %3056 }
 0x8a0   : > { %v3013_v29 = vadd.f32 %v3012_v42, %v2984_v30  ;;  %v3071_v19 = vmul.f32 %v3057_v5, %v5019_v61 }
 0x8a2   : > { %v3042_v51 = vadd.f32 %v3041_v20, %v3013_v29  ;;  %v5698_v15 = vsub.f32 %v5677_v28, %v3071_v19 }
 0x8a4   : > { %v3051_v6 = vadd.f32 %v3042_v51, %v5380_v50  ;;  %v3087_v14 = vmul.f32 %v5698_v15, %v5698_v15 }
 0x8a6   : > { %3068 = vadd.xlane.f32.xlu0 %v3051_v6  ;;  %3096 = vadd.xlane.f32.xlu1 %v3087_v14 }
 0x8d6   : > { %v3059_v60 = vpop.xlane.xlu2 %3058 }
 0x8d7   : > { %v3072_v31 = vmul.f32 %v3059_v60, %v5019_v61 }
 0x8d9   : > { %v5704_v63 = vsub.f32 %v3046_v0, %v3072_v31 }
 0x8db   : > { %v3088_v7 = vmul.f32 %v5704_v63, %v5704_v63 }
 0x8dd   : > { %3098 = vadd.xlane.f32.xlu0 %v3088_v7 }
 0x8de   : > { %v3061_v36 = vpop.xlane.xlu1 %3060 }
 0x8df   : > { %v3073_v28 = vmul.f32 %v3061_v36, %v5019_v61 }
 0x8e1   : > { %v5709_v49 = vsub.f32 %v3047_v9, %v3073_v28 }
 0x8e3   : > { %v3089_v50 = vmul.f32 %v5709_v49, %v5709_v49 }
 0x8e5   : > { %3100 = vadd.xlane.f32.xlu2 %v3089_v50 }
 0x8e6   : > { %v3063_v26 = vpop.xlane.xlu0 %3062 }
 0x8e7   : > { %v3074_v4 = vmul.f32 %v3063_v26, %v5019_v61 }
 0x8e9   : > { %v5714_v56 = vsub.f32 %v3048_v21, %v3074_v4 }
 0x8eb   : > { %v3090_v59 = vmul.f32 %v5714_v56, %v5714_v56 }
 0x8ed   : > { %3102 = vadd.xlane.f32.xlu1 %v3090_v59 }
 0x8ee   : > { %v3065_v1 = vpop.xlane.xlu2 %3064 }
 0x8ef   : > { %v3075_v0 = vmul.f32 %v3065_v1, %v5019_v61 }
 0x8f1   : > { %v5719_v41 = vsub.f32 %v3049_v18, %v3075_v0 }
 0x8f3   : > { %v3091_v3 = vmul.f32 %v5719_v41, %v5719_v41 }
 0x8f5   : > { %3104 = vadd.xlane.f32.xlu0 %v3091_v3 }
 0x911   : > { %v3095_v45 = vpop.xlane.xlu2 %3094  ;;  %v3067_v25 = vpop.xlane.xlu1 %3066 }
 0x912   : > { %v3110_v35 = vmul.f32 %v3095_v45, %v5019_v61  ;;  %v3076_v62 = vmul.f32 %v3067_v25, %v5019_v61 }
 0x914   : > { %v3118_v46 = vadd.f32 1e-05, %v3110_v35  ;;  %v5725_v9 = vsub.f32 %v3050_v27, %v3076_v62 }
 0x916   : > { %4082 = vrsqrt.f32 %v3118_v46  ;;  %v3092_v8 = vmul.f32 %v5725_v9, %v5725_v9  ;;  %vm3132_vm12 = vweird.f32 %v3118_v46 }
 0x918   : > { %3106 = vadd.xlane.f32.xlu2 %v3092_v8 }
 0x919   : > { %v3069_v23 = vpop.xlane.xlu0 %3068  ;;  %v3097_v57 = vpop.xlane.xlu1 %3096 }
 0x91a   : > { %v3077_v43 = vmul.f32 %v3069_v23, %v5019_v61  ;;  %v3111_v48 = vmul.f32 %v3097_v57, %v5019_v61 }
 0x91c   : > { %v4083_v12 = vpop.eup %4082  ;;  %v5731_v22 = vsub.f32 %v3051_v6, %v3077_v43  ;;  %v3119_v21 = vadd.f32 1e-05, %v3111_v48 }
 0x91d   : > { %v3127_v17 = vmul.f32 %v4083_v12, %v3118_v46  ;;  %vm3133_vm11 = vweird.f32 %v4083_v12 }
 0x91e   : > { %4084 = vrsqrt.f32 %v3119_v21  ;;  %v3093_v11 = vmul.f32 %v5731_v22, %v5731_v22  ;;  %vm3134_vm13 = vmor %vm3132_vm12, %vm3133_vm11  ;;  %vm3142_vm15 = vweird.f32 %v3119_v21 }
 0x91f   : > { %v3128_v55 = vmul.f32 %v4083_v12, %v3127_v17 }
 0x920   : > { %3108 = vadd.xlane.f32.xlu1 %v3093_v11 }
 0x921   : > { %v3129_v53 = vmul.f32 0.5, %v3128_v55 }
 0x923   : > { %v3130_v44 = vsub.f32 1.5, %v3129_v53 }
 0x924   : > { %v4085_v54 = vpop.eup %4084 }
 0x925   : > { %v3131_v18 = vmul.f32 %v4083_v12, %v3130_v44  ;;  %v3137_v33 = vmul.f32 %v4085_v54, %v3119_v21  ;;  %vm3143_vm14 = vweird.f32 %v4085_v54 }
 0x926   : > { %vm3144_vm0 = vmor %vm3142_vm15, %vm3143_vm14 }
 0x927   : > { %v3135_v47 = vsel %vm3134_vm13, %v4083_v12, %v3131_v18  ;;  %v3138_v32 = vmul.f32 %v4085_v54, %v3137_v33 }
 0x928   : > { %v3206_v40 = vmul.f32 %v3135_v47, %v5690_v39 }
 0x929   : > { %v3139_v13 = vmul.f32 0.5, %v3138_v32 }
 0x92a   : > { %v3217_v37 = vmul.f32 %v5738_v2, %v3206_v40 }
 0x92b   : > { %v3140_v24 = vsub.f32 1.5, %v3139_v13 }
 0x92c   : > { %v3228_v34 = vadd.f32 %v5743_v52, %v3217_v37 }
 0x92d   : > { %v3141_v38 = vmul.f32 %v4085_v54, %v3140_v24 }
 0x92e   : > { %3236 = vst [vmem:[%s5752_s24] sm:$0xff] %v3228_v34 }
 0x92f   : > { %v3145_v39 = vsel %vm3144_vm0, %v4085_v54, %v3141_v38 }
 0x930   : > { %v3207_v58 = vmul.f32 %v3145_v39, %v5698_v15 }
 0x932   : > { %v3218_v10 = vmul.f32 %v5738_v2, %v3207_v58 }
 0x934   : > { %v3229_v27 = vadd.f32 %v5743_v52, %v3218_v10 }
 0x936   : > { %3237 = vst [vmem:[%s5752_s24 + $0x8] sm:$0xff] %v3229_v27 }
 0x950   : > { %v3099_v16 = vpop.xlane.xlu0 %3098 }
 0x951   : > { %v3112_v30 = vmul.f32 %v3099_v16, %v5019_v61 }
 0x953   : > { %v3120_v42 = vadd.f32 1e-05, %v3112_v30 }
 0x955   : > { %4086 = vrsqrt.f32 %v3120_v42  ;;  %vm3152_vm2 = vweird.f32 %v3120_v42 }
 0x958   : > { %v3101_v5 = vpop.xlane.xlu2 %3100 }
 0x959   : > { %v3113_v29 = vmul.f32 %v3101_v5, %v5019_v61 }
 0x95b   : > { %v4087_v19 = vpop.eup %4086  ;;  %v3121_v20 = vadd.f32 1e-05, %v3113_v29 }
 0x95c   : > { %v3147_v51 = vmul.f32 %v4087_v19, %v3120_v42  ;;  %vm3153_vm1 = vweird.f32 %v4087_v19 }
 0x95d   : > { %4088 = vrsqrt.f32 %v3121_v20  ;;  %vm3154_vm3 = vmor %vm3152_vm2, %vm3153_vm1  ;;  %vm3162_vm5 = vweird.f32 %v3121_v20 }
 0x95e   : > { %v3148_v6 = vmul.f32 %v4087_v19, %v3147_v51 }
 0x960   : > { %v3149_v14 = vmul.f32 0.5, %v3148_v6  ;;  %v3103_v15 = vpop.xlane.xlu1 %3102 }
 0x961   : > { %v3114_v60 = vmul.f32 %v3103_v15, %v5019_v61 }
 0x962   : > { %v3150_v31 = vsub.f32 1.5, %v3149_v14 }
 0x963   : > { %v4089_v7 = vpop.eup %4088  ;;  %v3122_v36 = vadd.f32 1e-05, %v3114_v60 }
 0x964   : > { %v3151_v28 = vmul.f32 %v4087_v19, %v3150_v31  ;;  %v3157_v50 = vmul.f32 %v4089_v7, %v3121_v20  ;;  %vm3163_vm4 = vweird.f32 %v4089_v7 }
 0x965   : > { %4090 = vrsqrt.f32 %v3122_v36  ;;  %vm3164_vm6 = vmor %vm3162_vm5, %vm3163_vm4  ;;  %vm3172_vm8 = vweird.f32 %v3122_v36 }
 0x966   : > { %v3155_v26 = vsel %vm3154_vm3, %v4087_v19, %v3151_v28  ;;  %v3158_v4 = vmul.f32 %v4089_v7, %v3157_v50 }
 0x967   : > { %v3208_v59 = vmul.f32 %v3155_v26, %v5704_v63 }
 0x968   : > { %v3159_v1 = vmul.f32 0.5, %v3158_v4  ;;  %v3105_v0 = vpop.xlane.xlu0 %3104 }
 0x969   : > { %v3219_v3 = vmul.f32 %v5738_v2, %v3208_v59  ;;  %v3115_v45 = vmul.f32 %v3105_v0, %v5019_v61 }
 0x96a   : > { %v3160_v25 = vsub.f32 1.5, %v3159_v1 }
 0x96b   : > { %v4091_v35 = vpop.eup %4090  ;;  %v3230_v62 = vadd.f32 %v5743_v52, %v3219_v3  ;;  %v3123_v46 = vadd.f32 1e-05, %v3115_v45 }
 0x96c   : > { %v3161_v8 = vmul.f32 %v4089_v7, %v3160_v25  ;;  %v3167_v23 = vmul.f32 %v4091_v35, %v3122_v36  ;;  %vm3173_vm7 = vweird.f32 %v4091_v35 }
 0x96d   : > { %3238 = vst [vmem:[%s5752_s24 + $0x10] sm:$0xff] %v3230_v62  ;;  %4092 = vrsqrt.f32 %v3123_v46  ;;  %vm3174_vm9 = vmor %vm3172_vm8, %vm3173_vm7  ;;  %vm3182_vm11 = vweird.f32 %v3123_v46 }
 0x96e   : > { %v3165_v63 = vsel %vm3164_vm6, %v4089_v7, %v3161_v8  ;;  %v3168_v57 = vmul.f32 %v4091_v35, %v3167_v23 }
 0x96f   : > { %v3209_v43 = vmul.f32 %v3165_v63, %v5709_v49 }
 0x970   : > { %v3169_v48 = vmul.f32 0.5, %v3168_v57 }
 0x971   : > { %v3220_v12 = vmul.f32 %v5738_v2, %v3209_v43 }
 0x972   : > { %v3170_v21 = vsub.f32 1.5, %v3169_v48 }
 0x973   : > { %v4093_v17 = vpop.eup %4092  ;;  %v3231_v11 = vadd.f32 %v5743_v52, %v3220_v12 }
 0x974   : > { %v3171_v55 = vmul.f32 %v4091_v35, %v3170_v21  ;;  %v3177_v53 = vmul.f32 %v4093_v17, %v3123_v46  ;;  %vm3183_vm10 = vweird.f32 %v4093_v17 }
 0x975   : > { %3239 = vst [vmem:[%s5752_s24 + $0x18] sm:$0xff] %v3231_v11  ;;  %vm3184_vm12 = vmor %vm3182_vm11, %vm3183_vm10 }
 0x976   : > { %v3175_v44 = vsel %vm3174_vm9, %v4091_v35, %v3171_v55  ;;  %v3178_v54 = vmul.f32 %v4093_v17, %v3177_v53 }
 0x977   : > { %v3210_v18 = vmul.f32 %v3175_v44, %v5714_v56 }
 0x978   : > { %v3179_v49 = vmul.f32 0.5, %v3178_v54 }
 0x979   : > { %v3221_v33 = vmul.f32 %v5738_v2, %v3210_v18 }
 0x97a   : > { %v3180_v47 = vsub.f32 1.5, %v3179_v49 }
 0x97b   : > { %v3232_v32 = vadd.f32 %v5743_v52, %v3221_v33 }
 0x97c   : > { %v3181_v40 = vmul.f32 %v4093_v17, %v3180_v47 }
 0x97d   : > { %3240 = vst [vmem:[%s5752_s24 + $0x20] sm:$0xff] %v3232_v32 }
 0x97e   : > { %v3185_v13 = vsel %vm3184_vm12, %v4093_v17, %v3181_v40 }
 0x97f   : > { %v3211_v37 = vmul.f32 %v3185_v13, %v5719_v41 }
 0x981   : > { %v3222_v24 = vmul.f32 %v5738_v2, %v3211_v37 }
 0x983   : > { %v3233_v34 = vadd.f32 %v5743_v52, %v3222_v24 }
 0x985   : > { %3241 = vst [vmem:[%s5752_s24 + $0x28] sm:$0xff] %v3233_v34 }
 0x98b   : > { %v3107_v56 = vpop.xlane.xlu2 %3106 }
 0x98c   : > { %v3116_v38 = vmul.f32 %v3107_v56, %v5019_v61 }
 0x98e   : > { %v3124_v39 = vadd.f32 1e-05, %v3116_v38 }
 0x990   : > { %4094 = vrsqrt.f32 %v3124_v39  ;;  %vm3192_vm14 = vweird.f32 %v3124_v39 }
 0x993   : > { %v3109_v58 = vpop.xlane.xlu1 %3108 }
 0x994   : > { %v3117_v10 = vmul.f32 %v3109_v58, %v5019_v61 }
 0x996   : > { %v4095_v27 = vpop.eup %4094  ;;  %v3125_v16 = vadd.f32 1e-05, %v3117_v10 }
 0x997   : > { %v3187_v30 = vmul.f32 %v4095_v27, %v3124_v39  ;;  %vm3193_vm13 = vweird.f32 %v4095_v27 }
 0x998   : > { %4096 = vrsqrt.f32 %v3125_v16  ;;  %vm3194_vm15 = vmor %vm3192_vm14, %vm3193_vm13  ;;  %vm3202_vm1 = vweird.f32 %v3125_v16 }
 0x999   : > { %v3188_v42 = vmul.f32 %v4095_v27, %v3187_v30 }
 0x99b   : > { %v3189_v5 = vmul.f32 0.5, %v3188_v42 }
 0x99d   : > { %v3190_v41 = vsub.f32 1.5, %v3189_v5 }
 0x99e   : > { %v4097_v29 = vpop.eup %4096 }
 0x99f   : > { %v3191_v19 = vmul.f32 %v4095_v27, %v3190_v41  ;;  %v3197_v20 = vmul.f32 %v4097_v29, %v3125_v16  ;;  %vm3203_vm0 = vweird.f32 %v4097_v29 }
 0x9a0   : > { %vm3204_vm2 = vmor %vm3202_vm1, %vm3203_vm0 }
 0x9a1   : > { %v3195_v51 = vsel %vm3194_vm15, %v4095_v27, %v3191_v19  ;;  %v3198_v6 = vmul.f32 %v4097_v29, %v3197_v20 }
 0x9a2   : > { %v3212_v14 = vmul.f32 %v3195_v51, %v5725_v9 }
 0x9a3   : > { %v3199_v61 = vmul.f32 0.5, %v3198_v6 }
 0x9a4   : > { %v3223_v15 = vmul.f32 %v5738_v2, %v3212_v14 }
 0x9a5   : > { %v3200_v60 = vsub.f32 1.5, %v3199_v61 }
 0x9a6   : > { %v3234_v31 = vadd.f32 %v5743_v52, %v3223_v15 }
 0x9a7   : > { %v3201_v7 = vmul.f32 %v4097_v29, %v3200_v60 }
 0x9a8   : > { %3242 = vst [vmem:[%s5752_s24 + $0x30] sm:$0xff] %v3234_v31 }
 0x9a9   : > { %v3205_v36 = vsel %vm3204_vm2, %v4097_v29, %v3201_v7 }
 0x9aa   : > { %v3213_v28 = vmul.f32 %v3205_v36, %v5731_v22 }
 0x9ac   : > { %v3224_v50 = vmul.f32 %v5738_v2, %v3213_v28 }
 0x9ae   : > { %v3235_v26 = vadd.f32 %v5743_v52, %v3224_v50 }
 0x9b0   : > { %3243 = vst [vmem:[%s5752_s24 + $0x38] sm:$0xff] %v3235_v26 }
 0x9b1 PF: > { %s23_s25 = sadd.s32 1, %s4112_s25  }
 0x9b2   : > { %p20_p4 = scmp.ge.s32.totalorder %s23_s25, 4  }
 0x9b4   :  { %22 = sbr.rel (!%p20_p4) target bundleno = 1 (0x1), region = 102 }

</bundles_post_ra>
